<compile_context>
chip_gen: v7x
topology: tpu7x:2x2x1
jax: 0.10.0
libtpu: 0.0.40
codegen_flags: <defaults>
</compile_context>

<pallas_src>
from functools import partial

import jax
import jax.numpy as jnp
from jax.experimental import pallas as pl
from jax.experimental.pallas import tpu as pltpu


# ----------------------------------------------------------------------------
# Fused conv-GEMM kernel: bf16 MXU matmul + (BN-stats | sigmoid) epilogue.
# ----------------------------------------------------------------------------
def fused_conv_kernel(a_ref, b_ref, *rest, nk, emit_stats, apply_sigmoid):
    if emit_stats:
        o_ref, sum_ref, sq_ref = rest[0], rest[1], rest[2]
        acc_ref = rest[3] if nk > 1 else None
    else:
        o_ref = rest[0]
        sum_ref = sq_ref = None
        acc_ref = rest[1] if nk > 1 else None

    part = jnp.dot(a_ref[...], b_ref[...], preferred_element_type=jnp.float32)

    def _finish(r):
        if emit_stats:
            # Per-(i, j)-tile partial batch statistics, from the f32 accumulator.
            # Block is 8 sublanes tall to stay (8, 128)-tile friendly; row 0
            # carries the partials, rows 1..7 are zero.
            sum_ref[...] = jnp.zeros_like(sum_ref)
            sq_ref[...] = jnp.zeros_like(sq_ref)
            sum_ref[0:1, :] = jnp.sum(r, axis=0, keepdims=True)
            sq_ref[0:1, :] = jnp.sum(r * r, axis=0, keepdims=True)
        if apply_sigmoid:
            r = jax.nn.sigmoid(r)
        o_ref[...] = r.astype(o_ref.dtype)

    if nk == 1:
        # Single K block: no accumulator scratch, write straight through.
        _finish(part)
    else:
        @pl.when(pl.program_id(2) == 0)
        def _():
            acc_ref[...] = jnp.zeros_like(acc_ref)

        acc_ref[...] += part

        @pl.when(pl.program_id(2) == nk - 1)
        def _():
            _finish(acc_ref[...])


# ----------------------------------------------------------------------------
# Tile-size selection helpers
# ----------------------------------------------------------------------------
def _rup(x, m):
    return (x + m - 1) // m * m


def _pick_tn(n_p):
    # >= 2 N blocks for wide-N layers so both v7x TensorCores get work without
    # re-streaming the (large) weight blocks per M tile.
    if n_p >= 256:
        half = n_p // 2
        if half % 128 == 0:
            return min(half, 256)
        if n_p % 128 == 0:
            return 128
    return n_p


def _pick_tm(m, want_multi):
    """Returns (TM, padded M). TM capped at 1024; prefer >= 2 M blocks when the
    N axis has a single block. Non-multiple-of-8 M is zero-padded (stats-safe)."""
    cands = (1024, 512, 256, 128, 64, 32, 16, 8)
    if want_multi:
        for c in cands:
            if m % c == 0 and m // c >= 2:
                return c, m
    for c in cands:
        if m % c == 0:
            return c, m
    mp = _rup(m, 8)
    for c in cands:
        if mp % c == 0:
            return c, mp
    return 8, _rup(m, 8)


def _pick_tk(k, tn):
    """Returns (TK, padded K). Keeps the (TK, TN) bf16 weight block <= ~1 MiB so
    double buffering stays far inside v7x's 32 MiB scoped-VMEM default."""
    budget = max(128, (1 << 20) // (2 * tn))
    if k <= budget:
        return k, k
    for c in (8192, 4096, 2048, 1024, 512, 256, 128):
        if c <= budget and k % c == 0:
            return c, k
    c = max(128, min(budget // 128 * 128, 2048))
    return c, _rup(k, c)


# ----------------------------------------------------------------------------
# Pallas wrapper: one call per conv layer.
# ----------------------------------------------------------------------------
def fused_conv_gemm(a, b, *, emit_stats, apply_sigmoid):
    """(M,K) @ (K,N) bf16 MXU GEMM with f32 accumulation.
    emit_stats: also return per-channel sum / sum-of-squares (f32) of the f32
    result (for training-mode BatchNorm).  apply_sigmoid: fuse sigmoid into the
    epilogue.  Output dtype is bf16 for stats layers, f32 for the sigmoid head.
    Returns (out[M,N], sum[N] | None, sumsq[N] | None)."""
    M, K = a.shape
    Kb, N = b.shape
    assert K == Kb
    a = a.astype(jnp.bfloat16)
    b = b.astype(jnp.bfloat16)

    # Lane-pad only narrow output-channel counts (the 1-channel head); zero
    # weight columns keep padded-channel outputs/stats exactly zero.
    Np = N if N % 8 == 0 else _rup(N, 128)
    if Np != N:
        b = jnp.pad(b, ((0, 0), (0, Np - N)))

    TN = _pick_tn(Np)
    nN = Np // TN

    TM, Mp = _pick_tm(M, want_multi=(nN == 1))
    if Mp != M:
        a = jnp.pad(a, ((0, Mp - M), (0, 0)))      # zero rows: stats-transparent
    nM = Mp // TM

    TK, Kp = _pick_tk(K, TN)
    if Kp != K:
        a = jnp.pad(a, ((0, 0), (0, Kp - K)))
        b = jnp.pad(b, ((0, Kp - K), (0, 0)))
    nk = Kp // TK

    out_dtype = jnp.float32 if apply_sigmoid else jnp.bfloat16

    in_specs = [pl.BlockSpec((TM, TK), lambda i, j, k: (i, k)),
                pl.BlockSpec((TK, TN), lambda i, j, k: (k, j))]
    out_shape = [jax.ShapeDtypeStruct((Mp, Np), out_dtype)]
    out_specs = [pl.BlockSpec((TM, TN), lambda i, j, k: (i, j))]
    if emit_stats:
        out_shape += [jax.ShapeDtypeStruct((nM * 8, Np), jnp.float32)] * 2
        out_specs += [pl.BlockSpec((8, TN), lambda i, j, k: (i, j))] * 2

    scratch = [pltpu.VMEM((TM, TN), jnp.float32)] if nk > 1 else []

    kernel = partial(fused_conv_kernel, nk=nk,
                     emit_stats=emit_stats, apply_sigmoid=apply_sigmoid)

    res = pl.pallas_call(
        kernel,
        out_shape=tuple(out_shape),
        grid_spec=pltpu.PrefetchScalarGridSpec(
            num_scalar_prefetch=0,
            grid=(nM, nN, nk),
            in_specs=in_specs,
            out_specs=tuple(out_specs),
            scratch_shapes=scratch),
        compiler_params=pltpu.CompilerParams(
            dimension_semantics=("parallel", "parallel", "arbitrary")),
    )(a, b)

    if emit_stats:
        o, s8, q8 = res
        s = jnp.sum(s8, axis=0)[:N]
        q = jnp.sum(q8, axis=0)[:N]
    else:
        o = res[0] if isinstance(res, (tuple, list)) else res
        s = q = None
    return o[:M, :N], s, q


# ----------------------------------------------------------------------------
# Convolution lowering glue: (optional BN-affine + LeakyReLU) + pad + im2col.
# The elementwise activation is composed here so XLA fuses it into the im2col
# producer (no standalone activation pass, no extra HBM round trip).
# ----------------------------------------------------------------------------
def _act_pad_im2col(h, scale_c, shift_c, k=4, stride=2):
    n, hh, ww, c = h.shape
    oh, ow = hh // stride, ww // stride
    if scale_c is not None:
        x = h.astype(jnp.float32) * scale_c + shift_c     # BN affine
        x = jnp.maximum(x, 0.2 * x).astype(jnp.bfloat16)  # LeakyReLU(0.2)
    else:
        x = h
    xp = jnp.pad(x, ((0, 0), (1, 1), (1, 1), (0, 0)))     # p=1, post-activation
    cols = []
    for kh in range(k):
        for kw in range(k):
            cols.append(xp[:, kh:kh + stride * (oh - 1) + 1:stride,
                           kw:kw + stride * (ow - 1) + 1:stride, :])
    patches = jnp.stack(cols, axis=3)                     # (n, oh, ow, k*k, c)
    return patches.reshape(n * oh * ow, k * k * c), (n, oh, ow)


# ----------------------------------------------------------------------------
# Model: parameters + forward
# ----------------------------------------------------------------------------
CH = [(3, 64), (64, 128), (128, 256), (256, 512), (512, 1)]


def init_params(key):
    params = {"w": [], "g": [], "b": []}
    keys = jax.random.split(key, len(CH))
    for i, (cin, cout) in enumerate(CH):
        params["w"].append(
            0.02 * jax.random.normal(keys[i], (cout, cin, 4, 4), jnp.float32))
        if i < len(CH) - 1:   # last conv has Sigmoid, no BN
            params["g"].append(jnp.ones((cout,), jnp.float32))
            params["b"].append(jnp.zeros((cout,), jnp.float32))
    return params


def disc_model_forward(x_nchw, params, eps=1e-5):
    # NCHW f32 -> NHWC bf16 (GEMM inputs bf16; accumulation / stats stay f32).
    h = jnp.transpose(x_nchw, (0, 2, 3, 1)).astype(jnp.bfloat16)
    scale_c = shift_c = None

    for i, (cin, cout) in enumerate(CH):
        last = (i == len(CH) - 1)
        a, (n, oh, ow) = _act_pad_im2col(h, scale_c, shift_c)      # (M, 16*cin)
        wm = jnp.transpose(params["w"][i], (2, 3, 1, 0)).reshape(16 * cin, cout)

        y, s, ss = fused_conv_gemm(a, wm, emit_stats=not last, apply_sigmoid=last)

        if last:
            out = y.reshape(n, oh, ow, cout)
            return jnp.transpose(out, (0, 3, 1, 2)).astype(jnp.float32)  # NCHW

        # Training-mode BatchNorm statistics (biased variance) of the raw conv
        # output; the affine + LeakyReLU are applied in the next layer's im2col.
        m_rows = n * oh * ow
        mean = s / m_rows
        var = jnp.maximum(ss / m_rows - mean * mean, 0.0)
        scale_c = params["g"][i] * jax.lax.rsqrt(var + eps)
        shift_c = params["b"][i] - mean * scale_c
        h = y.reshape(n, oh, ow, cout)       # raw bf16 conv output


if __name__ == "__main__":
    key = jax.random.PRNGKey(0)
    k_param, k_x = jax.random.split(key)
    params = init_params(k_param)

    # 5 stride-2 downsamples: 64 -> 32 -> 16 -> 8 -> 4 -> 2.
    x = jax.random.normal(k_x, (2, 3, 64, 64), jnp.float32)

    fwd = jax.jit(disc_model_forward)
    out = jax.block_until_ready(fwd(x, params))

    assert out.shape == (2, 1, 2, 2), out.shape
    assert bool(jnp.all(jnp.isfinite(out)))
    assert bool(jnp.all((out >= 0.0) & (out <= 1.0)))  # sigmoid range
    print("KERNEL_OK")
</pallas_src>

<mosaic_0001>
module attributes {stable_mosaic.version = 11 : i64} {
  func.func @fused_conv_kernel(%arg0: i32, %arg1: i32, %arg2: i32, %arg3: memref<1024x48xbf16, #tpu.memory_space<vmem>>, %arg4: memref<48x64xbf16, #tpu.memory_space<vmem>>, %arg5: memref<1024x64xbf16, #tpu.memory_space<vmem>>, %arg6: memref<8x64xf32, #tpu.memory_space<vmem>>, %arg7: memref<8x64xf32, #tpu.memory_space<vmem>>) attributes {dimension_semantics = [#tpu.dimension_semantics<parallel>, #tpu.dimension_semantics<parallel>, #tpu.dimension_semantics<arbitrary>], iteration_bounds = array<i64: 2, 1, 1>, scalar_prefetch = 0 : i64, scratch_operands = 0 : i64, tpu.core_type = #tpu.core_type<tc>, window_params = [{transform_indices = @transform_0, window_bounds = array<i64: 1024, 48>}, {transform_indices = @transform_1, window_bounds = array<i64: 48, 64>}, {transform_indices = @transform_2, window_bounds = array<i64: 1024, 64>}, {transform_indices = @transform_3, window_bounds = array<i64: 8, 64>}, {transform_indices = @transform_4, window_bounds = array<i64: 8, 64>}]} {
    %c0 = arith.constant 0 : index
    %c0_0 = arith.constant 0 : index
    %0 = vector.load %arg3[%c0, %c0_0] : memref<1024x48xbf16, #tpu.memory_space<vmem>>, vector<1024x48xbf16>
    %c0_1 = arith.constant 0 : index
    %c0_2 = arith.constant 0 : index
    %1 = vector.load %arg4[%c0_1, %c0_2] : memref<48x64xbf16, #tpu.memory_space<vmem>>, vector<48x64xbf16>
    %cst = arith.constant dense<0.000000e+00> : vector<1024x64xf32>
    %2 = tpu.matmul %0, %1, %cst {dimension_numbers = #tpu.dot_dimension_numbers<[1], [0], [0], [1], [0, 0, 1, 1], [], []>} : vector<1024x48xbf16>, vector<48x64xbf16>, vector<1024x64xf32> -> vector<1024x64xf32>
    %cst_3 = arith.constant 0.000000e+00 : f32
    %3 = vector.broadcast %cst_3 : f32 to vector<8x64xf32>
    %c0_4 = arith.constant 0 : index
    %c0_5 = arith.constant 0 : index
    %4 = vector.load %arg6[%c0_4, %c0_5] : memref<8x64xf32, #tpu.memory_space<vmem>>, vector<8x64xf32>
    tpu.vector_store %arg6[%c0_4, %c0_5], %3 {strides = array<i32>} : memref<8x64xf32, #tpu.memory_space<vmem>>, vector<8x64xf32>,
    %cst_6 = arith.constant 0.000000e+00 : f32
    %5 = vector.broadcast %cst_6 : f32 to vector<8x64xf32>
    %c0_7 = arith.constant 0 : index
    %c0_8 = arith.constant 0 : index
    %6 = vector.load %arg7[%c0_7, %c0_8] : memref<8x64xf32, #tpu.memory_space<vmem>>, vector<8x64xf32>
    tpu.vector_store %arg7[%c0_7, %c0_8], %5 {strides = array<i32>} : memref<8x64xf32, #tpu.memory_space<vmem>>, vector<8x64xf32>,
    %cst_9 = arith.constant dense<0.000000e+00> : vector<64xf32>
    %7 = vector.multi_reduction <add>, %2, %cst_9 [0] : vector<1024x64xf32> to vector<64xf32>
    %8 = vector.shape_cast %7 : vector<64xf32> to vector<1x64xf32>
    %c0_10 = arith.constant 0 : index
    %c0_11 = arith.constant 0 : index
    %9 = vector.load %arg6[%c0_10, %c0_11] : memref<8x64xf32, #tpu.memory_space<vmem>>, vector<1x64xf32>
    tpu.vector_store %arg6[%c0_10, %c0_11], %8 {strides = array<i32>} : memref<8x64xf32, #tpu.memory_space<vmem>>, vector<1x64xf32>,
    %10 = arith.mulf %2, %2 : vector<1024x64xf32>
    %cst_12 = arith.constant dense<0.000000e+00> : vector<64xf32>
    %11 = vector.multi_reduction <add>, %10, %cst_12 [0] : vector<1024x64xf32> to vector<64xf32>
    %12 = vector.shape_cast %11 : vector<64xf32> to vector<1x64xf32>
    %c0_13 = arith.constant 0 : index
    %c0_14 = arith.constant 0 : index
    %13 = vector.load %arg7[%c0_13, %c0_14] : memref<8x64xf32, #tpu.memory_space<vmem>>, vector<1x64xf32>
    tpu.vector_store %arg7[%c0_13, %c0_14], %12 {strides = array<i32>} : memref<8x64xf32, #tpu.memory_space<vmem>>, vector<1x64xf32>,
    %14 = arith.truncf %2 : vector<1024x64xf32> to vector<1024x64xbf16>
    %c0_15 = arith.constant 0 : index
    %c0_16 = arith.constant 0 : index
    %15 = vector.load %arg5[%c0_15, %c0_16] : memref<1024x64xbf16, #tpu.memory_space<vmem>>, vector<1024x64xbf16>
    tpu.vector_store %arg5[%c0_15, %c0_16], %14 {strides = array<i32>} : memref<1024x64xbf16, #tpu.memory_space<vmem>>, vector<1024x64xbf16>,
    return
  }
  func.func @transform_0(%arg0: i32, %arg1: i32, %arg2: i32) -> (i32, i32) {
    %c0_i32 = arith.constant 0 : i32
    return %arg0, %arg2 : i32, i32
  }
  func.func @transform_1(%arg0: i32, %arg1: i32, %arg2: i32) -> (i32, i32) {
    %c0_i32 = arith.constant 0 : i32
    return %arg2, %arg1 : i32, i32
  }
  func.func @transform_2(%arg0: i32, %arg1: i32, %arg2: i32) -> (i32, i32) {
    %c0_i32 = arith.constant 0 : i32
    return %arg0, %arg1 : i32, i32
  }
  func.func @transform_3(%arg0: i32, %arg1: i32, %arg2: i32) -> (i32, i32) {
    %c0_i32 = arith.constant 0 : i32
    return %arg0, %arg1 : i32, i32
  }
  func.func @transform_4(%arg0: i32, %arg1: i32, %arg2: i32) -> (i32, i32) {
    %c0_i32 = arith.constant 0 : i32
    return %arg0, %arg1 : i32, i32
  }
}

module attributes {stable_mosaic.version = 11 : i64} {
  func.func @fused_conv_kernel(%arg0: i32, %arg1: i32, %arg2: i32, %arg3: memref<256x1024xbf16, #tpu.memory_space<vmem>>, %arg4: memref<1024x128xbf16, #tpu.memory_space<vmem>>, %arg5: memref<256x128xbf16, #tpu.memory_space<vmem>>, %arg6: memref<8x128xf32, #tpu.memory_space<vmem>>, %arg7: memref<8x128xf32, #tpu.memory_space<vmem>>) attributes {dimension_semantics = [#tpu.dimension_semantics<parallel>, #tpu.dimension_semantics<parallel>, #tpu.dimension_semantics<arbitrary>], iteration_bounds = array<i64: 2, 1, 1>, scalar_prefetch = 0 : i64, scratch_operands = 0 : i64, tpu.core_type = #tpu.core_type<tc>, window_params = [{transform_indices = @transform_0, window_bounds = array<i64: 256, 1024>}, {transform_indices = @transform_1, window_bounds = array<i64: 1024, 128>}, {transform_indices = @transform_2, window_bounds = array<i64: 256, 128>}, {transform_indices = @transform_3, window_bounds = array<i64: 8, 128>}, {transform_indices = @transform_4, window_bounds = array<i64: 8, 128>}]} {
    %c0 = arith.constant 0 : index
    %c0_0 = arith.constant 0 : index
    %0 = vector.load %arg3[%c0, %c0_0] : memref<256x1024xbf16, #tpu.memory_space<vmem>>, vector<256x1024xbf16>
    %c0_1 = arith.constant 0 : index
    %c0_2 = arith.constant 0 : index
    %1 = vector.load %arg4[%c0_1, %c0_2] : memref<1024x128xbf16, #tpu.memory_space<vmem>>, vector<1024x128xbf16>
    %cst = arith.constant dense<0.000000e+00> : vector<256x128xf32>
    %2 = tpu.matmul %0, %1, %cst {dimension_numbers = #tpu.dot_dimension_numbers<[1], [0], [0], [1], [0, 0, 1, 1], [], []>} : vector<256x1024xbf16>, vector<1024x128xbf16>, vector<256x128xf32> -> vector<256x128xf32>
    %cst_3 = arith.constant 0.000000e+00 : f32
    %3 = vector.broadcast %cst_3 : f32 to vector<8x128xf32>
    %c0_4 = arith.constant 0 : index
    %c0_5 = arith.constant 0 : index
    %4 = vector.load %arg6[%c0_4, %c0_5] : memref<8x128xf32, #tpu.memory_space<vmem>>, vector<8x128xf32>
    tpu.vector_store %arg6[%c0_4, %c0_5], %3 {strides = array<i32>} : memref<8x128xf32, #tpu.memory_space<vmem>>, vector<8x128xf32>,
    %cst_6 = arith.constant 0.000000e+00 : f32
    %5 = vector.broadcast %cst_6 : f32 to vector<8x128xf32>
    %c0_7 = arith.constant 0 : index
    %c0_8 = arith.constant 0 : index
    %6 = vector.load %arg7[%c0_7, %c0_8] : memref<8x128xf32, #tpu.memory_space<vmem>>, vector<8x128xf32>
    tpu.vector_store %arg7[%c0_7, %c0_8], %5 {strides = array<i32>} : memref<8x128xf32, #tpu.memory_space<vmem>>, vector<8x128xf32>,
    %cst_9 = arith.constant dense<0.000000e+00> : vector<128xf32>
    %7 = vector.multi_reduction <add>, %2, %cst_9 [0] : vector<256x128xf32> to vector<128xf32>
    %8 = vector.shape_cast %7 : vector<128xf32> to vector<1x128xf32>
    %c0_10 = arith.constant 0 : index
    %c0_11 = arith.constant 0 : index
    %9 = vector.load %arg6[%c0_10, %c0_11] : memref<8x128xf32, #tpu.memory_space<vmem>>, vector<1x128xf32>
    tpu.vector_store %arg6[%c0_10, %c0_11], %8 {strides = array<i32>} : memref<8x128xf32, #tpu.memory_space<vmem>>, vector<1x128xf32>,
    %10 = arith.mulf %2, %2 : vector<256x128xf32>
    %cst_12 = arith.constant dense<0.000000e+00> : vector<128xf32>
    %11 = vector.multi_reduction <add>, %10, %cst_12 [0] : vector<256x128xf32> to vector<128xf32>
    %12 = vector.shape_cast %11 : vector<128xf32> to vector<1x128xf32>
    %c0_13 = arith.constant 0 : index
    %c0_14 = arith.constant 0 : index
    %13 = vector.load %arg7[%c0_13, %c0_14] : memref<8x128xf32, #tpu.memory_space<vmem>>, vector<1x128xf32>
    tpu.vector_store %arg7[%c0_13, %c0_14], %12 {strides = array<i32>} : memref<8x128xf32, #tpu.memory_space<vmem>>, vector<1x128xf32>,
    %14 = arith.truncf %2 : vector<256x128xf32> to vector<256x128xbf16>
    %c0_15 = arith.constant 0 : index
    %c0_16 = arith.constant 0 : index
    %15 = vector.load %arg5[%c0_15, %c0_16] : memref<256x128xbf16, #tpu.memory_space<vmem>>, vector<256x128xbf16>
    tpu.vector_store %arg5[%c0_15, %c0_16], %14 {strides = array<i32>} : memref<256x128xbf16, #tpu.memory_space<vmem>>, vector<256x128xbf16>,
    return
  }
  func.func @transform_0(%arg0: i32, %arg1: i32, %arg2: i32) -> (i32, i32) {
    %c0_i32 = arith.constant 0 : i32
    return %arg0, %arg2 : i32, i32
  }
  func.func @transform_1(%arg0: i32, %arg1: i32, %arg2: i32) -> (i32, i32) {
    %c0_i32 = arith.constant 0 : i32
    return %arg2, %arg1 : i32, i32
  }
  func.func @transform_2(%arg0: i32, %arg1: i32, %arg2: i32) -> (i32, i32) {
    %c0_i32 = arith.constant 0 : i32
    return %arg0, %arg1 : i32, i32
  }
  func.func @transform_3(%arg0: i32, %arg1: i32, %arg2: i32) -> (i32, i32) {
    %c0_i32 = arith.constant 0 : i32
    return %arg0, %arg1 : i32, i32
  }
  func.func @transform_4(%arg0: i32, %arg1: i32, %arg2: i32) -> (i32, i32) {
    %c0_i32 = arith.constant 0 : i32
    return %arg0, %arg1 : i32, i32
  }
}

module attributes {stable_mosaic.version = 11 : i64} {
  func.func @fused_conv_kernel(%arg0: i32, %arg1: i32, %arg2: i32, %arg3: memref<128x2048xbf16, #tpu.memory_space<vmem>>, %arg4: memref<2048x128xbf16, #tpu.memory_space<vmem>>, %arg5: memref<128x128xbf16, #tpu.memory_space<vmem>>, %arg6: memref<8x128xf32, #tpu.memory_space<vmem>>, %arg7: memref<8x128xf32, #tpu.memory_space<vmem>>) attributes {dimension_semantics = [#tpu.dimension_semantics<parallel>, #tpu.dimension_semantics<parallel>, #tpu.dimension_semantics<arbitrary>], iteration_bounds = array<i64: 1, 2, 1>, scalar_prefetch = 0 : i64, scratch_operands = 0 : i64, tpu.core_type = #tpu.core_type<tc>, window_params = [{transform_indices = @transform_0, window_bounds = array<i64: 128, 2048>}, {transform_indices = @transform_1, window_bounds = array<i64: 2048, 128>}, {transform_indices = @transform_2, window_bounds = array<i64: 128, 128>}, {transform_indices = @transform_3, window_bounds = array<i64: 8, 128>}, {transform_indices = @transform_4, window_bounds = array<i64: 8, 128>}]} {
    %c0 = arith.constant 0 : index
    %c0_0 = arith.constant 0 : index
    %0 = vector.load %arg3[%c0, %c0_0] : memref<128x2048xbf16, #tpu.memory_space<vmem>>, vector<128x2048xbf16>
    %c0_1 = arith.constant 0 : index
    %c0_2 = arith.constant 0 : index
    %1 = vector.load %arg4[%c0_1, %c0_2] : memref<2048x128xbf16, #tpu.memory_space<vmem>>, vector<2048x128xbf16>
    %cst = arith.constant dense<0.000000e+00> : vector<128x128xf32>
    %2 = tpu.matmul %0, %1, %cst {dimension_numbers = #tpu.dot_dimension_numbers<[1], [0], [0], [1], [0, 0, 1, 1], [], []>} : vector<128x2048xbf16>, vector<2048x128xbf16>, vector<128x128xf32> -> vector<128x128xf32>
    %cst_3 = arith.constant 0.000000e+00 : f32
    %3 = vector.broadcast %cst_3 : f32 to vector<8x128xf32>
    %c0_4 = arith.constant 0 : index
    %c0_5 = arith.constant 0 : index
    %4 = vector.load %arg6[%c0_4, %c0_5] : memref<8x128xf32, #tpu.memory_space<vmem>>, vector<8x128xf32>
    tpu.vector_store %arg6[%c0_4, %c0_5], %3 {strides = array<i32>} : memref<8x128xf32, #tpu.memory_space<vmem>>, vector<8x128xf32>,
    %cst_6 = arith.constant 0.000000e+00 : f32
    %5 = vector.broadcast %cst_6 : f32 to vector<8x128xf32>
    %c0_7 = arith.constant 0 : index
    %c0_8 = arith.constant 0 : index
    %6 = vector.load %arg7[%c0_7, %c0_8] : memref<8x128xf32, #tpu.memory_space<vmem>>, vector<8x128xf32>
    tpu.vector_store %arg7[%c0_7, %c0_8], %5 {strides = array<i32>} : memref<8x128xf32, #tpu.memory_space<vmem>>, vector<8x128xf32>,
    %cst_9 = arith.constant dense<0.000000e+00> : vector<128xf32>
    %7 = vector.multi_reduction <add>, %2, %cst_9 [0] : vector<128x128xf32> to vector<128xf32>
    %8 = vector.shape_cast %7 : vector<128xf32> to vector<1x128xf32>
    %c0_10 = arith.constant 0 : index
    %c0_11 = arith.constant 0 : index
    %9 = vector.load %arg6[%c0_10, %c0_11] : memref<8x128xf32, #tpu.memory_space<vmem>>, vector<1x128xf32>
    tpu.vector_store %arg6[%c0_10, %c0_11], %8 {strides = array<i32>} : memref<8x128xf32, #tpu.memory_space<vmem>>, vector<1x128xf32>,
    %10 = arith.mulf %2, %2 : vector<128x128xf32>
    %cst_12 = arith.constant dense<0.000000e+00> : vector<128xf32>
    %11 = vector.multi_reduction <add>, %10, %cst_12 [0] : vector<128x128xf32> to vector<128xf32>
    %12 = vector.shape_cast %11 : vector<128xf32> to vector<1x128xf32>
    %c0_13 = arith.constant 0 : index
    %c0_14 = arith.constant 0 : index
    %13 = vector.load %arg7[%c0_13, %c0_14] : memref<8x128xf32, #tpu.memory_space<vmem>>, vector<1x128xf32>
    tpu.vector_store %arg7[%c0_13, %c0_14], %12 {strides = array<i32>} : memref<8x128xf32, #tpu.memory_space<vmem>>, vector<1x128xf32>,
    %14 = arith.truncf %2 : vector<128x128xf32> to vector<128x128xbf16>
    %c0_15 = arith.constant 0 : index
    %c0_16 = arith.constant 0 : index
    %15 = vector.load %arg5[%c0_15, %c0_16] : memref<128x128xbf16, #tpu.memory_space<vmem>>, vector<128x128xbf16>
    tpu.vector_store %arg5[%c0_15, %c0_16], %14 {strides = array<i32>} : memref<128x128xbf16, #tpu.memory_space<vmem>>, vector<128x128xbf16>,
    return
  }
  func.func @transform_0(%arg0: i32, %arg1: i32, %arg2: i32) -> (i32, i32) {
    %c0_i32 = arith.constant 0 : i32
    return %arg0, %arg2 : i32, i32
  }
  func.func @transform_1(%arg0: i32, %arg1: i32, %arg2: i32) -> (i32, i32) {
    %c0_i32 = arith.constant 0 : i32
    return %arg2, %arg1 : i32, i32
  }
  func.func @transform_2(%arg0: i32, %arg1: i32, %arg2: i32) -> (i32, i32) {
    %c0_i32 = arith.constant 0 : i32
    return %arg0, %arg1 : i32, i32
  }
  func.func @transform_3(%arg0: i32, %arg1: i32, %arg2: i32) -> (i32, i32) {
    %c0_i32 = arith.constant 0 : i32
    return %arg0, %arg1 : i32, i32
  }
  func.func @transform_4(%arg0: i32, %arg1: i32, %arg2: i32) -> (i32, i32) {
    %c0_i32 = arith.constant 0 : i32
    return %arg0, %arg1 : i32, i32
  }
}

module attributes {stable_mosaic.version = 11 : i64} {
  func.func @fused_conv_kernel(%arg0: i32, %arg1: i32, %arg2: i32, %arg3: memref<32x2048xbf16, #tpu.memory_space<vmem>>, %arg4: memref<2048x256xbf16, #tpu.memory_space<vmem>>, %arg5: memref<32x256xbf16, #tpu.memory_space<vmem>>, %arg6: memref<8x256xf32, #tpu.memory_space<vmem>>, %arg7: memref<8x256xf32, #tpu.memory_space<vmem>>, %arg8: memref<32x256xf32, #tpu.memory_space<vmem>>) attributes {dimension_semantics = [#tpu.dimension_semantics<parallel>, #tpu.dimension_semantics<parallel>, #tpu.dimension_semantics<arbitrary>], iteration_bounds = array<i64: 1, 2, 2>, scalar_prefetch = 0 : i64, scratch_operands = 1 : i64, tpu.core_type = #tpu.core_type<tc>, window_params = [{transform_indices = @transform_0, window_bounds = array<i64: 32, 2048>}, {transform_indices = @transform_1, window_bounds = array<i64: 2048, 256>}, {transform_indices = @transform_2, window_bounds = array<i64: 32, 256>}, {transform_indices = @transform_3, window_bounds = array<i64: 8, 256>}, {transform_indices = @transform_4, window_bounds = array<i64: 8, 256>}]} {
    %c0 = arith.constant 0 : index
    %c0_0 = arith.constant 0 : index
    %0 = vector.load %arg3[%c0, %c0_0] : memref<32x2048xbf16, #tpu.memory_space<vmem>>, vector<32x2048xbf16>
    %c0_1 = arith.constant 0 : index
    %c0_2 = arith.constant 0 : index
    %1 = vector.load %arg4[%c0_1, %c0_2] : memref<2048x256xbf16, #tpu.memory_space<vmem>>, vector<2048x256xbf16>
    %cst = arith.constant dense<0.000000e+00> : vector<32x256xf32>
    %2 = tpu.matmul %0, %1, %cst {dimension_numbers = #tpu.dot_dimension_numbers<[1], [0], [0], [1], [0, 0, 1, 1], [], []>} : vector<32x2048xbf16>, vector<2048x256xbf16>, vector<32x256xf32> -> vector<32x256xf32>
    %c0_i32 = arith.constant 0 : i32
    %3 = arith.cmpi eq, %arg2, %c0_i32 : i32
    %4 = arith.extui %3 : i1 to i32
    %c0_i32_3 = arith.constant 0 : i32
    %5 = arith.cmpi ne, %4, %c0_i32_3 : i32
    scf.if %5 {
      %cst_9 = arith.constant 0.000000e+00 : f32
      %12 = vector.broadcast %cst_9 : f32 to vector<32x256xf32>
      %c0_10 = arith.constant 0 : index
      %c0_11 = arith.constant 0 : index
      %13 = vector.load %arg8[%c0_10, %c0_11] : memref<32x256xf32, #tpu.memory_space<vmem>>, vector<32x256xf32>
      tpu.vector_store %arg8[%c0_10, %c0_11], %12 {strides = array<i32>} : memref<32x256xf32, #tpu.memory_space<vmem>>, vector<32x256xf32>,
    } else {
    }
    %c0_4 = arith.constant 0 : index
    %c0_5 = arith.constant 0 : index
    %6 = vector.load %arg8[%c0_4, %c0_5] : memref<32x256xf32, #tpu.memory_space<vmem>>, vector<32x256xf32>
    %7 = arith.addf %6, %2 : vector<32x256xf32>
    %c0_6 = arith.constant 0 : index
    %c0_7 = arith.constant 0 : index
    %8 = vector.load %arg8[%c0_6, %c0_7] : memref<32x256xf32, #tpu.memory_space<vmem>>, vector<32x256xf32>
    tpu.vector_store %arg8[%c0_6, %c0_7], %7 {strides = array<i32>} : memref<32x256xf32, #tpu.memory_space<vmem>>, vector<32x256xf32>,
    %c1_i32 = arith.constant 1 : i32
    %9 = arith.cmpi eq, %arg2, %c1_i32 : i32
    %10 = arith.extui %9 : i1 to i32
    %c0_i32_8 = arith.constant 0 : i32
    %11 = arith.cmpi ne, %10, %c0_i32_8 : i32
    scf.if %11 {
      %c0_9 = arith.constant 0 : index
      %c0_10 = arith.constant 0 : index
      %12 = vector.load %arg8[%c0_9, %c0_10] : memref<32x256xf32, #tpu.memory_space<vmem>>, vector<32x256xf32>
      %cst_11 = arith.constant 0.000000e+00 : f32
      %13 = vector.broadcast %cst_11 : f32 to vector<8x256xf32>
      %c0_12 = arith.constant 0 : index
      %c0_13 = arith.constant 0 : index
      %14 = vector.load %arg6[%c0_12, %c0_13] : memref<8x256xf32, #tpu.memory_space<vmem>>, vector<8x256xf32>
      tpu.vector_store %arg6[%c0_12, %c0_13], %13 {strides = array<i32>} : memref<8x256xf32, #tpu.memory_space<vmem>>, vector<8x256xf32>,
      %cst_14 = arith.constant 0.000000e+00 : f32
      %15 = vector.broadcast %cst_14 : f32 to vector<8x256xf32>
      %c0_15 = arith.constant 0 : index
      %c0_16 = arith.constant 0 : index
      %16 = vector.load %arg7[%c0_15, %c0_16] : memref<8x256xf32, #tpu.memory_space<vmem>>, vector<8x256xf32>
      tpu.vector_store %arg7[%c0_15, %c0_16], %15 {strides = array<i32>} : memref<8x256xf32, #tpu.memory_space<vmem>>, vector<8x256xf32>,
      %cst_17 = arith.constant dense<0.000000e+00> : vector<256xf32>
      %17 = vector.multi_reduction <add>, %12, %cst_17 [0] : vector<32x256xf32> to vector<256xf32>
      %18 = vector.shape_cast %17 : vector<256xf32> to vector<1x256xf32>
      %c0_18 = arith.constant 0 : index
      %c0_19 = arith.constant 0 : index
      %19 = vector.load %arg6[%c0_18, %c0_19] : memref<8x256xf32, #tpu.memory_space<vmem>>, vector<1x256xf32>
      tpu.vector_store %arg6[%c0_18, %c0_19], %18 {strides = array<i32>} : memref<8x256xf32, #tpu.memory_space<vmem>>, vector<1x256xf32>,
      %20 = arith.mulf %12, %12 : vector<32x256xf32>
      %cst_20 = arith.constant dense<0.000000e+00> : vector<256xf32>
      %21 = vector.multi_reduction <add>, %20, %cst_20 [0] : vector<32x256xf32> to vector<256xf32>
      %22 = vector.shape_cast %21 : vector<256xf32> to vector<1x256xf32>
      %c0_21 = arith.constant 0 : index
      %c0_22 = arith.constant 0 : index
      %23 = vector.load %arg7[%c0_21, %c0_22] : memref<8x256xf32, #tpu.memory_space<vmem>>, vector<1x256xf32>
      tpu.vector_store %arg7[%c0_21, %c0_22], %22 {strides = array<i32>} : memref<8x256xf32, #tpu.memory_space<vmem>>, vector<1x256xf32>,
      %24 = arith.truncf %12 : vector<32x256xf32> to vector<32x256xbf16>
      %c0_23 = arith.constant 0 : index
      %c0_24 = arith.constant 0 : index
      %25 = vector.load %arg5[%c0_23, %c0_24] : memref<32x256xbf16, #tpu.memory_space<vmem>>, vector<32x256xbf16>
      tpu.vector_store %arg5[%c0_23, %c0_24], %24 {strides = array<i32>} : memref<32x256xbf16, #tpu.memory_space<vmem>>, vector<32x256xbf16>,
    } else {
    }
    return
  }
  func.func @transform_0(%arg0: i32, %arg1: i32, %arg2: i32) -> (i32, i32) {
    %c0_i32 = arith.constant 0 : i32
    return %arg0, %arg2 : i32, i32
  }
  func.func @transform_1(%arg0: i32, %arg1: i32, %arg2: i32) -> (i32, i32) {
    %c0_i32 = arith.constant 0 : i32
    return %arg2, %arg1 : i32, i32
  }
  func.func @transform_2(%arg0: i32, %arg1: i32, %arg2: i32) -> (i32, i32) {
    %c0_i32 = arith.constant 0 : i32
    return %arg0, %arg1 : i32, i32
  }
  func.func @transform_3(%arg0: i32, %arg1: i32, %arg2: i32) -> (i32, i32) {
    %c0_i32 = arith.constant 0 : i32
    return %arg0, %arg1 : i32, i32
  }
  func.func @transform_4(%arg0: i32, %arg1: i32, %arg2: i32) -> (i32, i32) {
    %c0_i32 = arith.constant 0 : i32
    return %arg0, %arg1 : i32, i32
  }
}

module attributes {stable_mosaic.version = 11 : i64} {
  func.func @fused_conv_kernel(%arg0: i32, %arg1: i32, %arg2: i32, %arg3: memref<8x4096xbf16, #tpu.memory_space<vmem>>, %arg4: memref<4096x128xbf16, #tpu.memory_space<vmem>>, %arg5: memref<8x128xf32, #tpu.memory_space<vmem>>, %arg6: memref<8x128xf32, #tpu.memory_space<vmem>>) attributes {dimension_semantics = [#tpu.dimension_semantics<parallel>, #tpu.dimension_semantics<parallel>, #tpu.dimension_semantics<arbitrary>], iteration_bounds = array<i64: 1, 1, 2>, scalar_prefetch = 0 : i64, scratch_operands = 1 : i64, tpu.core_type = #tpu.core_type<tc>, window_params = [{transform_indices = @transform_0, window_bounds = array<i64: 8, 4096>}, {transform_indices = @transform_1, window_bounds = array<i64: 4096, 128>}, {transform_indices = @transform_2, window_bounds = array<i64: 8, 128>}]} {
    %c0 = arith.constant 0 : index
    %c0_0 = arith.constant 0 : index
    %0 = vector.load %arg3[%c0, %c0_0] : memref<8x4096xbf16, #tpu.memory_space<vmem>>, vector<8x4096xbf16>
    %c0_1 = arith.constant 0 : index
    %c0_2 = arith.constant 0 : index
    %1 = vector.load %arg4[%c0_1, %c0_2] : memref<4096x128xbf16, #tpu.memory_space<vmem>>, vector<4096x128xbf16>
    %cst = arith.constant dense<0.000000e+00> : vector<8x128xf32>
    %2 = tpu.matmul %0, %1, %cst {dimension_numbers = #tpu.dot_dimension_numbers<[1], [0], [0], [1], [0, 0, 1, 1], [], []>} : vector<8x4096xbf16>, vector<4096x128xbf16>, vector<8x128xf32> -> vector<8x128xf32>
    %c0_i32 = arith.constant 0 : i32
    %3 = arith.cmpi eq, %arg2, %c0_i32 : i32
    %4 = arith.extui %3 : i1 to i32
    %c0_i32_3 = arith.constant 0 : i32
    %5 = arith.cmpi ne, %4, %c0_i32_3 : i32
    scf.if %5 {
      %cst_9 = arith.constant 0.000000e+00 : f32
      %12 = vector.broadcast %cst_9 : f32 to vector<8x128xf32>
      %c0_10 = arith.constant 0 : index
      %c0_11 = arith.constant 0 : index
      %13 = vector.load %arg6[%c0_10, %c0_11] : memref<8x128xf32, #tpu.memory_space<vmem>>, vector<8x128xf32>
      tpu.vector_store %arg6[%c0_10, %c0_11], %12 {strides = array<i32>} : memref<8x128xf32, #tpu.memory_space<vmem>>, vector<8x128xf32>,
    } else {
    }
    %c0_4 = arith.constant 0 : index
    %c0_5 = arith.constant 0 : index
    %6 = vector.load %arg6[%c0_4, %c0_5] : memref<8x128xf32, #tpu.memory_space<vmem>>, vector<8x128xf32>
    %7 = arith.addf %6, %2 : vector<8x128xf32>
    %c0_6 = arith.constant 0 : index
    %c0_7 = arith.constant 0 : index
    %8 = vector.load %arg6[%c0_6, %c0_7] : memref<8x128xf32, #tpu.memory_space<vmem>>, vector<8x128xf32>
    tpu.vector_store %arg6[%c0_6, %c0_7], %7 {strides = array<i32>} : memref<8x128xf32, #tpu.memory_space<vmem>>, vector<8x128xf32>,
    %c1_i32 = arith.constant 1 : i32
    %9 = arith.cmpi eq, %arg2, %c1_i32 : i32
    %10 = arith.extui %9 : i1 to i32
    %c0_i32_8 = arith.constant 0 : i32
    %11 = arith.cmpi ne, %10, %c0_i32_8 : i32
    scf.if %11 {
      %c0_9 = arith.constant 0 : index
      %c0_10 = arith.constant 0 : index
      %12 = vector.load %arg6[%c0_9, %c0_10] : memref<8x128xf32, #tpu.memory_space<vmem>>, vector<8x128xf32>
      %13 = arith.negf %12 : vector<8x128xf32>
      %14 = math.exp %13 : vector<8x128xf32>
      %cst_11 = arith.constant 1.000000e+00 : f32
      %15 = vector.broadcast %cst_11 : f32 to vector<8x128xf32>
      %16 = arith.addf %15, %14 : vector<8x128xf32>
      %17 = arith.divf %15, %16 : vector<8x128xf32>
      %c0_12 = arith.constant 0 : index
      %c0_13 = arith.constant 0 : index
      %18 = vector.load %arg5[%c0_12, %c0_13] : memref<8x128xf32, #tpu.memory_space<vmem>>, vector<8x128xf32>
      tpu.vector_store %arg5[%c0_12, %c0_13], %17 {strides = array<i32>} : memref<8x128xf32, #tpu.memory_space<vmem>>, vector<8x128xf32>,
    } else {
    }
    return
  }
  func.func @transform_0(%arg0: i32, %arg1: i32, %arg2: i32) -> (i32, i32) {
    %c0_i32 = arith.constant 0 : i32
    return %arg0, %arg2 : i32, i32
  }
  func.func @transform_1(%arg0: i32, %arg1: i32, %arg2: i32) -> (i32, i32) {
    %c0_i32 = arith.constant 0 : i32
    return %arg2, %arg1 : i32, i32
  }
  func.func @transform_2(%arg0: i32, %arg1: i32, %arg2: i32) -> (i32, i32) {
    %c0_i32 = arith.constant 0 : i32
    return %arg0, %arg1 : i32, i32
  }
}

</mosaic_0001>

<bundles_post_ra>
// kernel: disc_model_forward.5
= control target key start
LH: loop header
LB: loop body
LE: loop exit
PB: predicated region body
PF: predicated region fallthrough
CT: control target
= control target key end

     0   :  { %s3748_s15 = smov 0   ;;  %s3750_s16 = smov 0   ;;  %s4915_s0 = inlined_call_operand.vmem [shape: bf16[2048,48], index: 0, kind: input, shape index: {}]   ;;  %s4916_s1 = inlined_call_operand.vmem [shape: bf16[48,64], index: 1, kind: input, shape index: {}]   ;;  %s4917_s2 = inlined_call_operand.vmem [shape: bf16[2048,64], index: 2, kind: output, shape index: {0}]   ;;  %s4918_s3 = inlined_call_operand.vmem [shape: f32[16,64], index: 3, kind: output, shape index: {1}]   ;;  %s4919_s4 = inlined_call_operand.vmem [shape: f32[16,64], index: 4, kind: output, shape index: {2}]  }
   0x1   :  { %s3752_s17 = smov 0  }
   0x2 LB: > { %s34_s18 = sadd.s32 1, %s3716_s16  ;;  %p3003_p0 = scmp.ge.s32.totalorder %s3720_s17, 1  ;;  %s3720_s17 = sphi %s3752_s17, %s15_s17   ;;  %s3716_s16 = sphi %s3750_s16, %s4945_s16   ;;  %s3712_s15 = sphi %s3748_s15, %s4944_s15  }
   0x3   : > { %p36_p1 = scmp.ge.s32.totalorder %s34_s18, 2  ;;  %p214_p2 = scmp.lt.s32.totalorder %s3720_s17, 3 }
   0x5   : > { %s4947_s18 = smov (%p36_p1, %s34_s18), 0  ;;  %p215_p3 = pnand %p3003_p0, %p214_p2 }
   0x7   : > { %218 = sbr.rel (%p215_p3) target bundleno = 512 (0x200), region = 28 }
   0xe   : > { %v3631_v0 = vld [vmem:[%s4916_s1] sm:$0xff]   ;;  %s3004_s21 = sshll.u32 %s3712_s15, 7  ;;  %v3632_v1 = vld [vmem:[%s4916_s1 + $0x8] sm:$0xff]   ;;  %v3633_v2 = vld [vmem:[%s4916_s1 + $0x10] sm:$0xff]   ;;  %vm782_vm0 = vcmask 392192   ;;  %vm2688_vm1 = vcmask 519168  }
   0xf   : > { %p269_p4 = scmp.lt.s32.totalorder %s3004_s21, 255  ;;  %3466 = vmatprep.subr.bf16.mxu0 %v3631_v0  ;;  %3600 = vmatprep.subr.bf16.mxu1 %v3631_v0  ;;  %vm1520_vm2 = vcmask 523264   ;;  %p295_p5 = scmp.lt.s32.totalorder %s3712_s15, 1  ;;  %vm1784_vm3 = vcmask 516096  }
  0x10   : > { %3467 = vmatpush3.bf16.msra.mxu0 %v3631_v0  ;;  %3603 = vmatpush3.bf16.msra.mxu1 %v3631_v0 }
  0x11   : > { %s4949_s21 = smov (!%p269_p4, %s3004_s21), 255  ;;  %3468 = vmatprep.subr.bf16.mxu0 %v3632_v1  ;;  %3601 = vmatprep.subr.bf16.mxu1 %v3632_v1  ;;  %s4951_s15 = smov (!%p295_p5, %s3712_s15), 1 }
  0x12   : > { %s3005_s26 = sshll.u32 %s4949_s21, 2  ;;  %s3008_s7 = sshll.u32 %s4951_s15, 3 }
  0x13   : > { %s3786_s29 = scalar_lea.vmem %s4915_s0, %s3005_s26  ;;  %s3921_s6 = scalar_lea.vmem %s4917_s2, %s3005_s26 }
  0x14   : > { %3469 = vmatpush3.bf16.msra.mxu0 %v3632_v1  ;;  %v3634_v3 = vld [vmem:[%s3786_s29] sm:$0xff]   ;;  %3604 = vmatpush3.bf16.msra.mxu1 %v3632_v1  ;;  %v3635_v4 = vld [vmem:[%s3786_s29 + $0x8] sm:$0xff]   ;;  %v3636_v5 = vld [vmem:[%s3786_s29 + $0x10] sm:$0xff]   ;;  %s4679_s10 = scalar_lea.vmem %s4918_s3, %s3008_s7  ;;  %s4684_s13 = scalar_lea.vmem %s4919_s4, %s3008_s7 }
  0x15   : > { %3470 = vmatprep.subr.bf16.mxu0 %v3633_v2  ;;  %3602 = vmatprep.subr.bf16.mxu1 %v3633_v2  ;;  %v3637_v6 = vld [vmem:[%s3786_s29 + $0x18] sm:$0xff]   ;;  %v3638_v7 = vld [vmem:[%s3786_s29 + $0x20] sm:$0xff]   ;;  %v3639_v8 = vld [vmem:[%s3786_s29 + $0x28] sm:$0xff]  }
  0x16   : > { %3472 = vmatprep.mubr.msk.bf16.mxu0 %vm782_vm0, %v3634_v3  ;;  %v3640_v9 = vld [vmem:[%s3786_s29 + $0x30] sm:$0xff]   ;;  %v3641_v10 = vld [vmem:[%s3786_s29 + $0x38] sm:$0xff]   ;;  %v3642_v11 = vld [vmem:[%s3786_s29 + $0x40] sm:$0xff]  }
  0x17   : > { %v3666_v12 = vld [vmem:[%s3786_s29 + $0x100] sm:$0xff]   ;;  %v3667_v13 = vld [vmem:[%s3786_s29 + $0x108] sm:$0xff]   ;;  %v3668_v14 = vld [vmem:[%s3786_s29 + $0x110] sm:$0xff]  }
  0x18   : > { %3471 = vmatpush3.bf16.msra.mxu0 %v3633_v2  ;;  %3605 = vmatpush3.bf16.msra.mxu1 %v3633_v2  ;;  %v3643_v15 = vld [vmem:[%s3786_s29 + $0x48] sm:$0xff]   ;;  %v3644_v16 = vld [vmem:[%s3786_s29 + $0x50] sm:$0xff]   ;;  %v3669_v17 = vld [vmem:[%s3786_s29 + $0x118] sm:$0xff]  }
  0x19   : > { %3536 = vmatprep.mubr.msk.bf16.mxu1 %vm782_vm0, %v3666_v12  ;;  %v3670_v18 = vld [vmem:[%s3786_s29 + $0x120] sm:$0xff]   ;;  %v3645_v19 = vld [vmem:[%s3786_s29 + $0x58] sm:$0xff]   ;;  %v3671_v21 = vld [vmem:[%s3786_s29 + $0x128] sm:$0xff]  }
  0x1a   : > { %v3646_v20 = vld [vmem:[%s3786_s29 + $0x60] sm:$0xff]   ;;  %v3672_v22 = vld [vmem:[%s3786_s29 + $0x130] sm:$0xff]   ;;  %v3647_v23 = vld [vmem:[%s3786_s29 + $0x68] sm:$0xff]  }
  0x1b   : > { %3473 = vmatmul.mubr.msk.bf16.vlgmr.msra.gmra.mrb[0].mxu0 %vm782_vm0, %v3635_v4  ;;  %3537 = vmatmul.mubr.msk.bf16.vlgmr.msra.gmra.mrb[0].mxu1 %vm782_vm0, %v3667_v13  ;;  %v3648_v24 = vld [vmem:[%s3786_s29 + $0x70] sm:$0xff]   ;;  %v3673_v25 = vld [vmem:[%s3786_s29 + $0x138] sm:$0xff]   ;;  %v3674_v26 = vld [vmem:[%s3786_s29 + $0x140] sm:$0xff]  }
  0x1c   : > { %3476 = vmatprep.mubr.msk.bf16.mxu0 %vm782_vm0, %v3636_v5  ;;  %3540 = vmatprep.mubr.msk.bf16.mxu1 %vm782_vm0, %v3668_v14  ;;  %v3649_v27 = vld [vmem:[%s3786_s29 + $0x78] sm:$0xff]   ;;  %v3650_v28 = vld [vmem:[%s3786_s29 + $0x80] sm:$0xff]   ;;  %v3675_v29 = vld [vmem:[%s3786_s29 + $0x148] sm:$0xff]  }
  0x1d   : > { %v3676_v30 = vld [vmem:[%s3786_s29 + $0x150] sm:$0xff]   ;;  %v3651_v31 = vld [vmem:[%s3786_s29 + $0x88] sm:$0xff]   ;;  %v3677_v33 = vld [vmem:[%s3786_s29 + $0x158] sm:$0xff]  }
  0x1e   : > { %v3652_v32 = vld [vmem:[%s3786_s29 + $0x90] sm:$0xff]   ;;  %v3678_v34 = vld [vmem:[%s3786_s29 + $0x160] sm:$0xff]   ;;  %v3653_v35 = vld [vmem:[%s3786_s29 + $0x98] sm:$0xff]  }
  0x1f   : > { %v3654_v36 = vld [vmem:[%s3786_s29 + $0xa0] sm:$0xff]   ;;  %v3679_v37 = vld [vmem:[%s3786_s29 + $0x168] sm:$0xff]   ;;  %v3680_v38 = vld [vmem:[%s3786_s29 + $0x170] sm:$0xff]  }
  0x20   : > { %v3655_v39 = vld [vmem:[%s3786_s29 + $0xa8] sm:$0xff]   ;;  %v3656_v40 = vld [vmem:[%s3786_s29 + $0xb0] sm:$0xff]   ;;  %v3681_v41 = vld [vmem:[%s3786_s29 + $0x178] sm:$0xff]  }
  0x21   : > { %v3682_v42 = vld [vmem:[%s3786_s29 + $0x180] sm:$0xff]   ;;  %v3657_v43 = vld [vmem:[%s3786_s29 + $0xb8] sm:$0xff]   ;;  %v3683_v45 = vld [vmem:[%s3786_s29 + $0x188] sm:$0xff]  }
  0x22   : > { %v3658_v44 = vld [vmem:[%s3786_s29 + $0xc0] sm:$0xff]   ;;  %v3684_v46 = vld [vmem:[%s3786_s29 + $0x190] sm:$0xff]   ;;  %v3659_v47 = vld [vmem:[%s3786_s29 + $0xc8] sm:$0xff]  }
  0x23   : > { %3477 = vmatmul.mubr.msk.bf16.gmra.mrb[4].mxu0 %vm782_vm0, %v3637_v6  ;;  %3541 = vmatmul.mubr.msk.bf16.gmra.mrb[4].mxu1 %vm782_vm0, %v3669_v17  ;;  %v3660_v48 = vld [vmem:[%s3786_s29 + $0xd0] sm:$0xff]   ;;  %v3685_v49 = vld [vmem:[%s3786_s29 + $0x198] sm:$0xff]   ;;  %v3686_v50 = vld [vmem:[%s3786_s29 + $0x1a0] sm:$0xff]  }
  0x24   : > { %3480 = vmatprep.mubr.msk.bf16.mxu0 %vm782_vm0, %v3638_v7  ;;  %3544 = vmatprep.mubr.msk.bf16.mxu1 %vm782_vm0, %v3670_v18  ;;  %v3661_v51 = vld [vmem:[%s3786_s29 + $0xd8] sm:$0xff]   ;;  %v3662_v52 = vld [vmem:[%s3786_s29 + $0xe0] sm:$0xff]   ;;  %v3687_v53 = vld [vmem:[%s3786_s29 + $0x1a8] sm:$0xff]  }
  0x25   : > { %v3688_v54 = vld [vmem:[%s3786_s29 + $0x1b0] sm:$0xff]   ;;  %v3663_v55 = vld [vmem:[%s3786_s29 + $0xe8] sm:$0xff]   ;;  %v3689_v57 = vld [vmem:[%s3786_s29 + $0x1b8] sm:$0xff]  }
  0x26   : > { %v3664_v56 = vld [vmem:[%s3786_s29 + $0xf0] sm:$0xff]   ;;  %v3690_v58 = vld [vmem:[%s3786_s29 + $0x1c0] sm:$0xff]   ;;  %v3665_v59 = vld [vmem:[%s3786_s29 + $0xf8] sm:$0xff]  }
  0x27   : > { %v3691_v60 = vld [vmem:[%s3786_s29 + $0x1c8] sm:$0xff]   ;;  %v3692_v61 = vld [vmem:[%s3786_s29 + $0x1d0] sm:$0xff]   ;;  %v3693_v62 = vld [vmem:[%s3786_s29 + $0x1d8] sm:$0xff]  }
  0x28   : > { %v3694_v63 = vld [vmem:[%s3786_s29 + $0x1e0] sm:$0xff]   ;;  %v3695_v0 = vld [vmem:[%s3786_s29 + $0x1e8] sm:$0xff]   ;;  %v3696_v1 = vld [vmem:[%s3786_s29 + $0x1f0] sm:$0xff]  }
  0x29   : > { %v3697_v2 = vld [vmem:[%s3786_s29 + $0x1f8] sm:$0xff]  }
  0x2b   : > { %3481 = vmatmul.mubr.msk.bf16.gmra.mrb[8].mxu0 %vm782_vm0, %v3639_v8  ;;  %3545 = vmatmul.mubr.msk.bf16.gmra.mrb[8].mxu1 %vm782_vm0, %v3671_v21 }
  0x2c   : > { %3484 = vmatprep.mubr.msk.bf16.mxu0 %vm782_vm0, %v3640_v9  ;;  %3548 = vmatprep.mubr.msk.bf16.mxu1 %vm782_vm0, %v3672_v22 }
  0x33   : > { %3485 = vmatmul.mubr.msk.bf16.gmra.mrb[12].mxu0 %vm782_vm0, %v3641_v10  ;;  %3549 = vmatmul.mubr.msk.bf16.gmra.mrb[12].mxu1 %vm782_vm0, %v3673_v25 }
  0x34   : > { %3488 = vmatprep.mubr.msk.bf16.mxu0 %vm782_vm0, %v3642_v11  ;;  %3552 = vmatprep.mubr.msk.bf16.mxu1 %vm782_vm0, %v3674_v26 }
  0x3b   : > { %3489 = vmatmul.mubr.msk.bf16.gmra.mrb[16].mxu0 %vm782_vm0, %v3643_v15  ;;  %3553 = vmatmul.mubr.msk.bf16.gmra.mrb[16].mxu1 %vm782_vm0, %v3675_v29 }
  0x3c   : > { %3492 = vmatprep.mubr.msk.bf16.mxu0 %vm782_vm0, %v3644_v16  ;;  %3556 = vmatprep.mubr.msk.bf16.mxu1 %vm782_vm0, %v3676_v30 }
  0x43   : > { %3493 = vmatmul.mubr.msk.bf16.gmra.mrb[20].mxu0 %vm782_vm0, %v3645_v19  ;;  %3557 = vmatmul.mubr.msk.bf16.gmra.mrb[20].mxu1 %vm782_vm0, %v3677_v33 }
  0x44   : > { %3496 = vmatprep.mubr.msk.bf16.mxu0 %vm782_vm0, %v3646_v20  ;;  %3560 = vmatprep.mubr.msk.bf16.mxu1 %vm782_vm0, %v3678_v34 }
  0x4b   : > { %3497 = vmatmul.mubr.msk.bf16.gmra.mrb[24].mxu0 %vm782_vm0, %v3647_v23  ;;  %3561 = vmatmul.mubr.msk.bf16.gmra.mrb[24].mxu1 %vm782_vm0, %v3679_v37 }
  0x4c   : > { %3500 = vmatprep.mubr.msk.bf16.mxu0 %vm782_vm0, %v3648_v24  ;;  %3564 = vmatprep.mubr.msk.bf16.mxu1 %vm782_vm0, %v3680_v38 }
  0x53   : > { %3501 = vmatmul.mubr.msk.bf16.gmra.mrb[28].mxu0 %vm782_vm0, %v3649_v27  ;;  %3565 = vmatmul.mubr.msk.bf16.gmra.mrb[28].mxu1 %vm782_vm0, %v3681_v41 }
  0x54   : > { %3504 = vmatprep.mubr.msk.bf16.mxu0 %vm782_vm0, %v3650_v28  ;;  %3568 = vmatprep.mubr.msk.bf16.mxu1 %vm782_vm0, %v3682_v42 }
  0x5b   : > { %3505 = vmatmul.mubr.msk.bf16.gmra.mrb[32].mxu0 %vm782_vm0, %v3651_v31  ;;  %3569 = vmatmul.mubr.msk.bf16.gmra.mrb[32].mxu1 %vm782_vm0, %v3683_v45 }
  0x5c   : > { %3508 = vmatprep.mubr.msk.bf16.mxu0 %vm782_vm0, %v3652_v32  ;;  %3572 = vmatprep.mubr.msk.bf16.mxu1 %vm782_vm0, %v3684_v46 }
  0x63   : > { %3509 = vmatmul.mubr.msk.bf16.gmra.mrb[36].mxu0 %vm782_vm0, %v3653_v35  ;;  %3573 = vmatmul.mubr.msk.bf16.gmra.mrb[36].mxu1 %vm782_vm0, %v3685_v49 }
  0x64   : > { %3512 = vmatprep.mubr.msk.bf16.mxu0 %vm782_vm0, %v3654_v36  ;;  %3576 = vmatprep.mubr.msk.bf16.mxu1 %vm782_vm0, %v3686_v50 }
  0x6b   : > { %3513 = vmatmul.mubr.msk.bf16.gmra.mrb[40].mxu0 %vm782_vm0, %v3655_v39  ;;  %3577 = vmatmul.mubr.msk.bf16.gmra.mrb[40].mxu1 %vm782_vm0, %v3687_v53 }
  0x6c   : > { %3516 = vmatprep.mubr.msk.bf16.mxu0 %vm782_vm0, %v3656_v40  ;;  %3580 = vmatprep.mubr.msk.bf16.mxu1 %vm782_vm0, %v3688_v54 }
  0x73   : > { %3517 = vmatmul.mubr.msk.bf16.gmra.mrb[44].mxu0 %vm782_vm0, %v3657_v43  ;;  %3581 = vmatmul.mubr.msk.bf16.gmra.mrb[44].mxu1 %vm782_vm0, %v3689_v57 }
  0x74   : > { %3520 = vmatprep.mubr.msk.bf16.mxu0 %vm782_vm0, %v3658_v44  ;;  %3584 = vmatprep.mubr.msk.bf16.mxu1 %vm782_vm0, %v3690_v58 }
  0x7b   : > { %3521 = vmatmul.mubr.msk.bf16.gmra.mrb[48].mxu0 %vm782_vm0, %v3659_v47  ;;  %3585 = vmatmul.mubr.msk.bf16.gmra.mrb[48].mxu1 %vm782_vm0, %v3691_v60 }
  0x7c   : > { %3524 = vmatprep.mubr.msk.bf16.mxu0 %vm782_vm0, %v3660_v48  ;;  %3588 = vmatprep.mubr.msk.bf16.mxu1 %vm782_vm0, %v3692_v61 }
  0x83   : > { %3525 = vmatmul.mubr.msk.bf16.gmra.mrb[52].mxu0 %vm782_vm0, %v3661_v51  ;;  %3589 = vmatmul.mubr.msk.bf16.gmra.mrb[52].mxu1 %vm782_vm0, %v3693_v62 }
  0x84   : > { %3528 = vmatprep.mubr.msk.bf16.mxu0 %vm782_vm0, %v3662_v52  ;;  %3592 = vmatprep.mubr.msk.bf16.mxu1 %vm782_vm0, %v3694_v63 }
  0x8b   : > { %3529 = vmatmul.mubr.msk.bf16.gmra.mrb[56].mxu0 %vm782_vm0, %v3663_v55  ;;  %3593 = vmatmul.mubr.msk.bf16.gmra.mrb[56].mxu1 %vm782_vm0, %v3695_v0 }
  0x8c   : > { %3532 = vmatprep.mubr.msk.bf16.mxu0 %vm782_vm0, %v3664_v56  ;;  %3596 = vmatprep.mubr.msk.bf16.mxu1 %vm782_vm0, %v3696_v1 }
  0x93   : > { %3533 = vmatmul.mubr.msk.bf16.gmra.mrb[60].mxu0 %vm782_vm0, %v3665_v59  ;;  %3597 = vmatmul.mubr.msk.bf16.gmra.mrb[60].mxu1 %vm782_vm0, %v3697_v2 }
  0xee   : > { %v3474_v3 = vpop.f32.mrb[0].mxu0 }
  0xef   : > { %v3273_v4 = vpack.c.bf16 %v3474_v3, %v3474_v3  ;;  %v1009_v5 = vpop.f32.mrb[1].mxu0  ;;  %v1788_v9 = vmul.f32 %v3474_v3, %v3474_v3  ;;  %v1526_v18 = vsel %vm1520_vm2, %v3474_v3, 0.0 }
  0xf0   : > { %v1786_v6 = vmul.f32 %v1009_v5, %v1009_v5  ;;  %v3271_v7 = vpack.c.bf16 %v1009_v5, %v1009_v5  ;;  %v3475_v8 = vpop.f32.mrb[2].mxu0  ;;  %v1523_v12 = vsel %vm1520_vm2, %v1009_v5, 0.0 }
  0xf1   : > { %2691 = vst.msk [vmem:[%s3921_s6 + $0x8] sm:$0xf] %vm2688_vm1, %v3273_v4  ;;  %v3274_v10 = vpack.c.bf16 %v3475_v8, %v3475_v8  ;;  %v1012_v11 = vpop.f32.mrb[3].mxu0  ;;  %v1789_v16 = vmul.f32 %v3475_v8, %v3475_v8  ;;  %v1917_v23 = vsel %vm1520_vm2, %v1788_v9, 0.0  ;;  %v1528_v25 = vsel %vm1520_vm2, %v3475_v8, 0.0 }
  0xf2   : > { %2689 = vst.msk [vmem:[%s3921_s6] sm:$0xf] %vm2688_vm1, %v3271_v7  ;;  %v1524_v13 = vsel %vm1520_vm2, %v1012_v11, 0.0  ;;  %v1787_v14 = vmul.f32 %v1012_v11, %v1012_v11  ;;  %v3272_v15 = vpack.c.bf16 %v1012_v11, %v1012_v11  ;;  %v1914_v19 = vsel %vm1520_vm2, %v1786_v6, 0.0 }
  0xf3   : > { %2692 = vst.msk [vmem:[%s3921_s6 + $0xc] sm:$0xf] %vm2688_vm1, %v3274_v10  ;;  %v1525_v17 = vadd.f32 %v1524_v13, %v1523_v12  ;;  %v1919_v26 = vsel %vm1520_vm2, %v1789_v16, 0.0 }
  0xf4   : > { %v1915_v20 = vsel %vm1520_vm2, %v1787_v14, 0.0  ;;  %2690 = vst.msk [vmem:[%s3921_s6 + $0x4] sm:$0xf] %vm2688_vm1, %v3272_v15 }
  0xf5   : > { %v1527_v21 = vadd.f32 %v1526_v18, %v1525_v17  ;;  %v1916_v22 = vadd.f32 %v1915_v20, %v1914_v19 }
  0xf6   : > { %v3478_v24 = vpop.f32.mrb[4].mxu0 }
  0xf7   : > { %v1918_v27 = vadd.f32 %v1917_v23, %v1916_v22  ;;  %v3277_v28 = vpack.c.bf16 %v3478_v24, %v3478_v24  ;;  %v1025_v29 = vpop.f32.mrb[5].mxu0  ;;  %v1529_v30 = vadd.f32 %v1528_v25, %v1527_v21  ;;  %v1792_v41 = vmul.f32 %v3478_v24, %v3478_v24 }
  0xf8   : > { %v1530_v31 = vsel %vm1520_vm2, %v1025_v29, 0.0  ;;  %v1790_v32 = vmul.f32 %v1025_v29, %v1025_v29  ;;  %v3275_v33 = vpack.c.bf16 %v1025_v29, %v1025_v29  ;;  %v3479_v34 = vpop.f32.mrb[6].mxu0  ;;  %v1534_v46 = vsel %vm1520_vm2, %v3478_v24, 0.0 }
  0xf9   : > { %2695 = vst.msk [vmem:[%s3921_s6 + $0x18] sm:$0xf] %vm2688_vm1, %v3277_v28  ;;  %v1920_v35 = vadd.f32 %v1919_v26, %v1918_v27  ;;  %v1028_v36 = vpop.f32.mrb[7].mxu0  ;;  %v1531_v37 = vadd.f32 %v1530_v31, %v1529_v30  ;;  %v3278_v39 = vpack.c.bf16 %v3479_v34, %v3479_v34  ;;  %v1793_v47 = vmul.f32 %v3479_v34, %v3479_v34 }
  0xfa   : > { %v1921_v38 = vsel %vm1520_vm2, %v1790_v32, 0.0  ;;  %2693 = vst.msk [vmem:[%s3921_s6 + $0x10] sm:$0xf] %vm2688_vm1, %v3275_v33  ;;  %v1532_v40 = vsel %vm1520_vm2, %v1028_v36, 0.0  ;;  %v1791_v43 = vmul.f32 %v1028_v36, %v1028_v36  ;;  %v3276_v44 = vpack.c.bf16 %v1028_v36, %v1028_v36  ;;  %v3975_v32 = vpop.f32.mrb[0].mxu1 }
  0xfb   : > { %v1922_v42 = vadd.f32 %v1921_v38, %v1920_v35  ;;  %2696 = vst.msk [vmem:[%s3921_s6 + $0x1c] sm:$0xf] %vm2688_vm1, %v3278_v39  ;;  %v1533_v45 = vadd.f32 %v1532_v40, %v1531_v37  ;;  %v1925_v52 = vsel %vm1520_vm2, %v1792_v41, 0.0  ;;  %v1536_v53 = vsel %vm1520_vm2, %v3479_v34, 0.0  ;;  %v3980_v37 = vpop.f32.mrb[1].mxu1 }
  0xfc   : > { %v1923_v48 = vsel %vm1520_vm2, %v1791_v43, 0.0  ;;  %2694 = vst.msk [vmem:[%s3921_s6 + $0x14] sm:$0xf] %vm2688_vm1, %v3276_v44  ;;  %v1927_v61 = vsel %vm1520_vm2, %v1793_v47, 0.0  ;;  %v3984_v40 = vpop.f32.mrb[2].mxu1  ;;  %v3337_v44 = vpack.c.bf16 %v3975_v32, %v3975_v32 }
  0xfd   : > { %v1535_v49 = vadd.f32 %v1534_v46, %v1533_v45  ;;  %v1924_v50 = vadd.f32 %v1923_v48, %v1922_v42  ;;  %v3992_v45 = vpop.f32.mrb[3].mxu1 }
  0xfe   : > { %v3482_v51 = vpop.f32.mrb[8].mxu0  ;;  %2755 = vst.msk [vmem:[%s3921_s6 + $0x108] sm:$0xf] %vm2688_vm1, %v3337_v44 }
  0xff   : > { %v3281_v54 = vpack.c.bf16 %v3482_v51, %v3482_v51  ;;  %v1041_v55 = vpop.f32.mrb[9].mxu0  ;;  %v1926_v56 = vadd.f32 %v1925_v52, %v1924_v50  ;;  %v1537_v57 = vadd.f32 %v1536_v53, %v1535_v49  ;;  %v1796_v4 = vmul.f32 %v3482_v51, %v3482_v51 }
 0x100   : > { %v1538_v58 = vsel %vm1520_vm2, %v1041_v55, 0.0  ;;  %v1794_v59 = vmul.f32 %v1041_v55, %v1041_v55  ;;  %v3483_v60 = vpop.f32.mrb[10].mxu0  ;;  %v3279_v62 = vpack.c.bf16 %v1041_v55, %v1041_v55  ;;  %v1542_v10 = vsel %vm1520_vm2, %v3482_v51, 0.0 }
 0x101   : > { %2699 = vst.msk [vmem:[%s3921_s6 + $0x28] sm:$0xf] %vm2688_vm1, %v3281_v54  ;;  %v1044_v63 = vpop.f32.mrb[11].mxu0  ;;  %v1539_v0 = vadd.f32 %v1538_v58, %v1537_v57  ;;  %v1928_v1 = vadd.f32 %v1927_v61, %v1926_v56  ;;  %v3282_v3 = vpack.c.bf16 %v3483_v60, %v3483_v60  ;;  %v1797_v11 = vmul.f32 %v3483_v60, %v3483_v60 }
 0x102   : > { %v1929_v2 = vsel %vm1520_vm2, %v1794_v59, 0.0  ;;  %2697 = vst.msk [vmem:[%s3921_s6 + $0x20] sm:$0xf] %vm2688_vm1, %v3279_v62  ;;  %v1540_v5 = vsel %vm1520_vm2, %v1044_v63, 0.0  ;;  %v1795_v6 = vmul.f32 %v1044_v63, %v1044_v63  ;;  %v3280_v7 = vpack.c.bf16 %v1044_v63, %v1044_v63 }
 0x103   : > { %v1930_v8 = vadd.f32 %v1929_v2, %v1928_v1  ;;  %2700 = vst.msk [vmem:[%s3921_s6 + $0x2c] sm:$0xf] %vm2688_vm1, %v3282_v3  ;;  %v1541_v9 = vadd.f32 %v1540_v5, %v1539_v0  ;;  %v1933_v16 = vsel %vm1520_vm2, %v1796_v4, 0.0  ;;  %v1544_v17 = vsel %vm1520_vm2, %v3483_v60, 0.0  ;;  %v4007_v2 = vpop.f32.mrb[4].mxu1 }
 0x104   : > { %v1931_v12 = vsel %vm1520_vm2, %v1795_v6, 0.0  ;;  %2698 = vst.msk [vmem:[%s3921_s6 + $0x24] sm:$0xf] %vm2688_vm1, %v3280_v7  ;;  %v1935_v25 = vsel %vm1520_vm2, %v1797_v11, 0.0  ;;  %v3335_v49 = vpack.c.bf16 %v3980_v37, %v3980_v37  ;;  %v4012_v7 = vpop.f32.mrb[5].mxu1 }
 0x105   : > { %v1543_v13 = vadd.f32 %v1542_v10, %v1541_v9  ;;  %v1932_v14 = vadd.f32 %v1931_v12, %v1930_v8  ;;  %v4016_v10 = vpop.f32.mrb[6].mxu1 }
 0x106   : > { %v3486_v15 = vpop.f32.mrb[12].mxu0  ;;  %2753 = vst.msk [vmem:[%s3921_s6 + $0x100] sm:$0xf] %vm2688_vm1, %v3335_v49 }
 0x107   : > { %v3285_v18 = vpack.c.bf16 %v3486_v15, %v3486_v15  ;;  %v1057_v19 = vpop.f32.mrb[13].mxu0  ;;  %v1934_v20 = vadd.f32 %v1933_v16, %v1932_v14  ;;  %v1545_v21 = vadd.f32 %v1544_v17, %v1543_v13  ;;  %v1800_v33 = vmul.f32 %v3486_v15, %v3486_v15 }
 0x108   : > { %v1546_v22 = vsel %vm1520_vm2, %v1057_v19, 0.0  ;;  %v1798_v23 = vmul.f32 %v1057_v19, %v1057_v19  ;;  %v3487_v24 = vpop.f32.mrb[14].mxu0  ;;  %v3283_v26 = vpack.c.bf16 %v1057_v19, %v1057_v19  ;;  %v1550_v41 = vsel %vm1520_vm2, %v3486_v15, 0.0  ;;  %v4024_v15 = vpop.f32.mrb[7].mxu1 }
 0x109   : > { %2703 = vst.msk [vmem:[%s3921_s6 + $0x38] sm:$0xf] %vm2688_vm1, %v3285_v18  ;;  %v1060_v27 = vpop.f32.mrb[15].mxu0  ;;  %v1547_v28 = vadd.f32 %v1546_v22, %v1545_v21  ;;  %v1936_v29 = vadd.f32 %v1935_v25, %v1934_v20  ;;  %v3286_v31 = vpack.c.bf16 %v3487_v24, %v3487_v24  ;;  %v1801_v42 = vmul.f32 %v3487_v24, %v3487_v24 }
 0x10a   : > { %v1937_v30 = vsel %vm1520_vm2, %v1798_v23, 0.0  ;;  %2701 = vst.msk [vmem:[%s3921_s6 + $0x30] sm:$0xf] %vm2688_vm1, %v3283_v26  ;;  %v1548_v34 = vsel %vm1520_vm2, %v1060_v27, 0.0  ;;  %v1799_v35 = vmul.f32 %v1060_v27, %v1060_v27  ;;  %v3284_v36 = vpack.c.bf16 %v1060_v27, %v1060_v27 }
 0x10b   : > { %v1938_v38 = vadd.f32 %v1937_v30, %v1936_v29  ;;  %2704 = vst.msk [vmem:[%s3921_s6 + $0x3c] sm:$0xf] %vm2688_vm1, %v3286_v31  ;;  %v1549_v39 = vadd.f32 %v1548_v34, %v1547_v28  ;;  %v1941_v50 = vsel %vm1520_vm2, %v1800_v33, 0.0  ;;  %v1552_v51 = vsel %vm1520_vm2, %v3487_v24, 0.0 }
 0x10c   : > { %v1939_v43 = vsel %vm1520_vm2, %v1799_v35, 0.0  ;;  %2702 = vst.msk [vmem:[%s3921_s6 + $0x34] sm:$0xf] %vm2688_vm1, %v3284_v36  ;;  %v1943_v59 = vsel %vm1520_vm2, %v1801_v42, 0.0  ;;  %v3338_v14 = vpack.c.bf16 %v3984_v40, %v3984_v40  ;;  %v3336_v19 = vpack.c.bf16 %v3992_v45, %v3992_v45 }
 0x10d   : > { %v1551_v46 = vadd.f32 %v1550_v41, %v1549_v39  ;;  %v1940_v47 = vadd.f32 %v1939_v43, %v1938_v38  ;;  %v4039_v38 = vpop.f32.mrb[8].mxu1 }
 0x10e   : > { %v3490_v48 = vpop.f32.mrb[16].mxu0  ;;  %2756 = vst.msk [vmem:[%s3921_s6 + $0x10c] sm:$0xf] %vm2688_vm1, %v3338_v14  ;;  %2754 = vst.msk [vmem:[%s3921_s6 + $0x104] sm:$0xf] %vm2688_vm1, %v3336_v19  ;;  %v4044_v44 = vpop.f32.mrb[9].mxu1 }
 0x10f   : > { %v3289_v52 = vpack.c.bf16 %v3490_v48, %v3490_v48  ;;  %v1073_v53 = vpop.f32.mrb[17].mxu0  ;;  %v1942_v54 = vadd.f32 %v1941_v50, %v1940_v47  ;;  %v1553_v55 = vadd.f32 %v1552_v51, %v1551_v46  ;;  %v1804_v3 = vmul.f32 %v3490_v48, %v3490_v48 }
 0x110   : > { %v1554_v56 = vsel %vm1520_vm2, %v1073_v53, 0.0  ;;  %v1802_v57 = vmul.f32 %v1073_v53, %v1073_v53  ;;  %v3491_v58 = vpop.f32.mrb[18].mxu0  ;;  %v3287_v60 = vpack.c.bf16 %v1073_v53, %v1073_v53  ;;  %v1558_v11 = vsel %vm1520_vm2, %v3490_v48, 0.0  ;;  %v4048_v48 = vpop.f32.mrb[10].mxu1 }
 0x111   : > { %2707 = vst.msk [vmem:[%s3921_s6 + $0x48] sm:$0xf] %vm2688_vm1, %v3289_v52  ;;  %v1076_v61 = vpop.f32.mrb[19].mxu0  ;;  %v1555_v62 = vadd.f32 %v1554_v56, %v1553_v55  ;;  %v1944_v63 = vadd.f32 %v1943_v59, %v1942_v54  ;;  %v3290_v1 = vpack.c.bf16 %v3491_v58, %v3491_v58  ;;  %v1805_v12 = vmul.f32 %v3491_v58, %v3491_v58  ;;  %v4056_v53 = vpop.f32.mrb[11].mxu1 }
 0x112   : > { %v1945_v0 = vsel %vm1520_vm2, %v1802_v57, 0.0  ;;  %2705 = vst.msk [vmem:[%s3921_s6 + $0x40] sm:$0xf] %vm2688_vm1, %v3287_v60  ;;  %v1556_v4 = vsel %vm1520_vm2, %v1076_v61, 0.0  ;;  %v1803_v5 = vmul.f32 %v1076_v61, %v1076_v61  ;;  %v3288_v6 = vpack.c.bf16 %v1076_v61, %v1076_v61 }
 0x113   : > { %v1946_v8 = vadd.f32 %v1945_v0, %v1944_v63  ;;  %2708 = vst.msk [vmem:[%s3921_s6 + $0x4c] sm:$0xf] %vm2688_vm1, %v3290_v1  ;;  %v1557_v9 = vadd.f32 %v1556_v4, %v1555_v62  ;;  %v1949_v20 = vsel %vm1520_vm2, %v1804_v3, 0.0  ;;  %v1560_v21 = vsel %vm1520_vm2, %v3491_v58, 0.0 }
 0x114   : > { %v1947_v13 = vsel %vm1520_vm2, %v1803_v5, 0.0  ;;  %2706 = vst.msk [vmem:[%s3921_s6 + $0x44] sm:$0xf] %vm2688_vm1, %v3288_v6  ;;  %v1951_v29 = vsel %vm1520_vm2, %v1805_v12, 0.0  ;;  %v3341_v52 = vpack.c.bf16 %v4007_v2, %v4007_v2  ;;  %v3339_v57 = vpack.c.bf16 %v4012_v7, %v4012_v7 }
 0x115   : > { %v1559_v16 = vadd.f32 %v1558_v11, %v1557_v9  ;;  %v1948_v17 = vadd.f32 %v1947_v13, %v1946_v8  ;;  %v4071_v13 = vpop.f32.mrb[12].mxu1 }
 0x116   : > { %v3494_v18 = vpop.f32.mrb[20].mxu0  ;;  %2759 = vst.msk [vmem:[%s3921_s6 + $0x118] sm:$0xf] %vm2688_vm1, %v3341_v52  ;;  %2757 = vst.msk [vmem:[%s3921_s6 + $0x110] sm:$0xf] %vm2688_vm1, %v3339_v57  ;;  %v4076_v19 = vpop.f32.mrb[13].mxu1 }
 0x117   : > { %v3293_v22 = vpack.c.bf16 %v3494_v18, %v3494_v18  ;;  %v1089_v23 = vpop.f32.mrb[21].mxu0  ;;  %v1950_v24 = vadd.f32 %v1949_v20, %v1948_v17  ;;  %v1561_v25 = vadd.f32 %v1560_v21, %v1559_v16  ;;  %v1808_v39 = vmul.f32 %v3494_v18, %v3494_v18 }
 0x118   : > { %v1562_v26 = vsel %vm1520_vm2, %v1089_v23, 0.0  ;;  %v1806_v27 = vmul.f32 %v1089_v23, %v1089_v23  ;;  %v3495_v28 = vpop.f32.mrb[22].mxu0  ;;  %v3291_v30 = vpack.c.bf16 %v1089_v23, %v1089_v23  ;;  %v1566_v49 = vsel %vm1520_vm2, %v3494_v18, 0.0 }
 0x119   : > { %2711 = vst.msk [vmem:[%s3921_s6 + $0x58] sm:$0xf] %vm2688_vm1, %v3293_v22  ;;  %v1092_v31 = vpop.f32.mrb[23].mxu0  ;;  %v1563_v33 = vadd.f32 %v1562_v26, %v1561_v25  ;;  %v1952_v34 = vadd.f32 %v1951_v29, %v1950_v24  ;;  %v3294_v36 = vpack.c.bf16 %v3495_v28, %v3495_v28  ;;  %v1809_v50 = vmul.f32 %v3495_v28, %v3495_v28  ;;  %v4080_v22 = vpop.f32.mrb[14].mxu1 }
 0x11a   : > { %v1953_v35 = vsel %vm1520_vm2, %v1806_v27, 0.0  ;;  %2709 = vst.msk [vmem:[%s3921_s6 + $0x50] sm:$0xf] %vm2688_vm1, %v3291_v30  ;;  %v1564_v41 = vsel %vm1520_vm2, %v1092_v31, 0.0  ;;  %v1807_v42 = vmul.f32 %v1092_v31, %v1092_v31  ;;  %v3292_v43 = vpack.c.bf16 %v1092_v31, %v1092_v31  ;;  %v4088_v27 = vpop.f32.mrb[15].mxu1 }
 0x11b   : > { %v1954_v46 = vadd.f32 %v1953_v35, %v1952_v34  ;;  %2712 = vst.msk [vmem:[%s3921_s6 + $0x5c] sm:$0xf] %vm2688_vm1, %v3294_v36  ;;  %v1565_v47 = vadd.f32 %v1564_v41, %v1563_v33  ;;  %v1957_v58 = vsel %vm1520_vm2, %v1808_v39, 0.0  ;;  %v1568_v59 = vsel %vm1520_vm2, %v3495_v28, 0.0 }
 0x11c   : > { %v1955_v51 = vsel %vm1520_vm2, %v1807_v42, 0.0  ;;  %2710 = vst.msk [vmem:[%s3921_s6 + $0x54] sm:$0xf] %vm2688_vm1, %v3292_v43  ;;  %v1959_v4 = vsel %vm1520_vm2, %v1809_v50, 0.0  ;;  %v3342_v26 = vpack.c.bf16 %v4016_v10, %v4016_v10  ;;  %v3340_v31 = vpack.c.bf16 %v4024_v15, %v4024_v15 }
 0x11d   : > { %v1567_v54 = vadd.f32 %v1566_v49, %v1565_v47  ;;  %v1956_v55 = vadd.f32 %v1955_v51, %v1954_v46 }
 0x11e   : > { %v3498_v56 = vpop.f32.mrb[24].mxu0  ;;  %2760 = vst.msk [vmem:[%s3921_s6 + $0x11c] sm:$0xf] %vm2688_vm1, %v3342_v26  ;;  %2758 = vst.msk [vmem:[%s3921_s6 + $0x114] sm:$0xf] %vm2688_vm1, %v3340_v31 }
 0x11f   : > { %v3297_v60 = vpack.c.bf16 %v3498_v56, %v3498_v56  ;;  %v1105_v61 = vpop.f32.mrb[25].mxu0  ;;  %v1958_v62 = vadd.f32 %v1957_v58, %v1956_v55  ;;  %v1569_v63 = vadd.f32 %v1568_v59, %v1567_v54  ;;  %v1812_v14 = vmul.f32 %v3498_v56, %v3498_v56 }
 0x120   : > { %v1570_v0 = vsel %vm1520_vm2, %v1105_v61, 0.0  ;;  %v1810_v1 = vmul.f32 %v1105_v61, %v1105_v61  ;;  %v3499_v3 = vpop.f32.mrb[26].mxu0  ;;  %v3295_v5 = vpack.c.bf16 %v1105_v61, %v1105_v61  ;;  %v1574_v23 = vsel %vm1520_vm2, %v3498_v56, 0.0  ;;  %v4103_v56 = vpop.f32.mrb[16].mxu1 }
 0x121   : > { %2715 = vst.msk [vmem:[%s3921_s6 + $0x68] sm:$0xf] %vm2688_vm1, %v3297_v60  ;;  %v1108_v6 = vpop.f32.mrb[27].mxu0  ;;  %v1571_v8 = vadd.f32 %v1570_v0, %v1569_v63  ;;  %v1960_v9 = vadd.f32 %v1959_v4, %v1958_v62  ;;  %v3298_v12 = vpack.c.bf16 %v3499_v3, %v3499_v3  ;;  %v1813_v24 = vmul.f32 %v3499_v3, %v3499_v3  ;;  %v4108_v61 = vpop.f32.mrb[17].mxu1 }
 0x122   : > { %v1961_v11 = vsel %vm1520_vm2, %v1810_v1, 0.0  ;;  %2713 = vst.msk [vmem:[%s3921_s6 + $0x60] sm:$0xf] %vm2688_vm1, %v3295_v5  ;;  %v1572_v16 = vsel %vm1520_vm2, %v1108_v6, 0.0  ;;  %v1811_v17 = vmul.f32 %v1108_v6, %v1108_v6  ;;  %v3296_v18 = vpack.c.bf16 %v1108_v6, %v1108_v6  ;;  %v4112_v0 = vpop.f32.mrb[18].mxu1 }
 0x123   : > { %v1962_v20 = vadd.f32 %v1961_v11, %v1960_v9  ;;  %2716 = vst.msk [vmem:[%s3921_s6 + $0x6c] sm:$0xf] %vm2688_vm1, %v3298_v12  ;;  %v1573_v21 = vadd.f32 %v1572_v16, %v1571_v8  ;;  %v1965_v33 = vsel %vm1520_vm2, %v1812_v14, 0.0  ;;  %v1576_v34 = vsel %vm1520_vm2, %v3499_v3, 0.0  ;;  %4932 = vst [vmem:[#allocation2_spill] sm:$0xff] %v4112_v0  ;;  %v4120_v6 = vpop.f32.mrb[19].mxu1 }
 0x124   : > { %v1963_v25 = vsel %vm1520_vm2, %v1811_v17, 0.0  ;;  %2714 = vst.msk [vmem:[%s3921_s6 + $0x64] sm:$0xf] %vm2688_vm1, %v3296_v18  ;;  %v1967_v47 = vsel %vm1520_vm2, %v1813_v24, 0.0  ;;  %v3345_v5 = vpack.c.bf16 %v4039_v38, %v4039_v38  ;;  %v3343_v12 = vpack.c.bf16 %v4044_v44, %v4044_v44 }
 0x125   : > { %v1575_v28 = vadd.f32 %v1574_v23, %v1573_v21  ;;  %v1964_v29 = vadd.f32 %v1963_v25, %v1962_v20 }
 0x126   : > { %v3502_v30 = vpop.f32.mrb[28].mxu0  ;;  %2763 = vst.msk [vmem:[%s3921_s6 + $0x128] sm:$0xf] %vm2688_vm1, %v3345_v5  ;;  %2761 = vst.msk [vmem:[%s3921_s6 + $0x120] sm:$0xf] %vm2688_vm1, %v3343_v12 }
 0x127   : > { %v3301_v35 = vpack.c.bf16 %v3502_v30, %v3502_v30  ;;  %v1121_v36 = vpop.f32.mrb[29].mxu0  ;;  %v1966_v39 = vadd.f32 %v1965_v33, %v1964_v29  ;;  %v1577_v41 = vadd.f32 %v1576_v34, %v1575_v28  ;;  %v1816_v57 = vmul.f32 %v3502_v30, %v3502_v30 }
 0x128   : > { %v1578_v42 = vsel %vm1520_vm2, %v1121_v36, 0.0  ;;  %v1814_v43 = vmul.f32 %v1121_v36, %v1121_v36  ;;  %v3503_v46 = vpop.f32.mrb[30].mxu0  ;;  %v3299_v49 = vpack.c.bf16 %v1121_v36, %v1121_v36  ;;  %v1582_v1 = vsel %vm1520_vm2, %v3502_v30, 0.0 }
 0x129   : > { %2719 = vst.msk [vmem:[%s3921_s6 + $0x78] sm:$0xf] %vm2688_vm1, %v3301_v35  ;;  %v1124_v50 = vpop.f32.mrb[31].mxu0  ;;  %v1579_v51 = vadd.f32 %v1578_v42, %v1577_v41  ;;  %v1968_v52 = vadd.f32 %v1967_v47, %v1966_v39  ;;  %v3302_v55 = vpack.c.bf16 %v3503_v46, %v3503_v46  ;;  %v1817_v3 = vmul.f32 %v3503_v46, %v3503_v46  ;;  %v4135_v35 = vpop.f32.mrb[20].mxu1 }
 0x12a   : > { %v1969_v54 = vsel %vm1520_vm2, %v1814_v43, 0.0  ;;  %2717 = vst.msk [vmem:[%s3921_s6 + $0x70] sm:$0xf] %vm2688_vm1, %v3299_v49  ;;  %v1580_v58 = vsel %vm1520_vm2, %v1124_v50, 0.0  ;;  %v1815_v59 = vmul.f32 %v1124_v50, %v1124_v50  ;;  %v3300_v60 = vpack.c.bf16 %v1124_v50, %v1124_v50  ;;  %4933 = vst [vmem:[#allocation3_spill] sm:$0xff] %v4135_v35  ;;  %v4140_v43 = vpop.f32.mrb[21].mxu1 }
 0x12b   : > { %v1970_v62 = vadd.f32 %v1969_v54, %v1968_v52  ;;  %2720 = vst.msk [vmem:[%s3921_s6 + $0x7c] sm:$0xf] %vm2688_vm1, %v3302_v55  ;;  %v1581_v63 = vadd.f32 %v1580_v58, %v1579_v51  ;;  %v1973_v14 = vsel %vm1520_vm2, %v1816_v57, 0.0  ;;  %v1584_v16 = vsel %vm1520_vm2, %v3503_v46, 0.0  ;;  %4934 = vst [vmem:[#allocation4_spill] sm:$0xff] %v4140_v43  ;;  %v4144_v49 = vpop.f32.mrb[22].mxu1 }
 0x12c   : > { %v1971_v4 = vsel %vm1520_vm2, %v1815_v59, 0.0  ;;  %2718 = vst.msk [vmem:[%s3921_s6 + $0x74] sm:$0xf] %vm2688_vm1, %v3300_v60  ;;  %v1975_v26 = vsel %vm1520_vm2, %v1817_v3, 0.0  ;;  %4935 = vst [vmem:[#allocation5_spill] sm:$0xff] %v4144_v49  ;;  %v3346_v54 = vpack.c.bf16 %v4048_v48, %v4048_v48  ;;  %v4152_v55 = vpop.f32.mrb[23].mxu1  ;;  %v3344_v60 = vpack.c.bf16 %v4056_v53, %v4056_v53 }
 0x12d   : > { %v1583_v8 = vadd.f32 %v1582_v1, %v1581_v63  ;;  %v1972_v9 = vadd.f32 %v1971_v4, %v1970_v62  ;;  %4936 = vst [vmem:[#allocation6_spill] sm:$0xff] %v4152_v55 }
 0x12e   : > { %v3506_v11 = vpop.f32.mrb[32].mxu0  ;;  %2764 = vst.msk [vmem:[%s3921_s6 + $0x12c] sm:$0xf] %vm2688_vm1, %v3346_v54  ;;  %2762 = vst.msk [vmem:[%s3921_s6 + $0x124] sm:$0xf] %vm2688_vm1, %v3344_v60 }
 0x12f   : > { %v3305_v17 = vpack.c.bf16 %v3506_v11, %v3506_v11  ;;  %v1137_v18 = vpop.f32.mrb[33].mxu0  ;;  %v1974_v20 = vadd.f32 %v1973_v14, %v1972_v9  ;;  %v1585_v21 = vadd.f32 %v1584_v16, %v1583_v8  ;;  %v1820_v36 = vmul.f32 %v3506_v11, %v3506_v11 }
 0x130   : > { %v1586_v23 = vsel %vm1520_vm2, %v1137_v18, 0.0  ;;  %v1818_v24 = vmul.f32 %v1137_v18, %v1137_v18  ;;  %v3507_v25 = vpop.f32.mrb[34].mxu0  ;;  %v3303_v28 = vpack.c.bf16 %v1137_v18, %v1137_v18  ;;  %v1590_v50 = vsel %vm1520_vm2, %v3506_v11, 0.0 }
 0x131   : > { %2723 = vst.msk [vmem:[%s3921_s6 + $0x88] sm:$0xf] %vm2688_vm1, %v3305_v17  ;;  %v1140_v29 = vpop.f32.mrb[35].mxu0  ;;  %v1587_v30 = vadd.f32 %v1586_v23, %v1585_v21  ;;  %v1976_v31 = vadd.f32 %v1975_v26, %v1974_v20  ;;  %v3306_v34 = vpack.c.bf16 %v3507_v25, %v3507_v25  ;;  %v1821_v51 = vmul.f32 %v3507_v25, %v3507_v25  ;;  %v4167_v23 = vpop.f32.mrb[24].mxu1 }
 0x132   : > { %v1977_v33 = vsel %vm1520_vm2, %v1818_v24, 0.0  ;;  %2721 = vst.msk [vmem:[%s3921_s6 + $0x80] sm:$0xf] %vm2688_vm1, %v3303_v28  ;;  %v1588_v39 = vsel %vm1520_vm2, %v1140_v29, 0.0  ;;  %v1819_v41 = vmul.f32 %v1140_v29, %v1140_v29  ;;  %v3304_v42 = vpack.c.bf16 %v1140_v29, %v1140_v29  ;;  %4937 = vst [vmem:[#allocation7_spill] sm:$0xff] %v4167_v23  ;;  %v4172_v29 = vpop.f32.mrb[25].mxu1 }
 0x133   : > { %v1978_v46 = vadd.f32 %v1977_v33, %v1976_v31  ;;  %2724 = vst.msk [vmem:[%s3921_s6 + $0x8c] sm:$0xf] %vm2688_vm1, %v3306_v34  ;;  %v1589_v47 = vadd.f32 %v1588_v39, %v1587_v30  ;;  %v1981_v62 = vsel %vm1520_vm2, %v1820_v36, 0.0  ;;  %v1592_v63 = vsel %vm1520_vm2, %v3507_v25, 0.0  ;;  %v4176_v33 = vpop.f32.mrb[26].mxu1 }
 0x134   : > { %v1979_v52 = vsel %vm1520_vm2, %v1819_v41, 0.0  ;;  %2722 = vst.msk [vmem:[%s3921_s6 + $0x84] sm:$0xf] %vm2688_vm1, %v3304_v42  ;;  %v1983_v12 = vsel %vm1520_vm2, %v1821_v51, 0.0  ;;  %v3349_v41 = vpack.c.bf16 %v4071_v13, %v4071_v13  ;;  %v4184_v42 = vpop.f32.mrb[27].mxu1  ;;  %v3347_v51 = vpack.c.bf16 %v4076_v19, %v4076_v19 }
 0x135   : > { %v1591_v57 = vadd.f32 %v1590_v50, %v1589_v47  ;;  %v1980_v58 = vadd.f32 %v1979_v52, %v1978_v46 }
 0x136   : > { %v3510_v59 = vpop.f32.mrb[36].mxu0  ;;  %2767 = vst.msk [vmem:[%s3921_s6 + $0x138] sm:$0xf] %vm2688_vm1, %v3349_v41  ;;  %2765 = vst.msk [vmem:[%s3921_s6 + $0x130] sm:$0xf] %vm2688_vm1, %v3347_v51 }
 0x137   : > { %v3309_v1 = vpack.c.bf16 %v3510_v59, %v3510_v59  ;;  %v1153_v3 = vpop.f32.mrb[37].mxu0  ;;  %v1982_v4 = vadd.f32 %v1981_v62, %v1980_v58  ;;  %v1593_v5 = vadd.f32 %v1592_v63, %v1591_v57  ;;  %v1824_v24 = vmul.f32 %v3510_v59, %v3510_v59 }
 0x138   : > { %v1594_v8 = vsel %vm1520_vm2, %v1153_v3, 0.0  ;;  %v1822_v9 = vmul.f32 %v1153_v3, %v1153_v3  ;;  %v3511_v11 = vpop.f32.mrb[38].mxu0  ;;  %v3307_v14 = vpack.c.bf16 %v1153_v3, %v1153_v3  ;;  %v1598_v34 = vsel %vm1520_vm2, %v3510_v59, 0.0 }
 0x139   : > { %2727 = vst.msk [vmem:[%s3921_s6 + $0x98] sm:$0xf] %vm2688_vm1, %v3309_v1  ;;  %v1156_v16 = vpop.f32.mrb[39].mxu0  ;;  %v1595_v17 = vadd.f32 %v1594_v8, %v1593_v5  ;;  %v1984_v18 = vadd.f32 %v1983_v12, %v1982_v4  ;;  %v3310_v21 = vpack.c.bf16 %v3511_v11, %v3511_v11  ;;  %v1825_v36 = vmul.f32 %v3511_v11, %v3511_v11 }
 0x13a   : > { %v1985_v20 = vsel %vm1520_vm2, %v1822_v9, 0.0  ;;  %2725 = vst.msk [vmem:[%s3921_s6 + $0x90] sm:$0xf] %vm2688_vm1, %v3307_v14  ;;  %v1596_v25 = vsel %vm1520_vm2, %v1156_v16, 0.0  ;;  %v1823_v26 = vmul.f32 %v1156_v16, %v1156_v16  ;;  %v3308_v28 = vpack.c.bf16 %v1156_v16, %v1156_v16  ;;  %v4199_v14 = vpop.f32.mrb[28].mxu1 }
 0x13b   : > { %v1986_v30 = vadd.f32 %v1985_v20, %v1984_v18  ;;  %2728 = vst.msk [vmem:[%s3921_s6 + $0x9c] sm:$0xf] %vm2688_vm1, %v3310_v21  ;;  %v1597_v31 = vadd.f32 %v1596_v25, %v1595_v17  ;;  %v1989_v52 = vsel %vm1520_vm2, %v1824_v24, 0.0  ;;  %v1600_v54 = vsel %vm1520_vm2, %v3511_v11, 0.0  ;;  %v4204_v21 = vpop.f32.mrb[29].mxu1 }
 0x13c   : > { %v1987_v39 = vsel %vm1520_vm2, %v1823_v26, 0.0  ;;  %2726 = vst.msk [vmem:[%s3921_s6 + $0x94] sm:$0xf] %vm2688_vm1, %v3308_v28  ;;  %v1991_v3 = vsel %vm1520_vm2, %v1825_v36, 0.0  ;;  %v4208_v26 = vpop.f32.mrb[30].mxu1 }
 0x13d   : > { %v1599_v46 = vadd.f32 %v1598_v34, %v1597_v31  ;;  %v1988_v47 = vadd.f32 %v1987_v39, %v1986_v30  ;;  %v3350_v34 = vpack.c.bf16 %v4080_v22, %v4080_v22  ;;  %v4216_v36 = vpop.f32.mrb[31].mxu1 }
 0x13e   : > { %v3514_v50 = vpop.f32.mrb[40].mxu0 }
 0x13f   : > { %v3313_v57 = vpack.c.bf16 %v3514_v50, %v3514_v50  ;;  %v1169_v58 = vpop.f32.mrb[41].mxu0  ;;  %v1990_v59 = vadd.f32 %v1989_v52, %v1988_v47  ;;  %v1601_v60 = vadd.f32 %v1600_v54, %v1599_v46  ;;  %v1828_v16 = vmul.f32 %v3514_v50, %v3514_v50  ;;  %2768 = vst.msk [vmem:[%s3921_s6 + $0x13c] sm:$0xf] %vm2688_vm1, %v3350_v34 }
 0x140   : > { %v1602_v62 = vsel %vm1520_vm2, %v1169_v58, 0.0  ;;  %v1826_v63 = vmul.f32 %v1169_v58, %v1169_v58  ;;  %v3515_v1 = vpop.f32.mrb[42].mxu0  ;;  %v3311_v4 = vpack.c.bf16 %v1169_v58, %v1169_v58  ;;  %v1606_v28 = vsel %vm1520_vm2, %v3514_v50, 0.0 }
 0x141   : > { %2731 = vst.msk [vmem:[%s3921_s6 + $0xa8] sm:$0xf] %vm2688_vm1, %v3313_v57  ;;  %v1172_v5 = vpop.f32.mrb[43].mxu0  ;;  %v1603_v8 = vadd.f32 %v1602_v62, %v1601_v60  ;;  %v1992_v9 = vadd.f32 %v1991_v3, %v1990_v59  ;;  %v3314_v12 = vpack.c.bf16 %v3515_v1, %v3515_v1  ;;  %v1829_v30 = vmul.f32 %v3515_v1, %v3515_v1 }
 0x142   : > { %v1993_v11 = vsel %vm1520_vm2, %v1826_v63, 0.0  ;;  %2729 = vst.msk [vmem:[%s3921_s6 + $0xa0] sm:$0xf] %vm2688_vm1, %v3311_v4  ;;  %v1604_v17 = vsel %vm1520_vm2, %v1172_v5, 0.0  ;;  %v1827_v18 = vmul.f32 %v1172_v5, %v1172_v5  ;;  %v3312_v20 = vpack.c.bf16 %v1172_v5, %v1172_v5 }
 0x143   : > { %v1994_v24 = vadd.f32 %v1993_v11, %v1992_v9  ;;  %2732 = vst.msk [vmem:[%s3921_s6 + $0xac] sm:$0xf] %vm2688_vm1, %v3314_v12  ;;  %v1605_v25 = vadd.f32 %v1604_v17, %v1603_v8  ;;  %v3348_v47 = vpack.c.bf16 %v4088_v27, %v4088_v27  ;;  %v1997_v50 = vsel %vm1520_vm2, %v1828_v16, 0.0  ;;  %v4231_v11 = vpop.f32.mrb[32].mxu1 }
 0x144   : > { %v1995_v31 = vsel %vm1520_vm2, %v1827_v18, 0.0  ;;  %2730 = vst.msk [vmem:[%s3921_s6 + $0xa4] sm:$0xf] %vm2688_vm1, %v3312_v20  ;;  %v1608_v51 = vsel %vm1520_vm2, %v3515_v1, 0.0  ;;  %v1999_v63 = vsel %vm1520_vm2, %v1829_v30, 0.0  ;;  %v4236_v20 = vpop.f32.mrb[33].mxu1 }
 0x145   : > { %v1607_v39 = vadd.f32 %v1606_v28, %v1605_v25  ;;  %v1996_v41 = vadd.f32 %v1995_v31, %v1994_v24  ;;  %2766 = vst.msk [vmem:[%s3921_s6 + $0x134] sm:$0xf] %vm2688_vm1, %v3348_v47  ;;  %v4240_v28 = vpop.f32.mrb[34].mxu1 }
 0x146   : > { %v3518_v46 = vpop.f32.mrb[44].mxu0 }
 0x147   : > { %v3317_v52 = vpack.c.bf16 %v3518_v46, %v3518_v46  ;;  %v1185_v54 = vpop.f32.mrb[45].mxu0  ;;  %v1998_v57 = vadd.f32 %v1997_v50, %v1996_v41  ;;  %v1609_v58 = vadd.f32 %v1608_v51, %v1607_v39  ;;  %v1832_v12 = vmul.f32 %v3518_v46, %v3518_v46  ;;  %v4248_v41 = vpop.f32.mrb[35].mxu1 }
 0x148   : > { %v1610_v59 = vsel %vm1520_vm2, %v1185_v54, 0.0  ;;  %v1830_v60 = vmul.f32 %v1185_v54, %v1185_v54  ;;  %v3519_v62 = vpop.f32.mrb[46].mxu0  ;;  %v3315_v3 = vpack.c.bf16 %v1185_v54, %v1185_v54  ;;  %v1614_v30 = vsel %vm1520_vm2, %v3518_v46, 0.0 }
 0x149   : > { %2735 = vst.msk [vmem:[%s3921_s6 + $0xb8] sm:$0xf] %vm2688_vm1, %v3317_v52  ;;  %v1188_v1 = vpop.f32.mrb[47].mxu0  ;;  %v1611_v4 = vadd.f32 %v1610_v59, %v1609_v58  ;;  %v2000_v5 = vadd.f32 %v1999_v63, %v1998_v57  ;;  %v3318_v9 = vpack.c.bf16 %v3519_v62, %v3519_v62  ;;  %v1833_v31 = vmul.f32 %v3519_v62, %v3519_v62 }
 0x14a   : > { %v2001_v8 = vsel %vm1520_vm2, %v1830_v60, 0.0  ;;  %2733 = vst.msk [vmem:[%s3921_s6 + $0xb0] sm:$0xf] %vm2688_vm1, %v3315_v3  ;;  %v1612_v16 = vsel %vm1520_vm2, %v1188_v1, 0.0  ;;  %v1831_v17 = vmul.f32 %v1188_v1, %v1188_v1  ;;  %v3316_v18 = vpack.c.bf16 %v1188_v1, %v1188_v1 }
 0x14b   : > { %v2002_v24 = vadd.f32 %v2001_v8, %v2000_v5  ;;  %2736 = vst.msk [vmem:[%s3921_s6 + $0xbc] sm:$0xf] %vm2688_vm1, %v3318_v9  ;;  %v1613_v25 = vadd.f32 %v1612_v16, %v1611_v4  ;;  %v3353_v39 = vpack.c.bf16 %v4103_v56, %v4103_v56  ;;  %v3351_v52 = vpack.c.bf16 %v4108_v61, %v4108_v61 }
 0x14c   : > { %v2003_v34 = vsel %vm1520_vm2, %v1831_v17, 0.0  ;;  %2734 = vst.msk [vmem:[%s3921_s6 + $0xb4] sm:$0xf] %vm2688_vm1, %v3316_v18  ;;  %v2005_v46 = vsel %vm1520_vm2, %v1832_v12, 0.0  ;;  %v1616_v54 = vsel %vm1520_vm2, %v3519_v62, 0.0  ;;  %v2007_v4 = vsel %vm1520_vm2, %v1833_v31, 0.0 }
 0x14d   : > { %v1615_v47 = vadd.f32 %v1614_v30, %v1613_v25  ;;  %v2004_v50 = vadd.f32 %v2003_v34, %v2002_v24  ;;  %2771 = vst.msk [vmem:[%s3921_s6 + $0x148] sm:$0xf] %vm2688_vm1, %v3353_v39  ;;  %2769 = vst.msk [vmem:[%s3921_s6 + $0x140] sm:$0xf] %vm2688_vm1, %v3351_v52  ;;  %v4263_v17 = vpop.f32.mrb[36].mxu1 }
 0x14e   : > { %v3522_v51 = vpop.f32.mrb[48].mxu0  ;;  %v4268_v31 = vpop.f32.mrb[37].mxu1 }
 0x14f   : > { %v3321_v57 = vpack.c.bf16 %v3522_v51, %v3522_v51  ;;  %v1201_v58 = vpop.f32.mrb[49].mxu0  ;;  %v2006_v59 = vadd.f32 %v2005_v46, %v2004_v50  ;;  %v1617_v60 = vadd.f32 %v1616_v54, %v1615_v47  ;;  %v1836_v18 = vmul.f32 %v3522_v51, %v3522_v51  ;;  %v4272_v47 = vpop.f32.mrb[38].mxu1 }
 0x150   : > { %v1618_v63 = vsel %vm1520_vm2, %v1201_v58, 0.0  ;;  %v1834_v3 = vmul.f32 %v1201_v58, %v1201_v58  ;;  %v3523_v1 = vpop.f32.mrb[50].mxu0  ;;  %v3319_v5 = vpack.c.bf16 %v1201_v58, %v1201_v58  ;;  %v1622_v50 = vsel %vm1520_vm2, %v3522_v51, 0.0 }
 0x151   : > { %2739 = vst.msk [vmem:[%s3921_s6 + $0xc8] sm:$0xf] %vm2688_vm1, %v3321_v57  ;;  %v1204_v62 = vpop.f32.mrb[51].mxu0  ;;  %v1619_v8 = vadd.f32 %v1618_v63, %v1617_v60  ;;  %v2008_v9 = vadd.f32 %v2007_v4, %v2006_v59  ;;  %v3322_v16 = vpack.c.bf16 %v3523_v1, %v3523_v1  ;;  %v1837_v52 = vmul.f32 %v3523_v1, %v3523_v1  ;;  %v4280_v57 = vpop.f32.mrb[39].mxu1 }
 0x152   : > { %v2009_v12 = vsel %vm1520_vm2, %v1834_v3, 0.0  ;;  %2737 = vst.msk [vmem:[%s3921_s6 + $0xc0] sm:$0xf] %vm2688_vm1, %v3319_v5  ;;  %v1620_v24 = vsel %vm1520_vm2, %v1204_v62, 0.0  ;;  %v1835_v25 = vmul.f32 %v1204_v62, %v1204_v62  ;;  %v3320_v30 = vpack.c.bf16 %v1204_v62, %v1204_v62 }
 0x153   : > { %v2010_v34 = vadd.f32 %v2009_v12, %v2008_v9  ;;  %2740 = vst.msk [vmem:[%s3921_s6 + $0xcc] sm:$0xf] %vm2688_vm1, %v3322_v16  ;;  %v1621_v39 = vadd.f32 %v1620_v24, %v1619_v8  ;;  %v3354_v54 = vpack.c.bf16 %v4112_v0, %v4112_v0  ;;  %v3352_v63 = vpack.c.bf16 %v4120_v6, %v4120_v6 }
 0x154   : > { %v2011_v46 = vsel %vm1520_vm2, %v1835_v25, 0.0  ;;  %2738 = vst.msk [vmem:[%s3921_s6 + $0xc4] sm:$0xf] %vm2688_vm1, %v3320_v30  ;;  %v2013_v51 = vsel %vm1520_vm2, %v1836_v18, 0.0  ;;  %v1624_v3 = vsel %vm1520_vm2, %v3523_v1, 0.0  ;;  %v2015_v24 = vsel %vm1520_vm2, %v1837_v52, 0.0 }
 0x155   : > { %v1623_v58 = vadd.f32 %v1622_v50, %v1621_v39  ;;  %v2012_v59 = vadd.f32 %v2011_v46, %v2010_v34  ;;  %2772 = vst.msk [vmem:[%s3921_s6 + $0x14c] sm:$0xf] %vm2688_vm1, %v3354_v54  ;;  %2770 = vst.msk [vmem:[%s3921_s6 + $0x144] sm:$0xf] %vm2688_vm1, %v3352_v63  ;;  %v4295_v50 = vpop.f32.mrb[40].mxu1 }
 0x156   : > { %v3526_v60 = vpop.f32.mrb[52].mxu0 }
 0x157   : > { %v3325_v4 = vpack.c.bf16 %v3526_v60, %v3526_v60  ;;  %v1217_v5 = vpop.f32.mrb[53].mxu0  ;;  %v2014_v62 = vadd.f32 %v2013_v51, %v2012_v59  ;;  %v1625_v8 = vadd.f32 %v1624_v3, %v1623_v58  ;;  %v1840_v46 = vmul.f32 %v3526_v60, %v3526_v60  ;;  %v4300_v59 = vpop.f32.mrb[41].mxu1 }
 0x158   : > { %v1626_v9 = vsel %vm1520_vm2, %v1217_v5, 0.0  ;;  %v1838_v12 = vmul.f32 %v1217_v5, %v1217_v5  ;;  %v3527_v16 = vpop.f32.mrb[54].mxu0  ;;  %v3323_v18 = vpack.c.bf16 %v1217_v5, %v1217_v5  ;;  %v4304_v3 = vpop.f32.mrb[42].mxu1 }
 0x159   : > { %2743 = vst.msk [vmem:[%s3921_s6 + $0xd8] sm:$0xf] %vm2688_vm1, %v3325_v4  ;;  %v1220_v1 = vpop.f32.mrb[55].mxu0  ;;  %v1627_v25 = vadd.f32 %v1626_v9, %v1625_v8  ;;  %v2016_v30 = vadd.f32 %v2015_v24, %v2014_v62  ;;  %v3326_v39 = vpack.c.bf16 %v3527_v16, %v3527_v16  ;;  %v1630_v4 = vsel %vm1520_vm2, %v3526_v60, 0.0  ;;  %v4312_v9 = vpop.f32.mrb[43].mxu1 }
 0x15a   : > { %v2017_v34 = vsel %vm1520_vm2, %v1838_v12, 0.0  ;;  %2741 = vst.msk [vmem:[%s3921_s6 + $0xd0] sm:$0xf] %vm2688_vm1, %v3323_v18  ;;  %v1628_v54 = vsel %vm1520_vm2, %v1220_v1, 0.0  ;;  %v1839_v58 = vmul.f32 %v1220_v1, %v1220_v1  ;;  %v3324_v52 = vpack.c.bf16 %v1220_v1, %v1220_v1 }
 0x15b   : > { %v2018_v63 = vadd.f32 %v2017_v34, %v2016_v30  ;;  %2744 = vst.msk [vmem:[%s3921_s6 + $0xdc] sm:$0xf] %vm2688_vm1, %v3326_v39  ;;  %v1629_v51 = vadd.f32 %v1628_v54, %v1627_v25  ;;  %v1841_v5 = vmul.f32 %v3527_v16, %v3527_v16  ;;  %v3357_v8 = vpack.c.bf16 %v4135_v35, %v4135_v35 }
 0x15c   : > { %v2019_v62 = vsel %vm1520_vm2, %v1839_v58, 0.0  ;;  %2742 = vst.msk [vmem:[%s3921_s6 + $0xd4] sm:$0xf] %vm2688_vm1, %v3324_v52  ;;  %v3355_v1 = vpack.c.bf16 %v4140_v43, %v4140_v43  ;;  %v2021_v60 = vsel %vm1520_vm2, %v1840_v46, 0.0  ;;  %v1632_v25 = vsel %vm1520_vm2, %v3527_v16, 0.0 }
 0x15d   : > { %v1631_v12 = vadd.f32 %v1630_v4, %v1629_v51  ;;  %v2020_v24 = vadd.f32 %v2019_v62, %v2018_v63  ;;  %2775 = vst.msk [vmem:[%s3921_s6 + $0x158] sm:$0xf] %vm2688_vm1, %v3357_v8  ;;  %v2023_v63 = vsel %vm1520_vm2, %v1841_v5, 0.0 }
 0x15e   : > { %v3530_v18 = vpop.f32.mrb[56].mxu0  ;;  %2773 = vst.msk [vmem:[%s3921_s6 + $0x150] sm:$0xf] %vm2688_vm1, %v3355_v1 }
 0x15f   : > { %v3329_v30 = vpack.c.bf16 %v3530_v18, %v3530_v18  ;;  %v1233_v34 = vpop.f32.mrb[57].mxu0  ;;  %v2022_v39 = vadd.f32 %v2021_v60, %v2020_v24  ;;  %v1633_v54 = vadd.f32 %v1632_v25, %v1631_v12  ;;  %v4327_v12 = vpop.f32.mrb[44].mxu1  ;;  %v1844_v60 = vmul.f32 %v3530_v18, %v3530_v18 }
 0x160   : > { %v1634_v58 = vsel %vm1520_vm2, %v1233_v34, 0.0  ;;  %v1842_v52 = vmul.f32 %v1233_v34, %v1233_v34  ;;  %v3531_v51 = vpop.f32.mrb[58].mxu0  ;;  %v3327_v46 = vpack.c.bf16 %v1233_v34, %v1233_v34  ;;  %v4332_v35 = vpop.f32.mrb[45].mxu1 }
 0x161   : > { %2747 = vst.msk [vmem:[%s3921_s6 + $0xe8] sm:$0xf] %vm2688_vm1, %v3329_v30  ;;  %v1236_v16 = vpop.f32.mrb[59].mxu0  ;;  %v1635_v4 = vadd.f32 %v1634_v58, %v1633_v54  ;;  %v2024_v62 = vadd.f32 %v2023_v63, %v2022_v39  ;;  %v3330_v24 = vpack.c.bf16 %v3531_v51, %v3531_v51  ;;  %v4336_v39 = vpop.f32.mrb[46].mxu1  ;;  %v1638_v54 = vsel %vm1520_vm2, %v3530_v18, 0.0 }
 0x162   : > { %v2025_v8 = vsel %vm1520_vm2, %v1842_v52, 0.0  ;;  %2745 = vst.msk [vmem:[%s3921_s6 + $0xe0] sm:$0xf] %vm2688_vm1, %v3327_v46  ;;  %v1636_v1 = vsel %vm1520_vm2, %v1236_v16, 0.0  ;;  %v1843_v25 = vmul.f32 %v1236_v16, %v1236_v16  ;;  %v3328_v5 = vpack.c.bf16 %v1236_v16, %v1236_v16  ;;  %v4344_v46 = vpop.f32.mrb[47].mxu1 }
 0x163   : > { %v2026_v30 = vadd.f32 %v2025_v8, %v2024_v62  ;;  %2748 = vst.msk [vmem:[%s3921_s6 + $0xec] sm:$0xf] %vm2688_vm1, %v3330_v24  ;;  %v1637_v34 = vadd.f32 %v1636_v1, %v1635_v4  ;;  %v1845_v58 = vmul.f32 %v3531_v51, %v3531_v51  ;;  %v3358_v63 = vpack.c.bf16 %v4144_v49, %v4144_v49 }
 0x164   : > { %v2027_v52 = vsel %vm1520_vm2, %v1843_v25, 0.0  ;;  %2746 = vst.msk [vmem:[%s3921_s6 + $0xe4] sm:$0xf] %vm2688_vm1, %v3328_v5  ;;  %v3356_v8 = vpack.c.bf16 %v4152_v55, %v4152_v55  ;;  %v2029_v18 = vsel %vm1520_vm2, %v1844_v60, 0.0  ;;  %v1640_v24 = vsel %vm1520_vm2, %v3531_v51, 0.0 }
 0x165   : > { %v1639_v16 = vadd.f32 %v1638_v54, %v1637_v34  ;;  %v2028_v62 = vadd.f32 %v2027_v52, %v2026_v30  ;;  %2776 = vst.msk [vmem:[%s3921_s6 + $0x15c] sm:$0xf] %vm2688_vm1, %v3358_v63  ;;  %v2031_v30 = vsel %vm1520_vm2, %v1845_v58, 0.0 }
 0x166   : > { %v3534_v4 = vpop.f32.mrb[60].mxu0  ;;  %2774 = vst.msk [vmem:[%s3921_s6 + $0x154] sm:$0xf] %vm2688_vm1, %v3356_v8 }
 0x167   : > { %v3333_v1 = vpack.c.bf16 %v3534_v4, %v3534_v4  ;;  %v1249_v25 = vpop.f32.mrb[61].mxu0  ;;  %v2030_v5 = vadd.f32 %v2029_v18, %v2028_v62  ;;  %v1641_v49 = vadd.f32 %v1640_v24, %v1639_v16  ;;  %v4359_v16 = vpop.f32.mrb[48].mxu1  ;;  %v1848_v18 = vmul.f32 %v3534_v4, %v3534_v4 }
 0x168   : > { %v1642_v43 = vsel %vm1520_vm2, %v1249_v25, 0.0  ;;  %v1846_v34 = vmul.f32 %v1249_v25, %v1249_v25  ;;  %v3535_v54 = vpop.f32.mrb[62].mxu0  ;;  %v3331_v60 = vpack.c.bf16 %v1249_v25, %v1249_v25  ;;  %v4364_v0 = vpop.f32.mrb[49].mxu1 }
 0x169   : > { %2751 = vst.msk [vmem:[%s3921_s6 + $0xf8] sm:$0xf] %vm2688_vm1, %v3333_v1  ;;  %v1252_v51 = vpop.f32.mrb[63].mxu0  ;;  %v1643_v52 = vadd.f32 %v1642_v43, %v1641_v49  ;;  %v2032_v55 = vadd.f32 %v2031_v30, %v2030_v5  ;;  %v3334_v62 = vpack.c.bf16 %v3535_v54, %v3535_v54  ;;  %v1850_v49 = vmul.f32 %v3980_v37, %v3980_v37  ;;  %v4370_v25 = vpop.f32.mrb[50].mxu1 }
 0x16a   : > { %v2033_v63 = vsel %vm1520_vm2, %v1846_v34, 0.0  ;;  %2749 = vst.msk [vmem:[%s3921_s6 + $0xf0] sm:$0xf] %vm2688_vm1, %v3331_v60  ;;  %v1644_v8 = vsel %vm1520_vm2, %v1252_v51, 0.0  ;;  %v1847_v24 = vmul.f32 %v1252_v51, %v1252_v51  ;;  %v3332_v58 = vpack.c.bf16 %v1252_v51, %v1252_v51  ;;  %v4378_v60 = vpop.f32.mrb[51].mxu1 }
 0x16b   : > { %v2034_v1 = vadd.f32 %v2033_v63, %v2032_v55  ;;  %2752 = vst.msk [vmem:[%s3921_s6 + $0xfc] sm:$0xf] %vm2688_vm1, %v3334_v62  ;;  %v1645_v43 = vadd.f32 %v1644_v8, %v1643_v52  ;;  %v1646_v5 = vsel %vm1520_vm2, %v3534_v4, 0.0  ;;  %v1849_v34 = vmul.f32 %v3535_v54, %v3535_v54 }
 0x16c   : > { %v2035_v30 = vsel %vm1520_vm2, %v1847_v24, 0.0  ;;  %2750 = vst.msk [vmem:[%s3921_s6 + $0xf4] sm:$0xf] %vm2688_vm1, %v3332_v58  ;;  %v3361_v55 = vpack.c.bf16 %v4167_v23, %v4167_v23  ;;  %v3359_v63 = vpack.c.bf16 %v4172_v29, %v4172_v29  ;;  %v2037_v62 = vsel %vm1520_vm2, %v1848_v18, 0.0 }
 0x16d   : > { %v1647_v51 = vadd.f32 %v1646_v5, %v1645_v43  ;;  %v2036_v52 = vadd.f32 %v2035_v30, %v2034_v1  ;;  %v1648_v4 = vsel %vm1520_vm2, %v3535_v54, 0.0  ;;  %v1650_v8 = vsel %vm1520_vm2, %v3980_v37, 0.0 }
 0x16e   : > { %2779 = vst.msk [vmem:[%s3921_s6 + $0x168] sm:$0xf] %vm2688_vm1, %v3361_v55  ;;  %v3362_v24 = vpack.c.bf16 %v4176_v33, %v4176_v33  ;;  %2777 = vst.msk [vmem:[%s3921_s6 + $0x160] sm:$0xf] %vm2688_vm1, %v3359_v63  ;;  %v2039_v1 = vsel %vm1520_vm2, %v1849_v34, 0.0  ;;  %v2041_v43 = vsel %vm1520_vm2, %v1850_v49, 0.0  ;;  %v1851_v54 = vmul.f32 %v3992_v45, %v3992_v45 }
 0x16f   : > { %v1649_v58 = vadd.f32 %v1648_v4, %v1647_v51  ;;  %v2038_v23 = vadd.f32 %v2037_v62, %v2036_v52  ;;  %v3360_v37 = vpack.c.bf16 %v4184_v42, %v4184_v42  ;;  %v3365_v30 = vpack.c.bf16 %v4199_v14, %v4199_v14  ;;  %v4402_v55 = vpop.f32.mrb[52].mxu1 }
 0x170   : > { %2780 = vst.msk [vmem:[%s3921_s6 + $0x16c] sm:$0xf] %vm2688_vm1, %v3362_v24  ;;  %v1852_v49 = vmul.f32 %v3975_v32, %v3975_v32  ;;  %v1652_v34 = vsel %vm1520_vm2, %v3992_v45, 0.0  ;;  %v3363_v51 = vpack.c.bf16 %v4204_v21, %v4204_v21  ;;  %v4412_v52 = vpop.f32.mrb[53].mxu1  ;;  %v1853_v45 = vmul.f32 %v3984_v40, %v3984_v40 }
 0x171   : > { %v2040_v18 = vadd.f32 %v2039_v1, %v2038_v23  ;;  %v1651_v5 = vadd.f32 %v1650_v8, %v1649_v58  ;;  %2778 = vst.msk [vmem:[%s3921_s6 + $0x164] sm:$0xf] %vm2688_vm1, %v3360_v37  ;;  %v1654_v23 = vsel %vm1520_vm2, %v3975_v32, 0.0  ;;  %2783 = vst.msk [vmem:[%s3921_s6 + $0x178] sm:$0xf] %vm2688_vm1, %v3365_v30  ;;  %v4418_v4 = vpop.f32.mrb[54].mxu1  ;;  %v1854_v24 = vmul.f32 %v4012_v7, %v4012_v7 }
 0x172   : > { %v2043_v8 = vsel %vm1520_vm2, %v1851_v54, 0.0  ;;  %2781 = vst.msk [vmem:[%s3921_s6 + $0x170] sm:$0xf] %vm2688_vm1, %v3363_v51  ;;  %v3366_v32 = vpack.c.bf16 %v4208_v26, %v4208_v26  ;;  %v4429_v58 = vpop.f32.mrb[55].mxu1  ;;  %v3364_v37 = vpack.c.bf16 %v4216_v36, %v4216_v36  ;;  %v1656_v54 = vsel %vm1520_vm2, %v3984_v40, 0.0 }
 0x173   : > { %v2042_v63 = vadd.f32 %v2041_v43, %v2040_v18  ;;  %v1653_v62 = vadd.f32 %v1652_v34, %v1651_v5  ;;  %v2045_v18 = vsel %vm1520_vm2, %v1852_v49, 0.0  ;;  %v1658_v5 = vsel %vm1520_vm2, %v4012_v7, 0.0 }
 0x174   : > { %2784 = vst.msk [vmem:[%s3921_s6 + $0x17c] sm:$0xf] %vm2688_vm1, %v3366_v32  ;;  %v3369_v30 = vpack.c.bf16 %v4231_v11, %v4231_v11  ;;  %2782 = vst.msk [vmem:[%s3921_s6 + $0x174] sm:$0xf] %vm2688_vm1, %v3364_v37  ;;  %v2049_v49 = vsel %vm1520_vm2, %v1854_v24, 0.0  ;;  %v1855_v40 = vmul.f32 %v4024_v15, %v4024_v15  ;;  %v3367_v7 = vpack.c.bf16 %v4236_v20, %v4236_v20  ;;  %v4454_v32 = vpop.f32.mrb[56].mxu1 }
 0x175   : > { %v1655_v1 = vadd.f32 %v1654_v23, %v1653_v62  ;;  %v2044_v43 = vadd.f32 %v2043_v8, %v2042_v63  ;;  %v2047_v23 = vsel %vm1520_vm2, %v1853_v45, 0.0  ;;  %v3370_v8 = vpack.c.bf16 %v4240_v28, %v4240_v28 }
 0x176   : > { %2787 = vst.msk [vmem:[%s3921_s6 + $0x188] sm:$0xf] %vm2688_vm1, %v3369_v30  ;;  %v1856_v45 = vmul.f32 %v4007_v2, %v4007_v2  ;;  %v1660_v24 = vsel %vm1520_vm2, %v4024_v15, 0.0  ;;  %2785 = vst.msk [vmem:[%s3921_s6 + $0x180] sm:$0xf] %vm2688_vm1, %v3367_v7  ;;  %v1662_v37 = vsel %vm1520_vm2, %v4007_v2, 0.0  ;;  %v1857_v15 = vmul.f32 %v4016_v10, %v4016_v10 }
 0x177   : > { %v2046_v34 = vadd.f32 %v2045_v18, %v2044_v43  ;;  %v1657_v51 = vadd.f32 %v1656_v54, %v1655_v1  ;;  %v3368_v1 = vpack.c.bf16 %v4248_v41, %v4248_v41  ;;  %v4464_v43 = vpop.f32.mrb[57].mxu1  ;;  %2788 = vst.msk [vmem:[%s3921_s6 + $0x18c] sm:$0xf] %vm2688_vm1, %v3370_v8  ;;  %v2051_v30 = vsel %vm1520_vm2, %v1855_v40, 0.0 }
 0x178   : > { %v3373_v2 = vpack.c.bf16 %v4263_v17, %v4263_v17  ;;  %v3371_v7 = vpack.c.bf16 %v4268_v31, %v4268_v31  ;;  %v1664_v40 = vsel %vm1520_vm2, %v4016_v10, 0.0  ;;  %v3374_v8 = vpack.c.bf16 %v4272_v47, %v4272_v47 }
 0x179   : > { %v1659_v63 = vadd.f32 %v1658_v5, %v1657_v51  ;;  %v2048_v62 = vadd.f32 %v2047_v23, %v2046_v34  ;;  %v4470_v5 = vpop.f32.mrb[58].mxu1  ;;  %v1858_v34 = vmul.f32 %v4044_v44, %v4044_v44  ;;  %2786 = vst.msk [vmem:[%s3921_s6 + $0x184] sm:$0xf] %vm2688_vm1, %v3368_v1  ;;  %v1859_v10 = vmul.f32 %v4056_v53, %v4056_v53 }
 0x17a   : > { %v4481_v51 = vpop.f32.mrb[59].mxu1  ;;  %2791 = vst.msk [vmem:[%s3921_s6 + $0x198] sm:$0xf] %vm2688_vm1, %v3373_v2  ;;  %2789 = vst.msk [vmem:[%s3921_s6 + $0x190] sm:$0xf] %vm2688_vm1, %v3371_v7  ;;  %v1670_v7 = vsel %vm1520_vm2, %v4039_v38, 0.0 }
 0x17b   : > { %v2050_v18 = vadd.f32 %v2049_v49, %v2048_v62  ;;  %v1661_v54 = vadd.f32 %v1660_v24, %v1659_v63  ;;  %v2053_v63 = vsel %vm1520_vm2, %v1856_v45, 0.0  ;;  %v1666_v62 = vsel %vm1520_vm2, %v4044_v44, 0.0  ;;  %2792 = vst.msk [vmem:[%s3921_s6 + $0x19c] sm:$0xf] %vm2688_vm1, %v3374_v8  ;;  %v4506_v2 = vpop.f32.mrb[60].mxu1 }
 0x17c   : > { %v2057_v45 = vsel %vm1520_vm2, %v1858_v34, 0.0  ;;  %v3372_v44 = vpack.c.bf16 %v4280_v57, %v4280_v57  ;;  %v1668_v34 = vsel %vm1520_vm2, %v4056_v53, 0.0  ;;  %v1861_v53 = vmul.f32 %v4048_v48, %v4048_v48 }
 0x17d   : > { %v1663_v23 = vadd.f32 %v1662_v37, %v1661_v54  ;;  %v2052_v49 = vadd.f32 %v2051_v30, %v2050_v18  ;;  %v2055_v37 = vsel %vm1520_vm2, %v1857_v15, 0.0  ;;  %v3377_v30 = vpack.c.bf16 %v4295_v50, %v4295_v50 }
 0x17e   : > { %v1860_v15 = vmul.f32 %v4039_v38, %v4039_v38  ;;  %2790 = vst.msk [vmem:[%s3921_s6 + $0x194] sm:$0xf] %vm2688_vm1, %v3372_v44  ;;  %v2059_v8 = vsel %vm1520_vm2, %v1859_v10, 0.0  ;;  %v3378_v38 = vpack.c.bf16 %v4304_v3, %v4304_v3  ;;  %v3376_v44 = vpack.c.bf16 %v4312_v9, %v4312_v9 }
 0x17f   : > { %v2054_v24 = vadd.f32 %v2053_v63, %v2052_v49  ;;  %v1665_v1 = vadd.f32 %v1664_v40, %v1663_v23  ;;  %v3375_v23 = vpack.c.bf16 %v4300_v59, %v4300_v59  ;;  %v4516_v49 = vpop.f32.mrb[61].mxu1  ;;  %2795 = vst.msk [vmem:[%s3921_s6 + $0x1a8] sm:$0xf] %vm2688_vm1, %v3377_v30  ;;  %v1672_v10 = vsel %vm1520_vm2, %v4048_v48, 0.0 }
 0x180   : > { %2796 = vst.msk [vmem:[%s3921_s6 + $0x1ac] sm:$0xf] %vm2688_vm1, %v3378_v38  ;;  %v3381_v30 = vpack.c.bf16 %v4327_v12, %v4327_v12  ;;  %2794 = vst.msk [vmem:[%s3921_s6 + $0x1a4] sm:$0xf] %vm2688_vm1, %v3376_v44  ;;  %v1863_v48 = vmul.f32 %v4088_v27, %v4088_v27  ;;  %v1864_v38 = vmul.f32 %v4071_v13, %v4071_v13 }
 0x181   : > { %v1667_v18 = vadd.f32 %v1666_v62, %v1665_v1  ;;  %v2056_v54 = vadd.f32 %v2055_v37, %v2054_v24  ;;  %v4522_v62 = vpop.f32.mrb[62].mxu1  ;;  %v1862_v24 = vmul.f32 %v4076_v19, %v4076_v19  ;;  %2793 = vst.msk [vmem:[%s3921_s6 + $0x1a0] sm:$0xf] %vm2688_vm1, %v3375_v23 }
 0x182   : > { %v4533_v1 = vpop.f32.mrb[63].mxu1  ;;  %2799 = vst.msk [vmem:[%s3921_s6 + $0x1b8] sm:$0xf] %vm2688_vm1, %v3381_v30 }
 0x183   : > { %v2058_v63 = vadd.f32 %v2057_v45, %v2056_v54  ;;  %v1669_v40 = vadd.f32 %v1668_v34, %v1667_v18  ;;  %v2061_v18 = vsel %vm1520_vm2, %v1860_v15, 0.0  ;;  %v1674_v54 = vsel %vm1520_vm2, %v4076_v19, 0.0 }
 0x184   : > { %v2065_v15 = vsel %vm1520_vm2, %v1862_v24, 0.0  ;;  %v3379_v19 = vpack.c.bf16 %v4332_v35, %v4332_v35  ;;  %v3380_v24 = vpack.c.bf16 %v4344_v46, %v4344_v46 }
 0x185   : > { %v1671_v37 = vadd.f32 %v1670_v7, %v1669_v40  ;;  %v2060_v45 = vadd.f32 %v2059_v8, %v2058_v63  ;;  %v2063_v7 = vsel %vm1520_vm2, %v1861_v53, 0.0  ;;  %v3382_v8 = vpack.c.bf16 %v4336_v39, %v4336_v39 }
 0x186   : > { %v1676_v53 = vsel %vm1520_vm2, %v4088_v27, 0.0  ;;  %2797 = vst.msk [vmem:[%s3921_s6 + $0x1b0] sm:$0xf] %vm2688_vm1, %v3379_v19  ;;  %v1866_v27 = vmul.f32 %v4108_v61, %v4108_v61  ;;  %2798 = vst.msk [vmem:[%s3921_s6 + $0x1b4] sm:$0xf] %vm2688_vm1, %v3380_v24  ;;  %v3389_v24 = vpack.c.bf16 %v4402_v55, %v4402_v55 }
 0x187   : > { %v2062_v34 = vadd.f32 %v2061_v18, %v2060_v45  ;;  %v1673_v23 = vadd.f32 %v1672_v10, %v1671_v37  ;;  %v1678_v37 = vsel %vm1520_vm2, %v4071_v13, 0.0  ;;  %2800 = vst.msk [vmem:[%s3921_s6 + $0x1bc] sm:$0xf] %vm2688_vm1, %v3382_v8  ;;  %v1865_v18 = vmul.f32 %v4080_v22, %v4080_v22 }
 0x188   : > { %v2067_v10 = vsel %vm1520_vm2, %v1863_v48, 0.0  ;;  %v3386_v48 = vpack.c.bf16 %v4370_v25, %v4370_v25  ;;  %v2073_v8 = vsel %vm1520_vm2, %v1866_v27, 0.0  ;;  %2807 = vst.msk [vmem:[%s3921_s6 + $0x1d8] sm:$0xf] %vm2688_vm1, %v3389_v24 }
 0x189   : > { %v1675_v63 = vadd.f32 %v1674_v54, %v1673_v23  ;;  %v2064_v40 = vadd.f32 %v2063_v7, %v2062_v34  ;;  %v3385_v54 = vpack.c.bf16 %v4359_v16, %v4359_v16  ;;  %v3383_v34 = vpack.c.bf16 %v4364_v0, %v4364_v0 }
 0x18a   : > { %v2069_v23 = vsel %vm1520_vm2, %v1864_v38, 0.0  ;;  %v1680_v7 = vsel %vm1520_vm2, %v4080_v22, 0.0  ;;  %v1867_v22 = vmul.f32 %v4120_v6, %v4120_v6  ;;  %2804 = vst.msk [vmem:[%s3921_s6 + $0x1cc] sm:$0xf] %vm2688_vm1, %v3386_v48 }
 0x18b   : > { %v2066_v45 = vadd.f32 %v2065_v15, %v2064_v40  ;;  %v1677_v44 = vadd.f32 %v1676_v53, %v1675_v63  ;;  %v1682_v15 = vsel %vm1520_vm2, %v4108_v61, 0.0  ;;  %2803 = vst.msk [vmem:[%s3921_s6 + $0x1c8] sm:$0xf] %vm2688_vm1, %v3385_v54  ;;  %2801 = vst.msk [vmem:[%s3921_s6 + $0x1c0] sm:$0xf] %vm2688_vm1, %v3383_v34  ;;  %v2071_v40 = vsel %vm1520_vm2, %v1865_v18, 0.0 }
 0x18c   : > { %v3384_v61 = vpack.c.bf16 %v4378_v60, %v4378_v60  ;;  %v1686_v18 = vsel %vm1520_vm2, %v4103_v56, 0.0  ;;  %v4938_v54 = vld [vmem:[#allocation2_spill] sm:$0xff] }
 0x18d   : > { %v1679_v13 = vadd.f32 %v1678_v37, %v1677_v44  ;;  %v2068_v30 = vadd.f32 %v2067_v10, %v2066_v45  ;;  %v1868_v37 = vmul.f32 %v4103_v56, %v4103_v56  ;;  %v1684_v45 = vsel %vm1520_vm2, %v4120_v6, 0.0 }
 0x18e   : > { %2802 = vst.msk [vmem:[%s3921_s6 + $0x1c4] sm:$0xf] %vm2688_vm1, %v3384_v61  ;;  %v3387_v44 = vpack.c.bf16 %v4412_v52, %v4412_v52  ;;  %v2075_v6 = vsel %vm1520_vm2, %v1867_v22, 0.0  ;;  %v3390_v56 = vpack.c.bf16 %v4418_v4, %v4418_v4 }
 0x18f   : > { %v2070_v19 = vadd.f32 %v2069_v23, %v2068_v30  ;;  %v1681_v63 = vadd.f32 %v1680_v7, %v1679_v13  ;;  %v1869_v13 = vmul.f32 %v4938_v54, %v4938_v54  ;;  %v4939_v30 = vld [vmem:[#allocation4_spill] sm:$0xff]  ;;  %v2077_v48 = vsel %vm1520_vm2, %v1868_v37, 0.0 }
 0x190   : > { %v1870_v34 = vmul.f32 %v4939_v30, %v4939_v30  ;;  %2805 = vst.msk [vmem:[%s3921_s6 + $0x1d0] sm:$0xf] %vm2688_vm1, %v3387_v44  ;;  %2808 = vst.msk [vmem:[%s3921_s6 + $0x1dc] sm:$0xf] %vm2688_vm1, %v3390_v56  ;;  %v3391_v37 = vpack.c.bf16 %v4464_v43, %v4464_v43  ;;  %v4942_v56 = vld [vmem:[#allocation5_spill] sm:$0xff] }
 0x191   : > { %v1683_v38 = vadd.f32 %v1682_v15, %v1681_v63  ;;  %v2072_v53 = vadd.f32 %v2071_v40, %v2070_v19  ;;  %v3388_v15 = vpack.c.bf16 %v4429_v58, %v4429_v58  ;;  %v1688_v19 = vsel %vm1520_vm2, %v4938_v54, 0.0 }
 0x192   : > { %v1690_v63 = vsel %vm1520_vm2, %v4939_v30, 0.0  ;;  %v3393_v40 = vpack.c.bf16 %v4454_v32, %v4454_v32  ;;  %v2079_v61 = vsel %vm1520_vm2, %v1869_v13, 0.0  ;;  %2809 = vst.msk [vmem:[%s3921_s6 + $0x1e0] sm:$0xf] %vm2688_vm1, %v3391_v37  ;;  %v3392_v13 = vpack.c.bf16 %v4481_v51, %v4481_v51 }
 0x193   : > { %v2074_v10 = vadd.f32 %v2073_v8, %v2072_v53  ;;  %v1685_v27 = vadd.f32 %v1684_v45, %v1683_v38  ;;  %2806 = vst.msk [vmem:[%s3921_s6 + $0x1d4] sm:$0xf] %vm2688_vm1, %v3388_v15  ;;  %v2081_v38 = vsel %vm1520_vm2, %v1870_v34, 0.0  ;;  %v4940_v53 = vld [vmem:[#allocation6_spill] sm:$0xff]  ;;  %v1874_v15 = vmul.f32 %v4172_v29, %v4172_v29 }
 0x194   : > { %v1871_v24 = vmul.f32 %v4940_v53, %v4940_v53  ;;  %2811 = vst.msk [vmem:[%s3921_s6 + $0x1e8] sm:$0xf] %vm2688_vm1, %v3393_v40  ;;  %v1692_v54 = vsel %vm1520_vm2, %v4940_v53, 0.0  ;;  %2810 = vst.msk [vmem:[%s3921_s6 + $0x1e4] sm:$0xf] %vm2688_vm1, %v3392_v13  ;;  %v3395_v40 = vpack.c.bf16 %v4516_v49, %v4516_v49 }
 0x195   : > { %v1687_v23 = vadd.f32 %v1686_v18, %v1685_v27  ;;  %v2076_v7 = vadd.f32 %v2075_v6, %v2074_v10  ;;  %v3394_v18 = vpack.c.bf16 %v4470_v5, %v4470_v5  ;;  %v4941_v10 = vld [vmem:[#allocation3_spill] sm:$0xff] }
 0x196   : > { %v1872_v27 = vmul.f32 %v4941_v10, %v4941_v10  ;;  %v1694_v6 = vsel %vm1520_vm2, %v4941_v10, 0.0  ;;  %2813 = vst.msk [vmem:[%s3921_s6 + $0x1f0] sm:$0xf] %vm2688_vm1, %v3395_v40  ;;  %v1706_v40 = vsel %vm1520_vm2, %v4204_v21, 0.0 }
 0x197   : > { %v2078_v8 = vadd.f32 %v2077_v48, %v2076_v7  ;;  %v1689_v22 = vadd.f32 %v1688_v19, %v1687_v23  ;;  %2812 = vst.msk [vmem:[%s3921_s6 + $0x1ec] sm:$0xf] %vm2688_vm1, %v3394_v18  ;;  %v1873_v23 = vmul.f32 %v4942_v56, %v4942_v56  ;;  %v2083_v7 = vsel %vm1520_vm2, %v1871_v24, 0.0 }
 0x198   : > { %v3397_v48 = vpack.c.bf16 %v4506_v2, %v4506_v2  ;;  %v3396_v18 = vpack.c.bf16 %v4533_v1, %v4533_v1 }
 0x199   : > { %v1691_v45 = vadd.f32 %v1690_v63, %v1689_v22  ;;  %v2080_v44 = vadd.f32 %v2079_v61, %v2078_v8  ;;  %v2085_v8 = vsel %vm1520_vm2, %v1872_v27, 0.0  ;;  %v1696_v22 = vsel %vm1520_vm2, %v4942_v56, 0.0 }
 0x19a   : > { %v1698_v61 = vsel %vm1520_vm2, %v4172_v29, 0.0  ;;  %2815 = vst.msk [vmem:[%s3921_s6 + $0x1f8] sm:$0xf] %vm2688_vm1, %v3397_v48  ;;  %v2087_v37 = vsel %vm1520_vm2, %v1873_v23, 0.0  ;;  %v3722_v29 = vmov 0.0   ;;  %v1877_v23 = vmul.f32 %v4176_v33, %v4176_v33 }
 0x19b   : > { %v2082_v30 = vadd.f32 %v2081_v38, %v2080_v44  ;;  %v1693_v34 = vadd.f32 %v1692_v54, %v1691_v45  ;;  %v3398_v38 = vpack.c.bf16 %v4522_v62, %v4522_v62  ;;  %v2089_v45 = vsel %vm1520_vm2, %v1874_v15, 0.0  ;;  %1521 = vst.msk [vmem:[%s4679_s10] sm:$0xff] %vm1520_vm2, %v3722_v29  ;;  %1522 = vst.msk [vmem:[%s4684_s13] sm:$0xff] %vm1520_vm2, %v3722_v29  ;;  %v4943_v54 = vld [vmem:[#allocation7_spill] sm:$0xff] }
 0x19c   : > { %v1875_v44 = vmul.f32 %v4184_v42, %v4184_v42  ;;  %v1876_v13 = vmul.f32 %v4943_v54, %v4943_v54  ;;  %2814 = vst.msk [vmem:[%s3921_s6 + $0x1f4] sm:$0xf] %vm2688_vm1, %v3396_v18  ;;  %v1702_v56 = vsel %vm1520_vm2, %v4943_v54, 0.0  ;;  %v1878_v15 = vmul.f32 %v4204_v21, %v4204_v21 }
 0x19d   : > { %v1695_v19 = vadd.f32 %v1694_v6, %v1693_v34  ;;  %v2084_v63 = vadd.f32 %v2083_v7, %v2082_v30  ;;  %2816 = vst.msk [vmem:[%s3921_s6 + $0x1fc] sm:$0xf] %vm2688_vm1, %v3398_v38  ;;  %v1700_v6 = vsel %vm1520_vm2, %v4184_v42, 0.0  ;;  %v1704_v42 = vsel %vm1520_vm2, %v4176_v33, 0.0 }
 0x19e   : > { %v2091_v7 = vsel %vm1520_vm2, %v1875_v44, 0.0  ;;  %v2097_v38 = vsel %vm1520_vm2, %v1878_v15, 0.0  ;;  %v1708_v33 = vsel %vm1520_vm2, %v4216_v36, 0.0  ;;  %v1710_v21 = vsel %vm1520_vm2, %v4199_v14, 0.0 }
 0x19f   : > { %v2086_v53 = vadd.f32 %v2085_v8, %v2084_v63  ;;  %v1697_v24 = vadd.f32 %v1696_v22, %v1695_v19  ;;  %v2093_v63 = vsel %vm1520_vm2, %v1876_v13, 0.0  ;;  %v1881_v18 = vmul.f32 %v4208_v26, %v4208_v26 }
 0x1a1   : > { %v1699_v10 = vadd.f32 %v1698_v61, %v1697_v24  ;;  %v2088_v27 = vadd.f32 %v2087_v37, %v2086_v53  ;;  %v2095_v61 = vsel %vm1520_vm2, %v1877_v23, 0.0  ;;  %v1879_v53 = vmul.f32 %v4216_v36, %v4216_v36 }
 0x1a2   : > { %v1712_v36 = vsel %vm1520_vm2, %v4208_v26, 0.0  ;;  %v1716_v26 = vsel %vm1520_vm2, %v4248_v41, 0.0 }
 0x1a3   : > { %v2090_v30 = vadd.f32 %v2089_v45, %v2088_v27  ;;  %v1701_v34 = vadd.f32 %v1700_v6, %v1699_v10  ;;  %v1880_v45 = vmul.f32 %v4199_v14, %v4199_v14  ;;  %v2099_v10 = vsel %vm1520_vm2, %v1879_v53, 0.0 }
 0x1a4   : > { %v1882_v27 = vmul.f32 %v4236_v20, %v4236_v20 }
 0x1a5   : > { %v1703_v48 = vadd.f32 %v1702_v56, %v1701_v34  ;;  %v2092_v19 = vadd.f32 %v2091_v7, %v2090_v30  ;;  %v2101_v6 = vsel %vm1520_vm2, %v1880_v45, 0.0  ;;  %v1714_v30 = vsel %vm1520_vm2, %v4236_v20, 0.0 }
 0x1a6   : > { %v2103_v56 = vsel %vm1520_vm2, %v1881_v18, 0.0  ;;  %v2105_v23 = vsel %vm1520_vm2, %v1882_v27, 0.0  ;;  %v1883_v7 = vmul.f32 %v4248_v41, %v4248_v41  ;;  %v1718_v20 = vsel %vm1520_vm2, %v4231_v11, 0.0 }
 0x1a7   : > { %v2094_v8 = vadd.f32 %v2093_v63, %v2092_v19  ;;  %v1705_v22 = vadd.f32 %v1704_v42, %v1703_v48  ;;  %v1884_v19 = vmul.f32 %v4231_v11, %v4231_v11  ;;  %v1720_v41 = vsel %vm1520_vm2, %v4240_v28, 0.0 }
 0x1a8   : > { %v1888_v18 = vmul.f32 %v4263_v17, %v4263_v17 }
 0x1a9   : > { %v1707_v24 = vadd.f32 %v1706_v40, %v1705_v22  ;;  %v2096_v37 = vadd.f32 %v2095_v61, %v2094_v8  ;;  %v1885_v40 = vmul.f32 %v4240_v28, %v4240_v28  ;;  %v2107_v8 = vsel %vm1520_vm2, %v1883_v7, 0.0 }
 0x1aa   : > { %v1886_v22 = vmul.f32 %v4268_v31, %v4268_v31  ;;  %v2109_v53 = vsel %vm1520_vm2, %v1884_v19, 0.0  ;;  %v1724_v28 = vsel %vm1520_vm2, %v4280_v57, 0.0 }
 0x1ab   : > { %v2098_v44 = vadd.f32 %v2097_v38, %v2096_v37  ;;  %v1709_v29 = vadd.f32 %v1708_v33, %v1707_v24  ;;  %v1722_v24 = vsel %vm1520_vm2, %v4268_v31, 0.0  ;;  %v2111_v45 = vsel %vm1520_vm2, %v1885_v40, 0.0 }
 0x1ac   : > { %v2113_v33 = vsel %vm1520_vm2, %v1886_v22, 0.0  ;;  %v1726_v31 = vsel %vm1520_vm2, %v4263_v17, 0.0 }
 0x1ad   : > { %v1711_v54 = vadd.f32 %v1710_v21, %v1709_v29  ;;  %v2100_v13 = vadd.f32 %v2099_v10, %v2098_v44  ;;  %v1887_v44 = vmul.f32 %v4280_v57, %v4280_v57  ;;  %v1728_v57 = vsel %vm1520_vm2, %v4272_v47, 0.0 }
 0x1af   : > { %v2102_v34 = vadd.f32 %v2101_v6, %v2100_v13  ;;  %v1713_v14 = vadd.f32 %v1712_v36, %v1711_v54  ;;  %v1889_v54 = vmul.f32 %v4272_v47, %v4272_v47  ;;  %v2115_v13 = vsel %vm1520_vm2, %v1887_v44, 0.0 }
 0x1b0   : > { %v1890_v6 = vmul.f32 %v4300_v59, %v4300_v59  ;;  %v1732_v47 = vsel %vm1520_vm2, %v4312_v9, 0.0  ;;  %v1896_v44 = vmul.f32 %v4327_v12, %v4327_v12 }
 0x1b1   : > { %v1715_v15 = vadd.f32 %v1714_v30, %v1713_v14  ;;  %v2104_v48 = vadd.f32 %v2103_v56, %v2102_v34  ;;  %v2117_v34 = vsel %vm1520_vm2, %v1888_v18, 0.0  ;;  %v1730_v14 = vsel %vm1520_vm2, %v4300_v59, 0.0 }
 0x1b2   : > { %v2121_v7 = vsel %vm1520_vm2, %v1890_v6, 0.0  ;;  %v1734_v59 = vsel %vm1520_vm2, %v4295_v50, 0.0  ;;  %v1897_v18 = vmul.f32 %v4336_v39, %v4336_v39 }
 0x1b3   : > { %v2106_v63 = vadd.f32 %v2105_v23, %v2104_v48  ;;  %v1717_v42 = vadd.f32 %v1716_v26, %v1715_v15  ;;  %v2119_v23 = vsel %vm1520_vm2, %v1889_v54, 0.0  ;;  %v1891_v15 = vmul.f32 %v4312_v9, %v4312_v9 }
 0x1b4   : > { %v1892_v26 = vmul.f32 %v4295_v50, %v4295_v50  ;;  %v1736_v9 = vsel %vm1520_vm2, %v4304_v3, 0.0  ;;  %v2133_v54 = vsel %vm1520_vm2, %v1896_v44, 0.0 }
 0x1b5   : > { %v1719_v61 = vadd.f32 %v1718_v20, %v1717_v42  ;;  %v2108_v38 = vadd.f32 %v2107_v8, %v2106_v63  ;;  %v1893_v20 = vmul.f32 %v4304_v3, %v4304_v3  ;;  %v2123_v40 = vsel %vm1520_vm2, %v1891_v15, 0.0 }
 0x1b6   : > { %v1894_v8 = vmul.f32 %v4332_v35, %v4332_v35  ;;  %v1740_v3 = vsel %vm1520_vm2, %v4344_v46, 0.0 }
 0x1b7   : > { %v2110_v37 = vadd.f32 %v2109_v53, %v2108_v38  ;;  %v1721_v11 = vadd.f32 %v1720_v41, %v1719_v61  ;;  %v2125_v38 = vsel %vm1520_vm2, %v1892_v26, 0.0  ;;  %v1738_v53 = vsel %vm1520_vm2, %v4332_v35, 0.0 }
 0x1b8   : > { %v1742_v35 = vsel %vm1520_vm2, %v4327_v12, 0.0 }
 0x1b9   : > { %v1723_v29 = vadd.f32 %v1722_v24, %v1721_v11  ;;  %v2112_v21 = vadd.f32 %v2111_v45, %v2110_v37  ;;  %v2127_v24 = vsel %vm1520_vm2, %v1893_v20, 0.0  ;;  %v2129_v37 = vsel %vm1520_vm2, %v1894_v8, 0.0 }
 0x1ba   : > { %v1895_v11 = vmul.f32 %v4344_v46, %v4344_v46  ;;  %v1744_v46 = vsel %vm1520_vm2, %v4336_v39, 0.0  ;;  %v1748_v39 = vsel %vm1520_vm2, %v4378_v60, 0.0 }
 0x1bb   : > { %v2114_v10 = vadd.f32 %v2113_v33, %v2112_v21  ;;  %v1725_v27 = vadd.f32 %v1724_v28, %v1723_v29 }
 0x1bc   : > { %v2131_v28 = vsel %vm1520_vm2, %v1895_v11, 0.0 }
 0x1bd   : > { %v1727_v36 = vadd.f32 %v1726_v31, %v1725_v27  ;;  %v2116_v30 = vadd.f32 %v2115_v13, %v2114_v10  ;;  %v1898_v10 = vmul.f32 %v4364_v0, %v4364_v0  ;;  %v1746_v13 = vsel %vm1520_vm2, %v4364_v0, 0.0 }
 0x1be   : > { %v1750_v0 = vsel %vm1520_vm2, %v4359_v16, 0.0 }
 0x1bf   : > { %v2118_v56 = vadd.f32 %v2117_v34, %v2116_v30  ;;  %v1729_v17 = vadd.f32 %v1728_v57, %v1727_v36  ;;  %v2135_v36 = vsel %vm1520_vm2, %v1897_v18, 0.0  ;;  %v2137_v30 = vsel %vm1520_vm2, %v1898_v10, 0.0 }
 0x1c0   : > { %v1899_v34 = vmul.f32 %v4378_v60, %v4378_v60  ;;  %v1752_v60 = vsel %vm1520_vm2, %v4370_v25, 0.0  ;;  %v1908_v18 = vmul.f32 %v4454_v32, %v4454_v32 }
 0x1c1   : > { %v1731_v48 = vadd.f32 %v1730_v14, %v1729_v17  ;;  %v2120_v19 = vadd.f32 %v2119_v23, %v2118_v56  ;;  %v1900_v56 = vmul.f32 %v4359_v16, %v4359_v16 }
 0x1c2   : > { %v2139_v15 = vsel %vm1520_vm2, %v1899_v34, 0.0 }
 0x1c3   : > { %v2122_v63 = vadd.f32 %v2121_v7, %v2120_v19  ;;  %v1733_v42 = vadd.f32 %v1732_v47, %v1731_v48  ;;  %v1901_v7 = vmul.f32 %v4370_v25, %v4370_v25  ;;  %v1902_v48 = vmul.f32 %v4412_v52, %v4412_v52 }
 0x1c4   : > { %v2141_v47 = vsel %vm1520_vm2, %v1900_v56, 0.0  ;;  %v1756_v25 = vsel %vm1520_vm2, %v4429_v58, 0.0 }
 0x1c5   : > { %v1735_v22 = vadd.f32 %v1734_v59, %v1733_v42  ;;  %v2124_v61 = vadd.f32 %v2123_v40, %v2122_v63  ;;  %v1754_v63 = vsel %vm1520_vm2, %v4412_v52, 0.0  ;;  %v2143_v59 = vsel %vm1520_vm2, %v1901_v7, 0.0 }
 0x1c6   : > { %v2145_v20 = vsel %vm1520_vm2, %v1902_v48, 0.0  ;;  %v1903_v40 = vmul.f32 %v4429_v58, %v4429_v58  ;;  %v1758_v52 = vsel %vm1520_vm2, %v4402_v55, 0.0  ;;  %v1760_v58 = vsel %vm1520_vm2, %v4418_v4, 0.0 }
 0x1c7   : > { %v2126_v41 = vadd.f32 %v2125_v38, %v2124_v61  ;;  %v1737_v50 = vadd.f32 %v1736_v9, %v1735_v22  ;;  %v1904_v61 = vmul.f32 %v4402_v55, %v4402_v55 }
 0x1c9   : > { %v1739_v45 = vadd.f32 %v1738_v53, %v1737_v50  ;;  %v2128_v33 = vadd.f32 %v2127_v24, %v2126_v41  ;;  %v1905_v53 = vmul.f32 %v4418_v4, %v4418_v4  ;;  %v2147_v41 = vsel %vm1520_vm2, %v1903_v40, 0.0 }
 0x1ca   : > { %v1906_v50 = vmul.f32 %v4464_v43, %v4464_v43  ;;  %v2149_v11 = vsel %vm1520_vm2, %v1904_v61, 0.0  ;;  %v1764_v4 = vsel %vm1520_vm2, %v4481_v51, 0.0 }
 0x1cb   : > { %v2130_v29 = vadd.f32 %v2129_v37, %v2128_v33  ;;  %v1741_v21 = vadd.f32 %v1740_v3, %v1739_v45  ;;  %v1762_v45 = vsel %vm1520_vm2, %v4464_v43, 0.0  ;;  %v2151_v44 = vsel %vm1520_vm2, %v1905_v53, 0.0 }
 0x1cc   : > { %v2153_v3 = vsel %vm1520_vm2, %v1906_v50, 0.0  ;;  %v1766_v43 = vsel %vm1520_vm2, %v4454_v32, 0.0 }
 0x1cd   : > { %v1743_v27 = vadd.f32 %v1742_v35, %v1741_v21  ;;  %v2132_v31 = vadd.f32 %v2131_v28, %v2130_v29  ;;  %v1907_v29 = vmul.f32 %v4481_v51, %v4481_v51  ;;  %v1768_v51 = vsel %vm1520_vm2, %v4470_v5, 0.0 }
 0x1cf   : > { %v2134_v6 = vadd.f32 %v2133_v54, %v2132_v31  ;;  %v1745_v12 = vadd.f32 %v1744_v46, %v1743_v27  ;;  %v1909_v27 = vmul.f32 %v4470_v5, %v4470_v5  ;;  %v2155_v31 = vsel %vm1520_vm2, %v1907_v29, 0.0 }
 0x1d0   : > { %v1910_v54 = vmul.f32 %v4516_v49, %v4516_v49  ;;  %v1772_v5 = vsel %vm1520_vm2, %v4533_v1, 0.0 }
 0x1d1   : > { %v1747_v57 = vadd.f32 %v1746_v13, %v1745_v12  ;;  %v2136_v14 = vadd.f32 %v2135_v36, %v2134_v6  ;;  %v2157_v6 = vsel %vm1520_vm2, %v1908_v18, 0.0  ;;  %v1770_v12 = vsel %vm1520_vm2, %v4516_v49, 0.0 }
 0x1d2   : > { %v2161_v34 = vsel %vm1520_vm2, %v1910_v54, 0.0  ;;  %v1774_v49 = vsel %vm1520_vm2, %v4506_v2, 0.0 }
 0x1d3   : > { %v2138_v17 = vadd.f32 %v2137_v30, %v2136_v14  ;;  %v1749_v23 = vadd.f32 %v1748_v39, %v1747_v57  ;;  %v2159_v30 = vsel %vm1520_vm2, %v1909_v27, 0.0  ;;  %v1911_v57 = vmul.f32 %v4533_v1, %v4533_v1 }
 0x1d4   : > { %v1912_v39 = vmul.f32 %v4506_v2, %v4506_v2 }
 0x1d5   : > { %v1751_v19 = vadd.f32 %v1750_v0, %v1749_v23  ;;  %v2140_v26 = vadd.f32 %v2139_v15, %v2138_v17  ;;  %v1913_v0 = vmul.f32 %v4522_v62, %v4522_v62  ;;  %v2163_v7 = vsel %vm1520_vm2, %v1911_v57, 0.0 }
 0x1d7   : > { %v2142_v42 = vadd.f32 %v2141_v47, %v2140_v26  ;;  %v1753_v16 = vadd.f32 %v1752_v60, %v1751_v19  ;;  %v2165_v19 = vsel %vm1520_vm2, %v1912_v39, 0.0  ;;  %v1776_v26 = vsel %vm1520_vm2, %v4522_v62, 0.0 }
 0x1d8   : > { %v2167_v60 = vsel %vm1520_vm2, %v1913_v0, 0.0 }
 0x1d9   : > { %v1755_v8 = vadd.f32 %v1754_v63, %v1753_v16  ;;  %v2144_v22 = vadd.f32 %v2143_v59, %v2142_v42 }
 0x1db   : > { %v2146_v38 = vadd.f32 %v2145_v20, %v2144_v22  ;;  %v1757_v9 = vadd.f32 %v1756_v25, %v1755_v8 }
 0x1dd   : > { %v1759_v24 = vadd.f32 %v1758_v52, %v1757_v9  ;;  %v2148_v37 = vadd.f32 %v2147_v41, %v2146_v38 }
 0x1df   : > { %v2150_v33 = vadd.f32 %v2149_v11, %v2148_v37  ;;  %v1761_v55 = vadd.f32 %v1760_v58, %v1759_v24 }
 0x1e1   : > { %v1763_v21 = vadd.f32 %v1762_v45, %v1761_v55  ;;  %v2152_v35 = vadd.f32 %v2151_v44, %v2150_v33 }
 0x1e3   : > { %v2154_v28 = vadd.f32 %v2153_v3, %v2152_v35  ;;  %v1765_v10 = vadd.f32 %v1764_v4, %v1763_v21 }
 0x1e5   : > { %v1767_v46 = vadd.f32 %v1766_v43, %v1765_v10  ;;  %v2156_v13 = vadd.f32 %v2155_v31, %v2154_v28 }
 0x1e7   : > { %v2158_v36 = vadd.f32 %v2157_v6, %v2156_v13  ;;  %v1769_v32 = vadd.f32 %v1768_v51, %v1767_v46 }
 0x1e9   : > { %v1771_v14 = vadd.f32 %v1770_v12, %v1769_v32  ;;  %v2160_v56 = vadd.f32 %v2159_v30, %v2158_v36 }
 0x1eb   : > { %v2162_v17 = vadd.f32 %v2161_v34, %v2160_v56  ;;  %v1773_v23 = vadd.f32 %v1772_v5, %v1771_v14 }
 0x1ed   : > { %v1775_v15 = vadd.f32 %v1774_v49, %v1773_v23  ;;  %v2164_v48 = vadd.f32 %v2163_v7, %v2162_v17 }
 0x1ef   : > { %v1777_v47 = vadd.f32 %v1776_v26, %v1775_v15  ;;  %v2166_v1 = vadd.f32 %v2165_v19, %v2164_v48 }
 0x1f1   : > { %v1778_v63 = vrot.slane %v1777_v47, 4  ;;  %v2168_v2 = vadd.f32 %v2167_v60, %v2166_v1 }
 0x1f3   : > { %v1779_v42 = vadd.f32 %v1778_v63, %v1777_v47  ;;  %v2169_v16 = vrot.slane %v2168_v2, 4 }
 0x1f5   : > { %v1780_v59 = vrot.slane %v1779_v42, 2  ;;  %v2170_v20 = vadd.f32 %v2169_v16, %v2168_v2 }
 0x1f7   : > { %v1781_v40 = vadd.f32 %v1780_v59, %v1779_v42  ;;  %v2171_v8 = vrot.slane %v2170_v20, 2 }
 0x1f9   : > { %v1782_v22 = vrot.slane %v1781_v40, 1  ;;  %v2172_v61 = vadd.f32 %v2171_v8, %v2170_v20 }
 0x1fb   : > { %v1783_v25 = vadd.f32 %v1782_v22, %v1781_v40  ;;  %v2173_v38 = vrot.slane %v2172_v61, 1 }
 0x1fd   : > { %1785 = vst.msk [vmem:[%s4679_s10] sm:$0x1] %vm1784_vm3, %v1783_v25  ;;  %v2174_v62 = vadd.f32 %v2173_v38, %v2172_v61 }
 0x1ff   : > { %2175 = vst.msk [vmem:[%s4684_s13] sm:$0x1] %vm1784_vm3, %v2174_v62 }
 0x200 PF: > { %s15_s17 = sadd.s32 1, %s3720_s17   ;;  %s4944_s15 = smov %s3716_s16 }
 0x201   : > { %p12_p6 = scmp.ge.s32.totalorder %s15_s17, 4   ;;  %s4945_s16 = smov %s4947_s18 }
 0x203   :  { %14 = sbr.rel (!%p12_p6) target bundleno = 2 (0x2), region = 85 }

// kernel: disc_model_forward.6
= control target key start
LH: loop header
LB: loop body
LE: loop exit
PB: predicated region body
PF: predicated region fallthrough
CT: control target
= control target key end

     0   :  { %s3650_s15 = smov 0   ;;  %s3652_s16 = smov 0   ;;  %s4142_s0 = inlined_call_operand.vmem [shape: bf16[512,1024], index: 0, kind: input, shape index: {}]   ;;  %s4143_s1 = inlined_call_operand.vmem [shape: bf16[1024,128], index: 1, kind: input, shape index: {}]   ;;  %s4144_s2 = inlined_call_operand.vmem [shape: bf16[512,128], index: 2, kind: output, shape index: {0}]   ;;  %s4145_s3 = inlined_call_operand.vmem [shape: f32[16,128], index: 3, kind: output, shape index: {1}]   ;;  %s4146_s4 = inlined_call_operand.vmem [shape: f32[16,128], index: 4, kind: output, shape index: {2}]  }
   0x1   :  { %s3654_s17 = smov 0  }
   0x2 LB: > { %s34_s18 = sadd.s32 1, %s3618_s16  ;;  %p2701_p0 = scmp.ge.s32.totalorder %s3622_s17, 1  ;;  %s3622_s17 = sphi %s3654_s17, %s15_s17   ;;  %s3618_s16 = sphi %s3652_s16, %s4148_s16   ;;  %s3614_s15 = sphi %s3650_s15, %s4147_s15  }
   0x3   : > { %p36_p1 = scmp.ge.s32.totalorder %s34_s18, 2  ;;  %p217_p2 = scmp.lt.s32.totalorder %s3622_s17, 3 }
   0x5   : > { %s4150_s18 = smov (%p36_p1, %s34_s18), 0  ;;  %p218_p3 = pnand %p2701_p0, %p217_p2 }
   0x6   : > { %v3536_v0 = vld [vmem:[%s4143_s1 + $0x40] sm:$0xff] (!%p218_p3)   ;;  %v3540_v4 = vld [vmem:[%s4143_s1 + $0x48] sm:$0xff] (!%p218_p3)   ;;  %v3544_v8 = vld [vmem:[%s4143_s1 + $0x50] sm:$0xff] (!%p218_p3)   ;;  %s2702_s29 = sshll.u32 (!%p218_p3), %s3614_s15, 5  ;;  %p303_p5 = scmp.lt.s32.totalorder (!%p218_p3), %s3614_s15, 1 }
   0x7   : > { %221 = sbr.rel (%p218_p3) target bundleno = 526 (0x20e), region = 28  ;;  %v3537_v1 = vld [vmem:[%s4143_s1 + $0xc0] sm:$0xff] (!%p218_p3)   ;;  %3063 = vmatprep.subr.bf16.mxu0 (!%p218_p3), %v3536_v0  ;;  %v3541_v5 = vld [vmem:[%s4143_s1 + $0xc8] sm:$0xff] (!%p218_p3)   ;;  %v3545_v9 = vld [vmem:[%s4143_s1 + $0xd0] sm:$0xff] (!%p218_p3)   ;;  %p275_p4 = scmp.lt.s32.totalorder (!%p218_p3), %s2702_s29, 63 }
   0x8   : > { %v3538_v2 = vld [vmem:[%s4143_s1] sm:$0xff] (!%p218_p3)   ;;  %3175 = vmatprep.subr.bf16.mxu1 (!%p218_p3), %v3537_v1  ;;  %v3542_v6 = vld [vmem:[%s4143_s1 + $0x8] sm:$0xff] (!%p218_p3)   ;;  %v3546_v10 = vld [vmem:[%s4143_s1 + $0x10] sm:$0xff] (!%p218_p3)  }
   0x9   : > { %v3539_v3 = vld [vmem:[%s4143_s1 + $0x80] sm:$0xff] (!%p218_p3)   ;;  %3064 = vmatpush3.bf16.msra.mxu0 (!%p218_p3), %v3538_v2  ;;  %v3543_v7 = vld [vmem:[%s4143_s1 + $0x88] sm:$0xff] (!%p218_p3)   ;;  %v3547_v11 = vld [vmem:[%s4143_s1 + $0x90] sm:$0xff] (!%p218_p3)  }
   0xa   : > { %3176 = vmatpush3.bf16.msra.mxu1 (!%p218_p3), %v3539_v3  ;;  %3065 = vmatprep.subr.bf16.mxu0 (!%p218_p3), %v3540_v4  ;;  %v3548_v12 = vld [vmem:[%s4143_s1 + $0x58] sm:$0xff] (!%p218_p3)   ;;  %v3552_v16 = vld [vmem:[%s4143_s1 + $0x60] sm:$0xff] (!%p218_p3)   ;;  %v3556_v20 = vld [vmem:[%s4143_s1 + $0x68] sm:$0xff] (!%p218_p3)  }
   0xb   : > { %3177 = vmatprep.subr.bf16.mxu1 (!%p218_p3), %v3541_v5  ;;  %v3549_v13 = vld [vmem:[%s4143_s1 + $0xd8] sm:$0xff] (!%p218_p3)   ;;  %v3553_v17 = vld [vmem:[%s4143_s1 + $0xe0] sm:$0xff] (!%p218_p3)   ;;  %v3557_v21 = vld [vmem:[%s4143_s1 + $0xe8] sm:$0xff] (!%p218_p3)  }
   0xc   : > { %v3550_v14 = vld [vmem:[%s4143_s1 + $0x18] sm:$0xff] (!%p218_p3)   ;;  %v3554_v18 = vld [vmem:[%s4143_s1 + $0x20] sm:$0xff] (!%p218_p3)   ;;  %v3558_v22 = vld [vmem:[%s4143_s1 + $0x28] sm:$0xff] (!%p218_p3)  }
   0xd   : > { %3066 = vmatpush3.bf16.msra.mxu0 (!%p218_p3), %v3542_v6  ;;  %v3551_v15 = vld [vmem:[%s4143_s1 + $0x98] sm:$0xff] (!%p218_p3)   ;;  %v3555_v19 = vld [vmem:[%s4143_s1 + $0xa0] sm:$0xff] (!%p218_p3)   ;;  %v3559_v23 = vld [vmem:[%s4143_s1 + $0xa8] sm:$0xff] (!%p218_p3)  }
   0xe   : > { %3178 = vmatpush3.bf16.msra.mxu1 %v3543_v7  ;;  %3067 = vmatprep.subr.bf16.mxu0 %v3544_v8  ;;  %s4152_s29 = smov (!%p275_p4, %s2702_s29), 63  ;;  %v3560_v24 = vld [vmem:[%s4143_s1 + $0x70] sm:$0xff]   ;;  %v3564_v28 = vld [vmem:[%s4143_s1 + $0x78] sm:$0xff]   ;;  %v3568_v40 = vld [vmem:[%s4143_s1 + $0x140] sm:$0xff]   ;;  %s4154_s15 = smov (!%p303_p5, %s3614_s15), 1 }
   0xf   : > { %3179 = vmatprep.subr.bf16.mxu1 %v3545_v9  ;;  %v3561_v25 = vld [vmem:[%s4143_s1 + $0xf0] sm:$0xff]   ;;  %s2935_s5 = sshll.u32 %s4152_s29, 5  ;;  %v3565_v29 = vld [vmem:[%s4143_s1 + $0xf8] sm:$0xff]   ;;  %v3569_v41 = vld [vmem:[%s4143_s1 + $0x100] sm:$0xff]   ;;  %s2707_s27 = sshll.u32 %s4154_s15, 3 }
  0x10   : > { %v3562_v26 = vld [vmem:[%s4143_s1 + $0x30] sm:$0xff]   ;;  %s3767_s14 = scalar_lea.vmem %s4142_s0, %s2935_s5  ;;  %v3566_v30 = vld [vmem:[%s4143_s1 + $0x38] sm:$0xff]   ;;  %v3570_v42 = vld [vmem:[%s4143_s1 + $0x1c0] sm:$0xff]   ;;  %s4071_s5 = scalar_lea.vmem %s4145_s3, %s2707_s27 }
  0x11   : > { %3068 = vmatpush3.bf16.msra.mxu0 %v3546_v10  ;;  %v3563_v27 = vld [vmem:[%s4143_s1 + $0xb0] sm:$0xff]   ;;  %v3567_v31 = vld [vmem:[%s4143_s1 + $0xb8] sm:$0xff]   ;;  %v318_v32 = vld [vmem:[%s3767_s14] sm:$0xff]  ;;  %s4076_s8 = scalar_lea.vmem %s4146_s4, %s2707_s27 }
  0x12   : > { %3180 = vmatpush3.bf16.msra.mxu1 %v3547_v11  ;;  %3069 = vmatprep.subr.bf16.mxu0 %v3548_v12  ;;  %v322_v33 = vld [vmem:[%s3767_s14 + $0x20] sm:$0xff]  ;;  %v319_v34 = vld [vmem:[%s3767_s14 + $0x8] sm:$0xff]  ;;  %v3576_v2 = vld [vmem:[%s4143_s1 + $0x150] sm:$0xff]  }
  0x13   : > { %3181 = vmatprep.subr.bf16.mxu1 %v3549_v13  ;;  %v2709_v35 = vcombine.low %v318_v32, %v322_v33  ;;  %v2710_v36 = vcombine.high %v318_v32, %v322_v33  ;;  %v323_v37 = vld [vmem:[%s3767_s14 + $0x28] sm:$0xff]  ;;  %v3571_v43 = vld [vmem:[%s4143_s1 + $0x180] sm:$0xff]   ;;  %v3577_v4 = vld [vmem:[%s4143_s1 + $0x110] sm:$0xff]  }
  0x14   : > { %v2711_v38 = vcombine.low %v319_v34, %v323_v37  ;;  %v2712_v39 = vcombine.high %v319_v34, %v323_v37  ;;  %v326_v44 = vld [vmem:[%s3767_s14 + $0x40] sm:$0xff]  ;;  %v327_v47 = vld [vmem:[%s3767_s14 + $0x48] sm:$0xff]  ;;  %v3578_v7 = vld [vmem:[%s4143_s1 + $0x1d0] sm:$0xff]  }
  0x15   : > { %3070 = vmatpush3.bf16.msra.mxu0 %v3550_v14  ;;  %1630 = vmatprep.mubr.bf16.mxu0 %v2710_v36  ;;  %v330_v45 = vld [vmem:[%s3767_s14 + $0x60] sm:$0xff]  ;;  %v331_v48 = vld [vmem:[%s3767_s14 + $0x68] sm:$0xff]  ;;  %v3579_v9 = vld [vmem:[%s4143_s1 + $0x190] sm:$0xff]  }
  0x16   : > { %3182 = vmatpush3.bf16.msra.mxu1 %v3551_v15  ;;  %3071 = vmatprep.subr.bf16.mxu0 %v3552_v16  ;;  %v2718_v46 = vcombine.high %v326_v44, %v330_v45  ;;  %v334_v49 = vld [vmem:[%s3767_s14 + $0x80] sm:$0xff]  ;;  %v2720_v50 = vcombine.high %v327_v47, %v331_v48  ;;  %v335_v52 = vld [vmem:[%s3767_s14 + $0x88] sm:$0xff]  ;;  %v2717_v54 = vcombine.low %v326_v44, %v330_v45  ;;  %v3580_v14 = vld [vmem:[%s4143_s1 + $0x158] sm:$0xff]  }
  0x17   : > { %3183 = vmatprep.subr.bf16.mxu1 %v3553_v17  ;;  %1791 = vmatprep.mubr.bf16.mxu1 %v2712_v39  ;;  %v338_v51 = vld [vmem:[%s3767_s14 + $0xa0] sm:$0xff]  ;;  %v339_v53 = vld [vmem:[%s3767_s14 + $0xa8] sm:$0xff]  ;;  %v2719_v56 = vcombine.low %v327_v47, %v331_v48  ;;  %v3581_v15 = vld [vmem:[%s4143_s1 + $0x118] sm:$0xff]  }
  0x18   : > { %v3572_v55 = vld [vmem:[%s4143_s1 + $0x148] sm:$0xff]   ;;  %v2726_v57 = vcombine.high %v334_v49, %v338_v51  ;;  %v2728_v59 = vcombine.high %v335_v52, %v339_v53  ;;  %v342_v62 = vld [vmem:[%s3767_s14 + $0xc0] sm:$0xff]  ;;  %v2725_v3 = vcombine.low %v334_v49, %v338_v51  ;;  %v2727_v5 = vcombine.low %v335_v52, %v339_v53  ;;  %v3582_v17 = vld [vmem:[%s4143_s1 + $0x1d8] sm:$0xff]  }
  0x19   : > { %3072 = vmatpush3.bf16.msra.mxu0 %v3554_v18  ;;  %v3573_v58 = vld [vmem:[%s4143_s1 + $0x108] sm:$0xff]   ;;  %v346_v63 = vld [vmem:[%s3767_s14 + $0xe0] sm:$0xff]  ;;  %v3593_v47 = vld [vmem:[%s4143_s1 + $0x130] sm:$0xff]  }
  0x1a   : > { %3184 = vmatpush3.bf16.msra.mxu1 %v3555_v19  ;;  %3073 = vmatprep.subr.bf16.mxu0 %v3556_v20  ;;  %v3574_v60 = vld [vmem:[%s4143_s1 + $0x1c8] sm:$0xff]   ;;  %v2734_v6 = vcombine.high %v342_v62, %v346_v63  ;;  %v350_v10 = vld [vmem:[%s3767_s14 + $0x100] sm:$0xff]  ;;  %v2733_v16 = vcombine.low %v342_v62, %v346_v63  ;;  %v3583_v20 = vld [vmem:[%s4143_s1 + $0x198] sm:$0xff]  }
  0x1b   : > { %3185 = vmatprep.subr.bf16.mxu1 %v3557_v21  ;;  %v3575_v61 = vld [vmem:[%s4143_s1 + $0x188] sm:$0xff]   ;;  %v354_v11 = vld [vmem:[%s3767_s14 + $0x120] sm:$0xff]  ;;  %v3594_v48 = vld [vmem:[%s4143_s1 + $0x1f0] sm:$0xff]  }
  0x1c   : > { %v343_v0 = vld [vmem:[%s3767_s14 + $0xc8] sm:$0xff]  ;;  %v2742_v19 = vcombine.high %v350_v10, %v354_v11  ;;  %v3595_v49 = vld [vmem:[%s4143_s1 + $0x1b0] sm:$0xff]   ;;  %v378_v51 = vld [vmem:[%s3767_s14 + $0x1e0] sm:$0xff] }
  0x1d   : > { %3074 = vmatpush3.bf16.msra.mxu0 %v3558_v22  ;;  %v347_v1 = vld [vmem:[%s3767_s14 + $0xe8] sm:$0xff]  ;;  %v358_v22 = vld [vmem:[%s3767_s14 + $0x140] sm:$0xff] }
  0x1e   : > { %3186 = vmatpush3.bf16.msra.mxu1 %v3559_v23  ;;  %3075 = vmatprep.subr.bf16.mxu0 %v3560_v24  ;;  %v2736_v8 = vcombine.high %v343_v0, %v347_v1  ;;  %v351_v12 = vld [vmem:[%s3767_s14 + $0x108] sm:$0xff]  ;;  %v2735_v18 = vcombine.low %v343_v0, %v347_v1  ;;  %v362_v23 = vld [vmem:[%s3767_s14 + $0x160] sm:$0xff] }
  0x1f   : > { %3187 = vmatprep.subr.bf16.mxu1 %v3561_v25  ;;  %v355_v13 = vld [vmem:[%s3767_s14 + $0x128] sm:$0xff]  ;;  %v3584_v24 = vld [vmem:[%s4143_s1 + $0x160] sm:$0xff]   ;;  %v2750_v32 = vcombine.high %v358_v22, %v362_v23 }
  0x20   : > { %v2744_v21 = vcombine.high %v351_v12, %v355_v13  ;;  %v359_v25 = vld [vmem:[%s3767_s14 + $0x148] sm:$0xff]  ;;  %v382_v62 = vld [vmem:[%s3767_s14 + $0x200] sm:$0xff] }
  0x21   : > { %3076 = vmatpush3.bf16.msra.mxu0 %v3562_v26  ;;  %v363_v26 = vld [vmem:[%s3767_s14 + $0x168] sm:$0xff]  ;;  %v386_v63 = vld [vmem:[%s3767_s14 + $0x220] sm:$0xff] }
  0x22   : > { %3188 = vmatpush3.bf16.msra.mxu1 %v3563_v27  ;;  %3077 = vmatprep.subr.bf16.mxu0 %v3564_v28  ;;  %v3585_v27 = vld [vmem:[%s4143_s1 + $0x120] sm:$0xff]   ;;  %v2752_v33 = vcombine.high %v359_v25, %v363_v26  ;;  %v3588_v34 = vld [vmem:[%s4143_s1 + $0x168] sm:$0xff]  }
  0x23   : > { %3189 = vmatprep.subr.bf16.mxu1 %v3565_v29  ;;  %v3586_v28 = vld [vmem:[%s4143_s1 + $0x1e0] sm:$0xff]   ;;  %v3589_v36 = vld [vmem:[%s4143_s1 + $0x128] sm:$0xff]  }
  0x24   : > { %v3587_v29 = vld [vmem:[%s4143_s1 + $0x1a0] sm:$0xff]   ;;  %v3590_v37 = vld [vmem:[%s4143_s1 + $0x1e8] sm:$0xff]  }
  0x25   : > { %3078 = vmatpush3.bf16.msra.mxu0 %v3566_v30  ;;  %v2741_v30 = vcombine.low %v350_v10, %v354_v11  ;;  %v3591_v39 = vld [vmem:[%s4143_s1 + $0x1a8] sm:$0xff]   ;;  %v2773_v10 = vcombine.low %v382_v62, %v386_v63 }
  0x26   : > { %3190 = vmatpush3.bf16.msra.mxu1 %v3567_v31  ;;  %3287 = vmatprep.subr.bf16.mxu0 %v3568_v40  ;;  %v2743_v31 = vcombine.low %v351_v12, %v355_v13  ;;  %v367_v40 = vld [vmem:[%s3767_s14 + $0x188] sm:$0xff] }
  0x27   : > { %3399 = vmatprep.subr.bf16.mxu1 %v3570_v42  ;;  %v2749_v42 = vcombine.low %v358_v22, %v362_v23  ;;  %v375_v52 = vld [vmem:[%s3767_s14 + $0x1c8] sm:$0xff]  ;;  %v406_v22 = vld [vmem:[%s3767_s14 + $0x2c0] sm:$0xff] }
  0x28   : > { %1631 = vmatmul.mubr.bf16.vlgmr.msra.gmra.mrb[0].mxu0 %v2709_v35  ;;  %v366_v35 = vld [vmem:[%s3767_s14 + $0x180] sm:$0xff]  ;;  %v379_v53 = vld [vmem:[%s3767_s14 + $0x1e8] sm:$0xff] }
  0x29   : > { %1792 = vmatmul.mubr.bf16.vlgmr.msra.gmra.mrb[0].mxu1 %v2711_v38  ;;  %3288 = vmatpush3.bf16.msra.mxu0 %v3569_v41  ;;  %v370_v38 = vld [vmem:[%s3767_s14 + $0x1a0] sm:$0xff]  ;;  %v371_v41 = vld [vmem:[%s3767_s14 + $0x1a8] sm:$0xff] }
  0x2a   : > { %3400 = vmatpush3.bf16.msra.mxu1 %v3571_v43  ;;  %1638 = vmatprep.mubr.bf16.mxu0 %v2718_v46  ;;  %v2751_v43 = vcombine.low %v359_v25, %v363_v26  ;;  %v2758_v44 = vcombine.high %v366_v35, %v370_v38  ;;  %v2760_v45 = vcombine.high %v367_v40, %v371_v41  ;;  %v3592_v46 = vld [vmem:[%s4143_s1 + $0x170] sm:$0xff]   ;;  %v383_v0 = vld [vmem:[%s3767_s14 + $0x208] sm:$0xff]  ;;  %v410_v23 = vld [vmem:[%s3767_s14 + $0x2e0] sm:$0xff] }
  0x2b   : > { %1799 = vmatprep.mubr.bf16.mxu1 %v2720_v50  ;;  %3289 = vmatprep.subr.bf16.mxu0 %v3572_v55  ;;  %v374_v50 = vld [vmem:[%s3767_s14 + $0x1c0] sm:$0xff]  ;;  %v3596_v55 = vld [vmem:[%s4143_s1 + $0x178] sm:$0xff]   ;;  %v387_v1 = vld [vmem:[%s3767_s14 + $0x228] sm:$0xff] }
  0x2c   : > { %3401 = vmatprep.subr.bf16.mxu1 %v3574_v60  ;;  %v3598_v60 = vld [vmem:[%s4143_s1 + $0x1f8] sm:$0xff]   ;;  %v2775_v11 = vcombine.low %v383_v0, %v387_v1  ;;  %v411_v25 = vld [vmem:[%s3767_s14 + $0x2e8] sm:$0xff] }
  0x2d   : > { %3290 = vmatpush3.bf16.msra.mxu0 %v3573_v58  ;;  %v3597_v58 = vld [vmem:[%s4143_s1 + $0x138] sm:$0xff]  }
  0x2e   : > { %3402 = vmatpush3.bf16.msra.mxu1 %v3575_v61  ;;  %3291 = vmatprep.subr.bf16.mxu0 %v3576_v2  ;;  %v3599_v61 = vld [vmem:[%s4143_s1 + $0x1b8] sm:$0xff]   ;;  %v2765_v2 = vcombine.low %v374_v50, %v378_v51 }
  0x2f   : > { %3403 = vmatprep.subr.bf16.mxu1 %v3578_v7  ;;  %v394_v7 = vld [vmem:[%s3767_s14 + $0x260] sm:$0xff] }
  0x30   : > { %1639 = vmatmul.mubr.bf16.gmra.mrb[4].mxu0 %v2717_v54  ;;  %v2757_v54 = vcombine.low %v366_v35, %v370_v38  ;;  %v422_v38 = vld [vmem:[%s3767_s14 + $0x340] sm:$0xff] }
  0x31   : > { %1800 = vmatmul.mubr.bf16.gmra.mrb[4].mxu1 %v2719_v56  ;;  %1646 = vmatprep.mubr.bf16.mxu0 %v2726_v57  ;;  %v2759_v56 = vcombine.low %v367_v40, %v371_v41  ;;  %v2766_v57 = vcombine.high %v374_v50, %v378_v51  ;;  %v423_v40 = vld [vmem:[%s3767_s14 + $0x348] sm:$0xff] }
  0x32   : > { %1807 = vmatprep.mubr.bf16.mxu1 %v2728_v59  ;;  %3292 = vmatpush3.bf16.msra.mxu0 %v3577_v4  ;;  %v2768_v59 = vcombine.high %v375_v52, %v379_v53  ;;  %v2774_v4 = vcombine.high %v382_v62, %v386_v63  ;;  %v427_v41 = vld [vmem:[%s3767_s14 + $0x368] sm:$0xff]  ;;  %v320_v62 = vld [vmem:[%s3767_s14 + $0x10] sm:$0xff] }
  0x33   : > { %3404 = vmatpush3.bf16.msra.mxu1 %v3579_v9  ;;  %3293 = vmatprep.subr.bf16.mxu0 %v3580_v14  ;;  %v395_v9 = vld [vmem:[%s3767_s14 + $0x268] sm:$0xff]  ;;  %v398_v14 = vld [vmem:[%s3767_s14 + $0x280] sm:$0xff]  ;;  %v2815_v51 = vcombine.low %v423_v40, %v427_v41  ;;  %v324_v63 = vld [vmem:[%s3767_s14 + $0x30] sm:$0xff] }
  0x34   : > { %3405 = vmatprep.subr.bf16.mxu1 %v3582_v17  ;;  %v403_v17 = vld [vmem:[%s3767_s14 + $0x2a8] sm:$0xff] }
  0x36   : > { %3294 = vmatpush3.bf16.msra.mxu0 %v3581_v15  ;;  %v402_v15 = vld [vmem:[%s3767_s14 + $0x2a0] sm:$0xff] }
  0x37   : > { %3406 = vmatpush3.bf16.msra.mxu1 %v3583_v20  ;;  %3295 = vmatprep.subr.bf16.mxu0 %v3584_v24  ;;  %v2790_v20 = vcombine.high %v398_v14, %v402_v15  ;;  %v407_v24 = vld [vmem:[%s3767_s14 + $0x2c8] sm:$0xff]  ;;  %v2789_v26 = vcombine.low %v398_v14, %v402_v15  ;;  %v336_v14 = vld [vmem:[%s3767_s14 + $0x90] sm:$0xff] }
  0x38   : > { %1647 = vmatmul.mubr.bf16.gmra.mrb[8].mxu0 %v2725_v3  ;;  %3407 = vmatprep.subr.bf16.mxu1 %v3586_v28  ;;  %v2767_v3 = vcombine.low %v375_v52, %v379_v53  ;;  %v2798_v28 = vcombine.high %v406_v22, %v410_v23  ;;  %v2799_v35 = vcombine.low %v407_v24, %v411_v25  ;;  %v340_v15 = vld [vmem:[%s3767_s14 + $0xb0] sm:$0xff] }
  0x39   : > { %1808 = vmatmul.mubr.bf16.gmra.mrb[8].mxu1 %v2727_v5  ;;  %1654 = vmatprep.mubr.bf16.mxu0 %v2734_v6  ;;  %v2776_v5 = vcombine.high %v383_v0, %v387_v1  ;;  %v390_v6 = vld [vmem:[%s3767_s14 + $0x240] sm:$0xff]  ;;  %v321_v0 = vld [vmem:[%s3767_s14 + $0x18] sm:$0xff] }
  0x3a   : > { %1815 = vmatprep.mubr.bf16.mxu1 %v2736_v8  ;;  %3296 = vmatpush3.bf16.msra.mxu0 %v3585_v27  ;;  %v391_v8 = vld [vmem:[%s3767_s14 + $0x248] sm:$0xff]  ;;  %v2782_v12 = vcombine.high %v390_v6, %v394_v7  ;;  %v325_v1 = vld [vmem:[%s3767_s14 + $0x38] sm:$0xff] }
  0x3b   : > { %3408 = vmatpush3.bf16.msra.mxu1 %v3587_v29  ;;  %3297 = vmatprep.subr.bf16.mxu0 %v3588_v34  ;;  %v2784_v13 = vcombine.high %v391_v8, %v395_v9  ;;  %v2800_v29 = vcombine.high %v407_v24, %v411_v25  ;;  %v2797_v34 = vcombine.low %v406_v22, %v410_v23  ;;  %v344_v22 = vld [vmem:[%s3767_s14 + $0xd0] sm:$0xff]  ;;  %v345_v24 = vld [vmem:[%s3767_s14 + $0xd8] sm:$0xff] }
  0x3c   : > { %3409 = vmatprep.subr.bf16.mxu1 %v3590_v37  ;;  %v348_v23 = vld [vmem:[%s3767_s14 + $0xf0] sm:$0xff]  ;;  %v349_v25 = vld [vmem:[%s3767_s14 + $0xf8] sm:$0xff] }
  0x3e   : > { %3298 = vmatpush3.bf16.msra.mxu0 %v3589_v36 }
  0x3f   : > { %3410 = vmatpush3.bf16.msra.mxu1 %v3591_v39  ;;  %3299 = vmatprep.subr.bf16.mxu0 %v3592_v46  ;;  %v426_v39 = vld [vmem:[%s3767_s14 + $0x360] sm:$0xff] }
  0x40   : > { %1655 = vmatmul.mubr.bf16.gmra.mrb[12].mxu0 %v2733_v16  ;;  %3411 = vmatprep.subr.bf16.mxu1 %v3594_v48  ;;  %v399_v16 = vld [vmem:[%s3767_s14 + $0x288] sm:$0xff]  ;;  %v430_v46 = vld [vmem:[%s3767_s14 + $0x380] sm:$0xff]  ;;  %v2813_v50 = vcombine.low %v422_v38, %v426_v39 }
  0x41   : > { %1816 = vmatmul.mubr.bf16.gmra.mrb[12].mxu1 %v2735_v18  ;;  %1662 = vmatprep.mubr.bf16.mxu0 %v2742_v19  ;;  %v2781_v18 = vcombine.low %v390_v6, %v394_v7  ;;  %v2783_v19 = vcombine.low %v391_v8, %v395_v9  ;;  %v2791_v27 = vcombine.low %v399_v16, %v403_v17  ;;  %v431_v48 = vld [vmem:[%s3767_s14 + $0x388] sm:$0xff]  ;;  %v328_v6 = vld [vmem:[%s3767_s14 + $0x50] sm:$0xff]  ;;  %v329_v8 = vld [vmem:[%s3767_s14 + $0x58] sm:$0xff] }
  0x42   : > { %1823 = vmatprep.mubr.bf16.mxu1 %v2744_v21  ;;  %3300 = vmatpush3.bf16.msra.mxu0 %v3593_v47  ;;  %v2792_v21 = vcombine.high %v399_v16, %v403_v17  ;;  %v434_v47 = vld [vmem:[%s3767_s14 + $0x3a0] sm:$0xff]  ;;  %v332_v7 = vld [vmem:[%s3767_s14 + $0x70] sm:$0xff]  ;;  %v333_v9 = vld [vmem:[%s3767_s14 + $0x78] sm:$0xff] }
  0x43   : > { %3412 = vmatpush3.bf16.msra.mxu1 %v3595_v49  ;;  %3301 = vmatprep.subr.bf16.mxu0 %v3596_v55  ;;  %v435_v49 = vld [vmem:[%s3767_s14 + $0x3a8] sm:$0xff]  ;;  %v2822_v52 = vcombine.high %v430_v46, %v434_v47  ;;  %v442_v55 = vld [vmem:[%s3767_s14 + $0x3e0] sm:$0xff]  ;;  %v337_v16 = vld [vmem:[%s3767_s14 + $0x98] sm:$0xff] }
  0x44   : > { %3413 = vmatprep.subr.bf16.mxu1 %v3598_v60  ;;  %v2824_v53 = vcombine.high %v431_v48, %v435_v49  ;;  %v341_v17 = vld [vmem:[%s3767_s14 + $0xb8] sm:$0xff] }
  0x46   : > { %3302 = vmatpush3.bf16.msra.mxu0 %v3597_v58  ;;  %v2821_v58 = vcombine.low %v430_v46, %v434_v47  ;;  %v368_v46 = vld [vmem:[%s3767_s14 + $0x190] sm:$0xff] }
  0x47   : > { %3414 = vmatpush3.bf16.msra.mxu1 %v3599_v61  ;;  %v372_v47 = vld [vmem:[%s3767_s14 + $0x1b0] sm:$0xff] }
  0x48   : > { %1663 = vmatmul.mubr.bf16.gmra.mrb[16].mxu0 %v2741_v30  ;;  %v414_v30 = vld [vmem:[%s3767_s14 + $0x300] sm:$0xff] }
  0x49   : > { %1824 = vmatmul.mubr.bf16.gmra.mrb[16].mxu1 %v2743_v31  ;;  %1670 = vmatprep.mubr.bf16.mxu0 %v2750_v32  ;;  %v418_v31 = vld [vmem:[%s3767_s14 + $0x320] sm:$0xff]  ;;  %v415_v32 = vld [vmem:[%s3767_s14 + $0x308] sm:$0xff] }
  0x4a   : > { %1831 = vmatprep.mubr.bf16.mxu1 %v2752_v33  ;;  %v419_v33 = vld [vmem:[%s3767_s14 + $0x328] sm:$0xff]  ;;  %v2806_v36 = vcombine.high %v414_v30, %v418_v31 }
  0x4b   : > { %v2808_v37 = vcombine.high %v415_v32, %v419_v33 }
  0x50   : > { %1671 = vmatmul.mubr.bf16.gmra.mrb[20].mxu0 %v2749_v42  ;;  %v2805_v42 = vcombine.low %v414_v30, %v418_v31  ;;  %v352_v30 = vld [vmem:[%s3767_s14 + $0x110] sm:$0xff] }
  0x51   : > { %1832 = vmatmul.mubr.bf16.gmra.mrb[20].mxu1 %v2751_v43  ;;  %1678 = vmatprep.mubr.bf16.mxu0 %v2758_v44  ;;  %v2807_v43 = vcombine.low %v415_v32, %v419_v33  ;;  %v2814_v44 = vcombine.high %v422_v38, %v426_v39  ;;  %v356_v31 = vld [vmem:[%s3767_s14 + $0x130] sm:$0xff]  ;;  %v353_v32 = vld [vmem:[%s3767_s14 + $0x118] sm:$0xff] }
  0x52   : > { %1839 = vmatprep.mubr.bf16.mxu1 %v2760_v45  ;;  %v2816_v45 = vcombine.high %v423_v40, %v427_v41  ;;  %v357_v33 = vld [vmem:[%s3767_s14 + $0x138] sm:$0xff]  ;;  %v360_v38 = vld [vmem:[%s3767_s14 + $0x150] sm:$0xff] }
  0x53   : > { %v364_v39 = vld [vmem:[%s3767_s14 + $0x170] sm:$0xff]  ;;  %v361_v40 = vld [vmem:[%s3767_s14 + $0x158] sm:$0xff] }
  0x54   : > { %v365_v41 = vld [vmem:[%s3767_s14 + $0x178] sm:$0xff] }
  0x58   : > { %1679 = vmatmul.mubr.bf16.gmra.mrb[24].mxu0 %v2757_v54  ;;  %v438_v54 = vld [vmem:[%s3767_s14 + $0x3c0] sm:$0xff] }
  0x59   : > { %1840 = vmatmul.mubr.bf16.gmra.mrb[24].mxu1 %v2759_v56  ;;  %1686 = vmatprep.mubr.bf16.mxu0 %v2766_v57  ;;  %v439_v56 = vld [vmem:[%s3767_s14 + $0x3c8] sm:$0xff]  ;;  %v2830_v60 = vcombine.high %v438_v54, %v442_v55 }
  0x5a   : > { %1847 = vmatprep.mubr.bf16.mxu1 %v2768_v59  ;;  %v443_v57 = vld [vmem:[%s3767_s14 + $0x3e8] sm:$0xff]  ;;  %v2823_v59 = vcombine.low %v431_v48, %v435_v49  ;;  %v369_v48 = vld [vmem:[%s3767_s14 + $0x198] sm:$0xff] }
  0x5b   : > { %v2832_v61 = vcombine.high %v439_v56, %v443_v57  ;;  %v373_v49 = vld [vmem:[%s3767_s14 + $0x1b8] sm:$0xff] }
  0x60   : > { %1687 = vmatmul.mubr.bf16.gmra.mrb[28].mxu0 %v2765_v2  ;;  %v2829_v2 = vcombine.low %v438_v54, %v442_v55  ;;  %v376_v54 = vld [vmem:[%s3767_s14 + $0x1d0] sm:$0xff] }
  0x61   : > { %1848 = vmatmul.mubr.bf16.gmra.mrb[28].mxu1 %v2767_v3  ;;  %1694 = vmatprep.mubr.bf16.mxu0 %v2774_v4  ;;  %v2831_v3 = vcombine.low %v439_v56, %v443_v57  ;;  %v2714_v4 = vcombine.high %v320_v62, %v324_v63  ;;  %v380_v55 = vld [vmem:[%s3767_s14 + $0x1f0] sm:$0xff]  ;;  %v377_v56 = vld [vmem:[%s3767_s14 + $0x1d8] sm:$0xff] }
  0x62   : > { %1855 = vmatprep.mubr.bf16.mxu1 %v2776_v5  ;;  %v2716_v5 = vcombine.high %v321_v0, %v325_v1  ;;  %v381_v57 = vld [vmem:[%s3767_s14 + $0x1f8] sm:$0xff] }
  0x68   : > { %1695 = vmatmul.mubr.bf16.gmra.mrb[32].mxu0 %v2773_v10  ;;  %v2713_v10 = vcombine.low %v320_v62, %v324_v63  ;;  %v384_v62 = vld [vmem:[%s3767_s14 + $0x210] sm:$0xff] }
  0x69   : > { %1856 = vmatmul.mubr.bf16.gmra.mrb[32].mxu1 %v2775_v11  ;;  %1702 = vmatprep.mubr.bf16.mxu0 %v2782_v12  ;;  %v2715_v11 = vcombine.low %v321_v0, %v325_v1  ;;  %v2722_v12 = vcombine.high %v328_v6, %v332_v7  ;;  %v388_v63 = vld [vmem:[%s3767_s14 + $0x230] sm:$0xff]  ;;  %v385_v0 = vld [vmem:[%s3767_s14 + $0x218] sm:$0xff] }
  0x6a   : > { %1863 = vmatprep.mubr.bf16.mxu1 %v2784_v13  ;;  %v2724_v13 = vcombine.high %v329_v8, %v333_v9  ;;  %v389_v1 = vld [vmem:[%s3767_s14 + $0x238] sm:$0xff] }
  0x70   : > { %1703 = vmatmul.mubr.bf16.gmra.mrb[36].mxu0 %v2781_v18  ;;  %v2721_v18 = vcombine.low %v328_v6, %v332_v7  ;;  %v392_v6 = vld [vmem:[%s3767_s14 + $0x250] sm:$0xff] }
  0x71   : > { %1864 = vmatmul.mubr.bf16.gmra.mrb[36].mxu1 %v2783_v19  ;;  %1710 = vmatprep.mubr.bf16.mxu0 %v2790_v20  ;;  %v2723_v19 = vcombine.low %v329_v8, %v333_v9  ;;  %v2730_v20 = vcombine.high %v336_v14, %v340_v15  ;;  %v396_v7 = vld [vmem:[%s3767_s14 + $0x270] sm:$0xff]  ;;  %v393_v8 = vld [vmem:[%s3767_s14 + $0x258] sm:$0xff] }
  0x72   : > { %1871 = vmatprep.mubr.bf16.mxu1 %v2792_v21  ;;  %v2732_v21 = vcombine.high %v337_v16, %v341_v17  ;;  %v397_v9 = vld [vmem:[%s3767_s14 + $0x278] sm:$0xff] }
  0x78   : > { %1711 = vmatmul.mubr.bf16.gmra.mrb[40].mxu0 %v2789_v26  ;;  %v2729_v26 = vcombine.low %v336_v14, %v340_v15  ;;  %v400_v14 = vld [vmem:[%s3767_s14 + $0x290] sm:$0xff] }
  0x79   : > { %1872 = vmatmul.mubr.bf16.gmra.mrb[40].mxu1 %v2791_v27  ;;  %1718 = vmatprep.mubr.bf16.mxu0 %v2798_v28  ;;  %v2731_v27 = vcombine.low %v337_v16, %v341_v17  ;;  %v2738_v28 = vcombine.high %v344_v22, %v348_v23  ;;  %v404_v15 = vld [vmem:[%s3767_s14 + $0x2b0] sm:$0xff]  ;;  %v401_v16 = vld [vmem:[%s3767_s14 + $0x298] sm:$0xff] }
  0x7a   : > { %1879 = vmatprep.mubr.bf16.mxu1 %v2800_v29  ;;  %v2740_v29 = vcombine.high %v345_v24, %v349_v25  ;;  %v405_v17 = vld [vmem:[%s3767_s14 + $0x2b8] sm:$0xff] }
  0x80   : > { %1719 = vmatmul.mubr.bf16.gmra.mrb[44].mxu0 %v2797_v34  ;;  %v2737_v34 = vcombine.low %v344_v22, %v348_v23  ;;  %v408_v22 = vld [vmem:[%s3767_s14 + $0x2d0] sm:$0xff] }
  0x81   : > { %1880 = vmatmul.mubr.bf16.gmra.mrb[44].mxu1 %v2799_v35  ;;  %1726 = vmatprep.mubr.bf16.mxu0 %v2806_v36  ;;  %v2739_v35 = vcombine.low %v345_v24, %v349_v25  ;;  %v2746_v36 = vcombine.high %v352_v30, %v356_v31  ;;  %v412_v23 = vld [vmem:[%s3767_s14 + $0x2f0] sm:$0xff]  ;;  %v409_v24 = vld [vmem:[%s3767_s14 + $0x2d8] sm:$0xff] }
  0x82   : > { %1887 = vmatprep.mubr.bf16.mxu1 %v2808_v37  ;;  %v2748_v37 = vcombine.high %v353_v32, %v357_v33  ;;  %v413_v25 = vld [vmem:[%s3767_s14 + $0x2f8] sm:$0xff] }
  0x88   : > { %1727 = vmatmul.mubr.bf16.gmra.mrb[48].mxu0 %v2805_v42  ;;  %v2745_v42 = vcombine.low %v352_v30, %v356_v31  ;;  %v416_v30 = vld [vmem:[%s3767_s14 + $0x310] sm:$0xff] }
  0x89   : > { %1888 = vmatmul.mubr.bf16.gmra.mrb[48].mxu1 %v2807_v43  ;;  %1734 = vmatprep.mubr.bf16.mxu0 %v2814_v44  ;;  %v2747_v43 = vcombine.low %v353_v32, %v357_v33  ;;  %v2754_v44 = vcombine.high %v360_v38, %v364_v39  ;;  %v420_v31 = vld [vmem:[%s3767_s14 + $0x330] sm:$0xff]  ;;  %v417_v33 = vld [vmem:[%s3767_s14 + $0x318] sm:$0xff] }
  0x8a   : > { %1895 = vmatprep.mubr.bf16.mxu1 %v2816_v45  ;;  %v2756_v45 = vcombine.high %v361_v40, %v365_v41 }
  0x90   : > { %1735 = vmatmul.mubr.bf16.gmra.mrb[52].mxu0 %v2813_v50  ;;  %v2753_v50 = vcombine.low %v360_v38, %v364_v39 }
  0x91   : > { %1896 = vmatmul.mubr.bf16.gmra.mrb[52].mxu1 %v2815_v51  ;;  %1742 = vmatprep.mubr.bf16.mxu0 %v2822_v52  ;;  %v2755_v51 = vcombine.low %v361_v40, %v365_v41  ;;  %v2762_v52 = vcombine.high %v368_v46, %v372_v47  ;;  %v2803_v41 = vcombine.low %v409_v24, %v413_v25 }
  0x92   : > { %1903 = vmatprep.mubr.bf16.mxu1 %v2824_v53  ;;  %v2764_v53 = vcombine.high %v369_v48, %v373_v49 }
  0x98   : > { %1743 = vmatmul.mubr.bf16.gmra.mrb[56].mxu0 %v2821_v58  ;;  %v2761_v58 = vcombine.low %v368_v46, %v372_v47 }
  0x99   : > { %1904 = vmatmul.mubr.bf16.gmra.mrb[56].mxu1 %v2823_v59  ;;  %1750 = vmatprep.mubr.bf16.mxu0 %v2830_v60  ;;  %v2763_v59 = vcombine.low %v369_v48, %v373_v49  ;;  %v2770_v60 = vcombine.high %v376_v54, %v380_v55 }
  0x9a   : > { %1911 = vmatprep.mubr.bf16.mxu1 %v2832_v61  ;;  %v2772_v61 = vcombine.high %v377_v56, %v381_v57 }
  0xa0   : > { %1751 = vmatmul.mubr.bf16.gmra.mrb[60].mxu0 %v2829_v2  ;;  %v2769_v2 = vcombine.low %v376_v54, %v380_v55  ;;  %v425_v55 = vld [vmem:[%s3767_s14 + $0x358] sm:$0xff] }
  0xa1   : > { %1912 = vmatmul.mubr.bf16.gmra.mrb[60].mxu1 %v2831_v3  ;;  %1952 = vmatprep.mubr.bf16.mxu0 %v2714_v4  ;;  %v2771_v3 = vcombine.low %v377_v56, %v381_v57  ;;  %v2778_v4 = vcombine.high %v384_v62, %v388_v63  ;;  %v429_v56 = vld [vmem:[%s3767_s14 + $0x378] sm:$0xff] }
  0xa2   : > { %2113 = vmatprep.mubr.bf16.mxu1 %v2716_v5  ;;  %v2780_v5 = vcombine.high %v385_v0, %v389_v1 }
  0xa8   : > { %1953 = vmatmul.mubr.bf16.vlgmr.msra.gmra.mrb[64].mxu0 %v2713_v10  ;;  %v2777_v10 = vcombine.low %v384_v62, %v388_v63 }
  0xa9   : > { %2114 = vmatmul.mubr.bf16.vlgmr.msra.gmra.mrb[64].mxu1 %v2715_v11  ;;  %1960 = vmatprep.mubr.bf16.mxu0 %v2722_v12  ;;  %v2779_v11 = vcombine.low %v385_v0, %v389_v1  ;;  %v2786_v12 = vcombine.high %v392_v6, %v396_v7 }
  0xaa   : > { %2121 = vmatprep.mubr.bf16.mxu1 %v2724_v13  ;;  %v2788_v13 = vcombine.high %v393_v8, %v397_v9 }
  0xb0   : > { %1961 = vmatmul.mubr.bf16.gmra.mrb[68].mxu0 %v2721_v18  ;;  %v2785_v18 = vcombine.low %v392_v6, %v396_v7 }
  0xb1   : > { %2122 = vmatmul.mubr.bf16.gmra.mrb[68].mxu1 %v2723_v19  ;;  %1968 = vmatprep.mubr.bf16.mxu0 %v2730_v20  ;;  %v2787_v19 = vcombine.low %v393_v8, %v397_v9  ;;  %v2794_v20 = vcombine.high %v400_v14, %v404_v15 }
  0xb2   : > { %2129 = vmatprep.mubr.bf16.mxu1 %v2732_v21  ;;  %v2796_v21 = vcombine.high %v401_v16, %v405_v17 }
  0xb8   : > { %1969 = vmatmul.mubr.bf16.gmra.mrb[72].mxu0 %v2729_v26  ;;  %v2793_v26 = vcombine.low %v400_v14, %v404_v15  ;;  %v437_v14 = vld [vmem:[%s3767_s14 + $0x3b8] sm:$0xff] }
  0xb9   : > { %2130 = vmatmul.mubr.bf16.gmra.mrb[72].mxu1 %v2731_v27  ;;  %1976 = vmatprep.mubr.bf16.mxu0 %v2738_v28  ;;  %v2795_v27 = vcombine.low %v401_v16, %v405_v17  ;;  %v2802_v28 = vcombine.high %v408_v22, %v412_v23 }
  0xba   : > { %2137 = vmatprep.mubr.bf16.mxu1 %v2740_v29  ;;  %v2804_v29 = vcombine.high %v409_v24, %v413_v25 }
  0xc0   : > { %1977 = vmatmul.mubr.bf16.gmra.mrb[76].mxu0 %v2737_v34  ;;  %v421_v34 = vld [vmem:[%s3767_s14 + $0x338] sm:$0xff] }
  0xc1   : > { %2138 = vmatmul.mubr.bf16.gmra.mrb[76].mxu1 %v2739_v35  ;;  %1984 = vmatprep.mubr.bf16.mxu0 %v2746_v36  ;;  %v2812_v46 = vcombine.high %v417_v33, %v421_v34  ;;  %v2811_v63 = vcombine.low %v417_v33, %v421_v34  ;;  %v444_v33 = vld [vmem:[%s3767_s14 + $0x3f0] sm:$0xff] }
  0xc2   : > { %2145 = vmatprep.mubr.bf16.mxu1 %v2748_v37  ;;  %v2801_v37 = vcombine.low %v408_v22, %v412_v23 }
  0xc8   : > { %1985 = vmatmul.mubr.bf16.gmra.mrb[80].mxu0 %v2745_v42  ;;  %v2810_v42 = vcombine.high %v416_v30, %v420_v31 }
  0xc9   : > { %2146 = vmatmul.mubr.bf16.gmra.mrb[80].mxu1 %v2747_v43  ;;  %1992 = vmatprep.mubr.bf16.mxu0 %v2754_v44 }
  0xca   : > { %2153 = vmatprep.mubr.bf16.mxu1 %v2756_v45 }
  0xd0   : > { %1993 = vmatmul.mubr.bf16.gmra.mrb[84].mxu0 %v2753_v50 }
  0xd1   : > { %2154 = vmatmul.mubr.bf16.gmra.mrb[84].mxu1 %v2755_v51  ;;  %2000 = vmatprep.mubr.bf16.mxu0 %v2762_v52  ;;  %v424_v52 = vld [vmem:[%s3767_s14 + $0x350] sm:$0xff] }
  0xd2   : > { %2161 = vmatprep.mubr.bf16.mxu1 %v2764_v53  ;;  %v428_v53 = vld [vmem:[%s3767_s14 + $0x370] sm:$0xff] }
  0xd3   : > { %v2818_v0 = vcombine.high %v424_v52, %v428_v53  ;;  %v2817_v17 = vcombine.low %v424_v52, %v428_v53 }
  0xd8   : > { %2001 = vmatmul.mubr.bf16.gmra.mrb[88].mxu0 %v2761_v58 }
  0xd9   : > { %2162 = vmatmul.mubr.bf16.gmra.mrb[88].mxu1 %v2763_v59  ;;  %2008 = vmatprep.mubr.bf16.mxu0 %v2770_v60  ;;  %v2809_v59 = vcombine.low %v416_v30, %v420_v31 }
  0xda   : > { %2169 = vmatprep.mubr.bf16.mxu1 %v2772_v61 }
  0xe0   : > { %2009 = vmatmul.mubr.bf16.gmra.mrb[92].mxu0 %v2769_v2 }
  0xe1   : > { %2170 = vmatmul.mubr.bf16.gmra.mrb[92].mxu1 %v2771_v3  ;;  %2016 = vmatprep.mubr.bf16.mxu0 %v2778_v4  ;;  %v2820_v4 = vcombine.high %v425_v55, %v429_v56 }
  0xe2   : > { %2177 = vmatprep.mubr.bf16.mxu1 %v2780_v5 }
  0xe8   : > { %2017 = vmatmul.mubr.bf16.gmra.mrb[96].mxu0 %v2777_v10  ;;  %v432_v10 = vld [vmem:[%s3767_s14 + $0x390] sm:$0xff] }
  0xe9   : > { %2178 = vmatmul.mubr.bf16.gmra.mrb[96].mxu1 %v2779_v11  ;;  %2024 = vmatprep.mubr.bf16.mxu0 %v2786_v12  ;;  %v436_v11 = vld [vmem:[%s3767_s14 + $0x3b0] sm:$0xff] }
  0xea   : > { %2185 = vmatprep.mubr.bf16.mxu1 %v2788_v13  ;;  %v433_v13 = vld [vmem:[%s3767_s14 + $0x398] sm:$0xff]  ;;  %v2826_v22 = vcombine.high %v432_v10, %v436_v11 }
  0xf0   : > { %2025 = vmatmul.mubr.bf16.gmra.mrb[100].mxu0 %v2785_v18 }
  0xf1   : > { %2186 = vmatmul.mubr.bf16.gmra.mrb[100].mxu1 %v2787_v19  ;;  %2032 = vmatprep.mubr.bf16.mxu0 %v2794_v20 }
  0xf2   : > { %2193 = vmatprep.mubr.bf16.mxu1 %v2796_v21  ;;  %v2819_v21 = vcombine.low %v425_v55, %v429_v56 }
  0xf8   : > { %2033 = vmatmul.mubr.bf16.gmra.mrb[104].mxu0 %v2793_v26  ;;  %v2828_v26 = vcombine.high %v433_v13, %v437_v14 }
  0xf9   : > { %2194 = vmatmul.mubr.bf16.gmra.mrb[104].mxu1 %v2795_v27  ;;  %2040 = vmatprep.mubr.bf16.mxu0 %v2802_v28 }
  0xfa   : > { %2201 = vmatprep.mubr.bf16.mxu1 %v2804_v29 }
  0xfb   : > { %v3079_v32 = vpop.f32.mrb[0].mxu0 }
  0xfc   : > { %v3191_v35 = vpop.f32.mrb[0].mxu1  ;;  %v3080_v36 = vpop.f32.mrb[1].mxu0 }
  0xfd   : > { %v3081_v38 = vadd.f32 %v3080_v36, %v3079_v32  ;;  %v3192_v39 = vpop.f32.mrb[1].mxu1  ;;  %v3082_v40 = vpop.f32.mrb[2].mxu0  ;;  %v440_v32 = vld [vmem:[%s3767_s14 + $0x3d0] sm:$0xff]  ;;  %v445_v36 = vld [vmem:[%s3767_s14 + $0x3f8] sm:$0xff] }
  0xfe   : > { %v3193_v43 = vadd.f32 %v3192_v39, %v3191_v35  ;;  %v3194_v44 = vpop.f32.mrb[2].mxu1  ;;  %v3083_v45 = vpop.f32.mrb[3].mxu0  ;;  %v441_v35 = vld [vmem:[%s3767_s14 + $0x3d8] sm:$0xff]  ;;  %v2825_v39 = vcombine.low %v432_v10, %v436_v11  ;;  %s2706_s14 = sshll.u32 %s4152_s29, 2 }
  0xff   : > { %v3084_v47 = vadd.f32 %v3083_v45, %v3082_v40  ;;  %v3195_v48 = vpop.f32.mrb[3].mxu1  ;;  %s4083_s9 = scalar_lea.vmem %s4144_s2, %s2706_s14 }
 0x100   : > { %v3987_v49 = vadd.f32 %v3193_v43, %v3081_v38  ;;  %v3196_v50 = vadd.f32 %v3195_v48, %v3194_v44  ;;  %2041 = vmatmul.mubr.bf16.gmra.mrb[108].mxu0 %v2801_v37  ;;  %v2827_v43 = vcombine.low %v433_v13, %v437_v14  ;;  %v2834_v44 = vcombine.high %v440_v32, %v444_v33 }
 0x101   : > { %2202 = vmatmul.mubr.bf16.gmra.mrb[108].mxu1 %v2803_v41  ;;  %2048 = vmatprep.mubr.bf16.mxu0 %v2810_v42  ;;  %v2836_v48 = vcombine.high %v441_v35, %v445_v36 }
 0x102   : > { %v3989_v51 = vadd.f32 %v3196_v50, %v3084_v47  ;;  %2209 = vmatprep.mubr.bf16.mxu1 %v2812_v46 }
 0x103   : > { %v3085_v54 = vpop.f32.mrb[4].mxu0 }
 0x104   : > { %v3197_v57 = vpop.f32.mrb[4].mxu1  ;;  %v3086_v58 = vpop.f32.mrb[5].mxu0 }
 0x105   : > { %v3087_v60 = vadd.f32 %v3086_v58, %v3085_v54  ;;  %v3198_v61 = vpop.f32.mrb[5].mxu1  ;;  %v3088_v62 = vpop.f32.mrb[6].mxu0 }
 0x106   : > { %v3199_v1 = vadd.f32 %v3198_v61, %v3197_v57  ;;  %v3200_v2 = vpop.f32.mrb[6].mxu1  ;;  %v3089_v3 = vpop.f32.mrb[7].mxu0 }
 0x107   : > { %v3090_v5 = vadd.f32 %v3089_v3, %v3088_v62  ;;  %v3201_v6 = vpop.f32.mrb[7].mxu1 }
 0x108   : > { %v3995_v7 = vadd.f32 %v3199_v1, %v3087_v60  ;;  %v3202_v8 = vadd.f32 %v3201_v6, %v3200_v2  ;;  %2049 = vmatmul.mubr.bf16.gmra.mrb[112].mxu0 %v2809_v59  ;;  %v2833_v59 = vcombine.low %v440_v32, %v444_v33 }
 0x109   : > { %2210 = vmatmul.mubr.bf16.gmra.mrb[112].mxu1 %v2811_v63  ;;  %2056 = vmatprep.mubr.bf16.mxu0 %v2818_v0  ;;  %v2835_v63 = vcombine.low %v441_v35, %v445_v36 }
 0x10a   : > { %v3997_v9 = vadd.f32 %v3202_v8, %v3090_v5  ;;  %2217 = vmatprep.mubr.bf16.mxu1 %v2820_v4 }
 0x10b   : > { %v3091_v12 = vpop.f32.mrb[8].mxu0 }
 0x10c   : > { %v3203_v15 = vpop.f32.mrb[8].mxu1  ;;  %v3092_v16 = vpop.f32.mrb[9].mxu0 }
 0x10d   : > { %v3093_v18 = vadd.f32 %v3092_v16, %v3091_v12  ;;  %v3204_v19 = vpop.f32.mrb[9].mxu1  ;;  %v3094_v20 = vpop.f32.mrb[10].mxu0 }
 0x10e   : > { %v3205_v23 = vadd.f32 %v3204_v19, %v3203_v15  ;;  %v3206_v24 = vpop.f32.mrb[10].mxu1  ;;  %v3095_v25 = vpop.f32.mrb[11].mxu0 }
 0x10f   : > { %v3096_v27 = vadd.f32 %v3095_v25, %v3094_v20  ;;  %v3207_v28 = vpop.f32.mrb[11].mxu1 }
 0x110   : > { %v4003_v29 = vadd.f32 %v3205_v23, %v3093_v18  ;;  %v3208_v30 = vadd.f32 %v3207_v28, %v3206_v24  ;;  %2057 = vmatmul.mubr.bf16.gmra.mrb[116].mxu0 %v2817_v17 }
 0x111   : > { %2218 = vmatmul.mubr.bf16.gmra.mrb[116].mxu1 %v2819_v21  ;;  %2064 = vmatprep.mubr.bf16.mxu0 %v2826_v22 }
 0x112   : > { %v4005_v31 = vadd.f32 %v3208_v30, %v3096_v27  ;;  %2225 = vmatprep.mubr.bf16.mxu1 %v2828_v26 }
 0x113   : > { %v3097_v34 = vpop.f32.mrb[12].mxu0 }
 0x114   : > { %v3209_v37 = vpop.f32.mrb[12].mxu1  ;;  %v3098_v38 = vpop.f32.mrb[13].mxu0 }
 0x115   : > { %v3099_v40 = vadd.f32 %v3098_v38, %v3097_v34  ;;  %v3210_v41 = vpop.f32.mrb[13].mxu1  ;;  %v3100_v42 = vpop.f32.mrb[14].mxu0 }
 0x116   : > { %v3211_v45 = vadd.f32 %v3210_v41, %v3209_v37  ;;  %v3212_v46 = vpop.f32.mrb[14].mxu1  ;;  %v3101_v47 = vpop.f32.mrb[15].mxu0 }
 0x117   : > { %v3102_v50 = vadd.f32 %v3101_v47, %v3100_v42  ;;  %v3213_v52 = vpop.f32.mrb[15].mxu1 }
 0x118   : > { %v4011_v53 = vadd.f32 %v3211_v45, %v3099_v40  ;;  %v3214_v54 = vadd.f32 %v3213_v52, %v3212_v46  ;;  %2065 = vmatmul.mubr.bf16.gmra.mrb[120].mxu0 %v2825_v39 }
 0x119   : > { %2226 = vmatmul.mubr.bf16.gmra.mrb[120].mxu1 %v2827_v43  ;;  %2072 = vmatprep.mubr.bf16.mxu0 %v2834_v44 }
 0x11a   : > { %v4013_v55 = vadd.f32 %v3214_v54, %v3102_v50  ;;  %2233 = vmatprep.mubr.bf16.mxu1 %v2836_v48 }
 0x11b   : > { %v3103_v56 = vpop.f32.mrb[16].mxu0 }
 0x11c   : > { %v3215_v57 = vpop.f32.mrb[16].mxu1  ;;  %v3104_v58 = vpop.f32.mrb[17].mxu0 }
 0x11d   : > { %v3105_v60 = vadd.f32 %v3104_v58, %v3103_v56  ;;  %v3216_v61 = vpop.f32.mrb[17].mxu1  ;;  %v3106_v62 = vpop.f32.mrb[18].mxu0 }
 0x11e   : > { %v3217_v0 = vadd.f32 %v3216_v61, %v3215_v57  ;;  %v3218_v1 = vpop.f32.mrb[18].mxu1  ;;  %v3107_v2 = vpop.f32.mrb[19].mxu0 }
 0x11f   : > { %v3108_v3 = vadd.f32 %v3107_v2, %v3106_v62  ;;  %v3219_v4 = vpop.f32.mrb[19].mxu1 }
 0x120   : > { %v4015_v5 = vadd.f32 %v3217_v0, %v3105_v60  ;;  %v3220_v6 = vadd.f32 %v3219_v4, %v3218_v1  ;;  %2073 = vmatmul.mubr.bf16.gmra.mrb[124].mxu0 %v2833_v59 }
 0x121   : > { %2234 = vmatmul.mubr.bf16.gmra.mrb[124].mxu1 %v2835_v63 }
 0x122   : > { %v4017_v8 = vadd.f32 %v3220_v6, %v3108_v3 }
 0x123   : > { %v3109_v10 = vpop.f32.mrb[20].mxu0 }
 0x124   : > { %v3221_v11 = vpop.f32.mrb[20].mxu1  ;;  %v3110_v12 = vpop.f32.mrb[21].mxu0 }
 0x125   : > { %v3111_v13 = vadd.f32 %v3110_v12, %v3109_v10  ;;  %v3222_v14 = vpop.f32.mrb[21].mxu1  ;;  %v3112_v15 = vpop.f32.mrb[22].mxu0 }
 0x126   : > { %v3223_v16 = vadd.f32 %v3222_v14, %v3221_v11  ;;  %v3224_v17 = vpop.f32.mrb[22].mxu1  ;;  %v3113_v18 = vpop.f32.mrb[23].mxu0 }
 0x127   : > { %v3114_v19 = vadd.f32 %v3113_v18, %v3112_v15  ;;  %v3225_v20 = vpop.f32.mrb[23].mxu1 }
 0x128   : > { %v4019_v21 = vadd.f32 %v3223_v16, %v3111_v13  ;;  %v3226_v22 = vadd.f32 %v3225_v20, %v3224_v17 }
 0x12a   : > { %v4021_v23 = vadd.f32 %v3226_v22, %v3114_v19 }
 0x12b   : > { %v3115_v24 = vpop.f32.mrb[24].mxu0 }
 0x12c   : > { %v3227_v25 = vpop.f32.mrb[24].mxu1  ;;  %v3116_v26 = vpop.f32.mrb[25].mxu0 }
 0x12d   : > { %v3117_v27 = vadd.f32 %v3116_v26, %v3115_v24  ;;  %v3228_v28 = vpop.f32.mrb[25].mxu1  ;;  %v3118_v30 = vpop.f32.mrb[26].mxu0 }
 0x12e   : > { %v3229_v32 = vadd.f32 %v3228_v28, %v3227_v25  ;;  %v3230_v33 = vpop.f32.mrb[26].mxu1  ;;  %v3119_v34 = vpop.f32.mrb[27].mxu0 }
 0x12f   : > { %v3120_v35 = vadd.f32 %v3119_v34, %v3118_v30  ;;  %v3231_v36 = vpop.f32.mrb[27].mxu1 }
 0x130   : > { %v4023_v37 = vadd.f32 %v3229_v32, %v3117_v27  ;;  %v3232_v38 = vadd.f32 %v3231_v36, %v3230_v33 }
 0x132   : > { %v4025_v39 = vadd.f32 %v3232_v38, %v3120_v35 }
 0x133   : > { %v3121_v40 = vpop.f32.mrb[28].mxu0 }
 0x134   : > { %v3233_v41 = vpop.f32.mrb[28].mxu1  ;;  %v3122_v42 = vpop.f32.mrb[29].mxu0 }
 0x135   : > { %v3123_v43 = vadd.f32 %v3122_v42, %v3121_v40  ;;  %v3234_v44 = vpop.f32.mrb[29].mxu1  ;;  %v3124_v45 = vpop.f32.mrb[30].mxu0 }
 0x136   : > { %v3235_v46 = vadd.f32 %v3234_v44, %v3233_v41  ;;  %v3236_v47 = vpop.f32.mrb[30].mxu1  ;;  %v3125_v48 = vpop.f32.mrb[31].mxu0 }
 0x137   : > { %v3126_v50 = vadd.f32 %v3125_v48, %v3124_v45  ;;  %v3237_v52 = vpop.f32.mrb[31].mxu1 }
 0x138   : > { %v4027_v54 = vadd.f32 %v3235_v46, %v3123_v43  ;;  %v3238_v56 = vadd.f32 %v3237_v52, %v3236_v47 }
 0x13a   : > { %v4029_v57 = vadd.f32 %v3238_v56, %v3126_v50 }
 0x13b   : > { %v3127_v58 = vpop.f32.mrb[32].mxu0 }
 0x13c   : > { %v3239_v59 = vpop.f32.mrb[32].mxu1  ;;  %v3128_v60 = vpop.f32.mrb[33].mxu0 }
 0x13d   : > { %v3129_v61 = vadd.f32 %v3128_v60, %v3127_v58  ;;  %v3240_v62 = vpop.f32.mrb[33].mxu1  ;;  %v3130_v63 = vpop.f32.mrb[34].mxu0 }
 0x13e   : > { %v3241_v0 = vadd.f32 %v3240_v62, %v3239_v59  ;;  %v3242_v1 = vpop.f32.mrb[34].mxu1  ;;  %v3131_v2 = vpop.f32.mrb[35].mxu0 }
 0x13f   : > { %v3132_v3 = vadd.f32 %v3131_v2, %v3130_v63  ;;  %v3243_v4 = vpop.f32.mrb[35].mxu1 }
 0x140   : > { %v4031_v6 = vadd.f32 %v3241_v0, %v3129_v61  ;;  %v3244_v10 = vadd.f32 %v3243_v4, %v3242_v1 }
 0x142   : > { %v4033_v11 = vadd.f32 %v3244_v10, %v3132_v3 }
 0x143   : > { %v3133_v12 = vpop.f32.mrb[36].mxu0 }
 0x144   : > { %v3245_v13 = vpop.f32.mrb[36].mxu1  ;;  %v3134_v14 = vpop.f32.mrb[37].mxu0 }
 0x145   : > { %v3135_v15 = vadd.f32 %v3134_v14, %v3133_v12  ;;  %v3246_v16 = vpop.f32.mrb[37].mxu1  ;;  %v3136_v17 = vpop.f32.mrb[38].mxu0 }
 0x146   : > { %v3247_v18 = vadd.f32 %v3246_v16, %v3245_v13  ;;  %v3248_v19 = vpop.f32.mrb[38].mxu1  ;;  %v3137_v20 = vpop.f32.mrb[39].mxu0 }
 0x147   : > { %v3138_v22 = vadd.f32 %v3137_v20, %v3136_v17  ;;  %v3249_v24 = vpop.f32.mrb[39].mxu1 }
 0x148   : > { %v4035_v25 = vadd.f32 %v3247_v18, %v3135_v15  ;;  %v3250_v26 = vadd.f32 %v3249_v24, %v3248_v19 }
 0x14a   : > { %v4037_v27 = vadd.f32 %v3250_v26, %v3138_v22 }
 0x14b   : > { %v3139_v28 = vpop.f32.mrb[40].mxu0 }
 0x14c   : > { %v3251_v30 = vpop.f32.mrb[40].mxu1  ;;  %v3140_v32 = vpop.f32.mrb[41].mxu0 }
 0x14d   : > { %v3141_v33 = vadd.f32 %v3140_v32, %v3139_v28  ;;  %v3252_v34 = vpop.f32.mrb[41].mxu1  ;;  %v3142_v35 = vpop.f32.mrb[42].mxu0 }
 0x14e   : > { %v3253_v36 = vadd.f32 %v3252_v34, %v3251_v30  ;;  %v3254_v38 = vpop.f32.mrb[42].mxu1  ;;  %v3143_v40 = vpop.f32.mrb[43].mxu0 }
 0x14f   : > { %v3144_v41 = vadd.f32 %v3143_v40, %v3142_v35  ;;  %v3255_v42 = vpop.f32.mrb[43].mxu1 }
 0x150   : > { %v4039_v43 = vadd.f32 %v3253_v36, %v3141_v33  ;;  %v3256_v44 = vadd.f32 %v3255_v42, %v3254_v38 }
 0x152   : > { %v4041_v45 = vadd.f32 %v3256_v44, %v3144_v41 }
 0x153   : > { %v3145_v46 = vpop.f32.mrb[44].mxu0 }
 0x154   : > { %v3257_v47 = vpop.f32.mrb[44].mxu1  ;;  %v3146_v48 = vpop.f32.mrb[45].mxu0 }
 0x155   : > { %v3147_v50 = vadd.f32 %v3146_v48, %v3145_v46  ;;  %v3258_v52 = vpop.f32.mrb[45].mxu1  ;;  %v3148_v56 = vpop.f32.mrb[46].mxu0 }
 0x156   : > { %v3259_v58 = vadd.f32 %v3258_v52, %v3257_v47  ;;  %v3260_v59 = vpop.f32.mrb[46].mxu1  ;;  %v3149_v60 = vpop.f32.mrb[47].mxu0 }
 0x157   : > { %v3150_v61 = vadd.f32 %v3149_v60, %v3148_v56  ;;  %v3261_v62 = vpop.f32.mrb[47].mxu1 }
 0x158   : > { %v4043_v63 = vadd.f32 %v3259_v58, %v3147_v50  ;;  %v3262_v0 = vadd.f32 %v3261_v62, %v3260_v59 }
 0x15a   : > { %v4045_v1 = vadd.f32 %v3262_v0, %v3150_v61 }
 0x15b   : > { %v3151_v2 = vpop.f32.mrb[48].mxu0 }
 0x15c   : > { %v3263_v3 = vpop.f32.mrb[48].mxu1  ;;  %v3152_v4 = vpop.f32.mrb[49].mxu0 }
 0x15d   : > { %v3153_v10 = vadd.f32 %v3152_v4, %v3151_v2  ;;  %v3264_v12 = vpop.f32.mrb[49].mxu1  ;;  %v3154_v13 = vpop.f32.mrb[50].mxu0 }
 0x15e   : > { %v3265_v14 = vadd.f32 %v3264_v12, %v3263_v3  ;;  %v3266_v15 = vpop.f32.mrb[50].mxu1  ;;  %v3155_v16 = vpop.f32.mrb[51].mxu0 }
 0x15f   : > { %v3156_v17 = vadd.f32 %v3155_v16, %v3154_v13  ;;  %v3267_v18 = vpop.f32.mrb[51].mxu1 }
 0x160   : > { %v4047_v19 = vadd.f32 %v3265_v14, %v3153_v10  ;;  %v3268_v20 = vadd.f32 %v3267_v18, %v3266_v15 }
 0x162   : > { %v4049_v22 = vadd.f32 %v3268_v20, %v3156_v17 }
 0x163   : > { %v3157_v24 = vpop.f32.mrb[52].mxu0 }
 0x164   : > { %v3269_v26 = vpop.f32.mrb[52].mxu1  ;;  %v3158_v28 = vpop.f32.mrb[53].mxu0 }
 0x165   : > { %v3159_v30 = vadd.f32 %v3158_v28, %v3157_v24  ;;  %v3270_v32 = vpop.f32.mrb[53].mxu1  ;;  %v3160_v33 = vpop.f32.mrb[54].mxu0 }
 0x166   : > { %v3271_v34 = vadd.f32 %v3270_v32, %v3269_v26  ;;  %v3272_v35 = vpop.f32.mrb[54].mxu1  ;;  %v3161_v36 = vpop.f32.mrb[55].mxu0 }
 0x167   : > { %v3162_v38 = vadd.f32 %v3161_v36, %v3160_v33  ;;  %v3273_v40 = vpop.f32.mrb[55].mxu1 }
 0x168   : > { %v4051_v41 = vadd.f32 %v3271_v34, %v3159_v30  ;;  %v3274_v42 = vadd.f32 %v3273_v40, %v3272_v35 }
 0x16a   : > { %v4053_v44 = vadd.f32 %v3274_v42, %v3162_v38 }
 0x16b   : > { %v3163_v46 = vpop.f32.mrb[56].mxu0 }
 0x16c   : > { %v3275_v47 = vpop.f32.mrb[56].mxu1  ;;  %v3164_v48 = vpop.f32.mrb[57].mxu0 }
 0x16d   : > { %v3165_v50 = vadd.f32 %v3164_v48, %v3163_v46  ;;  %v3276_v52 = vpop.f32.mrb[57].mxu1  ;;  %v3166_v56 = vpop.f32.mrb[58].mxu0 }
 0x16e   : > { %v3277_v58 = vadd.f32 %v3276_v52, %v3275_v47  ;;  %v3278_v59 = vpop.f32.mrb[58].mxu1  ;;  %v3167_v60 = vpop.f32.mrb[59].mxu0 }
 0x16f   : > { %v3168_v61 = vadd.f32 %v3167_v60, %v3166_v56  ;;  %v3279_v62 = vpop.f32.mrb[59].mxu1  ;;  %v3624_v60 = vmov 0.0  }
 0x170   : > { %v4055_v0 = vadd.f32 %v3277_v58, %v3165_v50  ;;  %v3280_v2 = vadd.f32 %v3279_v62, %v3278_v59  ;;  %2242 = vst [vmem:[%s4071_s5] sm:$0xff] %v3624_v60  ;;  %2243 = vst [vmem:[%s4076_s8] sm:$0xff] %v3624_v60 }
 0x172   : > { %v4057_v3 = vadd.f32 %v3280_v2, %v3168_v61 }
 0x173   : > { %v3169_v4 = vpop.f32.mrb[60].mxu0 }
 0x174   : > { %v3281_v10 = vpop.f32.mrb[60].mxu1  ;;  %v3170_v12 = vpop.f32.mrb[61].mxu0 }
 0x175   : > { %v3171_v13 = vadd.f32 %v3170_v12, %v3169_v4  ;;  %v3282_v14 = vpop.f32.mrb[61].mxu1  ;;  %v3172_v15 = vpop.f32.mrb[62].mxu0 }
 0x176   : > { %v3283_v16 = vadd.f32 %v3282_v14, %v3281_v10  ;;  %v3284_v17 = vpop.f32.mrb[62].mxu1  ;;  %v3173_v18 = vpop.f32.mrb[63].mxu0 }
 0x177   : > { %v3174_v20 = vadd.f32 %v3173_v18, %v3172_v15  ;;  %v3285_v24 = vpop.f32.mrb[63].mxu1 }
 0x178   : > { %v4059_v26 = vadd.f32 %v3283_v16, %v3171_v13  ;;  %v3286_v28 = vadd.f32 %v3285_v24, %v3284_v17 }
 0x17a   : > { %v4061_v30 = vadd.f32 %v3286_v28, %v3174_v20 }
 0x17b   : > { %v3303_v32 = vpop.f32.mrb[64].mxu0 }
 0x17c   : > { %v3415_v33 = vpop.f32.mrb[64].mxu1  ;;  %v3304_v34 = vpop.f32.mrb[65].mxu0 }
 0x17d   : > { %v3305_v35 = vadd.f32 %v3304_v34, %v3303_v32  ;;  %v3416_v36 = vpop.f32.mrb[65].mxu1  ;;  %v3306_v38 = vpop.f32.mrb[66].mxu0 }
 0x17e   : > { %v3417_v40 = vadd.f32 %v3416_v36, %v3415_v33  ;;  %v3418_v42 = vpop.f32.mrb[66].mxu1  ;;  %v3307_v46 = vpop.f32.mrb[67].mxu0 }
 0x17f   : > { %v1955_v47 = vadd.f32 %v3305_v35, %v3987_v49  ;;  %v3308_v48 = vadd.f32 %v3307_v46, %v3306_v38  ;;  %v3419_v50 = vpop.f32.mrb[67].mxu1 }
 0x180   : > { %v3420_v52 = vadd.f32 %v3419_v50, %v3418_v42 }
 0x181   : > { %v2116_v56 = vadd.f32 %v3417_v40, %v1955_v47  ;;  %v1958_v58 = vadd.f32 %v3308_v48, %v3989_v51 }
 0x183   : > { %v2119_v49 = vadd.f32 %v3420_v52, %v1958_v58  ;;  %v3309_v59 = vpop.f32.mrb[68].mxu0  ;;  %v2282_v51 = vmul.f32 %v2116_v56, %v2116_v56 }
 0x184   : > { %v3421_v61 = vpop.f32.mrb[68].mxu1  ;;  %v3310_v62 = vpop.f32.mrb[69].mxu0 }
 0x185   : > { %v2244_v2 = vadd.f32 %v2119_v49, %v2116_v56  ;;  %v2283_v4 = vmul.f32 %v2119_v49, %v2119_v49  ;;  %v2971_v10 = vpack.c.bf16 %v2119_v49, %v2116_v56  ;;  %v3311_v12 = vadd.f32 %v3310_v62, %v3309_v59  ;;  %v3422_v13 = vpop.f32.mrb[69].mxu1  ;;  %v3312_v14 = vpop.f32.mrb[70].mxu0 }
 0x186   : > { %v3423_v15 = vadd.f32 %v3422_v13, %v3421_v61  ;;  %v3424_v16 = vpop.f32.mrb[70].mxu1  ;;  %v3313_v17 = vpop.f32.mrb[71].mxu0 }
 0x187   : > { %v2314_v18 = vadd.f32 %v2283_v4, %v2282_v51  ;;  %2972 = vst [vmem:[%s4083_s9] sm:$0xff] %v2971_v10   ;;  %v1963_v20 = vadd.f32 %v3311_v12, %v3995_v7  ;;  %v3314_v24 = vadd.f32 %v3313_v17, %v3312_v14  ;;  %v3425_v28 = vpop.f32.mrb[71].mxu1 }
 0x188   : > { %v3426_v32 = vadd.f32 %v3425_v28, %v3424_v16 }
 0x189   : > { %v2124_v33 = vadd.f32 %v3423_v15, %v1963_v20  ;;  %v1966_v34 = vadd.f32 %v3314_v24, %v3997_v9 }
 0x18b   : > { %v2245_v35 = vadd.f32 %v2244_v2, %v2124_v33  ;;  %v2284_v36 = vmul.f32 %v2124_v33, %v2124_v33  ;;  %v2127_v38 = vadd.f32 %v3426_v32, %v1966_v34  ;;  %v3315_v40 = vpop.f32.mrb[72].mxu0 }
 0x18c   : > { %v3427_v42 = vpop.f32.mrb[72].mxu1  ;;  %v3316_v46 = vpop.f32.mrb[73].mxu0 }
 0x18d   : > { %v2315_v47 = vadd.f32 %v2314_v18, %v2284_v36  ;;  %v2246_v48 = vadd.f32 %v2245_v35, %v2127_v38  ;;  %v2285_v50 = vmul.f32 %v2127_v38, %v2127_v38  ;;  %v2976_v52 = vpack.c.bf16 %v2127_v38, %v2124_v33  ;;  %v3428_v56 = vpop.f32.mrb[73].mxu1  ;;  %v3318_v58 = vpop.f32.mrb[74].mxu0 }
 0x18e   : > { %v3317_v7 = vadd.f32 %v3316_v46, %v3315_v40  ;;  %v3429_v49 = vadd.f32 %v3428_v56, %v3427_v42  ;;  %v3430_v59 = vpop.f32.mrb[74].mxu1  ;;  %v3319_v60 = vpop.f32.mrb[75].mxu0 }
 0x18f   : > { %v2316_v51 = vadd.f32 %v2315_v47, %v2285_v50  ;;  %3048 = vst [vmem:[%s4083_s9 + $0x8] sm:$0xff] %v2976_v52   ;;  %v3320_v9 = vadd.f32 %v3319_v60, %v3318_v58  ;;  %v3431_v61 = vpop.f32.mrb[75].mxu1 }
 0x190   : > { %v1971_v62 = vadd.f32 %v3317_v7, %v4003_v29  ;;  %v3432_v2 = vadd.f32 %v3431_v61, %v3430_v59 }
 0x191   : > { %v1974_v4 = vadd.f32 %v3320_v9, %v4005_v31 }
 0x192   : > { %v2132_v10 = vadd.f32 %v3429_v49, %v1971_v62 }
 0x193   : > { %v2135_v12 = vadd.f32 %v3432_v2, %v1974_v4  ;;  %v3321_v13 = vpop.f32.mrb[76].mxu0 }
 0x194   : > { %v2247_v14 = vadd.f32 %v2246_v48, %v2132_v10  ;;  %v2286_v15 = vmul.f32 %v2132_v10, %v2132_v10  ;;  %v3433_v16 = vpop.f32.mrb[76].mxu1  ;;  %v3322_v17 = vpop.f32.mrb[77].mxu0 }
 0x195   : > { %v2287_v18 = vmul.f32 %v2135_v12, %v2135_v12  ;;  %v2981_v20 = vpack.c.bf16 %v2135_v12, %v2132_v10  ;;  %v3323_v24 = vadd.f32 %v3322_v17, %v3321_v13  ;;  %v3434_v28 = vpop.f32.mrb[77].mxu1  ;;  %v3324_v32 = vpop.f32.mrb[78].mxu0 }
 0x196   : > { %v2317_v33 = vadd.f32 %v2316_v51, %v2286_v15  ;;  %v2248_v34 = vadd.f32 %v2247_v14, %v2135_v12  ;;  %v3435_v35 = vadd.f32 %v3434_v28, %v3433_v16  ;;  %v3436_v29 = vpop.f32.mrb[78].mxu1  ;;  %v3325_v36 = vpop.f32.mrb[79].mxu0 }
 0x197   : > { %3049 = vst [vmem:[%s4083_s9 + $0x10] sm:$0xff] %v2981_v20   ;;  %v1979_v31 = vadd.f32 %v3323_v24, %v4011_v53  ;;  %v3326_v38 = vadd.f32 %v3325_v36, %v3324_v32  ;;  %v3437_v40 = vpop.f32.mrb[79].mxu1 }
 0x198   : > { %v2318_v42 = vadd.f32 %v2317_v33, %v2287_v18  ;;  %v3438_v46 = vadd.f32 %v3437_v40, %v3436_v29 }
 0x199   : > { %v2140_v47 = vadd.f32 %v3435_v35, %v1979_v31  ;;  %v1982_v48 = vadd.f32 %v3326_v38, %v4013_v55 }
 0x19b   : > { %v2249_v50 = vadd.f32 %v2248_v34, %v2140_v47  ;;  %v2288_v52 = vmul.f32 %v2140_v47, %v2140_v47  ;;  %v2143_v56 = vadd.f32 %v3438_v46, %v1982_v48  ;;  %v3327_v58 = vpop.f32.mrb[80].mxu0 }
 0x19c   : > { %v3439_v7 = vpop.f32.mrb[80].mxu1  ;;  %v3328_v49 = vpop.f32.mrb[81].mxu0 }
 0x19d   : > { %v2319_v59 = vadd.f32 %v2318_v42, %v2288_v52  ;;  %v2250_v60 = vadd.f32 %v2249_v50, %v2143_v56  ;;  %v2289_v51 = vmul.f32 %v2143_v56, %v2143_v56  ;;  %v2986_v9 = vpack.c.bf16 %v2143_v56, %v2140_v47  ;;  %v3440_v61 = vpop.f32.mrb[81].mxu1  ;;  %v3330_v53 = vpop.f32.mrb[82].mxu0 }
 0x19e   : > { %v3329_v62 = vadd.f32 %v3328_v49, %v3327_v58  ;;  %v3441_v2 = vadd.f32 %v3440_v61, %v3439_v7  ;;  %v3442_v4 = vpop.f32.mrb[82].mxu1  ;;  %v3331_v10 = vpop.f32.mrb[83].mxu0 }
 0x19f   : > { %v2320_v12 = vadd.f32 %v2319_v59, %v2289_v51  ;;  %3050 = vst [vmem:[%s4083_s9 + $0x18] sm:$0xff] %v2986_v9   ;;  %v3332_v55 = vadd.f32 %v3331_v10, %v3330_v53  ;;  %v3443_v13 = vpop.f32.mrb[83].mxu1 }
 0x1a0   : > { %v1987_v14 = vadd.f32 %v3329_v62, %v4015_v5  ;;  %v3444_v15 = vadd.f32 %v3443_v13, %v3442_v4 }
 0x1a1   : > { %v1990_v16 = vadd.f32 %v3332_v55, %v4017_v8 }
 0x1a2   : > { %v2148_v17 = vadd.f32 %v3441_v2, %v1987_v14 }
 0x1a3   : > { %v2151_v18 = vadd.f32 %v3444_v15, %v1990_v16  ;;  %v3333_v20 = vpop.f32.mrb[84].mxu0 }
 0x1a4   : > { %v2251_v24 = vadd.f32 %v2250_v60, %v2148_v17  ;;  %v2290_v28 = vmul.f32 %v2148_v17, %v2148_v17  ;;  %v3445_v32 = vpop.f32.mrb[84].mxu1  ;;  %v3334_v33 = vpop.f32.mrb[85].mxu0 }
 0x1a5   : > { %v2291_v34 = vmul.f32 %v2151_v18, %v2151_v18  ;;  %v2991_v35 = vpack.c.bf16 %v2151_v18, %v2148_v17  ;;  %v3335_v29 = vadd.f32 %v3334_v33, %v3333_v20  ;;  %v3446_v36 = vpop.f32.mrb[85].mxu1  ;;  %v3336_v31 = vpop.f32.mrb[86].mxu0 }
 0x1a6   : > { %v2321_v38 = vadd.f32 %v2320_v12, %v2290_v28  ;;  %v2252_v40 = vadd.f32 %v2251_v24, %v2151_v18  ;;  %v3447_v42 = vadd.f32 %v3446_v36, %v3445_v32  ;;  %v3448_v5 = vpop.f32.mrb[86].mxu1  ;;  %v3337_v46 = vpop.f32.mrb[87].mxu0 }
 0x1a7   : > { %3051 = vst [vmem:[%s4083_s9 + $0x20] sm:$0xff] %v2991_v35   ;;  %v1995_v8 = vadd.f32 %v3335_v29, %v4019_v21  ;;  %v3338_v47 = vadd.f32 %v3337_v46, %v3336_v31  ;;  %v3449_v48 = vpop.f32.mrb[87].mxu1 }
 0x1a8   : > { %v2322_v50 = vadd.f32 %v2321_v38, %v2291_v34  ;;  %v3450_v52 = vadd.f32 %v3449_v48, %v3448_v5 }
 0x1a9   : > { %v2156_v56 = vadd.f32 %v3447_v42, %v1995_v8  ;;  %v1998_v58 = vadd.f32 %v3338_v47, %v4021_v23 }
 0x1ab   : > { %v2253_v7 = vadd.f32 %v2252_v40, %v2156_v56  ;;  %v2292_v49 = vmul.f32 %v2156_v56, %v2156_v56  ;;  %v2159_v59 = vadd.f32 %v3450_v52, %v1998_v58  ;;  %v3339_v60 = vpop.f32.mrb[88].mxu0 }
 0x1ac   : > { %v3451_v51 = vpop.f32.mrb[88].mxu1  ;;  %v3340_v9 = vpop.f32.mrb[89].mxu0 }
 0x1ad   : > { %v2323_v61 = vadd.f32 %v2322_v50, %v2292_v49  ;;  %v2254_v53 = vadd.f32 %v2253_v7, %v2159_v59  ;;  %v2293_v62 = vmul.f32 %v2159_v59, %v2159_v59  ;;  %v2996_v2 = vpack.c.bf16 %v2159_v59, %v2156_v56  ;;  %v3452_v4 = vpop.f32.mrb[89].mxu1  ;;  %v3342_v21 = vpop.f32.mrb[90].mxu0 }
 0x1ae   : > { %v3341_v10 = vadd.f32 %v3340_v9, %v3339_v60  ;;  %v3453_v12 = vadd.f32 %v3452_v4, %v3451_v51  ;;  %v3454_v55 = vpop.f32.mrb[90].mxu1  ;;  %v3343_v13 = vpop.f32.mrb[91].mxu0 }
 0x1af   : > { %v2324_v14 = vadd.f32 %v2323_v61, %v2293_v62  ;;  %3052 = vst [vmem:[%s4083_s9 + $0x28] sm:$0xff] %v2996_v2   ;;  %v3344_v23 = vadd.f32 %v3343_v13, %v3342_v21  ;;  %v3455_v15 = vpop.f32.mrb[91].mxu1 }
 0x1b0   : > { %v2003_v16 = vadd.f32 %v3341_v10, %v4023_v37  ;;  %v3456_v17 = vadd.f32 %v3455_v15, %v3454_v55 }
 0x1b1   : > { %v2006_v18 = vadd.f32 %v3344_v23, %v4025_v39 }
 0x1b2   : > { %v2164_v20 = vadd.f32 %v3453_v12, %v2003_v16 }
 0x1b3   : > { %v2167_v24 = vadd.f32 %v3456_v17, %v2006_v18  ;;  %v3345_v28 = vpop.f32.mrb[92].mxu0 }
 0x1b4   : > { %v2255_v32 = vadd.f32 %v2254_v53, %v2164_v20  ;;  %v2294_v33 = vmul.f32 %v2164_v20, %v2164_v20  ;;  %v3457_v34 = vpop.f32.mrb[92].mxu1  ;;  %v3346_v35 = vpop.f32.mrb[93].mxu0 }
 0x1b5   : > { %v2295_v29 = vmul.f32 %v2167_v24, %v2167_v24  ;;  %v3001_v36 = vpack.c.bf16 %v2167_v24, %v2164_v20  ;;  %v3347_v31 = vadd.f32 %v3346_v35, %v3345_v28  ;;  %v3458_v38 = vpop.f32.mrb[93].mxu1  ;;  %v3348_v40 = vpop.f32.mrb[94].mxu0 }
 0x1b6   : > { %v2325_v42 = vadd.f32 %v2324_v14, %v2294_v33  ;;  %v2256_v5 = vadd.f32 %v2255_v32, %v2167_v24  ;;  %v3459_v46 = vadd.f32 %v3458_v38, %v3457_v34  ;;  %v3460_v37 = vpop.f32.mrb[94].mxu1  ;;  %v3349_v8 = vpop.f32.mrb[95].mxu0 }
 0x1b7   : > { %3053 = vst [vmem:[%s4083_s9 + $0x30] sm:$0xff] %v3001_v36   ;;  %v2011_v39 = vadd.f32 %v3347_v31, %v4027_v54  ;;  %v3350_v47 = vadd.f32 %v3349_v8, %v3348_v40  ;;  %v3461_v48 = vpop.f32.mrb[95].mxu1 }
 0x1b8   : > { %v2326_v50 = vadd.f32 %v2325_v42, %v2295_v29  ;;  %v3462_v52 = vadd.f32 %v3461_v48, %v3460_v37 }
 0x1b9   : > { %v2172_v56 = vadd.f32 %v3459_v46, %v2011_v39  ;;  %v2014_v58 = vadd.f32 %v3350_v47, %v4029_v57 }
 0x1bb   : > { %v2257_v7 = vadd.f32 %v2256_v5, %v2172_v56  ;;  %v2296_v49 = vmul.f32 %v2172_v56, %v2172_v56  ;;  %v2175_v59 = vadd.f32 %v3462_v52, %v2014_v58  ;;  %v3351_v60 = vpop.f32.mrb[96].mxu0 }
 0x1bc   : > { %v3463_v51 = vpop.f32.mrb[96].mxu1  ;;  %v3352_v9 = vpop.f32.mrb[97].mxu0 }
 0x1bd   : > { %v2327_v61 = vadd.f32 %v2326_v50, %v2296_v49  ;;  %v2258_v53 = vadd.f32 %v2257_v7, %v2175_v59  ;;  %v2297_v62 = vmul.f32 %v2175_v59, %v2175_v59  ;;  %v3006_v2 = vpack.c.bf16 %v2175_v59, %v2172_v56  ;;  %v3464_v4 = vpop.f32.mrb[97].mxu1  ;;  %v3354_v54 = vpop.f32.mrb[98].mxu0 }
 0x1be   : > { %v3353_v21 = vadd.f32 %v3352_v9, %v3351_v60  ;;  %v3465_v10 = vadd.f32 %v3464_v4, %v3463_v51  ;;  %v3466_v12 = vpop.f32.mrb[98].mxu1  ;;  %v3355_v55 = vpop.f32.mrb[99].mxu0 }
 0x1bf   : > { %v2328_v13 = vadd.f32 %v2327_v61, %v2297_v62  ;;  %3054 = vst [vmem:[%s4083_s9 + $0x38] sm:$0xff] %v3006_v2   ;;  %v3356_v57 = vadd.f32 %v3355_v55, %v3354_v54  ;;  %v3467_v14 = vpop.f32.mrb[99].mxu1 }
 0x1c0   : > { %v2019_v23 = vadd.f32 %v3353_v21, %v4031_v6  ;;  %v3468_v15 = vadd.f32 %v3467_v14, %v3466_v12 }
 0x1c1   : > { %v2022_v16 = vadd.f32 %v3356_v57, %v4033_v11 }
 0x1c2   : > { %v2180_v17 = vadd.f32 %v3465_v10, %v2019_v23 }
 0x1c3   : > { %v2183_v18 = vadd.f32 %v3468_v15, %v2022_v16  ;;  %v3357_v20 = vpop.f32.mrb[100].mxu0 }
 0x1c4   : > { %v2259_v24 = vadd.f32 %v2258_v53, %v2180_v17  ;;  %v2298_v28 = vmul.f32 %v2180_v17, %v2180_v17  ;;  %v3469_v32 = vpop.f32.mrb[100].mxu1  ;;  %v3358_v33 = vpop.f32.mrb[101].mxu0 }
 0x1c5   : > { %v2299_v34 = vmul.f32 %v2183_v18, %v2183_v18  ;;  %v3011_v35 = vpack.c.bf16 %v2183_v18, %v2180_v17  ;;  %v3359_v29 = vadd.f32 %v3358_v33, %v3357_v20  ;;  %v3470_v36 = vpop.f32.mrb[101].mxu1  ;;  %v3360_v31 = vpop.f32.mrb[102].mxu0 }
 0x1c6   : > { %v2329_v38 = vadd.f32 %v2328_v13, %v2298_v28  ;;  %v2260_v40 = vadd.f32 %v2259_v24, %v2183_v18  ;;  %v3471_v42 = vadd.f32 %v3470_v36, %v3469_v32  ;;  %v3472_v6 = vpop.f32.mrb[102].mxu1  ;;  %v3361_v5 = vpop.f32.mrb[103].mxu0 }
 0x1c7   : > { %3055 = vst [vmem:[%s4083_s9 + $0x40] sm:$0xff] %v3011_v35   ;;  %v2027_v11 = vadd.f32 %v3359_v29, %v4035_v25  ;;  %v3362_v46 = vadd.f32 %v3361_v5, %v3360_v31  ;;  %v3473_v37 = vpop.f32.mrb[103].mxu1 }
 0x1c8   : > { %v2330_v8 = vadd.f32 %v2329_v38, %v2299_v34  ;;  %v3474_v39 = vadd.f32 %v3473_v37, %v3472_v6 }
 0x1c9   : > { %v2188_v47 = vadd.f32 %v3471_v42, %v2027_v11  ;;  %v2030_v48 = vadd.f32 %v3362_v46, %v4037_v27 }
 0x1cb   : > { %v2261_v50 = vadd.f32 %v2260_v40, %v2188_v47  ;;  %v2300_v52 = vmul.f32 %v2188_v47, %v2188_v47  ;;  %v2191_v56 = vadd.f32 %v3474_v39, %v2030_v48  ;;  %v3363_v58 = vpop.f32.mrb[104].mxu0 }
 0x1cc   : > { %v3475_v7 = vpop.f32.mrb[104].mxu1  ;;  %v3364_v49 = vpop.f32.mrb[105].mxu0 }
 0x1cd   : > { %v2331_v59 = vadd.f32 %v2330_v8, %v2300_v52  ;;  %v2262_v60 = vadd.f32 %v2261_v50, %v2191_v56  ;;  %v2301_v51 = vmul.f32 %v2191_v56, %v2191_v56  ;;  %v3016_v9 = vpack.c.bf16 %v2191_v56, %v2188_v47  ;;  %v3476_v61 = vpop.f32.mrb[105].mxu1  ;;  %v3366_v25 = vpop.f32.mrb[106].mxu0 }
 0x1ce   : > { %v3365_v53 = vadd.f32 %v3364_v49, %v3363_v58  ;;  %v3477_v62 = vadd.f32 %v3476_v61, %v3475_v7  ;;  %v3478_v2 = vpop.f32.mrb[106].mxu1  ;;  %v3367_v4 = vpop.f32.mrb[107].mxu0 }
 0x1cf   : > { %v2332_v54 = vadd.f32 %v2331_v59, %v2301_v51  ;;  %3056 = vst [vmem:[%s4083_s9 + $0x48] sm:$0xff] %v3016_v9   ;;  %v3368_v27 = vadd.f32 %v3367_v4, %v3366_v25  ;;  %v3479_v21 = vpop.f32.mrb[107].mxu1 }
 0x1d0   : > { %v2035_v10 = vadd.f32 %v3365_v53, %v4039_v43  ;;  %v3480_v12 = vadd.f32 %v3479_v21, %v3478_v2 }
 0x1d1   : > { %v2038_v55 = vadd.f32 %v3368_v27, %v4041_v45 }
 0x1d2   : > { %v2196_v13 = vadd.f32 %v3477_v62, %v2035_v10 }
 0x1d3   : > { %v2199_v57 = vadd.f32 %v3480_v12, %v2038_v55  ;;  %v3369_v14 = vpop.f32.mrb[108].mxu0 }
 0x1d4   : > { %v2263_v23 = vadd.f32 %v2262_v60, %v2196_v13  ;;  %v2302_v15 = vmul.f32 %v2196_v13, %v2196_v13  ;;  %v3481_v16 = vpop.f32.mrb[108].mxu1  ;;  %v3370_v17 = vpop.f32.mrb[109].mxu0 }
 0x1d5   : > { %v2303_v18 = vmul.f32 %v2199_v57, %v2199_v57  ;;  %v3021_v20 = vpack.c.bf16 %v2199_v57, %v2196_v13  ;;  %v3371_v24 = vadd.f32 %v3370_v17, %v3369_v14  ;;  %v3482_v28 = vpop.f32.mrb[109].mxu1  ;;  %v3372_v32 = vpop.f32.mrb[110].mxu0 }
 0x1d6   : > { %v2333_v33 = vadd.f32 %v2332_v54, %v2302_v15  ;;  %v2264_v34 = vadd.f32 %v2263_v23, %v2199_v57  ;;  %v3483_v35 = vadd.f32 %v3482_v28, %v3481_v16  ;;  %v3484_v43 = vpop.f32.mrb[110].mxu1  ;;  %v3373_v29 = vpop.f32.mrb[111].mxu0 }
 0x1d7   : > { %3057 = vst [vmem:[%s4083_s9 + $0x50] sm:$0xff] %v3021_v20   ;;  %v2043_v45 = vadd.f32 %v3371_v24, %v4043_v63  ;;  %v3374_v36 = vadd.f32 %v3373_v29, %v3372_v32  ;;  %v3485_v31 = vpop.f32.mrb[111].mxu1 }
 0x1d8   : > { %v2334_v38 = vadd.f32 %v2333_v33, %v2303_v18  ;;  %v3486_v40 = vadd.f32 %v3485_v31, %v3484_v43 }
 0x1d9   : > { %v2204_v42 = vadd.f32 %v3483_v35, %v2043_v45  ;;  %v2046_v6 = vadd.f32 %v3374_v36, %v4045_v1 }
 0x1db   : > { %v2265_v5 = vadd.f32 %v2264_v34, %v2204_v42  ;;  %v2304_v11 = vmul.f32 %v2204_v42, %v2204_v42  ;;  %v2207_v46 = vadd.f32 %v3486_v40, %v2046_v6  ;;  %v3375_v37 = vpop.f32.mrb[112].mxu0 }
 0x1dc   : > { %v3487_v8 = vpop.f32.mrb[112].mxu1  ;;  %v3376_v39 = vpop.f32.mrb[113].mxu0 }
 0x1dd   : > { %v2335_v47 = vadd.f32 %v2334_v38, %v2304_v11  ;;  %v2266_v48 = vadd.f32 %v2265_v5, %v2207_v46  ;;  %v2305_v50 = vmul.f32 %v2207_v46, %v2207_v46  ;;  %v3026_v52 = vpack.c.bf16 %v2207_v46, %v2204_v42  ;;  %v3488_v56 = vpop.f32.mrb[113].mxu1  ;;  %v3378_v63 = vpop.f32.mrb[114].mxu0 }
 0x1de   : > { %v3377_v58 = vadd.f32 %v3376_v39, %v3375_v37  ;;  %v3489_v7 = vadd.f32 %v3488_v56, %v3487_v8  ;;  %v3490_v49 = vpop.f32.mrb[114].mxu1  ;;  %v3379_v59 = vpop.f32.mrb[115].mxu0 }
 0x1df   : > { %v2336_v60 = vadd.f32 %v2335_v47, %v2305_v50  ;;  %3058 = vst [vmem:[%s4083_s9 + $0x58] sm:$0xff] %v3026_v52   ;;  %v3380_v1 = vadd.f32 %v3379_v59, %v3378_v63  ;;  %v3491_v51 = vpop.f32.mrb[115].mxu1 }
 0x1e0   : > { %v2051_v9 = vadd.f32 %v3377_v58, %v4047_v19  ;;  %v3492_v61 = vadd.f32 %v3491_v51, %v3490_v49 }
 0x1e1   : > { %v2054_v25 = vadd.f32 %v3380_v1, %v4049_v22 }
 0x1e2   : > { %v2212_v53 = vadd.f32 %v3489_v7, %v2051_v9 }
 0x1e3   : > { %v2215_v62 = vadd.f32 %v3492_v61, %v2054_v25  ;;  %v3381_v2 = vpop.f32.mrb[116].mxu0 }
 0x1e4   : > { %v2267_v4 = vadd.f32 %v2266_v48, %v2212_v53  ;;  %v2306_v54 = vmul.f32 %v2212_v53, %v2212_v53  ;;  %v3493_v27 = vpop.f32.mrb[116].mxu1  ;;  %v3382_v21 = vpop.f32.mrb[117].mxu0 }
 0x1e5   : > { %v2307_v10 = vmul.f32 %v2215_v62, %v2215_v62  ;;  %v3031_v12 = vpack.c.bf16 %v2215_v62, %v2212_v53  ;;  %v3383_v55 = vadd.f32 %v3382_v21, %v3381_v2  ;;  %v3494_v13 = vpop.f32.mrb[117].mxu1  ;;  %v3384_v57 = vpop.f32.mrb[118].mxu0 }
 0x1e6   : > { %v2337_v14 = vadd.f32 %v2336_v60, %v2306_v54  ;;  %v2268_v23 = vadd.f32 %v2267_v4, %v2215_v62  ;;  %v3495_v15 = vadd.f32 %v3494_v13, %v3493_v27  ;;  %v3496_v19 = vpop.f32.mrb[118].mxu1  ;;  %v3385_v16 = vpop.f32.mrb[119].mxu0 }
 0x1e7   : > { %3059 = vst [vmem:[%s4083_s9 + $0x60] sm:$0xff] %v3031_v12   ;;  %v2059_v22 = vadd.f32 %v3383_v55, %v4051_v41  ;;  %v3386_v17 = vadd.f32 %v3385_v16, %v3384_v57  ;;  %v3497_v18 = vpop.f32.mrb[119].mxu1 }
 0x1e8   : > { %v2338_v20 = vadd.f32 %v2337_v14, %v2307_v10  ;;  %v3498_v24 = vadd.f32 %v3497_v18, %v3496_v19 }
 0x1e9   : > { %v2220_v28 = vadd.f32 %v3495_v15, %v2059_v22  ;;  %v2062_v32 = vadd.f32 %v3386_v17, %v4053_v44 }
 0x1eb   : > { %v2269_v33 = vadd.f32 %v2268_v23, %v2220_v28  ;;  %v2308_v34 = vmul.f32 %v2220_v28, %v2220_v28  ;;  %v2223_v35 = vadd.f32 %v3498_v24, %v2062_v32  ;;  %v3387_v43 = vpop.f32.mrb[120].mxu0 }
 0x1ec   : > { %v3499_v29 = vpop.f32.mrb[120].mxu1  ;;  %v3388_v45 = vpop.f32.mrb[121].mxu0 }
 0x1ed   : > { %v2339_v36 = vadd.f32 %v2338_v20, %v2308_v34  ;;  %v2270_v31 = vadd.f32 %v2269_v33, %v2223_v35  ;;  %v2309_v38 = vmul.f32 %v2223_v35, %v2223_v35  ;;  %v3036_v40 = vpack.c.bf16 %v2223_v35, %v2220_v28  ;;  %v3500_v42 = vpop.f32.mrb[121].mxu1  ;;  %v3390_v41 = vpop.f32.mrb[122].mxu0 }
 0x1ee   : > { %v3389_v6 = vadd.f32 %v3388_v45, %v3387_v43  ;;  %v3501_v5 = vadd.f32 %v3500_v42, %v3499_v29  ;;  %v3502_v11 = vpop.f32.mrb[122].mxu1  ;;  %v3391_v46 = vpop.f32.mrb[123].mxu0 }
 0x1ef   : > { %v2340_v37 = vadd.f32 %v2339_v36, %v2309_v38  ;;  %3060 = vst [vmem:[%s4083_s9 + $0x68] sm:$0xff] %v3036_v40   ;;  %v3392_v44 = vadd.f32 %v3391_v46, %v3390_v41  ;;  %v3503_v8 = vpop.f32.mrb[123].mxu1 }
 0x1f0   : > { %v2067_v39 = vadd.f32 %v3389_v6, %v4055_v0  ;;  %v3504_v47 = vadd.f32 %v3503_v8, %v3502_v11 }
 0x1f1   : > { %v2070_v48 = vadd.f32 %v3392_v44, %v4057_v3 }
 0x1f2   : > { %v2228_v50 = vadd.f32 %v3501_v5, %v2067_v39 }
 0x1f3   : > { %v2231_v52 = vadd.f32 %v3504_v47, %v2070_v48  ;;  %v3393_v56 = vpop.f32.mrb[124].mxu0 }
 0x1f4   : > { %v2271_v63 = vadd.f32 %v2270_v31, %v2228_v50  ;;  %v2310_v58 = vmul.f32 %v2228_v50, %v2228_v50  ;;  %v3505_v7 = vpop.f32.mrb[124].mxu1  ;;  %v3394_v49 = vpop.f32.mrb[125].mxu0 }
 0x1f5   : > { %v2311_v59 = vmul.f32 %v2231_v52, %v2231_v52  ;;  %v3041_v60 = vpack.c.bf16 %v2231_v52, %v2228_v50  ;;  %v3395_v1 = vadd.f32 %v3394_v49, %v3393_v56  ;;  %v3506_v51 = vpop.f32.mrb[125].mxu1  ;;  %v3396_v9 = vpop.f32.mrb[126].mxu0 }
 0x1f6   : > { %v2341_v61 = vadd.f32 %v2340_v37, %v2310_v58  ;;  %v2272_v25 = vadd.f32 %v2271_v63, %v2231_v52  ;;  %v3507_v53 = vadd.f32 %v3506_v51, %v3505_v7  ;;  %v3508_v0 = vpop.f32.mrb[126].mxu1  ;;  %v3397_v62 = vpop.f32.mrb[127].mxu0 }
 0x1f7   : > { %3061 = vst [vmem:[%s4083_s9 + $0x70] sm:$0xff] %v3041_v60   ;;  %v2075_v3 = vadd.f32 %v3395_v1, %v4059_v26  ;;  %v3398_v2 = vadd.f32 %v3397_v62, %v3396_v9  ;;  %v3509_v4 = vpop.f32.mrb[127].mxu1 }
 0x1f8   : > { %v2342_v54 = vadd.f32 %v2341_v61, %v2311_v59  ;;  %v3510_v27 = vadd.f32 %v3509_v4, %v3508_v0 }
 0x1f9   : > { %v2236_v21 = vadd.f32 %v3507_v53, %v2075_v3  ;;  %v2078_v10 = vadd.f32 %v3398_v2, %v4061_v30 }
 0x1fb   : > { %v2273_v12 = vadd.f32 %v2272_v25, %v2236_v21  ;;  %v2312_v55 = vmul.f32 %v2236_v21, %v2236_v21  ;;  %v2239_v13 = vadd.f32 %v3510_v27, %v2078_v10 }
 0x1fd   : > { %v2343_v57 = vadd.f32 %v2342_v54, %v2312_v55  ;;  %v2274_v14 = vadd.f32 %v2273_v12, %v2239_v13  ;;  %v2313_v23 = vmul.f32 %v2239_v13, %v2239_v13  ;;  %v3046_v15 = vpack.c.bf16 %v2239_v13, %v2236_v21 }
 0x1ff   : > { %v2275_v19 = vrot.slane %v2274_v14, 4  ;;  %v2344_v16 = vadd.f32 %v2343_v57, %v2313_v23  ;;  %3062 = vst [vmem:[%s4083_s9 + $0x78] sm:$0xff] %v3046_v15  }
 0x201   : > { %v2276_v26 = vadd.f32 %v2275_v19, %v2274_v14  ;;  %v2345_v22 = vrot.slane %v2344_v16, 4 }
 0x203   : > { %v2277_v17 = vrot.slane %v2276_v26, 2  ;;  %v2346_v18 = vadd.f32 %v2345_v22, %v2344_v16 }
 0x205   : > { %v2278_v20 = vadd.f32 %v2277_v17, %v2276_v26  ;;  %v2347_v24 = vrot.slane %v2346_v18, 2 }
 0x207   : > { %v2279_v28 = vrot.slane %v2278_v20, 1  ;;  %v2348_v30 = vadd.f32 %v2347_v24, %v2346_v18 }
 0x209   : > { %v2280_v32 = vadd.f32 %v2279_v28, %v2278_v20  ;;  %v2349_v33 = vrot.slane %v2348_v30, 1 }
 0x20b   : > { %2281 = vst [vmem:[%s4071_s5] sm:$0x1] %v2280_v32  ;;  %v2350_v34 = vadd.f32 %v2349_v33, %v2348_v30 }
 0x20d   : > { %2351 = vst [vmem:[%s4076_s8] sm:$0x1] %v2350_v34 }
 0x20e PF: > { %s15_s17 = sadd.s32 1, %s3622_s17   ;;  %s4147_s15 = smov %s3618_s16 }
 0x20f   : > { %p12_p6 = scmp.ge.s32.totalorder %s15_s17, 4   ;;  %s4148_s16 = smov %s4150_s18 }
 0x211   :  { %14 = sbr.rel (!%p12_p6) target bundleno = 2 (0x2), region = 85 }

// kernel: disc_model_forward.7
= control target key start
LH: loop header
LB: loop body
LE: loop exit
PB: predicated region body
PF: predicated region fallthrough
CT: control target
= control target key end

     0   :  { %s5470_s15 = smov 0   ;;  %s5472_s16 = smov 0   ;;  %s6778_s0 = inlined_call_operand.vmem [shape: bf16[128,2048], index: 0, kind: input, shape index: {}]   ;;  %s6779_s1 = inlined_call_operand.vmem [shape: bf16[2048,256], index: 1, kind: input, shape index: {}]   ;;  %s6780_s2 = inlined_call_operand.vmem [shape: bf16[128,256], index: 2, kind: output, shape index: {0}]   ;;  %s6781_s3 = inlined_call_operand.vmem [shape: f32[8,256], index: 3, kind: output, shape index: {1}]   ;;  %s6782_s4 = inlined_call_operand.vmem [shape: f32[8,256], index: 4, kind: output, shape index: {2}]  }
   0x1   :  { %s5474_s17 = smov 0   ;;  %s5476_s18 = smov 0  }
   0x2   :  { %s5478_s19 = smov 0  }
   0x3 LB: > { %s30_s20 = sadd.s32 1, %s5438_s18  ;;  %s4372_s21 = sadd.s32 4294967295, %s5442_s19   ;;  %s5442_s19 = sphi %s5478_s19, %s15_s19   ;;  %s5438_s18 = sphi %s5476_s18, %s6787_s18   ;;  %s5434_s17 = sphi %s5474_s17, %s6786_s17   ;;  %s5430_s16 = sphi %s5472_s16, %s6785_s16   ;;  %s5426_s15 = sphi %s5470_s15, %s6784_s15  }
   0x4   : > { %p32_p0 = scmp.ge.s32.totalorder %s30_s20, 2  ;;  %p78_p1 = scmp.ne.s32.totalorder %s5430_s16, %s5426_s15 }
   0x5   : > { %p79_p2 = scmp.eq.s32.totalorder %s5442_s19, 0  ;;  %p110_p4 = scmp.eq.s32.totalorder %s4372_s21, 1 }
   0x6   : > { %s6789_s20 = smov (%p32_p0, %s30_s20), 0  ;;  %s71_s23 = sadd.s32 1, %s5430_s16 }
   0x7   : > { %p80_p3 = por %p79_p2, %p78_p1  ;;  %s67_s22 = ssub.s32 %s5438_s18, %s6789_s20 }
   0x8   : > { %p69_p5 = scmp.eq.s32.totalorder %s67_s22, 0  ;;  %p5505_p6 = por %p110_p4, %p78_p1 }
   0x9   : > { %p4376_p7 = scmp.ge.s32.totalorder %s5442_s19, 2 }
   0xa   : > { %s5510_s25 = scalar_select %p69_p5, %s5430_s16, %s71_s23  }
   0xb   : > { %203 = sbr.rel (%p4376_p7) target bundleno = 192 (0xc0), region = 20 }
  0x12   : > { %206 = sbr.rel (!%p80_p3) target bundleno = 192 (0xc0), region = 24  ;;  %s208_s26 = sand.u32 (%p80_p3), 1, %s5430_s16  }
  0x13   : > { %s4378_s27 = sshll.u32 (%p80_p3), %s5438_s18, 2  ;;  %s4377_s28 = sshll.u32 (%p80_p3), %s208_s26, 10 }
  0x14   : > { %s5518_s5 = scalar_lea.vmem (%p80_p3), %s6779_s1, %s4378_s27  ;;  %s5522_s6 = scalar_lea.vmem (%p80_p3), [#allocation2], %s4377_s28 }
  0x15   : > { %v231_v0 = vld [vmem:[%s5518_s5] sm:$0xf] (%p80_p3)  ;;  %v233_v1 = vld [vmem:[%s5518_s5 + $0x8] sm:$0xf] (%p80_p3)  ;;  %v235_v2 = vld [vmem:[%s5518_s5 + $0x10] sm:$0xf] (%p80_p3) }
  0x16   : > { %232 = vst [vmem:[%s5522_s6] sm:$0xf] (%p80_p3), %v231_v0  ;;  %234 = vst [vmem:[%s5522_s6 + $0x4] sm:$0xf] (%p80_p3), %v233_v1  ;;  %v237_v3 = vld [vmem:[%s5518_s5 + $0x18] sm:$0xf] (%p80_p3) }
  0x17   : > { %v239_v4 = vld [vmem:[%s5518_s5 + $0x20] sm:$0xf] (%p80_p3)  ;;  %236 = vst [vmem:[%s5522_s6 + $0x8] sm:$0xf] (%p80_p3), %v235_v2  ;;  %238 = vst [vmem:[%s5522_s6 + $0xc] sm:$0xf] (%p80_p3), %v237_v3 }
  0x18   : > { %240 = vst [vmem:[%s5522_s6 + $0x10] sm:$0xf] (%p80_p3), %v239_v4  ;;  %v241_v5 = vld [vmem:[%s5518_s5 + $0x28] sm:$0xf] (%p80_p3)  ;;  %v243_v6 = vld [vmem:[%s5518_s5 + $0x30] sm:$0xf] (%p80_p3) }
  0x19   : > { %v245_v7 = vld [vmem:[%s5518_s5 + $0x38] sm:$0xf]  ;;  %242 = vst [vmem:[%s5522_s6 + $0x14] sm:$0xf] %v241_v5  ;;  %244 = vst [vmem:[%s5522_s6 + $0x18] sm:$0xf] %v243_v6 }
  0x1a   : > { %246 = vst [vmem:[%s5522_s6 + $0x1c] sm:$0xf] %v245_v7  ;;  %v247_v8 = vld [vmem:[%s5518_s5 + $0x40] sm:$0xf]  ;;  %v249_v9 = vld [vmem:[%s5518_s5 + $0x48] sm:$0xf] }
  0x1b   : > { %v251_v10 = vld [vmem:[%s5518_s5 + $0x50] sm:$0xf]  ;;  %248 = vst [vmem:[%s5522_s6 + $0x20] sm:$0xf] %v247_v8  ;;  %250 = vst [vmem:[%s5522_s6 + $0x24] sm:$0xf] %v249_v9 }
  0x1c   : > { %252 = vst [vmem:[%s5522_s6 + $0x28] sm:$0xf] %v251_v10  ;;  %v253_v11 = vld [vmem:[%s5518_s5 + $0x58] sm:$0xf]  ;;  %v255_v12 = vld [vmem:[%s5518_s5 + $0x60] sm:$0xf] }
  0x1d   : > { %v257_v13 = vld [vmem:[%s5518_s5 + $0x68] sm:$0xf]  ;;  %254 = vst [vmem:[%s5522_s6 + $0x2c] sm:$0xf] %v253_v11  ;;  %256 = vst [vmem:[%s5522_s6 + $0x30] sm:$0xf] %v255_v12 }
  0x1e   : > { %258 = vst [vmem:[%s5522_s6 + $0x34] sm:$0xf] %v257_v13  ;;  %v259_v14 = vld [vmem:[%s5518_s5 + $0x70] sm:$0xf]  ;;  %v261_v15 = vld [vmem:[%s5518_s5 + $0x78] sm:$0xf] }
  0x1f   : > { %v263_v16 = vld [vmem:[%s5518_s5 + $0x80] sm:$0xf]  ;;  %260 = vst [vmem:[%s5522_s6 + $0x38] sm:$0xf] %v259_v14  ;;  %262 = vst [vmem:[%s5522_s6 + $0x3c] sm:$0xf] %v261_v15 }
  0x20   : > { %264 = vst [vmem:[%s5522_s6 + $0x40] sm:$0xf] %v263_v16  ;;  %v265_v17 = vld [vmem:[%s5518_s5 + $0x88] sm:$0xf]  ;;  %v267_v18 = vld [vmem:[%s5518_s5 + $0x90] sm:$0xf] }
  0x21   : > { %v269_v19 = vld [vmem:[%s5518_s5 + $0x98] sm:$0xf]  ;;  %266 = vst [vmem:[%s5522_s6 + $0x44] sm:$0xf] %v265_v17  ;;  %268 = vst [vmem:[%s5522_s6 + $0x48] sm:$0xf] %v267_v18 }
  0x22   : > { %270 = vst [vmem:[%s5522_s6 + $0x4c] sm:$0xf] %v269_v19  ;;  %v271_v20 = vld [vmem:[%s5518_s5 + $0xa0] sm:$0xf]  ;;  %v273_v21 = vld [vmem:[%s5518_s5 + $0xa8] sm:$0xf] }
  0x23   : > { %v275_v22 = vld [vmem:[%s5518_s5 + $0xb0] sm:$0xf]  ;;  %272 = vst [vmem:[%s5522_s6 + $0x50] sm:$0xf] %v271_v20  ;;  %274 = vst [vmem:[%s5522_s6 + $0x54] sm:$0xf] %v273_v21 }
  0x24   : > { %276 = vst [vmem:[%s5522_s6 + $0x58] sm:$0xf] %v275_v22  ;;  %v277_v23 = vld [vmem:[%s5518_s5 + $0xb8] sm:$0xf]  ;;  %v279_v24 = vld [vmem:[%s5518_s5 + $0xc0] sm:$0xf] }
  0x25   : > { %v281_v25 = vld [vmem:[%s5518_s5 + $0xc8] sm:$0xf]  ;;  %278 = vst [vmem:[%s5522_s6 + $0x5c] sm:$0xf] %v277_v23  ;;  %280 = vst [vmem:[%s5522_s6 + $0x60] sm:$0xf] %v279_v24 }
  0x26   : > { %282 = vst [vmem:[%s5522_s6 + $0x64] sm:$0xf] %v281_v25  ;;  %v283_v26 = vld [vmem:[%s5518_s5 + $0xd0] sm:$0xf]  ;;  %v285_v27 = vld [vmem:[%s5518_s5 + $0xd8] sm:$0xf] }
  0x27   : > { %v287_v28 = vld [vmem:[%s5518_s5 + $0xe0] sm:$0xf]  ;;  %284 = vst [vmem:[%s5522_s6 + $0x68] sm:$0xf] %v283_v26  ;;  %286 = vst [vmem:[%s5522_s6 + $0x6c] sm:$0xf] %v285_v27 }
  0x28   : > { %288 = vst [vmem:[%s5522_s6 + $0x70] sm:$0xf] %v287_v28  ;;  %v289_v29 = vld [vmem:[%s5518_s5 + $0xe8] sm:$0xf]  ;;  %v291_v30 = vld [vmem:[%s5518_s5 + $0xf0] sm:$0xf] }
  0x29   : > { %v293_v31 = vld [vmem:[%s5518_s5 + $0xf8] sm:$0xf]  ;;  %290 = vst [vmem:[%s5522_s6 + $0x74] sm:$0xf] %v289_v29  ;;  %292 = vst [vmem:[%s5522_s6 + $0x78] sm:$0xf] %v291_v30 }
  0x2a   : > { %294 = vst [vmem:[%s5522_s6 + $0x7c] sm:$0xf] %v293_v31  ;;  %v295_v32 = vld [vmem:[%s5518_s5 + $0x100] sm:$0xf]  ;;  %v297_v33 = vld [vmem:[%s5518_s5 + $0x108] sm:$0xf] }
  0x2b   : > { %v299_v34 = vld [vmem:[%s5518_s5 + $0x110] sm:$0xf]  ;;  %296 = vst [vmem:[%s5522_s6 + $0x80] sm:$0xf] %v295_v32  ;;  %298 = vst [vmem:[%s5522_s6 + $0x84] sm:$0xf] %v297_v33 }
  0x2c   : > { %300 = vst [vmem:[%s5522_s6 + $0x88] sm:$0xf] %v299_v34  ;;  %v301_v35 = vld [vmem:[%s5518_s5 + $0x118] sm:$0xf]  ;;  %v303_v36 = vld [vmem:[%s5518_s5 + $0x120] sm:$0xf] }
  0x2d   : > { %v305_v37 = vld [vmem:[%s5518_s5 + $0x128] sm:$0xf]  ;;  %302 = vst [vmem:[%s5522_s6 + $0x8c] sm:$0xf] %v301_v35  ;;  %304 = vst [vmem:[%s5522_s6 + $0x90] sm:$0xf] %v303_v36 }
  0x2e   : > { %306 = vst [vmem:[%s5522_s6 + $0x94] sm:$0xf] %v305_v37  ;;  %v307_v38 = vld [vmem:[%s5518_s5 + $0x130] sm:$0xf]  ;;  %v309_v39 = vld [vmem:[%s5518_s5 + $0x138] sm:$0xf] }
  0x2f   : > { %v311_v40 = vld [vmem:[%s5518_s5 + $0x140] sm:$0xf]  ;;  %308 = vst [vmem:[%s5522_s6 + $0x98] sm:$0xf] %v307_v38  ;;  %310 = vst [vmem:[%s5522_s6 + $0x9c] sm:$0xf] %v309_v39 }
  0x30   : > { %312 = vst [vmem:[%s5522_s6 + $0xa0] sm:$0xf] %v311_v40  ;;  %v313_v41 = vld [vmem:[%s5518_s5 + $0x148] sm:$0xf]  ;;  %v315_v42 = vld [vmem:[%s5518_s5 + $0x150] sm:$0xf] }
  0x31   : > { %v317_v43 = vld [vmem:[%s5518_s5 + $0x158] sm:$0xf]  ;;  %314 = vst [vmem:[%s5522_s6 + $0xa4] sm:$0xf] %v313_v41  ;;  %316 = vst [vmem:[%s5522_s6 + $0xa8] sm:$0xf] %v315_v42 }
  0x32   : > { %318 = vst [vmem:[%s5522_s6 + $0xac] sm:$0xf] %v317_v43  ;;  %v319_v44 = vld [vmem:[%s5518_s5 + $0x160] sm:$0xf]  ;;  %v321_v45 = vld [vmem:[%s5518_s5 + $0x168] sm:$0xf] }
  0x33   : > { %v323_v46 = vld [vmem:[%s5518_s5 + $0x170] sm:$0xf]  ;;  %320 = vst [vmem:[%s5522_s6 + $0xb0] sm:$0xf] %v319_v44  ;;  %322 = vst [vmem:[%s5522_s6 + $0xb4] sm:$0xf] %v321_v45 }
  0x34   : > { %324 = vst [vmem:[%s5522_s6 + $0xb8] sm:$0xf] %v323_v46  ;;  %v325_v47 = vld [vmem:[%s5518_s5 + $0x178] sm:$0xf]  ;;  %v327_v48 = vld [vmem:[%s5518_s5 + $0x180] sm:$0xf] }
  0x35   : > { %v329_v49 = vld [vmem:[%s5518_s5 + $0x188] sm:$0xf]  ;;  %326 = vst [vmem:[%s5522_s6 + $0xbc] sm:$0xf] %v325_v47  ;;  %328 = vst [vmem:[%s5522_s6 + $0xc0] sm:$0xf] %v327_v48 }
  0x36   : > { %330 = vst [vmem:[%s5522_s6 + $0xc4] sm:$0xf] %v329_v49  ;;  %v331_v50 = vld [vmem:[%s5518_s5 + $0x190] sm:$0xf]  ;;  %v333_v51 = vld [vmem:[%s5518_s5 + $0x198] sm:$0xf] }
  0x37   : > { %v335_v52 = vld [vmem:[%s5518_s5 + $0x1a0] sm:$0xf]  ;;  %332 = vst [vmem:[%s5522_s6 + $0xc8] sm:$0xf] %v331_v50  ;;  %334 = vst [vmem:[%s5522_s6 + $0xcc] sm:$0xf] %v333_v51 }
  0x38   : > { %336 = vst [vmem:[%s5522_s6 + $0xd0] sm:$0xf] %v335_v52  ;;  %v337_v53 = vld [vmem:[%s5518_s5 + $0x1a8] sm:$0xf]  ;;  %v339_v54 = vld [vmem:[%s5518_s5 + $0x1b0] sm:$0xf] }
  0x39   : > { %v341_v55 = vld [vmem:[%s5518_s5 + $0x1b8] sm:$0xf]  ;;  %338 = vst [vmem:[%s5522_s6 + $0xd4] sm:$0xf] %v337_v53  ;;  %340 = vst [vmem:[%s5522_s6 + $0xd8] sm:$0xf] %v339_v54 }
  0x3a   : > { %342 = vst [vmem:[%s5522_s6 + $0xdc] sm:$0xf] %v341_v55  ;;  %v343_v56 = vld [vmem:[%s5518_s5 + $0x1c0] sm:$0xf]  ;;  %v345_v57 = vld [vmem:[%s5518_s5 + $0x1c8] sm:$0xf] }
  0x3b   : > { %v347_v58 = vld [vmem:[%s5518_s5 + $0x1d0] sm:$0xf]  ;;  %344 = vst [vmem:[%s5522_s6 + $0xe0] sm:$0xf] %v343_v56  ;;  %346 = vst [vmem:[%s5522_s6 + $0xe4] sm:$0xf] %v345_v57 }
  0x3c   : > { %348 = vst [vmem:[%s5522_s6 + $0xe8] sm:$0xf] %v347_v58  ;;  %v349_v59 = vld [vmem:[%s5518_s5 + $0x1d8] sm:$0xf]  ;;  %v351_v60 = vld [vmem:[%s5518_s5 + $0x1e0] sm:$0xf] }
  0x3d   : > { %v353_v61 = vld [vmem:[%s5518_s5 + $0x1e8] sm:$0xf]  ;;  %350 = vst [vmem:[%s5522_s6 + $0xec] sm:$0xf] %v349_v59  ;;  %352 = vst [vmem:[%s5522_s6 + $0xf0] sm:$0xf] %v351_v60 }
  0x3e   : > { %354 = vst [vmem:[%s5522_s6 + $0xf4] sm:$0xf] %v353_v61  ;;  %v355_v62 = vld [vmem:[%s5518_s5 + $0x1f0] sm:$0xf]  ;;  %v357_v63 = vld [vmem:[%s5518_s5 + $0x1f8] sm:$0xf] }
  0x3f   : > { %v359_v0 = vld [vmem:[%s5518_s5 + $0x200] sm:$0xf]  ;;  %356 = vst [vmem:[%s5522_s6 + $0xf8] sm:$0xf] %v355_v62  ;;  %358 = vst [vmem:[%s5522_s6 + $0xfc] sm:$0xf] %v357_v63 }
  0x40   : > { %360 = vst [vmem:[%s5522_s6 + $0x100] sm:$0xf] %v359_v0  ;;  %v361_v1 = vld [vmem:[%s5518_s5 + $0x208] sm:$0xf]  ;;  %v363_v2 = vld [vmem:[%s5518_s5 + $0x210] sm:$0xf] }
  0x41   : > { %v365_v3 = vld [vmem:[%s5518_s5 + $0x218] sm:$0xf]  ;;  %362 = vst [vmem:[%s5522_s6 + $0x104] sm:$0xf] %v361_v1  ;;  %364 = vst [vmem:[%s5522_s6 + $0x108] sm:$0xf] %v363_v2 }
  0x42   : > { %366 = vst [vmem:[%s5522_s6 + $0x10c] sm:$0xf] %v365_v3  ;;  %v367_v4 = vld [vmem:[%s5518_s5 + $0x220] sm:$0xf]  ;;  %v369_v5 = vld [vmem:[%s5518_s5 + $0x228] sm:$0xf] }
  0x43   : > { %v371_v6 = vld [vmem:[%s5518_s5 + $0x230] sm:$0xf]  ;;  %368 = vst [vmem:[%s5522_s6 + $0x110] sm:$0xf] %v367_v4  ;;  %370 = vst [vmem:[%s5522_s6 + $0x114] sm:$0xf] %v369_v5 }
  0x44   : > { %372 = vst [vmem:[%s5522_s6 + $0x118] sm:$0xf] %v371_v6  ;;  %v373_v7 = vld [vmem:[%s5518_s5 + $0x238] sm:$0xf]  ;;  %v375_v8 = vld [vmem:[%s5518_s5 + $0x240] sm:$0xf] }
  0x45   : > { %v377_v9 = vld [vmem:[%s5518_s5 + $0x248] sm:$0xf]  ;;  %374 = vst [vmem:[%s5522_s6 + $0x11c] sm:$0xf] %v373_v7  ;;  %376 = vst [vmem:[%s5522_s6 + $0x120] sm:$0xf] %v375_v8 }
  0x46   : > { %378 = vst [vmem:[%s5522_s6 + $0x124] sm:$0xf] %v377_v9  ;;  %v379_v10 = vld [vmem:[%s5518_s5 + $0x250] sm:$0xf]  ;;  %v381_v11 = vld [vmem:[%s5518_s5 + $0x258] sm:$0xf] }
  0x47   : > { %v383_v12 = vld [vmem:[%s5518_s5 + $0x260] sm:$0xf]  ;;  %380 = vst [vmem:[%s5522_s6 + $0x128] sm:$0xf] %v379_v10  ;;  %382 = vst [vmem:[%s5522_s6 + $0x12c] sm:$0xf] %v381_v11 }
  0x48   : > { %384 = vst [vmem:[%s5522_s6 + $0x130] sm:$0xf] %v383_v12  ;;  %v385_v13 = vld [vmem:[%s5518_s5 + $0x268] sm:$0xf]  ;;  %v387_v14 = vld [vmem:[%s5518_s5 + $0x270] sm:$0xf] }
  0x49   : > { %v389_v15 = vld [vmem:[%s5518_s5 + $0x278] sm:$0xf]  ;;  %386 = vst [vmem:[%s5522_s6 + $0x134] sm:$0xf] %v385_v13  ;;  %388 = vst [vmem:[%s5522_s6 + $0x138] sm:$0xf] %v387_v14 }
  0x4a   : > { %390 = vst [vmem:[%s5522_s6 + $0x13c] sm:$0xf] %v389_v15  ;;  %v391_v16 = vld [vmem:[%s5518_s5 + $0x280] sm:$0xf]  ;;  %v393_v17 = vld [vmem:[%s5518_s5 + $0x288] sm:$0xf] }
  0x4b   : > { %v395_v18 = vld [vmem:[%s5518_s5 + $0x290] sm:$0xf]  ;;  %392 = vst [vmem:[%s5522_s6 + $0x140] sm:$0xf] %v391_v16  ;;  %394 = vst [vmem:[%s5522_s6 + $0x144] sm:$0xf] %v393_v17 }
  0x4c   : > { %396 = vst [vmem:[%s5522_s6 + $0x148] sm:$0xf] %v395_v18  ;;  %v397_v19 = vld [vmem:[%s5518_s5 + $0x298] sm:$0xf]  ;;  %v399_v20 = vld [vmem:[%s5518_s5 + $0x2a0] sm:$0xf] }
  0x4d   : > { %v401_v21 = vld [vmem:[%s5518_s5 + $0x2a8] sm:$0xf]  ;;  %398 = vst [vmem:[%s5522_s6 + $0x14c] sm:$0xf] %v397_v19  ;;  %400 = vst [vmem:[%s5522_s6 + $0x150] sm:$0xf] %v399_v20 }
  0x4e   : > { %402 = vst [vmem:[%s5522_s6 + $0x154] sm:$0xf] %v401_v21  ;;  %v403_v22 = vld [vmem:[%s5518_s5 + $0x2b0] sm:$0xf]  ;;  %v405_v23 = vld [vmem:[%s5518_s5 + $0x2b8] sm:$0xf] }
  0x4f   : > { %v407_v24 = vld [vmem:[%s5518_s5 + $0x2c0] sm:$0xf]  ;;  %404 = vst [vmem:[%s5522_s6 + $0x158] sm:$0xf] %v403_v22  ;;  %406 = vst [vmem:[%s5522_s6 + $0x15c] sm:$0xf] %v405_v23 }
  0x50   : > { %408 = vst [vmem:[%s5522_s6 + $0x160] sm:$0xf] %v407_v24  ;;  %v409_v25 = vld [vmem:[%s5518_s5 + $0x2c8] sm:$0xf]  ;;  %v411_v26 = vld [vmem:[%s5518_s5 + $0x2d0] sm:$0xf] }
  0x51   : > { %v413_v27 = vld [vmem:[%s5518_s5 + $0x2d8] sm:$0xf]  ;;  %410 = vst [vmem:[%s5522_s6 + $0x164] sm:$0xf] %v409_v25  ;;  %412 = vst [vmem:[%s5522_s6 + $0x168] sm:$0xf] %v411_v26 }
  0x52   : > { %414 = vst [vmem:[%s5522_s6 + $0x16c] sm:$0xf] %v413_v27  ;;  %v415_v28 = vld [vmem:[%s5518_s5 + $0x2e0] sm:$0xf]  ;;  %v417_v29 = vld [vmem:[%s5518_s5 + $0x2e8] sm:$0xf] }
  0x53   : > { %v419_v30 = vld [vmem:[%s5518_s5 + $0x2f0] sm:$0xf]  ;;  %416 = vst [vmem:[%s5522_s6 + $0x170] sm:$0xf] %v415_v28  ;;  %418 = vst [vmem:[%s5522_s6 + $0x174] sm:$0xf] %v417_v29 }
  0x54   : > { %420 = vst [vmem:[%s5522_s6 + $0x178] sm:$0xf] %v419_v30  ;;  %v421_v31 = vld [vmem:[%s5518_s5 + $0x2f8] sm:$0xf]  ;;  %v423_v32 = vld [vmem:[%s5518_s5 + $0x300] sm:$0xf] }
  0x55   : > { %v425_v33 = vld [vmem:[%s5518_s5 + $0x308] sm:$0xf]  ;;  %422 = vst [vmem:[%s5522_s6 + $0x17c] sm:$0xf] %v421_v31  ;;  %424 = vst [vmem:[%s5522_s6 + $0x180] sm:$0xf] %v423_v32 }
  0x56   : > { %426 = vst [vmem:[%s5522_s6 + $0x184] sm:$0xf] %v425_v33  ;;  %v427_v34 = vld [vmem:[%s5518_s5 + $0x310] sm:$0xf]  ;;  %v429_v35 = vld [vmem:[%s5518_s5 + $0x318] sm:$0xf] }
  0x57   : > { %v431_v36 = vld [vmem:[%s5518_s5 + $0x320] sm:$0xf]  ;;  %428 = vst [vmem:[%s5522_s6 + $0x188] sm:$0xf] %v427_v34  ;;  %430 = vst [vmem:[%s5522_s6 + $0x18c] sm:$0xf] %v429_v35 }
  0x58   : > { %432 = vst [vmem:[%s5522_s6 + $0x190] sm:$0xf] %v431_v36  ;;  %v433_v37 = vld [vmem:[%s5518_s5 + $0x328] sm:$0xf]  ;;  %v435_v38 = vld [vmem:[%s5518_s5 + $0x330] sm:$0xf] }
  0x59   : > { %v437_v39 = vld [vmem:[%s5518_s5 + $0x338] sm:$0xf]  ;;  %434 = vst [vmem:[%s5522_s6 + $0x194] sm:$0xf] %v433_v37  ;;  %436 = vst [vmem:[%s5522_s6 + $0x198] sm:$0xf] %v435_v38 }
  0x5a   : > { %438 = vst [vmem:[%s5522_s6 + $0x19c] sm:$0xf] %v437_v39  ;;  %v439_v40 = vld [vmem:[%s5518_s5 + $0x340] sm:$0xf]  ;;  %v441_v41 = vld [vmem:[%s5518_s5 + $0x348] sm:$0xf] }
  0x5b   : > { %v443_v42 = vld [vmem:[%s5518_s5 + $0x350] sm:$0xf]  ;;  %440 = vst [vmem:[%s5522_s6 + $0x1a0] sm:$0xf] %v439_v40  ;;  %442 = vst [vmem:[%s5522_s6 + $0x1a4] sm:$0xf] %v441_v41 }
  0x5c   : > { %444 = vst [vmem:[%s5522_s6 + $0x1a8] sm:$0xf] %v443_v42  ;;  %v445_v43 = vld [vmem:[%s5518_s5 + $0x358] sm:$0xf]  ;;  %v447_v44 = vld [vmem:[%s5518_s5 + $0x360] sm:$0xf] }
  0x5d   : > { %v449_v45 = vld [vmem:[%s5518_s5 + $0x368] sm:$0xf]  ;;  %446 = vst [vmem:[%s5522_s6 + $0x1ac] sm:$0xf] %v445_v43  ;;  %448 = vst [vmem:[%s5522_s6 + $0x1b0] sm:$0xf] %v447_v44 }
  0x5e   : > { %450 = vst [vmem:[%s5522_s6 + $0x1b4] sm:$0xf] %v449_v45  ;;  %v451_v46 = vld [vmem:[%s5518_s5 + $0x370] sm:$0xf]  ;;  %v453_v47 = vld [vmem:[%s5518_s5 + $0x378] sm:$0xf] }
  0x5f   : > { %v455_v48 = vld [vmem:[%s5518_s5 + $0x380] sm:$0xf]  ;;  %452 = vst [vmem:[%s5522_s6 + $0x1b8] sm:$0xf] %v451_v46  ;;  %454 = vst [vmem:[%s5522_s6 + $0x1bc] sm:$0xf] %v453_v47 }
  0x60   : > { %456 = vst [vmem:[%s5522_s6 + $0x1c0] sm:$0xf] %v455_v48  ;;  %v457_v49 = vld [vmem:[%s5518_s5 + $0x388] sm:$0xf]  ;;  %v459_v50 = vld [vmem:[%s5518_s5 + $0x390] sm:$0xf] }
  0x61   : > { %v461_v51 = vld [vmem:[%s5518_s5 + $0x398] sm:$0xf]  ;;  %458 = vst [vmem:[%s5522_s6 + $0x1c4] sm:$0xf] %v457_v49  ;;  %460 = vst [vmem:[%s5522_s6 + $0x1c8] sm:$0xf] %v459_v50 }
  0x62   : > { %462 = vst [vmem:[%s5522_s6 + $0x1cc] sm:$0xf] %v461_v51  ;;  %v463_v52 = vld [vmem:[%s5518_s5 + $0x3a0] sm:$0xf]  ;;  %v465_v53 = vld [vmem:[%s5518_s5 + $0x3a8] sm:$0xf] }
  0x63   : > { %v467_v54 = vld [vmem:[%s5518_s5 + $0x3b0] sm:$0xf]  ;;  %464 = vst [vmem:[%s5522_s6 + $0x1d0] sm:$0xf] %v463_v52  ;;  %466 = vst [vmem:[%s5522_s6 + $0x1d4] sm:$0xf] %v465_v53 }
  0x64   : > { %468 = vst [vmem:[%s5522_s6 + $0x1d8] sm:$0xf] %v467_v54  ;;  %v469_v55 = vld [vmem:[%s5518_s5 + $0x3b8] sm:$0xf]  ;;  %v471_v56 = vld [vmem:[%s5518_s5 + $0x3c0] sm:$0xf] }
  0x65   : > { %v473_v57 = vld [vmem:[%s5518_s5 + $0x3c8] sm:$0xf]  ;;  %470 = vst [vmem:[%s5522_s6 + $0x1dc] sm:$0xf] %v469_v55  ;;  %472 = vst [vmem:[%s5522_s6 + $0x1e0] sm:$0xf] %v471_v56 }
  0x66   : > { %474 = vst [vmem:[%s5522_s6 + $0x1e4] sm:$0xf] %v473_v57  ;;  %v475_v58 = vld [vmem:[%s5518_s5 + $0x3d0] sm:$0xf]  ;;  %v477_v59 = vld [vmem:[%s5518_s5 + $0x3d8] sm:$0xf] }
  0x67   : > { %v479_v60 = vld [vmem:[%s5518_s5 + $0x3e0] sm:$0xf]  ;;  %476 = vst [vmem:[%s5522_s6 + $0x1e8] sm:$0xf] %v475_v58  ;;  %478 = vst [vmem:[%s5522_s6 + $0x1ec] sm:$0xf] %v477_v59 }
  0x68   : > { %480 = vst [vmem:[%s5522_s6 + $0x1f0] sm:$0xf] %v479_v60  ;;  %v481_v61 = vld [vmem:[%s5518_s5 + $0x3e8] sm:$0xf]  ;;  %v483_v62 = vld [vmem:[%s5518_s5 + $0x3f0] sm:$0xf] }
  0x69   : > { %v485_v63 = vld [vmem:[%s5518_s5 + $0x3f8] sm:$0xf]  ;;  %482 = vst [vmem:[%s5522_s6 + $0x1f4] sm:$0xf] %v481_v61  ;;  %484 = vst [vmem:[%s5522_s6 + $0x1f8] sm:$0xf] %v483_v62 }
  0x6a   : > { %486 = vst [vmem:[%s5522_s6 + $0x1fc] sm:$0xf] %v485_v63  ;;  %v487_v0 = vld [vmem:[%s5518_s5 + $0x400] sm:$0xf]  ;;  %v489_v1 = vld [vmem:[%s5518_s5 + $0x408] sm:$0xf] }
  0x6b   : > { %v491_v2 = vld [vmem:[%s5518_s5 + $0x410] sm:$0xf]  ;;  %488 = vst [vmem:[%s5522_s6 + $0x200] sm:$0xf] %v487_v0  ;;  %490 = vst [vmem:[%s5522_s6 + $0x204] sm:$0xf] %v489_v1 }
  0x6c   : > { %492 = vst [vmem:[%s5522_s6 + $0x208] sm:$0xf] %v491_v2  ;;  %v493_v3 = vld [vmem:[%s5518_s5 + $0x418] sm:$0xf]  ;;  %v495_v4 = vld [vmem:[%s5518_s5 + $0x420] sm:$0xf] }
  0x6d   : > { %v497_v5 = vld [vmem:[%s5518_s5 + $0x428] sm:$0xf]  ;;  %494 = vst [vmem:[%s5522_s6 + $0x20c] sm:$0xf] %v493_v3  ;;  %496 = vst [vmem:[%s5522_s6 + $0x210] sm:$0xf] %v495_v4 }
  0x6e   : > { %498 = vst [vmem:[%s5522_s6 + $0x214] sm:$0xf] %v497_v5  ;;  %v499_v6 = vld [vmem:[%s5518_s5 + $0x430] sm:$0xf]  ;;  %v501_v7 = vld [vmem:[%s5518_s5 + $0x438] sm:$0xf] }
  0x6f   : > { %v503_v8 = vld [vmem:[%s5518_s5 + $0x440] sm:$0xf]  ;;  %500 = vst [vmem:[%s5522_s6 + $0x218] sm:$0xf] %v499_v6  ;;  %502 = vst [vmem:[%s5522_s6 + $0x21c] sm:$0xf] %v501_v7 }
  0x70   : > { %504 = vst [vmem:[%s5522_s6 + $0x220] sm:$0xf] %v503_v8  ;;  %v505_v9 = vld [vmem:[%s5518_s5 + $0x448] sm:$0xf]  ;;  %v507_v10 = vld [vmem:[%s5518_s5 + $0x450] sm:$0xf] }
  0x71   : > { %v509_v11 = vld [vmem:[%s5518_s5 + $0x458] sm:$0xf]  ;;  %506 = vst [vmem:[%s5522_s6 + $0x224] sm:$0xf] %v505_v9  ;;  %508 = vst [vmem:[%s5522_s6 + $0x228] sm:$0xf] %v507_v10 }
  0x72   : > { %510 = vst [vmem:[%s5522_s6 + $0x22c] sm:$0xf] %v509_v11  ;;  %v511_v12 = vld [vmem:[%s5518_s5 + $0x460] sm:$0xf]  ;;  %v513_v13 = vld [vmem:[%s5518_s5 + $0x468] sm:$0xf] }
  0x73   : > { %v515_v14 = vld [vmem:[%s5518_s5 + $0x470] sm:$0xf]  ;;  %512 = vst [vmem:[%s5522_s6 + $0x230] sm:$0xf] %v511_v12  ;;  %514 = vst [vmem:[%s5522_s6 + $0x234] sm:$0xf] %v513_v13 }
  0x74   : > { %516 = vst [vmem:[%s5522_s6 + $0x238] sm:$0xf] %v515_v14  ;;  %v517_v15 = vld [vmem:[%s5518_s5 + $0x478] sm:$0xf]  ;;  %v519_v16 = vld [vmem:[%s5518_s5 + $0x480] sm:$0xf] }
  0x75   : > { %v521_v17 = vld [vmem:[%s5518_s5 + $0x488] sm:$0xf]  ;;  %518 = vst [vmem:[%s5522_s6 + $0x23c] sm:$0xf] %v517_v15  ;;  %520 = vst [vmem:[%s5522_s6 + $0x240] sm:$0xf] %v519_v16 }
  0x76   : > { %522 = vst [vmem:[%s5522_s6 + $0x244] sm:$0xf] %v521_v17  ;;  %v523_v18 = vld [vmem:[%s5518_s5 + $0x490] sm:$0xf]  ;;  %v525_v19 = vld [vmem:[%s5518_s5 + $0x498] sm:$0xf] }
  0x77   : > { %v527_v20 = vld [vmem:[%s5518_s5 + $0x4a0] sm:$0xf]  ;;  %524 = vst [vmem:[%s5522_s6 + $0x248] sm:$0xf] %v523_v18  ;;  %526 = vst [vmem:[%s5522_s6 + $0x24c] sm:$0xf] %v525_v19 }
  0x78   : > { %528 = vst [vmem:[%s5522_s6 + $0x250] sm:$0xf] %v527_v20  ;;  %v529_v21 = vld [vmem:[%s5518_s5 + $0x4a8] sm:$0xf]  ;;  %v531_v22 = vld [vmem:[%s5518_s5 + $0x4b0] sm:$0xf] }
  0x79   : > { %v533_v23 = vld [vmem:[%s5518_s5 + $0x4b8] sm:$0xf]  ;;  %530 = vst [vmem:[%s5522_s6 + $0x254] sm:$0xf] %v529_v21  ;;  %532 = vst [vmem:[%s5522_s6 + $0x258] sm:$0xf] %v531_v22 }
  0x7a   : > { %534 = vst [vmem:[%s5522_s6 + $0x25c] sm:$0xf] %v533_v23  ;;  %v535_v24 = vld [vmem:[%s5518_s5 + $0x4c0] sm:$0xf]  ;;  %v537_v25 = vld [vmem:[%s5518_s5 + $0x4c8] sm:$0xf] }
  0x7b   : > { %v539_v26 = vld [vmem:[%s5518_s5 + $0x4d0] sm:$0xf]  ;;  %536 = vst [vmem:[%s5522_s6 + $0x260] sm:$0xf] %v535_v24  ;;  %538 = vst [vmem:[%s5522_s6 + $0x264] sm:$0xf] %v537_v25 }
  0x7c   : > { %540 = vst [vmem:[%s5522_s6 + $0x268] sm:$0xf] %v539_v26  ;;  %v541_v27 = vld [vmem:[%s5518_s5 + $0x4d8] sm:$0xf]  ;;  %v543_v28 = vld [vmem:[%s5518_s5 + $0x4e0] sm:$0xf] }
  0x7d   : > { %v545_v29 = vld [vmem:[%s5518_s5 + $0x4e8] sm:$0xf]  ;;  %542 = vst [vmem:[%s5522_s6 + $0x26c] sm:$0xf] %v541_v27  ;;  %544 = vst [vmem:[%s5522_s6 + $0x270] sm:$0xf] %v543_v28 }
  0x7e   : > { %546 = vst [vmem:[%s5522_s6 + $0x274] sm:$0xf] %v545_v29  ;;  %v547_v30 = vld [vmem:[%s5518_s5 + $0x4f0] sm:$0xf]  ;;  %v549_v31 = vld [vmem:[%s5518_s5 + $0x4f8] sm:$0xf] }
  0x7f   : > { %v551_v32 = vld [vmem:[%s5518_s5 + $0x500] sm:$0xf]  ;;  %548 = vst [vmem:[%s5522_s6 + $0x278] sm:$0xf] %v547_v30  ;;  %550 = vst [vmem:[%s5522_s6 + $0x27c] sm:$0xf] %v549_v31 }
  0x80   : > { %552 = vst [vmem:[%s5522_s6 + $0x280] sm:$0xf] %v551_v32  ;;  %v553_v33 = vld [vmem:[%s5518_s5 + $0x508] sm:$0xf]  ;;  %v555_v34 = vld [vmem:[%s5518_s5 + $0x510] sm:$0xf] }
  0x81   : > { %v557_v35 = vld [vmem:[%s5518_s5 + $0x518] sm:$0xf]  ;;  %554 = vst [vmem:[%s5522_s6 + $0x284] sm:$0xf] %v553_v33  ;;  %556 = vst [vmem:[%s5522_s6 + $0x288] sm:$0xf] %v555_v34 }
  0x82   : > { %558 = vst [vmem:[%s5522_s6 + $0x28c] sm:$0xf] %v557_v35  ;;  %v559_v36 = vld [vmem:[%s5518_s5 + $0x520] sm:$0xf]  ;;  %v561_v37 = vld [vmem:[%s5518_s5 + $0x528] sm:$0xf] }
  0x83   : > { %v563_v38 = vld [vmem:[%s5518_s5 + $0x530] sm:$0xf]  ;;  %560 = vst [vmem:[%s5522_s6 + $0x290] sm:$0xf] %v559_v36  ;;  %562 = vst [vmem:[%s5522_s6 + $0x294] sm:$0xf] %v561_v37 }
  0x84   : > { %564 = vst [vmem:[%s5522_s6 + $0x298] sm:$0xf] %v563_v38  ;;  %v565_v39 = vld [vmem:[%s5518_s5 + $0x538] sm:$0xf]  ;;  %v567_v40 = vld [vmem:[%s5518_s5 + $0x540] sm:$0xf] }
  0x85   : > { %v569_v41 = vld [vmem:[%s5518_s5 + $0x548] sm:$0xf]  ;;  %566 = vst [vmem:[%s5522_s6 + $0x29c] sm:$0xf] %v565_v39  ;;  %568 = vst [vmem:[%s5522_s6 + $0x2a0] sm:$0xf] %v567_v40 }
  0x86   : > { %570 = vst [vmem:[%s5522_s6 + $0x2a4] sm:$0xf] %v569_v41  ;;  %v571_v42 = vld [vmem:[%s5518_s5 + $0x550] sm:$0xf]  ;;  %v573_v43 = vld [vmem:[%s5518_s5 + $0x558] sm:$0xf] }
  0x87   : > { %v575_v44 = vld [vmem:[%s5518_s5 + $0x560] sm:$0xf]  ;;  %572 = vst [vmem:[%s5522_s6 + $0x2a8] sm:$0xf] %v571_v42  ;;  %574 = vst [vmem:[%s5522_s6 + $0x2ac] sm:$0xf] %v573_v43 }
  0x88   : > { %576 = vst [vmem:[%s5522_s6 + $0x2b0] sm:$0xf] %v575_v44  ;;  %v577_v45 = vld [vmem:[%s5518_s5 + $0x568] sm:$0xf]  ;;  %v579_v46 = vld [vmem:[%s5518_s5 + $0x570] sm:$0xf] }
  0x89   : > { %v581_v47 = vld [vmem:[%s5518_s5 + $0x578] sm:$0xf]  ;;  %578 = vst [vmem:[%s5522_s6 + $0x2b4] sm:$0xf] %v577_v45  ;;  %580 = vst [vmem:[%s5522_s6 + $0x2b8] sm:$0xf] %v579_v46 }
  0x8a   : > { %582 = vst [vmem:[%s5522_s6 + $0x2bc] sm:$0xf] %v581_v47  ;;  %v583_v48 = vld [vmem:[%s5518_s5 + $0x580] sm:$0xf]  ;;  %v585_v49 = vld [vmem:[%s5518_s5 + $0x588] sm:$0xf] }
  0x8b   : > { %v587_v50 = vld [vmem:[%s5518_s5 + $0x590] sm:$0xf]  ;;  %584 = vst [vmem:[%s5522_s6 + $0x2c0] sm:$0xf] %v583_v48  ;;  %586 = vst [vmem:[%s5522_s6 + $0x2c4] sm:$0xf] %v585_v49 }
  0x8c   : > { %588 = vst [vmem:[%s5522_s6 + $0x2c8] sm:$0xf] %v587_v50  ;;  %v589_v51 = vld [vmem:[%s5518_s5 + $0x598] sm:$0xf]  ;;  %v591_v52 = vld [vmem:[%s5518_s5 + $0x5a0] sm:$0xf] }
  0x8d   : > { %v593_v53 = vld [vmem:[%s5518_s5 + $0x5a8] sm:$0xf]  ;;  %590 = vst [vmem:[%s5522_s6 + $0x2cc] sm:$0xf] %v589_v51  ;;  %592 = vst [vmem:[%s5522_s6 + $0x2d0] sm:$0xf] %v591_v52 }
  0x8e   : > { %594 = vst [vmem:[%s5522_s6 + $0x2d4] sm:$0xf] %v593_v53  ;;  %v595_v54 = vld [vmem:[%s5518_s5 + $0x5b0] sm:$0xf]  ;;  %v597_v55 = vld [vmem:[%s5518_s5 + $0x5b8] sm:$0xf] }
  0x8f   : > { %v599_v56 = vld [vmem:[%s5518_s5 + $0x5c0] sm:$0xf]  ;;  %596 = vst [vmem:[%s5522_s6 + $0x2d8] sm:$0xf] %v595_v54  ;;  %598 = vst [vmem:[%s5522_s6 + $0x2dc] sm:$0xf] %v597_v55 }
  0x90   : > { %600 = vst [vmem:[%s5522_s6 + $0x2e0] sm:$0xf] %v599_v56  ;;  %v601_v57 = vld [vmem:[%s5518_s5 + $0x5c8] sm:$0xf]  ;;  %v603_v58 = vld [vmem:[%s5518_s5 + $0x5d0] sm:$0xf] }
  0x91   : > { %v605_v59 = vld [vmem:[%s5518_s5 + $0x5d8] sm:$0xf]  ;;  %602 = vst [vmem:[%s5522_s6 + $0x2e4] sm:$0xf] %v601_v57  ;;  %604 = vst [vmem:[%s5522_s6 + $0x2e8] sm:$0xf] %v603_v58 }
  0x92   : > { %606 = vst [vmem:[%s5522_s6 + $0x2ec] sm:$0xf] %v605_v59  ;;  %v607_v60 = vld [vmem:[%s5518_s5 + $0x5e0] sm:$0xf]  ;;  %v609_v61 = vld [vmem:[%s5518_s5 + $0x5e8] sm:$0xf] }
  0x93   : > { %v611_v62 = vld [vmem:[%s5518_s5 + $0x5f0] sm:$0xf]  ;;  %608 = vst [vmem:[%s5522_s6 + $0x2f0] sm:$0xf] %v607_v60  ;;  %610 = vst [vmem:[%s5522_s6 + $0x2f4] sm:$0xf] %v609_v61 }
  0x94   : > { %612 = vst [vmem:[%s5522_s6 + $0x2f8] sm:$0xf] %v611_v62  ;;  %v613_v63 = vld [vmem:[%s5518_s5 + $0x5f8] sm:$0xf]  ;;  %v615_v0 = vld [vmem:[%s5518_s5 + $0x600] sm:$0xf] }
  0x95   : > { %v617_v1 = vld [vmem:[%s5518_s5 + $0x608] sm:$0xf]  ;;  %614 = vst [vmem:[%s5522_s6 + $0x2fc] sm:$0xf] %v613_v63  ;;  %616 = vst [vmem:[%s5522_s6 + $0x300] sm:$0xf] %v615_v0 }
  0x96   : > { %618 = vst [vmem:[%s5522_s6 + $0x304] sm:$0xf] %v617_v1  ;;  %v619_v2 = vld [vmem:[%s5518_s5 + $0x610] sm:$0xf]  ;;  %v621_v3 = vld [vmem:[%s5518_s5 + $0x618] sm:$0xf] }
  0x97   : > { %v623_v4 = vld [vmem:[%s5518_s5 + $0x620] sm:$0xf]  ;;  %620 = vst [vmem:[%s5522_s6 + $0x308] sm:$0xf] %v619_v2  ;;  %622 = vst [vmem:[%s5522_s6 + $0x30c] sm:$0xf] %v621_v3 }
  0x98   : > { %624 = vst [vmem:[%s5522_s6 + $0x310] sm:$0xf] %v623_v4  ;;  %v625_v5 = vld [vmem:[%s5518_s5 + $0x628] sm:$0xf]  ;;  %v627_v6 = vld [vmem:[%s5518_s5 + $0x630] sm:$0xf] }
  0x99   : > { %v629_v7 = vld [vmem:[%s5518_s5 + $0x638] sm:$0xf]  ;;  %626 = vst [vmem:[%s5522_s6 + $0x314] sm:$0xf] %v625_v5  ;;  %628 = vst [vmem:[%s5522_s6 + $0x318] sm:$0xf] %v627_v6 }
  0x9a   : > { %630 = vst [vmem:[%s5522_s6 + $0x31c] sm:$0xf] %v629_v7  ;;  %v631_v8 = vld [vmem:[%s5518_s5 + $0x640] sm:$0xf]  ;;  %v633_v9 = vld [vmem:[%s5518_s5 + $0x648] sm:$0xf] }
  0x9b   : > { %v635_v10 = vld [vmem:[%s5518_s5 + $0x650] sm:$0xf]  ;;  %632 = vst [vmem:[%s5522_s6 + $0x320] sm:$0xf] %v631_v8  ;;  %634 = vst [vmem:[%s5522_s6 + $0x324] sm:$0xf] %v633_v9 }
  0x9c   : > { %636 = vst [vmem:[%s5522_s6 + $0x328] sm:$0xf] %v635_v10  ;;  %v637_v11 = vld [vmem:[%s5518_s5 + $0x658] sm:$0xf]  ;;  %v639_v12 = vld [vmem:[%s5518_s5 + $0x660] sm:$0xf] }
  0x9d   : > { %v641_v13 = vld [vmem:[%s5518_s5 + $0x668] sm:$0xf]  ;;  %638 = vst [vmem:[%s5522_s6 + $0x32c] sm:$0xf] %v637_v11  ;;  %640 = vst [vmem:[%s5522_s6 + $0x330] sm:$0xf] %v639_v12 }
  0x9e   : > { %642 = vst [vmem:[%s5522_s6 + $0x334] sm:$0xf] %v641_v13  ;;  %v643_v14 = vld [vmem:[%s5518_s5 + $0x670] sm:$0xf]  ;;  %v645_v15 = vld [vmem:[%s5518_s5 + $0x678] sm:$0xf] }
  0x9f   : > { %v647_v16 = vld [vmem:[%s5518_s5 + $0x680] sm:$0xf]  ;;  %644 = vst [vmem:[%s5522_s6 + $0x338] sm:$0xf] %v643_v14  ;;  %646 = vst [vmem:[%s5522_s6 + $0x33c] sm:$0xf] %v645_v15 }
  0xa0   : > { %648 = vst [vmem:[%s5522_s6 + $0x340] sm:$0xf] %v647_v16  ;;  %v649_v17 = vld [vmem:[%s5518_s5 + $0x688] sm:$0xf]  ;;  %v651_v18 = vld [vmem:[%s5518_s5 + $0x690] sm:$0xf] }
  0xa1   : > { %v653_v19 = vld [vmem:[%s5518_s5 + $0x698] sm:$0xf]  ;;  %650 = vst [vmem:[%s5522_s6 + $0x344] sm:$0xf] %v649_v17  ;;  %652 = vst [vmem:[%s5522_s6 + $0x348] sm:$0xf] %v651_v18 }
  0xa2   : > { %654 = vst [vmem:[%s5522_s6 + $0x34c] sm:$0xf] %v653_v19  ;;  %v655_v20 = vld [vmem:[%s5518_s5 + $0x6a0] sm:$0xf]  ;;  %v657_v21 = vld [vmem:[%s5518_s5 + $0x6a8] sm:$0xf] }
  0xa3   : > { %v659_v22 = vld [vmem:[%s5518_s5 + $0x6b0] sm:$0xf]  ;;  %656 = vst [vmem:[%s5522_s6 + $0x350] sm:$0xf] %v655_v20  ;;  %658 = vst [vmem:[%s5522_s6 + $0x354] sm:$0xf] %v657_v21 }
  0xa4   : > { %660 = vst [vmem:[%s5522_s6 + $0x358] sm:$0xf] %v659_v22  ;;  %v661_v23 = vld [vmem:[%s5518_s5 + $0x6b8] sm:$0xf]  ;;  %v663_v24 = vld [vmem:[%s5518_s5 + $0x6c0] sm:$0xf] }
  0xa5   : > { %v665_v25 = vld [vmem:[%s5518_s5 + $0x6c8] sm:$0xf]  ;;  %662 = vst [vmem:[%s5522_s6 + $0x35c] sm:$0xf] %v661_v23  ;;  %664 = vst [vmem:[%s5522_s6 + $0x360] sm:$0xf] %v663_v24 }
  0xa6   : > { %666 = vst [vmem:[%s5522_s6 + $0x364] sm:$0xf] %v665_v25  ;;  %v667_v26 = vld [vmem:[%s5518_s5 + $0x6d0] sm:$0xf]  ;;  %v669_v27 = vld [vmem:[%s5518_s5 + $0x6d8] sm:$0xf] }
  0xa7   : > { %v671_v28 = vld [vmem:[%s5518_s5 + $0x6e0] sm:$0xf]  ;;  %668 = vst [vmem:[%s5522_s6 + $0x368] sm:$0xf] %v667_v26  ;;  %670 = vst [vmem:[%s5522_s6 + $0x36c] sm:$0xf] %v669_v27 }
  0xa8   : > { %672 = vst [vmem:[%s5522_s6 + $0x370] sm:$0xf] %v671_v28  ;;  %v673_v29 = vld [vmem:[%s5518_s5 + $0x6e8] sm:$0xf]  ;;  %v675_v30 = vld [vmem:[%s5518_s5 + $0x6f0] sm:$0xf] }
  0xa9   : > { %v677_v31 = vld [vmem:[%s5518_s5 + $0x6f8] sm:$0xf]  ;;  %674 = vst [vmem:[%s5522_s6 + $0x374] sm:$0xf] %v673_v29  ;;  %676 = vst [vmem:[%s5522_s6 + $0x378] sm:$0xf] %v675_v30 }
  0xaa   : > { %678 = vst [vmem:[%s5522_s6 + $0x37c] sm:$0xf] %v677_v31  ;;  %v679_v32 = vld [vmem:[%s5518_s5 + $0x700] sm:$0xf]  ;;  %v681_v33 = vld [vmem:[%s5518_s5 + $0x708] sm:$0xf] }
  0xab   : > { %v683_v34 = vld [vmem:[%s5518_s5 + $0x710] sm:$0xf]  ;;  %680 = vst [vmem:[%s5522_s6 + $0x380] sm:$0xf] %v679_v32  ;;  %682 = vst [vmem:[%s5522_s6 + $0x384] sm:$0xf] %v681_v33 }
  0xac   : > { %684 = vst [vmem:[%s5522_s6 + $0x388] sm:$0xf] %v683_v34  ;;  %v685_v35 = vld [vmem:[%s5518_s5 + $0x718] sm:$0xf]  ;;  %v687_v36 = vld [vmem:[%s5518_s5 + $0x720] sm:$0xf] }
  0xad   : > { %v689_v37 = vld [vmem:[%s5518_s5 + $0x728] sm:$0xf]  ;;  %686 = vst [vmem:[%s5522_s6 + $0x38c] sm:$0xf] %v685_v35  ;;  %688 = vst [vmem:[%s5522_s6 + $0x390] sm:$0xf] %v687_v36 }
  0xae   : > { %690 = vst [vmem:[%s5522_s6 + $0x394] sm:$0xf] %v689_v37  ;;  %v691_v38 = vld [vmem:[%s5518_s5 + $0x730] sm:$0xf]  ;;  %v693_v39 = vld [vmem:[%s5518_s5 + $0x738] sm:$0xf] }
  0xaf   : > { %v695_v40 = vld [vmem:[%s5518_s5 + $0x740] sm:$0xf]  ;;  %692 = vst [vmem:[%s5522_s6 + $0x398] sm:$0xf] %v691_v38  ;;  %694 = vst [vmem:[%s5522_s6 + $0x39c] sm:$0xf] %v693_v39 }
  0xb0   : > { %696 = vst [vmem:[%s5522_s6 + $0x3a0] sm:$0xf] %v695_v40  ;;  %v697_v41 = vld [vmem:[%s5518_s5 + $0x748] sm:$0xf]  ;;  %v699_v42 = vld [vmem:[%s5518_s5 + $0x750] sm:$0xf] }
  0xb1   : > { %v701_v43 = vld [vmem:[%s5518_s5 + $0x758] sm:$0xf]  ;;  %698 = vst [vmem:[%s5522_s6 + $0x3a4] sm:$0xf] %v697_v41  ;;  %700 = vst [vmem:[%s5522_s6 + $0x3a8] sm:$0xf] %v699_v42 }
  0xb2   : > { %702 = vst [vmem:[%s5522_s6 + $0x3ac] sm:$0xf] %v701_v43  ;;  %v703_v44 = vld [vmem:[%s5518_s5 + $0x760] sm:$0xf]  ;;  %v705_v45 = vld [vmem:[%s5518_s5 + $0x768] sm:$0xf] }
  0xb3   : > { %v707_v46 = vld [vmem:[%s5518_s5 + $0x770] sm:$0xf]  ;;  %704 = vst [vmem:[%s5522_s6 + $0x3b0] sm:$0xf] %v703_v44  ;;  %706 = vst [vmem:[%s5522_s6 + $0x3b4] sm:$0xf] %v705_v45 }
  0xb4   : > { %708 = vst [vmem:[%s5522_s6 + $0x3b8] sm:$0xf] %v707_v46  ;;  %v709_v47 = vld [vmem:[%s5518_s5 + $0x778] sm:$0xf]  ;;  %v711_v48 = vld [vmem:[%s5518_s5 + $0x780] sm:$0xf] }
  0xb5   : > { %v713_v49 = vld [vmem:[%s5518_s5 + $0x788] sm:$0xf]  ;;  %710 = vst [vmem:[%s5522_s6 + $0x3bc] sm:$0xf] %v709_v47  ;;  %712 = vst [vmem:[%s5522_s6 + $0x3c0] sm:$0xf] %v711_v48 }
  0xb6   : > { %714 = vst [vmem:[%s5522_s6 + $0x3c4] sm:$0xf] %v713_v49  ;;  %v715_v50 = vld [vmem:[%s5518_s5 + $0x790] sm:$0xf]  ;;  %v717_v51 = vld [vmem:[%s5518_s5 + $0x798] sm:$0xf] }
  0xb7   : > { %v719_v52 = vld [vmem:[%s5518_s5 + $0x7a0] sm:$0xf]  ;;  %716 = vst [vmem:[%s5522_s6 + $0x3c8] sm:$0xf] %v715_v50  ;;  %718 = vst [vmem:[%s5522_s6 + $0x3cc] sm:$0xf] %v717_v51 }
  0xb8   : > { %720 = vst [vmem:[%s5522_s6 + $0x3d0] sm:$0xf] %v719_v52  ;;  %v721_v53 = vld [vmem:[%s5518_s5 + $0x7a8] sm:$0xf]  ;;  %v723_v54 = vld [vmem:[%s5518_s5 + $0x7b0] sm:$0xf] }
  0xb9   : > { %v725_v55 = vld [vmem:[%s5518_s5 + $0x7b8] sm:$0xf]  ;;  %722 = vst [vmem:[%s5522_s6 + $0x3d4] sm:$0xf] %v721_v53  ;;  %724 = vst [vmem:[%s5522_s6 + $0x3d8] sm:$0xf] %v723_v54 }
  0xba   : > { %726 = vst [vmem:[%s5522_s6 + $0x3dc] sm:$0xf] %v725_v55  ;;  %v727_v56 = vld [vmem:[%s5518_s5 + $0x7c0] sm:$0xf]  ;;  %v729_v57 = vld [vmem:[%s5518_s5 + $0x7c8] sm:$0xf] }
  0xbb   : > { %v731_v58 = vld [vmem:[%s5518_s5 + $0x7d0] sm:$0xf]  ;;  %728 = vst [vmem:[%s5522_s6 + $0x3e0] sm:$0xf] %v727_v56  ;;  %730 = vst [vmem:[%s5522_s6 + $0x3e4] sm:$0xf] %v729_v57 }
  0xbc   : > { %732 = vst [vmem:[%s5522_s6 + $0x3e8] sm:$0xf] %v731_v58  ;;  %v733_v59 = vld [vmem:[%s5518_s5 + $0x7d8] sm:$0xf]  ;;  %v735_v60 = vld [vmem:[%s5518_s5 + $0x7e0] sm:$0xf] }
  0xbd   : > { %v737_v61 = vld [vmem:[%s5518_s5 + $0x7e8] sm:$0xf]  ;;  %734 = vst [vmem:[%s5522_s6 + $0x3ec] sm:$0xf] %v733_v59  ;;  %736 = vst [vmem:[%s5522_s6 + $0x3f0] sm:$0xf] %v735_v60 }
  0xbe   : > { %738 = vst [vmem:[%s5522_s6 + $0x3f4] sm:$0xf] %v737_v61  ;;  %v739_v62 = vld [vmem:[%s5518_s5 + $0x7f0] sm:$0xf]  ;;  %v741_v63 = vld [vmem:[%s5518_s5 + $0x7f8] sm:$0xf] }
  0xbf   : > { %740 = vst [vmem:[%s5522_s6 + $0x3f8] sm:$0xf] %v739_v62  ;;  %742 = vst [vmem:[%s5522_s6 + $0x3fc] sm:$0xf] %v741_v63 }
  0xc0 PF: > { %p4379_p8 = scmp.ge.s32.totalorder %s5442_s19, 1  ;;  %p1276_p9 = scmp.lt.s32.totalorder %s5442_s19, 3 }
  0xc2   : > { %p1277_p10 = pnand %p4379_p8, %p1276_p9 }
  0xc3   : > { %s1283_s7 = sand.u32 (!%p1277_p10), 1, %s5426_s15   ;;  %v6040_v0 = vld [vmem:[%s6778_s0] sm:$0xff] (!%p1277_p10)  ;;  %v6050_v2 = vld [vmem:[%s6778_s0 + $0x8] sm:$0xff] (!%p1277_p10)  ;;  %p1349_p11 = scmp.lt.s32.totalorder (!%p1277_p10), %s5434_s17, 1 }
  0xc4   : > { %1280 = sbr.rel (%p1277_p10) target bundleno = 718 (0x2ce), region = 65  ;;  %v6045_v1 = vld [vmem:[%s6778_s0 + $0x40] sm:$0xff] (!%p1277_p10)  ;;  %s4380_s14 = sshll.u32 (!%p1277_p10), %s1283_s7, 10  ;;  %v6059_v4 = vld [vmem:[%s6778_s0 + $0x48] sm:$0xff] (!%p1277_p10) }
  0xc5   : > { %v4385_v3 = vcombine.high (!%p1277_p10), %v6040_v0, %v6045_v1  ;;  %v4387_v5 = vcombine.high (!%p1277_p10), %v6050_v2, %v6059_v4  ;;  %s6063_s23 = scalar_lea.vmem (!%p1277_p10), [#allocation2], %s4380_s14  ;;  %v1380_v35 = vld [vmem:[%s6778_s0 + $0x80] sm:$0xff] (!%p1277_p10)  ;;  %v1381_v38 = vld [vmem:[%s6778_s0 + $0x88] sm:$0xff] (!%p1277_p10)  ;;  %v4384_v42 = vcombine.low (!%p1277_p10), %v6040_v0, %v6045_v1  ;;  %v4386_v43 = vcombine.low (!%p1277_p10), %v6050_v2, %v6059_v4  ;;  %s4381_s12 = sshll.u32 (!%p1277_p10), %s1283_s7, 6 }
  0xc6   : > { %v5276_v6 = vld [vmem:[%s6063_s23 + $0x40] sm:$0xff] (!%p1277_p10)   ;;  %v5280_v10 = vld [vmem:[%s6063_s23 + $0x48] sm:$0xff] (!%p1277_p10)   ;;  %v5284_v14 = vld [vmem:[%s6063_s23 + $0x50] sm:$0xff] (!%p1277_p10)  }
  0xc7   : > { %3188 = vmatprep.mubr.bf16.mxu0 (!%p1277_p10), %v4385_v3  ;;  %v5277_v7 = vld [vmem:[%s6063_s23 + $0xc0] sm:$0xff] (!%p1277_p10)   ;;  %3285 = vmatprep.mubr.bf16.mxu1 (!%p1277_p10), %v4387_v5  ;;  %v5281_v11 = vld [vmem:[%s6063_s23 + $0xc8] sm:$0xff] (!%p1277_p10)   ;;  %v5285_v15 = vld [vmem:[%s6063_s23 + $0xd0] sm:$0xff] (!%p1277_p10)  }
  0xc8   : > { %4723 = vmatprep.subr.bf16.mxu0 (!%p1277_p10), %v5276_v6  ;;  %v5278_v8 = vld [vmem:[%s6063_s23] sm:$0xff] (!%p1277_p10)   ;;  %4787 = vmatprep.subr.bf16.mxu1 (!%p1277_p10), %v5277_v7  ;;  %v5282_v12 = vld [vmem:[%s6063_s23 + $0x8] sm:$0xff] (!%p1277_p10)   ;;  %v5286_v16 = vld [vmem:[%s6063_s23 + $0x10] sm:$0xff] (!%p1277_p10)  }
  0xc9   : > { %v5279_v9 = vld [vmem:[%s6063_s23 + $0x80] sm:$0xff] (!%p1277_p10)   ;;  %4724 = vmatpush3.bf16.msra.mxu0 (!%p1277_p10), %v5278_v8  ;;  %v5283_v13 = vld [vmem:[%s6063_s23 + $0x88] sm:$0xff] (!%p1277_p10)   ;;  %v5287_v17 = vld [vmem:[%s6063_s23 + $0x90] sm:$0xff] (!%p1277_p10)  }
  0xca   : > { %4788 = vmatpush3.bf16.msra.mxu1 (!%p1277_p10), %v5279_v9  ;;  %4725 = vmatprep.subr.bf16.mxu0 (!%p1277_p10), %v5280_v10  ;;  %v5288_v18 = vld [vmem:[%s6063_s23 + $0x58] sm:$0xff] (!%p1277_p10)   ;;  %v5292_v22 = vld [vmem:[%s6063_s23 + $0x60] sm:$0xff] (!%p1277_p10)   ;;  %v5296_v26 = vld [vmem:[%s6063_s23 + $0x68] sm:$0xff] (!%p1277_p10)  }
  0xcb   : > { %4789 = vmatprep.subr.bf16.mxu1 %v5281_v11  ;;  %v5289_v19 = vld [vmem:[%s6063_s23 + $0xd8] sm:$0xff]   ;;  %v5293_v23 = vld [vmem:[%s6063_s23 + $0xe0] sm:$0xff]   ;;  %v5297_v27 = vld [vmem:[%s6063_s23 + $0xe8] sm:$0xff]   ;;  %s1350_s29 = scalar_select %p1349_p11, %s5434_s17, 1 }
  0xcc   : > { %v5290_v20 = vld [vmem:[%s6063_s23 + $0x18] sm:$0xff]   ;;  %v5294_v24 = vld [vmem:[%s6063_s23 + $0x20] sm:$0xff]   ;;  %v5298_v28 = vld [vmem:[%s6063_s23 + $0x28] sm:$0xff]   ;;  %s4657_s15 = sshll.u32 (%p5505_p6), %s5434_s17, 2 }
  0xcd   : > { %4726 = vmatpush3.bf16.msra.mxu0 %v5282_v12  ;;  %v5291_v21 = vld [vmem:[%s6063_s23 + $0x98] sm:$0xff]   ;;  %v5295_v25 = vld [vmem:[%s6063_s23 + $0xa0] sm:$0xff]   ;;  %v5299_v29 = vld [vmem:[%s6063_s23 + $0xa8] sm:$0xff]   ;;  %s4382_s30 = sshll.u32 %s1350_s29, 3  ;;  %s4101_s14 = scalar_lea.vmem (%p5505_p6), %s6780_s2, %s4657_s15 }
  0xce   : > { %4790 = vmatpush3.bf16.msra.mxu1 %v5283_v13  ;;  %4727 = vmatprep.subr.bf16.mxu0 %v5284_v14  ;;  %v5300_v30 = vld [vmem:[%s6063_s23 + $0x70] sm:$0xff]   ;;  %v5304_v34 = vld [vmem:[%s6063_s23 + $0x78] sm:$0xff]   ;;  %v1388_v36 = vld [vmem:[%s6778_s0 + $0xc0] sm:$0xff]  ;;  %s6658_s8 = scalar_lea.vmem %s6781_s3, %s4382_s30  ;;  %s6663_s11 = scalar_lea.vmem %s6782_s4, %s4382_s30 }
  0xcf   : > { %4791 = vmatprep.subr.bf16.mxu1 %v5285_v15  ;;  %v5301_v31 = vld [vmem:[%s6063_s23 + $0xf0] sm:$0xff]   ;;  %v5305_v37 = vld [vmem:[%s6063_s23 + $0xf8] sm:$0xff]   ;;  %v1389_v39 = vld [vmem:[%s6778_s0 + $0xc8] sm:$0xff]  ;;  %v4401_v46 = vcombine.high %v1380_v35, %v1388_v36  ;;  %v4400_v54 = vcombine.low %v1380_v35, %v1388_v36 }
  0xd0   : > { %v5302_v32 = vld [vmem:[%s6063_s23 + $0x30] sm:$0xff]   ;;  %v5306_v40 = vld [vmem:[%s6063_s23 + $0x38] sm:$0xff]   ;;  %v5308_v44 = vld [vmem:[%s6063_s23 + $0x140] sm:$0xff]   ;;  %v4403_v48 = vcombine.high %v1381_v38, %v1389_v39  ;;  %v4402_v56 = vcombine.low %v1381_v38, %v1389_v39 }
  0xd1   : > { %4728 = vmatpush3.bf16.msra.mxu0 %v5286_v16  ;;  %v5303_v33 = vld [vmem:[%s6063_s23 + $0xb0] sm:$0xff]   ;;  %v5307_v41 = vld [vmem:[%s6063_s23 + $0xb8] sm:$0xff]   ;;  %v5309_v45 = vld [vmem:[%s6063_s23 + $0x100] sm:$0xff]  }
  0xd2   : > { %4792 = vmatpush3.bf16.msra.mxu1 %v5287_v17  ;;  %4729 = vmatprep.subr.bf16.mxu0 %v5288_v18  ;;  %v5310_v47 = vld [vmem:[%s6063_s23 + $0x1c0] sm:$0xff]   ;;  %v5312_v50 = vld [vmem:[%s6063_s23 + $0x148] sm:$0xff]   ;;  %v5316_v62 = vld [vmem:[%s6063_s23 + $0x150] sm:$0xff]  }
  0xd3   : > { %4793 = vmatprep.subr.bf16.mxu1 %v5289_v19  ;;  %v5311_v49 = vld [vmem:[%s6063_s23 + $0x180] sm:$0xff]   ;;  %v5313_v52 = vld [vmem:[%s6063_s23 + $0x108] sm:$0xff]   ;;  %v5317_v63 = vld [vmem:[%s6063_s23 + $0x110] sm:$0xff]  }
  0xd4   : > { %v1396_v51 = vld [vmem:[%s6778_s0 + $0x100] sm:$0xff]  ;;  %v5314_v53 = vld [vmem:[%s6063_s23 + $0x1c8] sm:$0xff]   ;;  %v5318_v0 = vld [vmem:[%s6063_s23 + $0x1d0] sm:$0xff]  }
  0xd5   : > { %4730 = vmatpush3.bf16.msra.mxu0 %v5290_v20  ;;  %v5315_v55 = vld [vmem:[%s6063_s23 + $0x188] sm:$0xff]   ;;  %v1404_v57 = vld [vmem:[%s6778_s0 + $0x140] sm:$0xff]  ;;  %v5319_v1 = vld [vmem:[%s6063_s23 + $0x190] sm:$0xff]  }
  0xd6   : > { %4794 = vmatpush3.bf16.msra.mxu1 %v5291_v21  ;;  %4731 = vmatprep.subr.bf16.mxu0 %v5292_v22  ;;  %v1397_v58 = vld [vmem:[%s6778_s0 + $0x108] sm:$0xff]  ;;  %v4417_v60 = vcombine.high %v1396_v51, %v1404_v57  ;;  %v1412_v2 = vld [vmem:[%s6778_s0 + $0x180] sm:$0xff]  ;;  %v4416_v6 = vcombine.low %v1396_v51, %v1404_v57  ;;  %v5320_v7 = vld [vmem:[%s6063_s23 + $0x158] sm:$0xff]  }
  0xd7   : > { %4795 = vmatprep.subr.bf16.mxu1 %v5293_v23  ;;  %v1405_v59 = vld [vmem:[%s6778_s0 + $0x148] sm:$0xff]  ;;  %v1420_v3 = vld [vmem:[%s6778_s0 + $0x1c0] sm:$0xff]  ;;  %v5321_v10 = vld [vmem:[%s6063_s23 + $0x118] sm:$0xff]  }
  0xd8   : > { %v4419_v61 = vcombine.high %v1397_v58, %v1405_v59  ;;  %v1413_v4 = vld [vmem:[%s6778_s0 + $0x188] sm:$0xff]  ;;  %v4418_v8 = vcombine.low %v1397_v58, %v1405_v59  ;;  %v4433_v9 = vcombine.high %v1412_v2, %v1420_v3  ;;  %v5322_v12 = vld [vmem:[%s6063_s23 + $0x1d8] sm:$0xff]   ;;  %v1428_v14 = vld [vmem:[%s6778_s0 + $0x200] sm:$0xff]  ;;  %v4432_v21 = vcombine.low %v1412_v2, %v1420_v3 }
  0xd9   : > { %4732 = vmatpush3.bf16.msra.mxu0 %v5294_v24  ;;  %v1421_v5 = vld [vmem:[%s6778_s0 + $0x1c8] sm:$0xff]  ;;  %v5323_v13 = vld [vmem:[%s6063_s23 + $0x198] sm:$0xff]   ;;  %v1436_v15 = vld [vmem:[%s6778_s0 + $0x240] sm:$0xff] }
  0xda   : > { %4796 = vmatpush3.bf16.msra.mxu1 %v5295_v25  ;;  %4733 = vmatprep.subr.bf16.mxu0 %v5296_v26  ;;  %v4435_v11 = vcombine.high %v1413_v4, %v1421_v5  ;;  %v1429_v16 = vld [vmem:[%s6778_s0 + $0x208] sm:$0xff]  ;;  %v5324_v18 = vld [vmem:[%s6063_s23 + $0x160] sm:$0xff]   ;;  %v4434_v23 = vcombine.low %v1413_v4, %v1421_v5  ;;  %v4449_v24 = vcombine.high %v1428_v14, %v1436_v15  ;;  %v5332_v35 = vld [vmem:[%s6063_s23 + $0x170] sm:$0xff]  }
  0xdb   : > { %4797 = vmatprep.subr.bf16.mxu1 %v5297_v27  ;;  %v1437_v17 = vld [vmem:[%s6778_s0 + $0x248] sm:$0xff]  ;;  %v5325_v19 = vld [vmem:[%s6063_s23 + $0x120] sm:$0xff]   ;;  %v5333_v38 = vld [vmem:[%s6063_s23 + $0x130] sm:$0xff]  }
  0xdc   : > { %v5326_v20 = vld [vmem:[%s6063_s23 + $0x1e0] sm:$0xff]   ;;  %v4451_v25 = vcombine.high %v1429_v16, %v1437_v17  ;;  %v5328_v26 = vld [vmem:[%s6063_s23 + $0x168] sm:$0xff]   ;;  %v4450_v36 = vcombine.low %v1429_v16, %v1437_v17  ;;  %v1367_v2 = vld [vmem:[%s6778_s0 + $0x18] sm:$0xff] }
  0xdd   : > { %4734 = vmatpush3.bf16.msra.mxu0 %v5298_v28  ;;  %v5327_v22 = vld [vmem:[%s6063_s23 + $0x1a0] sm:$0xff]   ;;  %v5329_v27 = vld [vmem:[%s6063_s23 + $0x128] sm:$0xff]   ;;  %v1375_v3 = vld [vmem:[%s6778_s0 + $0x58] sm:$0xff] }
  0xde   : > { %4798 = vmatpush3.bf16.msra.mxu1 %v5299_v29  ;;  %4735 = vmatprep.subr.bf16.mxu0 %v5300_v30  ;;  %v5330_v28 = vld [vmem:[%s6063_s23 + $0x1e8] sm:$0xff]   ;;  %v1444_v30 = vld [vmem:[%s6778_s0 + $0x280] sm:$0xff] }
  0xdf   : > { %4799 = vmatprep.subr.bf16.mxu1 %v5301_v31  ;;  %v5331_v29 = vld [vmem:[%s6063_s23 + $0x1a8] sm:$0xff]   ;;  %v1452_v31 = vld [vmem:[%s6778_s0 + $0x2c0] sm:$0xff] }
  0xe0   : > { %v1484_v57 = vld [vmem:[%s6778_s0 + $0x3c0] sm:$0xff]  ;;  %v1477_v58 = vld [vmem:[%s6778_s0 + $0x388] sm:$0xff] }
  0xe1   : > { %4736 = vmatpush3.bf16.msra.mxu0 %v5302_v32  ;;  %v1445_v32 = vld [vmem:[%s6778_s0 + $0x288] sm:$0xff] }
  0xe2   : > { %4800 = vmatpush3.bf16.msra.mxu1 %v5303_v33  ;;  %4737 = vmatprep.subr.bf16.mxu0 %v5304_v34  ;;  %v1453_v33 = vld [vmem:[%s6778_s0 + $0x2c8] sm:$0xff]  ;;  %v4448_v34 = vcombine.low %v1428_v14, %v1436_v15  ;;  %v5341_v14 = vld [vmem:[%s6063_s23 + $0x200] sm:$0xff]  }
  0xe3   : > { %4801 = vmatprep.subr.bf16.mxu1 %v5305_v37  ;;  %v4465_v37 = vcombine.high %v1444_v30, %v1452_v31  ;;  %v4467_v39 = vcombine.high %v1445_v32, %v1453_v33  ;;  %v4466_v51 = vcombine.low %v1445_v32, %v1453_v33  ;;  %v1485_v59 = vld [vmem:[%s6778_s0 + $0x3c8] sm:$0xff]  ;;  %v5343_v15 = vld [vmem:[%s6063_s23 + $0x280] sm:$0xff]   ;;  %v5351_v33 = vld [vmem:[%s6063_s23 + $0x290] sm:$0xff]  }
  0xe4   : > { %v4498_v5 = vcombine.low %v1477_v58, %v1485_v59 }
  0xe5   : > { %4738 = vmatpush3.bf16.msra.mxu0 %v5306_v40  ;;  %v5334_v40 = vld [vmem:[%s6063_s23 + $0x1f0] sm:$0xff]  }
  0xe6   : > { %4802 = vmatpush3.bf16.msra.mxu1 %v5307_v41  ;;  %4851 = vmatprep.subr.bf16.mxu0 %v5308_v44  ;;  %v5335_v41 = vld [vmem:[%s6063_s23 + $0x1b0] sm:$0xff]   ;;  %v1461_v44 = vld [vmem:[%s6778_s0 + $0x308] sm:$0xff] }
  0xe7   : > { %4915 = vmatprep.subr.bf16.mxu1 %v5310_v47  ;;  %v5337_v47 = vld [vmem:[%s6063_s23 + $0x138] sm:$0xff]  }
  0xe8   : > { %3189 = vmatmul.mubr.bf16.vlgmr.msra.gmra.mrb[0].mxu0 %v4384_v42  ;;  %v1460_v42 = vld [vmem:[%s6778_s0 + $0x300] sm:$0xff] }
  0xe9   : > { %3286 = vmatmul.mubr.bf16.vlgmr.msra.gmra.mrb[0].mxu1 %v4386_v43  ;;  %4852 = vmatpush3.bf16.msra.mxu0 %v5309_v45  ;;  %v1468_v43 = vld [vmem:[%s6778_s0 + $0x340] sm:$0xff]  ;;  %v1469_v45 = vld [vmem:[%s6778_s0 + $0x348] sm:$0xff] }
  0xea   : > { %3196 = vmatprep.mubr.bf16.mxu0 %v4401_v46  ;;  %4916 = vmatpush3.bf16.msra.mxu1 %v5311_v49  ;;  %v5336_v46 = vld [vmem:[%s6063_s23 + $0x178] sm:$0xff]   ;;  %v4464_v49 = vcombine.low %v1444_v30, %v1452_v31  ;;  %v5349_v31 = vld [vmem:[%s6063_s23 + $0x210] sm:$0xff]  }
  0xeb   : > { %3293 = vmatprep.mubr.bf16.mxu1 %v4403_v48  ;;  %4853 = vmatprep.subr.bf16.mxu0 %v5312_v50  ;;  %v5338_v48 = vld [vmem:[%s6063_s23 + $0x1f8] sm:$0xff]  }
  0xec   : > { %4917 = vmatprep.subr.bf16.mxu1 %v5314_v53  ;;  %v5339_v50 = vld [vmem:[%s6063_s23 + $0x1b8] sm:$0xff]   ;;  %v4483_v53 = vcombine.high %v1461_v44, %v1469_v45 }
  0xed   : > { %4854 = vmatpush3.bf16.msra.mxu0 %v5313_v52  ;;  %v4481_v52 = vcombine.high %v1460_v42, %v1468_v43 }
  0xee   : > { %4918 = vmatpush3.bf16.msra.mxu1 %v5315_v55  ;;  %4855 = vmatprep.subr.bf16.mxu0 %v5316_v62  ;;  %v5342_v55 = vld [vmem:[%s6063_s23 + $0x2c0] sm:$0xff]  }
  0xef   : > { %4919 = vmatprep.subr.bf16.mxu1 %v5318_v0  ;;  %v1366_v0 = vld [vmem:[%s6778_s0 + $0x10] sm:$0xff] }
  0xf0   : > { %3197 = vmatmul.mubr.bf16.gmra.mrb[4].mxu0 %v4400_v54  ;;  %v5340_v54 = vld [vmem:[%s6063_s23 + $0x240] sm:$0xff]  }
  0xf1   : > { %3294 = vmatmul.mubr.bf16.gmra.mrb[4].mxu1 %v4402_v56  ;;  %3204 = vmatprep.mubr.bf16.mxu0 %v4417_v60  ;;  %v1476_v56 = vld [vmem:[%s6778_s0 + $0x380] sm:$0xff]  ;;  %v4480_v60 = vcombine.low %v1460_v42, %v1468_v43 }
  0xf2   : > { %3301 = vmatprep.mubr.bf16.mxu1 %v4419_v61  ;;  %4856 = vmatpush3.bf16.msra.mxu0 %v5317_v63  ;;  %v4482_v61 = vcombine.low %v1461_v44, %v1469_v45  ;;  %v4497_v62 = vcombine.high %v1476_v56, %v1484_v57  ;;  %v4499_v63 = vcombine.high %v1477_v58, %v1485_v59  ;;  %v5356_v42 = vld [vmem:[%s6063_s23 + $0x260] sm:$0xff]   ;;  %v5364_v58 = vld [vmem:[%s6063_s23 + $0x270] sm:$0xff]  }
  0xf3   : > { %4920 = vmatpush3.bf16.msra.mxu1 %v5319_v1  ;;  %4857 = vmatprep.subr.bf16.mxu0 %v5320_v7  ;;  %v1374_v1 = vld [vmem:[%s6778_s0 + $0x50] sm:$0xff]  ;;  %v4496_v4 = vcombine.low %v1476_v56, %v1484_v57  ;;  %v4391_v7 = vcombine.high %v1367_v2, %v1375_v3  ;;  %v5358_v44 = vld [vmem:[%s6063_s23 + $0x2e0] sm:$0xff]   ;;  %v5361_v56 = vld [vmem:[%s6063_s23 + $0x228] sm:$0xff]  }
  0xf4   : > { %4921 = vmatprep.subr.bf16.mxu1 %v5322_v12  ;;  %v1391_v12 = vld [vmem:[%s6778_s0 + $0xd8] sm:$0xff]  ;;  %v5363_v57 = vld [vmem:[%s6063_s23 + $0x2a8] sm:$0xff]  }
  0xf6   : > { %4858 = vmatpush3.bf16.msra.mxu0 %v5321_v10  ;;  %v1383_v10 = vld [vmem:[%s6778_s0 + $0x98] sm:$0xff] }
  0xf7   : > { %4922 = vmatpush3.bf16.msra.mxu1 %v5323_v13  ;;  %4859 = vmatprep.subr.bf16.mxu0 %v5324_v18  ;;  %v4390_v13 = vcombine.low %v1367_v2, %v1375_v3  ;;  %v4407_v17 = vcombine.high %v1383_v10, %v1391_v12  ;;  %v5344_v18 = vld [vmem:[%s6063_s23 + $0x248] sm:$0xff]   ;;  %v5368_v2 = vld [vmem:[%s6063_s23 + $0x278] sm:$0xff]   ;;  %v1446_v3 = vld [vmem:[%s6778_s0 + $0x290] sm:$0xff] }
  0xf8   : > { %3205 = vmatmul.mubr.bf16.gmra.mrb[8].mxu0 %v4416_v6  ;;  %4923 = vmatprep.subr.bf16.mxu1 %v5326_v20  ;;  %v4389_v6 = vcombine.high %v1366_v0, %v1374_v1  ;;  %v5346_v20 = vld [vmem:[%s6063_s23 + $0x2c8] sm:$0xff]  }
  0xf9   : > { %3302 = vmatmul.mubr.bf16.gmra.mrb[8].mxu1 %v4418_v8  ;;  %3212 = vmatprep.mubr.bf16.mxu0 %v4433_v9  ;;  %v1382_v8 = vld [vmem:[%s6778_s0 + $0x90] sm:$0xff] }
  0xfa   : > { %3309 = vmatprep.mubr.bf16.mxu1 %v4435_v11  ;;  %4860 = vmatpush3.bf16.msra.mxu0 %v5325_v19  ;;  %v1390_v9 = vld [vmem:[%s6778_s0 + $0xd0] sm:$0xff]  ;;  %v4388_v11 = vcombine.low %v1366_v0, %v1374_v1  ;;  %v5345_v19 = vld [vmem:[%s6063_s23 + $0x208] sm:$0xff]  }
  0xfb   : > { %4924 = vmatpush3.bf16.msra.mxu1 %v5327_v22  ;;  %4861 = vmatprep.subr.bf16.mxu0 %v5328_v26  ;;  %v4405_v16 = vcombine.high %v1382_v8, %v1390_v9  ;;  %v1398_v22 = vld [vmem:[%s6778_s0 + $0x110] sm:$0xff] }
  0xfc   : > { %4925 = vmatprep.subr.bf16.mxu1 %v5330_v28  ;;  %v5348_v26 = vld [vmem:[%s6063_s23 + $0x250] sm:$0xff]   ;;  %v4404_v28 = vcombine.low %v1382_v8, %v1390_v9  ;;  %v5369_v8 = vld [vmem:[%s6063_s23 + $0x238] sm:$0xff]  }
  0xfd   : > { %v5367_v1 = vld [vmem:[%s6063_s23 + $0x2b0] sm:$0xff]   ;;  %v5371_v9 = vld [vmem:[%s6063_s23 + $0x2b8] sm:$0xff]  }
  0xfe   : > { %4862 = vmatpush3.bf16.msra.mxu0 %v5329_v27  ;;  %v5350_v27 = vld [vmem:[%s6063_s23 + $0x2d0] sm:$0xff]  }
  0xff   : > { %4926 = vmatpush3.bf16.msra.mxu1 %v5331_v29  ;;  %4863 = vmatprep.subr.bf16.mxu0 %v5332_v35  ;;  %v4406_v29 = vcombine.low %v1383_v10, %v1391_v12  ;;  %v1414_v35 = vld [vmem:[%s6778_s0 + $0x190] sm:$0xff]  ;;  %v5372_v10 = vld [vmem:[%s6063_s23 + $0x340] sm:$0xff]  }
 0x100   : > { %3213 = vmatmul.mubr.bf16.gmra.mrb[12].mxu0 %v4432_v21  ;;  %4927 = vmatprep.subr.bf16.mxu1 %v5334_v40  ;;  %v5347_v21 = vld [vmem:[%s6063_s23 + $0x288] sm:$0xff]   ;;  %v5353_v40 = vld [vmem:[%s6063_s23 + $0x218] sm:$0xff]   ;;  %v5374_v12 = vld [vmem:[%s6063_s23 + $0x3c0] sm:$0xff]  }
 0x101   : > { %3310 = vmatmul.mubr.bf16.gmra.mrb[12].mxu1 %v4434_v23  ;;  %3220 = vmatprep.mubr.bf16.mxu0 %v4449_v24  ;;  %v1406_v23 = vld [vmem:[%s6778_s0 + $0x150] sm:$0xff]  ;;  %v1399_v24 = vld [vmem:[%s6778_s0 + $0x118] sm:$0xff] }
 0x102   : > { %3317 = vmatprep.mubr.bf16.mxu1 %v4451_v25  ;;  %4864 = vmatpush3.bf16.msra.mxu0 %v5333_v38  ;;  %v1407_v25 = vld [vmem:[%s6778_s0 + $0x158] sm:$0xff]  ;;  %v4421_v30 = vcombine.high %v1398_v22, %v1406_v23  ;;  %v4420_v43 = vcombine.low %v1398_v22, %v1406_v23 }
 0x103   : > { %4928 = vmatpush3.bf16.msra.mxu1 %v5335_v41  ;;  %4865 = vmatprep.subr.bf16.mxu0 %v5336_v46  ;;  %v4423_v32 = vcombine.high %v1399_v24, %v1407_v25  ;;  %v1415_v38 = vld [vmem:[%s6778_s0 + $0x198] sm:$0xff]  ;;  %v4422_v45 = vcombine.low %v1399_v24, %v1407_v25  ;;  %v1478_v24 = vld [vmem:[%s6778_s0 + $0x390] sm:$0xff] }
 0x104   : > { %4929 = vmatprep.subr.bf16.mxu1 %v5338_v48  ;;  %v5355_v41 = vld [vmem:[%s6063_s23 + $0x298] sm:$0xff]   ;;  %v5357_v48 = vld [vmem:[%s6063_s23 + $0x220] sm:$0xff]   ;;  %v1486_v25 = vld [vmem:[%s6778_s0 + $0x3d0] sm:$0xff] }
 0x106   : > { %4866 = vmatpush3.bf16.msra.mxu0 %v5337_v47 }
 0x107   : > { %4930 = vmatpush3.bf16.msra.mxu1 %v5339_v50  ;;  %4979 = vmatprep.subr.bf16.mxu0 %v5340_v54  ;;  %v5360_v50 = vld [vmem:[%s6063_s23 + $0x268] sm:$0xff]   ;;  %v1431_v54 = vld [vmem:[%s6778_s0 + $0x218] sm:$0xff] }
 0x108   : > { %3221 = vmatmul.mubr.bf16.gmra.mrb[16].mxu0 %v4448_v34  ;;  %5043 = vmatprep.subr.bf16.mxu1 %v5342_v55  ;;  %v5352_v34 = vld [vmem:[%s6063_s23 + $0x258] sm:$0xff]  }
 0x109   : > { %3318 = vmatmul.mubr.bf16.gmra.mrb[16].mxu1 %v4450_v36  ;;  %3228 = vmatprep.mubr.bf16.mxu0 %v4465_v37  ;;  %v1422_v36 = vld [vmem:[%s6778_s0 + $0x1d0] sm:$0xff]  ;;  %v5354_v37 = vld [vmem:[%s6063_s23 + $0x2d8] sm:$0xff]  }
 0x10a   : > { %3325 = vmatprep.mubr.bf16.mxu1 %v4467_v39  ;;  %v1423_v39 = vld [vmem:[%s6778_s0 + $0x1d8] sm:$0xff]  ;;  %v4437_v46 = vcombine.high %v1414_v35, %v1422_v36  ;;  %v4436_v59 = vcombine.low %v1414_v35, %v1422_v36  ;;  %v1377_v35 = vld [vmem:[%s6778_s0 + $0x68] sm:$0xff]  ;;  %v4500_v36 = vcombine.low %v1478_v24, %v1486_v25 }
 0x10b   : > { %v4439_v47 = vcombine.high %v1415_v38, %v1423_v39  ;;  %v1439_v55 = vld [vmem:[%s6778_s0 + $0x258] sm:$0xff] }
 0x10c   : > { %v4455_v0 = vcombine.high %v1431_v54, %v1439_v55 }
 0x110   : > { %3229 = vmatmul.mubr.bf16.gmra.mrb[20].mxu0 %v4464_v49  ;;  %v5359_v49 = vld [vmem:[%s6063_s23 + $0x2a0] sm:$0xff]  }
 0x111   : > { %3326 = vmatmul.mubr.bf16.gmra.mrb[20].mxu1 %v4466_v51  ;;  %3236 = vmatprep.mubr.bf16.mxu0 %v4481_v52  ;;  %v1430_v51 = vld [vmem:[%s6778_s0 + $0x210] sm:$0xff] }
 0x112   : > { %3333 = vmatprep.mubr.bf16.mxu1 %v4483_v53  ;;  %v1438_v52 = vld [vmem:[%s6778_s0 + $0x250] sm:$0xff]  ;;  %v5362_v53 = vld [vmem:[%s6063_s23 + $0x2e8] sm:$0xff]  }
 0x118   : > { %3237 = vmatmul.mubr.bf16.gmra.mrb[24].mxu0 %v4480_v60  ;;  %v5366_v60 = vld [vmem:[%s6063_s23 + $0x2f0] sm:$0xff]  }
 0x119   : > { %3334 = vmatmul.mubr.bf16.gmra.mrb[24].mxu1 %v4482_v61  ;;  %3244 = vmatprep.mubr.bf16.mxu0 %v4497_v62  ;;  %v4438_v61 = vcombine.low %v1415_v38, %v1423_v39  ;;  %v4453_v62 = vcombine.high %v1430_v51, %v1438_v52 }
 0x11a   : > { %3341 = vmatprep.mubr.bf16.mxu1 %v4499_v63  ;;  %v5365_v63 = vld [vmem:[%s6063_s23 + $0x230] sm:$0xff]  }
 0x120   : > { %3245 = vmatmul.mubr.bf16.gmra.mrb[28].mxu0 %v4496_v4  ;;  %v1454_v4 = vld [vmem:[%s6778_s0 + $0x2d0] sm:$0xff] }
 0x121   : > { %3342 = vmatmul.mubr.bf16.gmra.mrb[28].mxu1 %v4498_v5  ;;  %3382 = vmatprep.mubr.bf16.mxu0 %v4389_v6  ;;  %v5370_v5 = vld [vmem:[%s6063_s23 + $0x2f8] sm:$0xff]  }
 0x122   : > { %3479 = vmatprep.mubr.bf16.mxu1 %v4391_v7  ;;  %v1447_v6 = vld [vmem:[%s6778_s0 + $0x298] sm:$0xff] }
 0x123   : > { %v1455_v7 = vld [vmem:[%s6778_s0 + $0x2d8] sm:$0xff] }
 0x128   : > { %3383 = vmatmul.mubr.bf16.vlgmr.msra.gmra.mrb[32].mxu0 %v4388_v11  ;;  %v4452_v11 = vcombine.low %v1430_v51, %v1438_v52  ;;  %v5378_v51 = vld [vmem:[%s6063_s23 + $0x3c8] sm:$0xff]  }
 0x129   : > { %3480 = vmatmul.mubr.bf16.vlgmr.msra.gmra.mrb[32].mxu1 %v4390_v13  ;;  %4980 = vmatpush3.bf16.msra.mxu0 %v5341_v14  ;;  %v4454_v13 = vcombine.low %v1431_v54, %v1439_v55  ;;  %v4469_v14 = vcombine.high %v1446_v3, %v1454_v4  ;;  %v5377_v52 = vld [vmem:[%s6063_s23 + $0x308] sm:$0xff]   ;;  %v1400_v54 = vld [vmem:[%s6778_s0 + $0x120] sm:$0xff] }
 0x12a   : > { %5044 = vmatpush3.bf16.msra.mxu1 %v5343_v15  ;;  %3390 = vmatprep.mubr.bf16.mxu0 %v4405_v16  ;;  %v4471_v15 = vcombine.high %v1447_v6, %v1455_v7  ;;  %v1462_v16 = vld [vmem:[%s6778_s0 + $0x310] sm:$0xff]  ;;  %v1408_v55 = vld [vmem:[%s6778_s0 + $0x160] sm:$0xff] }
 0x12b   : > { %3487 = vmatprep.mubr.bf16.mxu1 %v4407_v17  ;;  %4981 = vmatprep.subr.bf16.mxu0 %v5344_v18  ;;  %v1470_v17 = vld [vmem:[%s6778_s0 + $0x350] sm:$0xff]  ;;  %v1463_v18 = vld [vmem:[%s6778_s0 + $0x318] sm:$0xff] }
 0x12c   : > { %5045 = vmatprep.subr.bf16.mxu1 %v5346_v20  ;;  %v4468_v20 = vcombine.low %v1446_v3, %v1454_v4  ;;  %v4485_v22 = vcombine.high %v1462_v16, %v1470_v17  ;;  %v5386_v3 = vld [vmem:[%s6063_s23 + $0x3d8] sm:$0xff]   ;;  %v1416_v4 = vld [vmem:[%s6778_s0 + $0x1a0] sm:$0xff] }
 0x12d   : > { %4982 = vmatpush3.bf16.msra.mxu0 %v5345_v19  ;;  %v1471_v19 = vld [vmem:[%s6778_s0 + $0x358] sm:$0xff] }
 0x12e   : > { %5046 = vmatpush3.bf16.msra.mxu1 %v5347_v21  ;;  %4983 = vmatprep.subr.bf16.mxu0 %v5348_v26  ;;  %v4470_v21 = vcombine.low %v1447_v6, %v1455_v7  ;;  %v4487_v23 = vcombine.high %v1463_v18, %v1471_v19  ;;  %v1479_v26 = vld [vmem:[%s6778_s0 + $0x398] sm:$0xff]  ;;  %v1417_v6 = vld [vmem:[%s6778_s0 + $0x1a8] sm:$0xff] }
 0x12f   : > { %5047 = vmatprep.subr.bf16.mxu1 %v5350_v27  ;;  %v1487_v27 = vld [vmem:[%s6778_s0 + $0x3d8] sm:$0xff] }
 0x130   : > { %3391 = vmatmul.mubr.bf16.gmra.mrb[36].mxu0 %v4404_v28  ;;  %v4484_v28 = vcombine.low %v1462_v16, %v1470_v17  ;;  %v5385_v7 = vld [vmem:[%s6063_s23 + $0x318] sm:$0xff]   ;;  %v5389_v16 = vld [vmem:[%s6063_s23 + $0x320] sm:$0xff]  }
 0x131   : > { %3488 = vmatmul.mubr.bf16.gmra.mrb[36].mxu1 %v4406_v29  ;;  %3398 = vmatprep.mubr.bf16.mxu0 %v4421_v30  ;;  %v4486_v29 = vcombine.low %v1463_v18, %v1471_v19  ;;  %v4501_v30 = vcombine.high %v1478_v24, %v1486_v25  ;;  %v5391_v17 = vld [vmem:[%s6063_s23 + $0x3a0] sm:$0xff]   ;;  %v5392_v18 = vld [vmem:[%s6063_s23 + $0x368] sm:$0xff]  }
 0x132   : > { %3495 = vmatprep.mubr.bf16.mxu1 %v4423_v32  ;;  %4984 = vmatpush3.bf16.msra.mxu0 %v5349_v31  ;;  %v4503_v31 = vcombine.high %v1479_v26, %v1487_v27  ;;  %v1368_v32 = vld [vmem:[%s6778_s0 + $0x20] sm:$0xff]  ;;  %v5394_v19 = vld [vmem:[%s6063_s23 + $0x3e8] sm:$0xff]  }
 0x133   : > { %5048 = vmatpush3.bf16.msra.mxu1 %v5351_v33  ;;  %4985 = vmatprep.subr.bf16.mxu0 %v5352_v34  ;;  %v1376_v33 = vld [vmem:[%s6778_s0 + $0x60] sm:$0xff]  ;;  %v1369_v34 = vld [vmem:[%s6778_s0 + $0x28] sm:$0xff] }
 0x134   : > { %5049 = vmatprep.subr.bf16.mxu1 %v5354_v37  ;;  %v4502_v37 = vcombine.low %v1479_v26, %v1487_v27  ;;  %v4393_v38 = vcombine.high %v1368_v32, %v1376_v33  ;;  %v4395_v39 = vcombine.high %v1369_v34, %v1377_v35  ;;  %v1441_v24 = vld [vmem:[%s6778_s0 + $0x268] sm:$0xff]  ;;  %v5396_v26 = vld [vmem:[%s6063_s23 + $0x370] sm:$0xff]  }
 0x135   : > { %v5395_v25 = vld [vmem:[%s6063_s23 + $0x3a8] sm:$0xff]  }
 0x136   : > { %4986 = vmatpush3.bf16.msra.mxu0 %v5353_v40  ;;  %v1384_v40 = vld [vmem:[%s6778_s0 + $0xa0] sm:$0xff] }
 0x137   : > { %5050 = vmatpush3.bf16.msra.mxu1 %v5355_v41  ;;  %4987 = vmatprep.subr.bf16.mxu0 %v5356_v42  ;;  %v1392_v41 = vld [vmem:[%s6778_s0 + $0xe0] sm:$0xff]  ;;  %v4392_v42 = vcombine.low %v1368_v32, %v1376_v33  ;;  %v5397_v32 = vld [vmem:[%s6063_s23 + $0x330] sm:$0xff]  }
 0x138   : > { %3399 = vmatmul.mubr.bf16.gmra.mrb[40].mxu0 %v4420_v43  ;;  %5051 = vmatprep.subr.bf16.mxu1 %v5358_v44  ;;  %v1385_v43 = vld [vmem:[%s6778_s0 + $0xa8] sm:$0xff]  ;;  %v5399_v33 = vld [vmem:[%s6063_s23 + $0x3b0] sm:$0xff]  }
 0x139   : > { %3496 = vmatmul.mubr.bf16.gmra.mrb[40].mxu1 %v4422_v45  ;;  %3406 = vmatprep.mubr.bf16.mxu0 %v4437_v46  ;;  %v1393_v44 = vld [vmem:[%s6778_s0 + $0xe8] sm:$0xff]  ;;  %v4394_v45 = vcombine.low %v1369_v34, %v1377_v35  ;;  %v5373_v46 = vld [vmem:[%s6063_s23 + $0x300] sm:$0xff]   ;;  %v5400_v34 = vld [vmem:[%s6063_s23 + $0x378] sm:$0xff]  }
 0x13a   : > { %3503 = vmatprep.mubr.bf16.mxu1 %v4439_v47  ;;  %4988 = vmatpush3.bf16.msra.mxu0 %v5357_v48  ;;  %v5375_v47 = vld [vmem:[%s6063_s23 + $0x380] sm:$0xff]   ;;  %v4409_v48 = vcombine.high %v1384_v40, %v1392_v41  ;;  %v5402_v35 = vld [vmem:[%s6063_s23 + $0x3f8] sm:$0xff]  }
 0x13b   : > { %5052 = vmatpush3.bf16.msra.mxu1 %v5359_v49  ;;  %4989 = vmatprep.subr.bf16.mxu0 %v5360_v50  ;;  %v4411_v49 = vcombine.high %v1385_v43, %v1393_v44  ;;  %v5376_v50 = vld [vmem:[%s6063_s23 + $0x348] sm:$0xff]  }
 0x13c   : > { %5053 = vmatprep.subr.bf16.mxu1 %v5362_v53  ;;  %v5379_v53 = vld [vmem:[%s6063_s23 + $0x388] sm:$0xff]  }
 0x13e   : > { %4990 = vmatpush3.bf16.msra.mxu0 %v5361_v56  ;;  %v5380_v56 = vld [vmem:[%s6063_s23 + $0x350] sm:$0xff]  }
 0x13f   : > { %5054 = vmatpush3.bf16.msra.mxu1 %v5363_v57  ;;  %4991 = vmatprep.subr.bf16.mxu0 %v5364_v58  ;;  %v1401_v57 = vld [vmem:[%s6778_s0 + $0x128] sm:$0xff] }
 0x140   : > { %3407 = vmatmul.mubr.bf16.gmra.mrb[44].mxu0 %v4436_v59  ;;  %5055 = vmatprep.subr.bf16.mxu1 %v5366_v60  ;;  %v1409_v58 = vld [vmem:[%s6778_s0 + $0x168] sm:$0xff]  ;;  %v5382_v59 = vld [vmem:[%s6063_s23 + $0x3d0] sm:$0xff]   ;;  %v4408_v60 = vcombine.low %v1384_v40, %v1392_v41  ;;  %v5403_v41 = vld [vmem:[%s6063_s23 + $0x3b8] sm:$0xff]  }
 0x141   : > { %3504 = vmatmul.mubr.bf16.gmra.mrb[44].mxu1 %v4438_v61  ;;  %3414 = vmatprep.mubr.bf16.mxu0 %v4453_v62  ;;  %v4410_v61 = vcombine.low %v1385_v43, %v1393_v44  ;;  %v4425_v62 = vcombine.high %v1400_v54, %v1408_v55  ;;  %v1457_v40 = vld [vmem:[%s6778_s0 + $0x2e8] sm:$0xff] }
 0x142   : > { %3511 = vmatprep.mubr.bf16.mxu1 %v4455_v0  ;;  %4992 = vmatpush3.bf16.msra.mxu0 %v5365_v63  ;;  %v4427_v63 = vcombine.high %v1401_v57, %v1409_v58  ;;  %v5381_v0 = vld [vmem:[%s6063_s23 + $0x310] sm:$0xff]  }
 0x143   : > { %5056 = vmatpush3.bf16.msra.mxu1 %v5367_v1  ;;  %4993 = vmatprep.subr.bf16.mxu0 %v5368_v2  ;;  %v5383_v1 = vld [vmem:[%s6063_s23 + $0x390] sm:$0xff]   ;;  %v5384_v2 = vld [vmem:[%s6063_s23 + $0x358] sm:$0xff]  }
 0x144   : > { %5057 = vmatprep.subr.bf16.mxu1 %v5370_v5  ;;  %v1424_v5 = vld [vmem:[%s6778_s0 + $0x1e0] sm:$0xff] }
 0x145   : > { %v4440_v27 = vcombine.low %v1416_v4, %v1424_v5 }
 0x146   : > { %4994 = vmatpush3.bf16.msra.mxu0 %v5369_v8  ;;  %v1425_v8 = vld [vmem:[%s6778_s0 + $0x1e8] sm:$0xff] }
 0x147   : > { %5058 = vmatpush3.bf16.msra.mxu1 %v5371_v9  ;;  %5107 = vmatprep.subr.bf16.mxu0 %v5372_v10  ;;  %v5387_v9 = vld [vmem:[%s6063_s23 + $0x398] sm:$0xff]   ;;  %v5388_v10 = vld [vmem:[%s6063_s23 + $0x360] sm:$0xff]  }
 0x148   : > { %3415 = vmatmul.mubr.bf16.gmra.mrb[48].mxu0 %v4452_v11  ;;  %5171 = vmatprep.subr.bf16.mxu1 %v5374_v12  ;;  %v4424_v11 = vcombine.low %v1400_v54, %v1408_v55  ;;  %v5390_v12 = vld [vmem:[%s6063_s23 + $0x3e0] sm:$0xff]  }
 0x149   : > { %3512 = vmatmul.mubr.bf16.gmra.mrb[48].mxu1 %v4454_v13  ;;  %3422 = vmatprep.mubr.bf16.mxu0 %v4469_v14  ;;  %v4426_v13 = vcombine.low %v1401_v57, %v1409_v58  ;;  %v4441_v14 = vcombine.high %v1416_v4, %v1424_v5  ;;  %v1480_v54 = vld [vmem:[%s6778_s0 + $0x3a0] sm:$0xff]  ;;  %v1489_v57 = vld [vmem:[%s6778_s0 + $0x3e8] sm:$0xff] }
 0x14a   : > { %3519 = vmatprep.mubr.bf16.mxu1 %v4471_v15  ;;  %v4443_v15 = vcombine.high %v1417_v6, %v1425_v8  ;;  %v1488_v55 = vld [vmem:[%s6778_s0 + $0x3e0] sm:$0xff] }
 0x150   : > { %3423 = vmatmul.mubr.bf16.gmra.mrb[52].mxu0 %v4468_v20  ;;  %v1432_v20 = vld [vmem:[%s6778_s0 + $0x220] sm:$0xff] }
 0x151   : > { %3520 = vmatmul.mubr.bf16.gmra.mrb[52].mxu1 %v4470_v21  ;;  %3430 = vmatprep.mubr.bf16.mxu0 %v4485_v22  ;;  %v1440_v21 = vld [vmem:[%s6778_s0 + $0x260] sm:$0xff]  ;;  %v1433_v22 = vld [vmem:[%s6778_s0 + $0x228] sm:$0xff] }
 0x152   : > { %3527 = vmatprep.mubr.bf16.mxu1 %v4487_v23  ;;  %v5393_v23 = vld [vmem:[%s6063_s23 + $0x328] sm:$0xff]   ;;  %v4458_v43 = vcombine.low %v1433_v22, %v1441_v24 }
 0x158   : > { %3431 = vmatmul.mubr.bf16.gmra.mrb[56].mxu0 %v4484_v28  ;;  %v5398_v28 = vld [vmem:[%s6063_s23 + $0x3f0] sm:$0xff]  }
 0x159   : > { %3528 = vmatmul.mubr.bf16.gmra.mrb[56].mxu1 %v4486_v29  ;;  %3438 = vmatprep.mubr.bf16.mxu0 %v4501_v30  ;;  %v4442_v29 = vcombine.low %v1417_v6, %v1425_v8  ;;  %v4457_v30 = vcombine.high %v1432_v20, %v1440_v21  ;;  %v1386_v6 = vld [vmem:[%s6778_s0 + $0xb0] sm:$0xff]  ;;  %v1387_v8 = vld [vmem:[%s6778_s0 + $0xb8] sm:$0xff] }
 0x15a   : > { %3535 = vmatprep.mubr.bf16.mxu1 %v4503_v31  ;;  %v4459_v31 = vcombine.high %v1433_v22, %v1441_v24  ;;  %v1418_v22 = vld [vmem:[%s6778_s0 + $0x1b0] sm:$0xff]  ;;  %v1419_v24 = vld [vmem:[%s6778_s0 + $0x1b8] sm:$0xff] }
 0x160   : > { %3439 = vmatmul.mubr.bf16.gmra.mrb[60].mxu0 %v4500_v36  ;;  %v1448_v36 = vld [vmem:[%s6778_s0 + $0x2a0] sm:$0xff] }
 0x161   : > { %3536 = vmatmul.mubr.bf16.gmra.mrb[60].mxu1 %v4502_v37  ;;  %3576 = vmatprep.mubr.bf16.mxu0 %v4393_v38  ;;  %v1456_v37 = vld [vmem:[%s6778_s0 + $0x2e0] sm:$0xff]  ;;  %v5401_v38 = vld [vmem:[%s6063_s23 + $0x338] sm:$0xff]   ;;  %s6715_s23 = scalar_lea.vmem [#allocation3], %s4381_s12 }
 0x162   : > { %3673 = vmatprep.mubr.bf16.mxu1 %v4395_v39  ;;  %v1449_v39 = vld [vmem:[%s6778_s0 + $0x2a8] sm:$0xff]  ;;  %v4473_v44 = vcombine.high %v1448_v36, %v1456_v37 }
 0x168   : > { %3577 = vmatmul.mubr.bf16.vlgmr.msra.gmra.mrb[64].mxu0 %v4392_v42  ;;  %v4456_v42 = vcombine.low %v1432_v20, %v1440_v21 }
 0x169   : > { %3674 = vmatmul.mubr.bf16.vlgmr.msra.gmra.mrb[64].mxu1 %v4394_v45  ;;  %5108 = vmatpush3.bf16.msra.mxu0 %v5373_v46  ;;  %v4475_v45 = vcombine.high %v1449_v39, %v1457_v40  ;;  %v1464_v46 = vld [vmem:[%s6778_s0 + $0x320] sm:$0xff] }
 0x16a   : > { %5172 = vmatpush3.bf16.msra.mxu1 %v5375_v47  ;;  %3584 = vmatprep.mubr.bf16.mxu0 %v4409_v48  ;;  %v1472_v47 = vld [vmem:[%s6778_s0 + $0x360] sm:$0xff]  ;;  %v1465_v48 = vld [vmem:[%s6778_s0 + $0x328] sm:$0xff] }
 0x16b   : > { %3681 = vmatprep.mubr.bf16.mxu1 %v4411_v49  ;;  %5109 = vmatprep.subr.bf16.mxu0 %v5376_v50  ;;  %v1473_v49 = vld [vmem:[%s6778_s0 + $0x368] sm:$0xff]  ;;  %v4472_v50 = vcombine.low %v1448_v36, %v1456_v37  ;;  %v4488_v58 = vcombine.low %v1464_v46, %v1472_v47 }
 0x16c   : > { %5173 = vmatprep.subr.bf16.mxu1 %v5378_v51  ;;  %v4474_v51 = vcombine.low %v1449_v39, %v1457_v40 }
 0x16d   : > { %5110 = vmatpush3.bf16.msra.mxu0 %v5377_v52  ;;  %v4489_v52 = vcombine.high %v1464_v46, %v1472_v47 }
 0x16e   : > { %5174 = vmatpush3.bf16.msra.mxu1 %v5379_v53  ;;  %5111 = vmatprep.subr.bf16.mxu0 %v5380_v56  ;;  %v4491_v53 = vcombine.high %v1465_v48, %v1473_v49  ;;  %v1481_v56 = vld [vmem:[%s6778_s0 + $0x3a8] sm:$0xff] }
 0x16f   : > { %5175 = vmatprep.subr.bf16.mxu1 %v5382_v59  ;;  %v4490_v59 = vcombine.low %v1465_v48, %v1473_v49 }
 0x170   : > { %3585 = vmatmul.mubr.bf16.gmra.mrb[68].mxu0 %v4408_v60  ;;  %v4505_v60 = vcombine.high %v1480_v54, %v1488_v55 }
 0x171   : > { %3682 = vmatmul.mubr.bf16.gmra.mrb[68].mxu1 %v4410_v61  ;;  %3592 = vmatprep.mubr.bf16.mxu0 %v4425_v62  ;;  %v4507_v61 = vcombine.high %v1481_v56, %v1489_v57  ;;  %v1370_v62 = vld [vmem:[%s6778_s0 + $0x30] sm:$0xff] }
 0x172   : > { %3689 = vmatprep.mubr.bf16.mxu1 %v4427_v63  ;;  %5112 = vmatpush3.bf16.msra.mxu0 %v5381_v0  ;;  %v1378_v63 = vld [vmem:[%s6778_s0 + $0x70] sm:$0xff]  ;;  %v1371_v0 = vld [vmem:[%s6778_s0 + $0x38] sm:$0xff] }
 0x173   : > { %5176 = vmatpush3.bf16.msra.mxu1 %v5383_v1  ;;  %5113 = vmatprep.subr.bf16.mxu0 %v5384_v2  ;;  %v1379_v1 = vld [vmem:[%s6778_s0 + $0x78] sm:$0xff]  ;;  %v4504_v2 = vcombine.low %v1480_v54, %v1488_v55  ;;  %v4397_v4 = vcombine.high %v1370_v62, %v1378_v63 }
 0x174   : > { %5177 = vmatprep.subr.bf16.mxu1 %v5386_v3  ;;  %v4506_v3 = vcombine.low %v1481_v56, %v1489_v57  ;;  %v4399_v5 = vcombine.high %v1371_v0, %v1379_v1  ;;  %v1451_v55 = vld [vmem:[%s6778_s0 + $0x2b8] sm:$0xff] }
 0x175   : > { %v1459_v56 = vld [vmem:[%s6778_s0 + $0x2f8] sm:$0xff] }
 0x176   : > { %5114 = vmatpush3.bf16.msra.mxu0 %v5385_v7  ;;  %v1394_v7 = vld [vmem:[%s6778_s0 + $0xf0] sm:$0xff] }
 0x177   : > { %5178 = vmatpush3.bf16.msra.mxu1 %v5387_v9  ;;  %5115 = vmatprep.subr.bf16.mxu0 %v5388_v10  ;;  %v1395_v9 = vld [vmem:[%s6778_s0 + $0xf8] sm:$0xff]  ;;  %v4396_v10 = vcombine.low %v1370_v62, %v1378_v63 }
 0x178   : > { %3593 = vmatmul.mubr.bf16.gmra.mrb[72].mxu0 %v4424_v11  ;;  %5179 = vmatprep.subr.bf16.mxu1 %v5390_v12  ;;  %v4398_v11 = vcombine.low %v1371_v0, %v1379_v1  ;;  %v4413_v12 = vcombine.high %v1386_v6, %v1394_v7 }
 0x179   : > { %3690 = vmatmul.mubr.bf16.gmra.mrb[72].mxu1 %v4426_v13  ;;  %3600 = vmatprep.mubr.bf16.mxu0 %v4441_v14  ;;  %v4415_v13 = vcombine.high %v1387_v8, %v1395_v9  ;;  %v1402_v14 = vld [vmem:[%s6778_s0 + $0x130] sm:$0xff] }
 0x17a   : > { %3697 = vmatprep.mubr.bf16.mxu1 %v4443_v15  ;;  %5116 = vmatpush3.bf16.msra.mxu0 %v5389_v16  ;;  %v1410_v15 = vld [vmem:[%s6778_s0 + $0x170] sm:$0xff]  ;;  %v1403_v16 = vld [vmem:[%s6778_s0 + $0x138] sm:$0xff] }
 0x17b   : > { %5180 = vmatpush3.bf16.msra.mxu1 %v5391_v17  ;;  %5117 = vmatprep.subr.bf16.mxu0 %v5392_v18  ;;  %v1411_v17 = vld [vmem:[%s6778_s0 + $0x178] sm:$0xff]  ;;  %v4412_v18 = vcombine.low %v1386_v6, %v1394_v7  ;;  %v4429_v20 = vcombine.high %v1402_v14, %v1410_v15 }
 0x17c   : > { %5181 = vmatprep.subr.bf16.mxu1 %v5394_v19  ;;  %v4414_v19 = vcombine.low %v1387_v8, %v1395_v9  ;;  %v4431_v21 = vcombine.high %v1403_v16, %v1411_v17 }
 0x17e   : > { %5118 = vmatpush3.bf16.msra.mxu0 %v5393_v23  ;;  %v1426_v23 = vld [vmem:[%s6778_s0 + $0x1f0] sm:$0xff] }
 0x17f   : > { %5182 = vmatpush3.bf16.msra.mxu1 %v5395_v25  ;;  %5119 = vmatprep.subr.bf16.mxu0 %v5396_v26  ;;  %v1427_v25 = vld [vmem:[%s6778_s0 + $0x1f8] sm:$0xff]  ;;  %v4428_v26 = vcombine.low %v1402_v14, %v1410_v15  ;;  %v4444_v37 = vcombine.low %v1418_v22, %v1426_v23 }
 0x180   : > { %3601 = vmatmul.mubr.bf16.gmra.mrb[76].mxu0 %v4440_v27  ;;  %5183 = vmatprep.subr.bf16.mxu1 %v5398_v28  ;;  %v4430_v27 = vcombine.low %v1403_v16, %v1411_v17  ;;  %v4445_v28 = vcombine.high %v1418_v22, %v1426_v23  ;;  %v1475_v14 = vld [vmem:[%s6778_s0 + $0x378] sm:$0xff] }
 0x181   : > { %3698 = vmatmul.mubr.bf16.gmra.mrb[76].mxu1 %v4442_v29  ;;  %3608 = vmatprep.mubr.bf16.mxu0 %v4457_v30  ;;  %v4447_v29 = vcombine.high %v1419_v24, %v1427_v25  ;;  %v1434_v30 = vld [vmem:[%s6778_s0 + $0x230] sm:$0xff] }
 0x182   : > { %3705 = vmatprep.mubr.bf16.mxu1 %v4459_v31  ;;  %5120 = vmatpush3.bf16.msra.mxu0 %v5397_v32  ;;  %v1442_v31 = vld [vmem:[%s6778_s0 + $0x270] sm:$0xff] }
 0x183   : > { %5184 = vmatpush3.bf16.msra.mxu1 %v5399_v33  ;;  %5121 = vmatprep.subr.bf16.mxu0 %v5400_v34  ;;  %v1435_v33 = vld [vmem:[%s6778_s0 + $0x238] sm:$0xff] }
 0x184   : > { %5185 = vmatprep.subr.bf16.mxu1 %v5402_v35  ;;  %v1443_v34 = vld [vmem:[%s6778_s0 + $0x278] sm:$0xff] }
 0x185   : > { %v4463_v46 = vcombine.high %v1435_v33, %v1443_v34  ;;  %v4462_v63 = vcombine.low %v1435_v33, %v1443_v34  ;;  %v1490_v33 = vld [vmem:[%s6778_s0 + $0x3f0] sm:$0xff] }
 0x186   : > { %5122 = vmatpush3.bf16.msra.mxu0 %v5401_v38 }
 0x187   : > { %5186 = vmatpush3.bf16.msra.mxu1 %v5403_v41  ;;  %v4446_v41 = vcombine.low %v1419_v24, %v1427_v25 }
 0x188   : > { %3609 = vmatmul.mubr.bf16.gmra.mrb[80].mxu0 %v4456_v42  ;;  %v4461_v42 = vcombine.high %v1434_v30, %v1442_v31 }
 0x189   : > { %3706 = vmatmul.mubr.bf16.gmra.mrb[80].mxu1 %v4458_v43  ;;  %3616 = vmatprep.mubr.bf16.mxu0 %v4473_v44 }
 0x18a   : > { %3713 = vmatprep.mubr.bf16.mxu1 %v4475_v45 }
 0x190   : > { %3617 = vmatmul.mubr.bf16.gmra.mrb[84].mxu0 %v4472_v50 }
 0x191   : > { %3714 = vmatmul.mubr.bf16.gmra.mrb[84].mxu1 %v4474_v51  ;;  %3624 = vmatprep.mubr.bf16.mxu0 %v4489_v52  ;;  %v1450_v52 = vld [vmem:[%s6778_s0 + $0x2b0] sm:$0xff] }
 0x192   : > { %3721 = vmatprep.mubr.bf16.mxu1 %v4491_v53  ;;  %v1458_v53 = vld [vmem:[%s6778_s0 + $0x2f0] sm:$0xff] }
 0x193   : > { %v4477_v0 = vcombine.high %v1450_v52, %v1458_v53  ;;  %v4476_v17 = vcombine.low %v1450_v52, %v1458_v53 }
 0x198   : > { %3625 = vmatmul.mubr.bf16.gmra.mrb[88].mxu0 %v4488_v58 }
 0x199   : > { %3722 = vmatmul.mubr.bf16.gmra.mrb[88].mxu1 %v4490_v59  ;;  %3632 = vmatprep.mubr.bf16.mxu0 %v4505_v60  ;;  %v4460_v59 = vcombine.low %v1434_v30, %v1442_v31 }
 0x19a   : > { %3729 = vmatprep.mubr.bf16.mxu1 %v4507_v61 }
 0x1a0   : > { %3633 = vmatmul.mubr.bf16.gmra.mrb[92].mxu0 %v4504_v2 }
 0x1a1   : > { %3730 = vmatmul.mubr.bf16.gmra.mrb[92].mxu1 %v4506_v3  ;;  %3770 = vmatprep.mubr.bf16.mxu0 %v4397_v4  ;;  %v4479_v4 = vcombine.high %v1451_v55, %v1459_v56 }
 0x1a2   : > { %3867 = vmatprep.mubr.bf16.mxu1 %v4399_v5 }
 0x1a8   : > { %3771 = vmatmul.mubr.bf16.vlgmr.msra.gmra.mrb[96].mxu0 %v4396_v10  ;;  %v1466_v10 = vld [vmem:[%s6778_s0 + $0x330] sm:$0xff] }
 0x1a9   : > { %3868 = vmatmul.mubr.bf16.vlgmr.msra.gmra.mrb[96].mxu1 %v4398_v11  ;;  %3778 = vmatprep.mubr.bf16.mxu0 %v4413_v12  ;;  %v1474_v11 = vld [vmem:[%s6778_s0 + $0x370] sm:$0xff] }
 0x1aa   : > { %3875 = vmatprep.mubr.bf16.mxu1 %v4415_v13  ;;  %v1467_v13 = vld [vmem:[%s6778_s0 + $0x338] sm:$0xff]  ;;  %v4493_v22 = vcombine.high %v1466_v10, %v1474_v11 }
 0x1b0   : > { %3779 = vmatmul.mubr.bf16.gmra.mrb[100].mxu0 %v4412_v18 }
 0x1b1   : > { %3876 = vmatmul.mubr.bf16.gmra.mrb[100].mxu1 %v4414_v19  ;;  %3786 = vmatprep.mubr.bf16.mxu0 %v4429_v20 }
 0x1b2   : > { %3883 = vmatprep.mubr.bf16.mxu1 %v4431_v21  ;;  %v4478_v21 = vcombine.low %v1451_v55, %v1459_v56 }
 0x1b8   : > { %3787 = vmatmul.mubr.bf16.gmra.mrb[104].mxu0 %v4428_v26  ;;  %v4495_v26 = vcombine.high %v1467_v13, %v1475_v14 }
 0x1b9   : > { %3884 = vmatmul.mubr.bf16.gmra.mrb[104].mxu1 %v4430_v27  ;;  %3794 = vmatprep.mubr.bf16.mxu0 %v4445_v28 }
 0x1ba   : > { %3891 = vmatprep.mubr.bf16.mxu1 %v4447_v29 }
 0x1bb   : > { %v4739_v32 = vpop.f32.mrb[0].mxu0 }
 0x1bc   : > { %v4803_v35 = vpop.f32.mrb[0].mxu1  ;;  %v4740_v36 = vpop.f32.mrb[1].mxu0 }
 0x1bd   : > { %v4741_v38 = vadd.f32 %v4740_v36, %v4739_v32  ;;  %v4804_v39 = vpop.f32.mrb[1].mxu1  ;;  %v4742_v40 = vpop.f32.mrb[2].mxu0  ;;  %v1482_v32 = vld [vmem:[%s6778_s0 + $0x3b0] sm:$0xff]  ;;  %v1491_v36 = vld [vmem:[%s6778_s0 + $0x3f8] sm:$0xff] }
 0x1be   : > { %v4805_v43 = vadd.f32 %v4804_v39, %v4803_v35  ;;  %v4806_v44 = vpop.f32.mrb[2].mxu1  ;;  %v4743_v45 = vpop.f32.mrb[3].mxu0  ;;  %v1483_v35 = vld [vmem:[%s6778_s0 + $0x3b8] sm:$0xff]  ;;  %v4492_v39 = vcombine.low %v1466_v10, %v1474_v11 }
 0x1bf   : > { %v4744_v47 = vadd.f32 %v4743_v45, %v4742_v40  ;;  %v4807_v48 = vpop.f32.mrb[3].mxu1 }
 0x1c0   : > { %v6533_v49 = vadd.f32 %v4805_v43, %v4741_v38  ;;  %v4808_v50 = vadd.f32 %v4807_v48, %v4806_v44  ;;  %3795 = vmatmul.mubr.bf16.gmra.mrb[108].mxu0 %v4444_v37  ;;  %v4494_v43 = vcombine.low %v1467_v13, %v1475_v14  ;;  %v4509_v44 = vcombine.high %v1482_v32, %v1490_v33 }
 0x1c1   : > { %3892 = vmatmul.mubr.bf16.gmra.mrb[108].mxu1 %v4446_v41  ;;  %3802 = vmatprep.mubr.bf16.mxu0 %v4461_v42  ;;  %v4511_v48 = vcombine.high %v1483_v35, %v1491_v36 }
 0x1c2   : > { %v6535_v51 = vadd.f32 %v4808_v50, %v4744_v47  ;;  %3899 = vmatprep.mubr.bf16.mxu1 %v4463_v46 }
 0x1c3   : > { %v4745_v54 = vpop.f32.mrb[4].mxu0 }
 0x1c4   : > { %v4809_v57 = vpop.f32.mrb[4].mxu1  ;;  %v4746_v58 = vpop.f32.mrb[5].mxu0 }
 0x1c5   : > { %v4747_v60 = vadd.f32 %v4746_v58, %v4745_v54  ;;  %v4810_v61 = vpop.f32.mrb[5].mxu1  ;;  %v4748_v62 = vpop.f32.mrb[6].mxu0 }
 0x1c6   : > { %v4811_v1 = vadd.f32 %v4810_v61, %v4809_v57  ;;  %v4812_v2 = vpop.f32.mrb[6].mxu1  ;;  %v4749_v3 = vpop.f32.mrb[7].mxu0 }
 0x1c7   : > { %v4750_v5 = vadd.f32 %v4749_v3, %v4748_v62  ;;  %v4813_v6 = vpop.f32.mrb[7].mxu1 }
 0x1c8   : > { %v6549_v7 = vadd.f32 %v4811_v1, %v4747_v60  ;;  %v4814_v8 = vadd.f32 %v4813_v6, %v4812_v2  ;;  %3803 = vmatmul.mubr.bf16.gmra.mrb[112].mxu0 %v4460_v59  ;;  %v4508_v59 = vcombine.low %v1482_v32, %v1490_v33 }
 0x1c9   : > { %3900 = vmatmul.mubr.bf16.gmra.mrb[112].mxu1 %v4462_v63  ;;  %3810 = vmatprep.mubr.bf16.mxu0 %v4477_v0  ;;  %v4510_v63 = vcombine.low %v1483_v35, %v1491_v36 }
 0x1ca   : > { %v6551_v9 = vadd.f32 %v4814_v8, %v4750_v5  ;;  %3907 = vmatprep.mubr.bf16.mxu1 %v4479_v4 }
 0x1cb   : > { %v4751_v12 = vpop.f32.mrb[8].mxu0 }
 0x1cc   : > { %v4815_v15 = vpop.f32.mrb[8].mxu1  ;;  %v4752_v16 = vpop.f32.mrb[9].mxu0 }
 0x1cd   : > { %v4753_v18 = vadd.f32 %v4752_v16, %v4751_v12  ;;  %v4816_v19 = vpop.f32.mrb[9].mxu1  ;;  %v4754_v20 = vpop.f32.mrb[10].mxu0 }
 0x1ce   : > { %v4817_v23 = vadd.f32 %v4816_v19, %v4815_v15  ;;  %v4818_v24 = vpop.f32.mrb[10].mxu1  ;;  %v4755_v25 = vpop.f32.mrb[11].mxu0 }
 0x1cf   : > { %v4756_v27 = vadd.f32 %v4755_v25, %v4754_v20  ;;  %v4819_v28 = vpop.f32.mrb[11].mxu1 }
 0x1d0   : > { %v6565_v29 = vadd.f32 %v4817_v23, %v4753_v18  ;;  %v4820_v30 = vadd.f32 %v4819_v28, %v4818_v24  ;;  %3811 = vmatmul.mubr.bf16.gmra.mrb[116].mxu0 %v4476_v17 }
 0x1d1   : > { %3908 = vmatmul.mubr.bf16.gmra.mrb[116].mxu1 %v4478_v21  ;;  %3818 = vmatprep.mubr.bf16.mxu0 %v4493_v22 }
 0x1d2   : > { %v6567_v31 = vadd.f32 %v4820_v30, %v4756_v27  ;;  %3915 = vmatprep.mubr.bf16.mxu1 %v4495_v26 }
 0x1d3   : > { %v4757_v34 = vpop.f32.mrb[12].mxu0 }
 0x1d4   : > { %v4821_v37 = vpop.f32.mrb[12].mxu1  ;;  %v4758_v38 = vpop.f32.mrb[13].mxu0 }
 0x1d5   : > { %v4759_v40 = vadd.f32 %v4758_v38, %v4757_v34  ;;  %v4822_v41 = vpop.f32.mrb[13].mxu1  ;;  %v4760_v42 = vpop.f32.mrb[14].mxu0 }
 0x1d6   : > { %v4823_v45 = vadd.f32 %v4822_v41, %v4821_v37  ;;  %v4824_v46 = vpop.f32.mrb[14].mxu1  ;;  %v4761_v47 = vpop.f32.mrb[15].mxu0 }
 0x1d7   : > { %v4762_v50 = vadd.f32 %v4761_v47, %v4760_v42  ;;  %v4825_v52 = vpop.f32.mrb[15].mxu1 }
 0x1d8   : > { %v6581_v53 = vadd.f32 %v4823_v45, %v4759_v40  ;;  %v4826_v54 = vadd.f32 %v4825_v52, %v4824_v46  ;;  %3819 = vmatmul.mubr.bf16.gmra.mrb[120].mxu0 %v4492_v39 }
 0x1d9   : > { %3916 = vmatmul.mubr.bf16.gmra.mrb[120].mxu1 %v4494_v43  ;;  %3826 = vmatprep.mubr.bf16.mxu0 %v4509_v44 }
 0x1da   : > { %v6583_v55 = vadd.f32 %v4826_v54, %v4762_v50  ;;  %3923 = vmatprep.mubr.bf16.mxu1 %v4511_v48 }
 0x1db   : > { %v4763_v56 = vpop.f32.mrb[16].mxu0 }
 0x1dc   : > { %v4827_v57 = vpop.f32.mrb[16].mxu1  ;;  %v4764_v58 = vpop.f32.mrb[17].mxu0 }
 0x1dd   : > { %v4765_v60 = vadd.f32 %v4764_v58, %v4763_v56  ;;  %v4828_v61 = vpop.f32.mrb[17].mxu1  ;;  %v4766_v62 = vpop.f32.mrb[18].mxu0 }
 0x1de   : > { %v4829_v0 = vadd.f32 %v4828_v61, %v4827_v57  ;;  %v4830_v1 = vpop.f32.mrb[18].mxu1  ;;  %v4767_v2 = vpop.f32.mrb[19].mxu0 }
 0x1df   : > { %v4768_v3 = vadd.f32 %v4767_v2, %v4766_v62  ;;  %v4831_v4 = vpop.f32.mrb[19].mxu1 }
 0x1e0   : > { %v6585_v5 = vadd.f32 %v4829_v0, %v4765_v60  ;;  %v4832_v6 = vadd.f32 %v4831_v4, %v4830_v1  ;;  %3827 = vmatmul.mubr.bf16.gmra.mrb[124].mxu0 %v4508_v59 }
 0x1e1   : > { %3924 = vmatmul.mubr.bf16.gmra.mrb[124].mxu1 %v4510_v63 }
 0x1e2   : > { %v6587_v8 = vadd.f32 %v4832_v6, %v4768_v3 }
 0x1e3   : > { %v4769_v10 = vpop.f32.mrb[20].mxu0 }
 0x1e4   : > { %v4833_v11 = vpop.f32.mrb[20].mxu1  ;;  %v4770_v12 = vpop.f32.mrb[21].mxu0 }
 0x1e5   : > { %v4771_v13 = vadd.f32 %v4770_v12, %v4769_v10  ;;  %v4834_v14 = vpop.f32.mrb[21].mxu1  ;;  %v4772_v15 = vpop.f32.mrb[22].mxu0 }
 0x1e6   : > { %v4835_v16 = vadd.f32 %v4834_v14, %v4833_v11  ;;  %v4836_v17 = vpop.f32.mrb[22].mxu1  ;;  %v4773_v18 = vpop.f32.mrb[23].mxu0 }
 0x1e7   : > { %v4774_v19 = vadd.f32 %v4773_v18, %v4772_v15  ;;  %v4837_v20 = vpop.f32.mrb[23].mxu1 }
 0x1e8   : > { %v6589_v21 = vadd.f32 %v4835_v16, %v4771_v13  ;;  %v4838_v22 = vadd.f32 %v4837_v20, %v4836_v17 }
 0x1ea   : > { %v6591_v23 = vadd.f32 %v4838_v22, %v4774_v19 }
 0x1eb   : > { %v4775_v24 = vpop.f32.mrb[24].mxu0 }
 0x1ec   : > { %v4839_v25 = vpop.f32.mrb[24].mxu1  ;;  %v4776_v26 = vpop.f32.mrb[25].mxu0 }
 0x1ed   : > { %v4777_v27 = vadd.f32 %v4776_v26, %v4775_v24  ;;  %v4840_v28 = vpop.f32.mrb[25].mxu1  ;;  %v4778_v30 = vpop.f32.mrb[26].mxu0 }
 0x1ee   : > { %v4841_v32 = vadd.f32 %v4840_v28, %v4839_v25  ;;  %v4842_v33 = vpop.f32.mrb[26].mxu1  ;;  %v4779_v34 = vpop.f32.mrb[27].mxu0 }
 0x1ef   : > { %v4780_v35 = vadd.f32 %v4779_v34, %v4778_v30  ;;  %v4843_v36 = vpop.f32.mrb[27].mxu1 }
 0x1f0   : > { %v6593_v37 = vadd.f32 %v4841_v32, %v4777_v27  ;;  %v4844_v38 = vadd.f32 %v4843_v36, %v4842_v33 }
 0x1f2   : > { %v6595_v39 = vadd.f32 %v4844_v38, %v4780_v35 }
 0x1f3   : > { %v4781_v40 = vpop.f32.mrb[28].mxu0 }
 0x1f4   : > { %v4845_v41 = vpop.f32.mrb[28].mxu1  ;;  %v4782_v42 = vpop.f32.mrb[29].mxu0 }
 0x1f5   : > { %v4783_v43 = vadd.f32 %v4782_v42, %v4781_v40  ;;  %v4846_v44 = vpop.f32.mrb[29].mxu1  ;;  %v4784_v45 = vpop.f32.mrb[30].mxu0 }
 0x1f6   : > { %v4847_v46 = vadd.f32 %v4846_v44, %v4845_v41  ;;  %v4848_v47 = vpop.f32.mrb[30].mxu1  ;;  %v4785_v48 = vpop.f32.mrb[31].mxu0 }
 0x1f7   : > { %v4786_v50 = vadd.f32 %v4785_v48, %v4784_v45  ;;  %v4849_v52 = vpop.f32.mrb[31].mxu1 }
 0x1f8   : > { %v6597_v54 = vadd.f32 %v4847_v46, %v4783_v43  ;;  %v4850_v56 = vadd.f32 %v4849_v52, %v4848_v47 }
 0x1fa   : > { %v6599_v57 = vadd.f32 %v4850_v56, %v4786_v50 }
 0x1fb   : > { %v4867_v58 = vpop.f32.mrb[32].mxu0 }
 0x1fc   : > { %v4931_v59 = vpop.f32.mrb[32].mxu1  ;;  %v4868_v60 = vpop.f32.mrb[33].mxu0 }
 0x1fd   : > { %v4869_v61 = vadd.f32 %v4868_v60, %v4867_v58  ;;  %v4932_v62 = vpop.f32.mrb[33].mxu1  ;;  %v4870_v63 = vpop.f32.mrb[34].mxu0 }
 0x1fe   : > { %v4933_v0 = vadd.f32 %v4932_v62, %v4931_v59  ;;  %v4934_v1 = vpop.f32.mrb[34].mxu1  ;;  %v4871_v2 = vpop.f32.mrb[35].mxu0 }
 0x1ff   : > { %v3385_v3 = vadd.f32 %v4869_v61, %v6533_v49  ;;  %v4872_v4 = vadd.f32 %v4871_v2, %v4870_v63  ;;  %v4935_v6 = vpop.f32.mrb[35].mxu1 }
 0x200   : > { %v4936_v10 = vadd.f32 %v4935_v6, %v4934_v1 }
 0x201   : > { %v6602_v11 = vadd.f32 %v4933_v0, %v3385_v3  ;;  %v3388_v12 = vadd.f32 %v4872_v4, %v6535_v51 }
 0x203   : > { %v6605_v13 = vadd.f32 %v4936_v10, %v3388_v12  ;;  %v4873_v14 = vpop.f32.mrb[36].mxu0 }
 0x204   : > { %v4937_v15 = vpop.f32.mrb[36].mxu1  ;;  %v4874_v16 = vpop.f32.mrb[37].mxu0 }
 0x205   : > { %v4875_v17 = vadd.f32 %v4874_v16, %v4873_v14  ;;  %v4938_v18 = vpop.f32.mrb[37].mxu1  ;;  %v4876_v19 = vpop.f32.mrb[38].mxu0 }
 0x206   : > { %v4939_v20 = vadd.f32 %v4938_v18, %v4937_v15  ;;  %v4940_v22 = vpop.f32.mrb[38].mxu1  ;;  %v4877_v24 = vpop.f32.mrb[39].mxu0 }
 0x207   : > { %v3393_v49 = vadd.f32 %v4875_v17, %v6549_v7  ;;  %v4878_v25 = vadd.f32 %v4877_v24, %v4876_v19  ;;  %v4941_v26 = vpop.f32.mrb[39].mxu1 }
 0x208   : > { %v4942_v27 = vadd.f32 %v4941_v26, %v4940_v22 }
 0x209   : > { %v6608_v28 = vadd.f32 %v4939_v20, %v3393_v49  ;;  %v3396_v51 = vadd.f32 %v4878_v25, %v6551_v9 }
 0x20b   : > { %v6611_v30 = vadd.f32 %v4942_v27, %v3396_v51  ;;  %v4879_v32 = vpop.f32.mrb[40].mxu0 }
 0x20c   : > { %v4943_v33 = vpop.f32.mrb[40].mxu1  ;;  %v4880_v34 = vpop.f32.mrb[41].mxu0 }
 0x20d   : > { %v4881_v35 = vadd.f32 %v4880_v34, %v4879_v32  ;;  %v4944_v36 = vpop.f32.mrb[41].mxu1  ;;  %v4882_v38 = vpop.f32.mrb[42].mxu0 }
 0x20e   : > { %v4945_v40 = vadd.f32 %v4944_v36, %v4943_v33  ;;  %v4946_v41 = vpop.f32.mrb[42].mxu1  ;;  %v4883_v42 = vpop.f32.mrb[43].mxu0 }
 0x20f   : > { %v3401_v7 = vadd.f32 %v4881_v35, %v6565_v29  ;;  %v4884_v43 = vadd.f32 %v4883_v42, %v4882_v38  ;;  %v4947_v44 = vpop.f32.mrb[43].mxu1 }
 0x210   : > { %v4948_v45 = vadd.f32 %v4947_v44, %v4946_v41 }
 0x211   : > { %v6614_v46 = vadd.f32 %v4945_v40, %v3401_v7  ;;  %v3404_v9 = vadd.f32 %v4884_v43, %v6567_v31 }
 0x213   : > { %v6617_v47 = vadd.f32 %v4948_v45, %v3404_v9  ;;  %v4885_v48 = vpop.f32.mrb[44].mxu0 }
 0x214   : > { %v4949_v50 = vpop.f32.mrb[44].mxu1  ;;  %v4886_v52 = vpop.f32.mrb[45].mxu0 }
 0x215   : > { %v4887_v56 = vadd.f32 %v4886_v52, %v4885_v48  ;;  %v4950_v58 = vpop.f32.mrb[45].mxu1  ;;  %v4888_v59 = vpop.f32.mrb[46].mxu0 }
 0x216   : > { %v4951_v60 = vadd.f32 %v4950_v58, %v4949_v50  ;;  %v4952_v61 = vpop.f32.mrb[46].mxu1  ;;  %v4889_v62 = vpop.f32.mrb[47].mxu0 }
 0x217   : > { %v3409_v29 = vadd.f32 %v4887_v56, %v6581_v53  ;;  %v4890_v63 = vadd.f32 %v4889_v62, %v4888_v59  ;;  %v4953_v0 = vpop.f32.mrb[47].mxu1 }
 0x218   : > { %v4954_v1 = vadd.f32 %v4953_v0, %v4952_v61 }
 0x219   : > { %v6620_v2 = vadd.f32 %v4951_v60, %v3409_v29  ;;  %v3412_v31 = vadd.f32 %v4890_v63, %v6583_v55 }
 0x21b   : > { %v6623_v3 = vadd.f32 %v4954_v1, %v3412_v31  ;;  %v4891_v4 = vpop.f32.mrb[48].mxu0 }
 0x21c   : > { %v4955_v6 = vpop.f32.mrb[48].mxu1  ;;  %v4892_v10 = vpop.f32.mrb[49].mxu0 }
 0x21d   : > { %v4893_v12 = vadd.f32 %v4892_v10, %v4891_v4  ;;  %v4956_v14 = vpop.f32.mrb[49].mxu1  ;;  %v4894_v15 = vpop.f32.mrb[50].mxu0 }
 0x21e   : > { %v4957_v16 = vadd.f32 %v4956_v14, %v4955_v6  ;;  %v4958_v17 = vpop.f32.mrb[50].mxu1  ;;  %v4895_v18 = vpop.f32.mrb[51].mxu0 }
 0x21f   : > { %v3417_v53 = vadd.f32 %v4893_v12, %v6585_v5  ;;  %v4896_v19 = vadd.f32 %v4895_v18, %v4894_v15  ;;  %v4959_v20 = vpop.f32.mrb[51].mxu1 }
 0x220   : > { %v4960_v22 = vadd.f32 %v4959_v20, %v4958_v17 }
 0x221   : > { %v6626_v24 = vadd.f32 %v4957_v16, %v3417_v53  ;;  %v3420_v55 = vadd.f32 %v4896_v19, %v6587_v8 }
 0x223   : > { %v6629_v49 = vadd.f32 %v4960_v22, %v3420_v55  ;;  %v4897_v25 = vpop.f32.mrb[52].mxu0 }
 0x224   : > { %v4961_v26 = vpop.f32.mrb[52].mxu1  ;;  %v4898_v27 = vpop.f32.mrb[53].mxu0 }
 0x225   : > { %v4899_v51 = vadd.f32 %v4898_v27, %v4897_v25  ;;  %v4962_v32 = vpop.f32.mrb[53].mxu1  ;;  %v4900_v33 = vpop.f32.mrb[54].mxu0 }
 0x226   : > { %v4963_v34 = vadd.f32 %v4962_v32, %v4961_v26  ;;  %v4964_v35 = vpop.f32.mrb[54].mxu1  ;;  %v4901_v36 = vpop.f32.mrb[55].mxu0 }
 0x227   : > { %v3425_v5 = vadd.f32 %v4899_v51, %v6589_v21  ;;  %v4902_v38 = vadd.f32 %v4901_v36, %v4900_v33  ;;  %v4965_v40 = vpop.f32.mrb[55].mxu1 }
 0x228   : > { %v4966_v41 = vadd.f32 %v4965_v40, %v4964_v35 }
 0x229   : > { %v6632_v42 = vadd.f32 %v4963_v34, %v3425_v5  ;;  %v3428_v8 = vadd.f32 %v4902_v38, %v6591_v23  ;;  %v5444_v38 = vmov 0.0  }
 0x22a   : > { %3932 = vst [vmem:[%s6658_s8] sm:$0xff] %v5444_v38  ;;  %3933 = vst [vmem:[%s6663_s11] sm:$0xff] %v5444_v38 }
 0x22b   : > { %v6635_v7 = vadd.f32 %v4966_v41, %v3428_v8  ;;  %v4903_v43 = vpop.f32.mrb[56].mxu0 }
 0x22c   : > { %v4967_v44 = vpop.f32.mrb[56].mxu1  ;;  %v4904_v45 = vpop.f32.mrb[57].mxu0 }
 0x22d   : > { %v4905_v9 = vadd.f32 %v4904_v45, %v4903_v43  ;;  %v4968_v48 = vpop.f32.mrb[57].mxu1  ;;  %v4906_v50 = vpop.f32.mrb[58].mxu0 }
 0x22e   : > { %v4969_v52 = vadd.f32 %v4968_v48, %v4967_v44  ;;  %v4970_v56 = vpop.f32.mrb[58].mxu1  ;;  %v4907_v58 = vpop.f32.mrb[59].mxu0 }
 0x22f   : > { %v3433_v21 = vadd.f32 %v4905_v9, %v6593_v37  ;;  %v4908_v59 = vadd.f32 %v4907_v58, %v4906_v50  ;;  %v4971_v60 = vpop.f32.mrb[59].mxu1 }
 0x230   : > { %v4972_v61 = vadd.f32 %v4971_v60, %v4970_v56 }
 0x231   : > { %v6638_v62 = vadd.f32 %v4969_v52, %v3433_v21  ;;  %v3436_v23 = vadd.f32 %v4908_v59, %v6595_v39 }
 0x233   : > { %v6641_v29 = vadd.f32 %v4972_v61, %v3436_v23  ;;  %v4909_v63 = vpop.f32.mrb[60].mxu0 }
 0x234   : > { %v4973_v0 = vpop.f32.mrb[60].mxu1  ;;  %v4910_v1 = vpop.f32.mrb[61].mxu0 }
 0x235   : > { %v4911_v31 = vadd.f32 %v4910_v1, %v4909_v63  ;;  %v4974_v4 = vpop.f32.mrb[61].mxu1  ;;  %v4912_v6 = vpop.f32.mrb[62].mxu0 }
 0x236   : > { %v4975_v10 = vadd.f32 %v4974_v4, %v4973_v0  ;;  %v4976_v12 = vpop.f32.mrb[62].mxu1  ;;  %v4913_v14 = vpop.f32.mrb[63].mxu0 }
 0x237   : > { %v3441_v37 = vadd.f32 %v4911_v31, %v6597_v54  ;;  %v4914_v15 = vadd.f32 %v4913_v14, %v4912_v6  ;;  %v4977_v16 = vpop.f32.mrb[63].mxu1 }
 0x238   : > { %v4978_v17 = vadd.f32 %v4977_v16, %v4976_v12 }
 0x239   : > { %v6644_v18 = vadd.f32 %v4975_v10, %v3441_v37  ;;  %v3444_v39 = vadd.f32 %v4914_v15, %v6599_v57 }
 0x23b   : > { %v6647_v53 = vadd.f32 %v4978_v17, %v3444_v39  ;;  %v4995_v19 = vpop.f32.mrb[64].mxu0 }
 0x23c   : > { %v5059_v20 = vpop.f32.mrb[64].mxu1  ;;  %v4996_v22 = vpop.f32.mrb[65].mxu0 }
 0x23d   : > { %v4997_v55 = vadd.f32 %v4996_v22, %v4995_v19  ;;  %v5060_v25 = vpop.f32.mrb[65].mxu1  ;;  %v4998_v26 = vpop.f32.mrb[66].mxu0 }
 0x23e   : > { %v5061_v27 = vadd.f32 %v5060_v25, %v5059_v20  ;;  %v5062_v51 = vpop.f32.mrb[66].mxu1  ;;  %v4999_v54 = vpop.f32.mrb[67].mxu0 }
 0x23f   : > { %v3579_v32 = vadd.f32 %v4997_v55, %v6602_v11  ;;  %v5000_v33 = vadd.f32 %v4999_v54, %v4998_v26  ;;  %v5063_v34 = vpop.f32.mrb[67].mxu1 }
 0x240   : > { %v5064_v35 = vadd.f32 %v5063_v34, %v5062_v51 }
 0x241   : > { %v6652_v36 = vadd.f32 %v5061_v27, %v3579_v32  ;;  %v3582_v57 = vadd.f32 %v5000_v33, %v6605_v13 }
 0x243   : > { %v6665_v11 = vadd.f32 %v5064_v35, %v3582_v57  ;;  %v5001_v5 = vpop.f32.mrb[68].mxu0 }
 0x244   : > { %v5065_v13 = vpop.f32.mrb[68].mxu1  ;;  %v5002_v40 = vpop.f32.mrb[69].mxu0 }
 0x245   : > { %v5003_v41 = vadd.f32 %v5002_v40, %v5001_v5  ;;  %v5066_v8 = vpop.f32.mrb[69].mxu1  ;;  %v5004_v43 = vpop.f32.mrb[70].mxu0 }
 0x246   : > { %v5067_v44 = vadd.f32 %v5066_v8, %v5065_v13  ;;  %v5068_v45 = vpop.f32.mrb[70].mxu1  ;;  %v5005_v9 = vpop.f32.mrb[71].mxu0 }
 0x247   : > { %v3587_v48 = vadd.f32 %v5003_v41, %v6608_v28  ;;  %v5006_v50 = vadd.f32 %v5005_v9, %v5004_v43  ;;  %v5069_v52 = vpop.f32.mrb[71].mxu1 }
 0x248   : > { %v5070_v56 = vadd.f32 %v5069_v52, %v5068_v45 }
 0x249   : > { %v6670_v58 = vadd.f32 %v5067_v44, %v3587_v48  ;;  %v3590_v21 = vadd.f32 %v5006_v50, %v6611_v30 }
 0x24b   : > { %v6673_v59 = vadd.f32 %v5070_v56, %v3590_v21  ;;  %v5007_v60 = vpop.f32.mrb[72].mxu0 }
 0x24c   : > { %v5071_v61 = vpop.f32.mrb[72].mxu1  ;;  %v5008_v23 = vpop.f32.mrb[73].mxu0 }
 0x24d   : > { %v5009_v63 = vadd.f32 %v5008_v23, %v5007_v60  ;;  %v5072_v0 = vpop.f32.mrb[73].mxu1  ;;  %v5010_v1 = vpop.f32.mrb[74].mxu0 }
 0x24e   : > { %v5073_v31 = vadd.f32 %v5072_v0, %v5071_v61  ;;  %v5074_v4 = vpop.f32.mrb[74].mxu1  ;;  %v5011_v6 = vpop.f32.mrb[75].mxu0 }
 0x24f   : > { %v3595_v28 = vadd.f32 %v5009_v63, %v6614_v46  ;;  %v5012_v10 = vadd.f32 %v5011_v6, %v5010_v1  ;;  %v5075_v12 = vpop.f32.mrb[75].mxu1 }
 0x250   : > { %v5076_v14 = vadd.f32 %v5075_v12, %v5074_v4 }
 0x251   : > { %v6676_v37 = vadd.f32 %v5073_v31, %v3595_v28  ;;  %v3598_v30 = vadd.f32 %v5012_v10, %v6617_v47 }
 0x253   : > { %v6679_v15 = vadd.f32 %v5076_v14, %v3598_v30  ;;  %v5013_v16 = vpop.f32.mrb[76].mxu0 }
 0x254   : > { %v5077_v17 = vpop.f32.mrb[76].mxu1  ;;  %v5014_v39 = vpop.f32.mrb[77].mxu0 }
 0x255   : > { %v5015_v19 = vadd.f32 %v5014_v39, %v5013_v16  ;;  %v5078_v20 = vpop.f32.mrb[77].mxu1  ;;  %v5016_v22 = vpop.f32.mrb[78].mxu0 }
 0x256   : > { %v5079_v55 = vadd.f32 %v5078_v20, %v5077_v17  ;;  %v5080_v25 = vpop.f32.mrb[78].mxu1  ;;  %v5017_v26 = vpop.f32.mrb[79].mxu0 }
 0x257   : > { %v3603_v46 = vadd.f32 %v5015_v19, %v6620_v2  ;;  %v5018_v27 = vadd.f32 %v5017_v26, %v5016_v22  ;;  %v5081_v51 = vpop.f32.mrb[79].mxu1 }
 0x258   : > { %v5082_v54 = vadd.f32 %v5081_v51, %v5080_v25 }
 0x259   : > { %v6682_v32 = vadd.f32 %v5079_v55, %v3603_v46  ;;  %v3606_v47 = vadd.f32 %v5018_v27, %v6623_v3 }
 0x25b   : > { %v6685_v33 = vadd.f32 %v5082_v54, %v3606_v47  ;;  %v5019_v34 = vpop.f32.mrb[80].mxu0 }
 0x25c   : > { %v5083_v35 = vpop.f32.mrb[80].mxu1  ;;  %v5020_v57 = vpop.f32.mrb[81].mxu0 }
 0x25d   : > { %v5021_v5 = vadd.f32 %v5020_v57, %v5019_v34  ;;  %v5084_v38 = vpop.f32.mrb[81].mxu1  ;;  %v5022_v13 = vpop.f32.mrb[82].mxu0 }
 0x25e   : > { %v5085_v40 = vadd.f32 %v5084_v38, %v5083_v35  ;;  %v5086_v41 = vpop.f32.mrb[82].mxu1  ;;  %v5023_v8 = vpop.f32.mrb[83].mxu0 }
 0x25f   : > { %v3611_v2 = vadd.f32 %v5021_v5, %v6626_v24  ;;  %v5024_v43 = vadd.f32 %v5023_v8, %v5022_v13  ;;  %v5087_v44 = vpop.f32.mrb[83].mxu1 }
 0x260   : > { %v5088_v45 = vadd.f32 %v5087_v44, %v5086_v41 }
 0x261   : > { %v6688_v9 = vadd.f32 %v5085_v40, %v3611_v2  ;;  %v3614_v3 = vadd.f32 %v5024_v43, %v6629_v49 }
 0x263   : > { %v6691_v48 = vadd.f32 %v5088_v45, %v3614_v3  ;;  %v5025_v50 = vpop.f32.mrb[84].mxu0 }
 0x264   : > { %v5089_v52 = vpop.f32.mrb[84].mxu1  ;;  %v5026_v56 = vpop.f32.mrb[85].mxu0 }
 0x265   : > { %v5027_v21 = vadd.f32 %v5026_v56, %v5025_v50  ;;  %v5090_v60 = vpop.f32.mrb[85].mxu1  ;;  %v5028_v61 = vpop.f32.mrb[86].mxu0 }
 0x266   : > { %v5091_v23 = vadd.f32 %v5090_v60, %v5089_v52  ;;  %v5092_v63 = vpop.f32.mrb[86].mxu1  ;;  %v5029_v0 = vpop.f32.mrb[87].mxu0 }
 0x267   : > { %v3619_v24 = vadd.f32 %v5027_v21, %v6632_v42  ;;  %v5030_v1 = vadd.f32 %v5029_v0, %v5028_v61  ;;  %v5093_v31 = vpop.f32.mrb[87].mxu1 }
 0x268   : > { %v5094_v4 = vadd.f32 %v5093_v31, %v5092_v63 }
 0x269   : > { %v6694_v6 = vadd.f32 %v5091_v23, %v3619_v24  ;;  %v3622_v49 = vadd.f32 %v5030_v1, %v6635_v7 }
 0x26b   : > { %v6697_v28 = vadd.f32 %v5094_v4, %v3622_v49  ;;  %v5031_v10 = vpop.f32.mrb[88].mxu0 }
 0x26c   : > { %v5095_v12 = vpop.f32.mrb[88].mxu1  ;;  %v5032_v14 = vpop.f32.mrb[89].mxu0 }
 0x26d   : > { %v5033_v30 = vadd.f32 %v5032_v14, %v5031_v10  ;;  %v5096_v16 = vpop.f32.mrb[89].mxu1  ;;  %v5034_v17 = vpop.f32.mrb[90].mxu0 }
 0x26e   : > { %v5097_v39 = vadd.f32 %v5096_v16, %v5095_v12  ;;  %v5098_v19 = vpop.f32.mrb[90].mxu1  ;;  %v5035_v20 = vpop.f32.mrb[91].mxu0 }
 0x26f   : > { %v3627_v42 = vadd.f32 %v5033_v30, %v6638_v62  ;;  %v5036_v22 = vadd.f32 %v5035_v20, %v5034_v17  ;;  %v5099_v55 = vpop.f32.mrb[91].mxu1 }
 0x270   : > { %v5100_v25 = vadd.f32 %v5099_v55, %v5098_v19 }
 0x271   : > { %v6700_v26 = vadd.f32 %v5097_v39, %v3627_v42  ;;  %v3630_v7 = vadd.f32 %v5036_v22, %v6641_v29 }
 0x273   : > { %v6703_v46 = vadd.f32 %v5100_v25, %v3630_v7  ;;  %v5037_v27 = vpop.f32.mrb[92].mxu0 }
 0x274   : > { %v5101_v51 = vpop.f32.mrb[92].mxu1  ;;  %v5038_v54 = vpop.f32.mrb[93].mxu0 }
 0x275   : > { %v5039_v47 = vadd.f32 %v5038_v54, %v5037_v27  ;;  %v5102_v34 = vpop.f32.mrb[93].mxu1  ;;  %v5040_v35 = vpop.f32.mrb[94].mxu0 }
 0x276   : > { %v5103_v57 = vadd.f32 %v5102_v34, %v5101_v51  ;;  %v5104_v5 = vpop.f32.mrb[94].mxu1  ;;  %v5041_v38 = vpop.f32.mrb[95].mxu0 }
 0x277   : > { %v3635_v62 = vadd.f32 %v5039_v47, %v6644_v18  ;;  %v5042_v13 = vadd.f32 %v5041_v38, %v5040_v35  ;;  %v5105_v40 = vpop.f32.mrb[95].mxu1 }
 0x278   : > { %v5106_v41 = vadd.f32 %v5105_v40, %v5104_v5 }
 0x279   : > { %v6706_v8 = vadd.f32 %v5103_v57, %v3635_v62  ;;  %v3638_v29 = vadd.f32 %v5042_v13, %v6647_v53 }
 0x27b   : > { %v6709_v2 = vadd.f32 %v5106_v41, %v3638_v29  ;;  %v5123_v43 = vpop.f32.mrb[96].mxu0 }
 0x27c   : > { %v5187_v44 = vpop.f32.mrb[96].mxu1  ;;  %v5124_v45 = vpop.f32.mrb[97].mxu0 }
 0x27d   : > { %v5125_v3 = vadd.f32 %v5124_v45, %v5123_v43  ;;  %v5188_v50 = vpop.f32.mrb[97].mxu1  ;;  %v5126_v52 = vpop.f32.mrb[98].mxu0 }
 0x27e   : > { %v5189_v56 = vadd.f32 %v5188_v50, %v5187_v44  ;;  %v5190_v21 = vpop.f32.mrb[98].mxu1  ;;  %v5127_v60 = vpop.f32.mrb[99].mxu0 }
 0x27f   : > { %v3773_v18 = vadd.f32 %v5125_v3, %v6652_v36  ;;  %v5128_v61 = vadd.f32 %v5127_v60, %v5126_v52  ;;  %v5191_v23 = vpop.f32.mrb[99].mxu1 }
 0x280   : > { %v5192_v63 = vadd.f32 %v5191_v23, %v5190_v21 }
 0x281   : > { %v3870_v0 = vadd.f32 %v5189_v56, %v3773_v18  ;;  %v3776_v53 = vadd.f32 %v5128_v61, %v6665_v11 }
 0x283   : > { %v3873_v24 = vadd.f32 %v5192_v63, %v3776_v53  ;;  %v5129_v1 = vpop.f32.mrb[100].mxu0  ;;  %v3956_v31 = vmul.f32 %v3870_v0, %v3870_v0 }
 0x284   : > { %v5193_v4 = vpop.f32.mrb[100].mxu1  ;;  %v5130_v49 = vpop.f32.mrb[101].mxu0 }
 0x285   : > { %v3934_v10 = vadd.f32 %v3873_v24, %v3870_v0  ;;  %v3957_v12 = vmul.f32 %v3873_v24, %v3873_v24  ;;  %v4679_v14 = vpack.c.bf16 %v3873_v24, %v3870_v0  ;;  %v5131_v30 = vadd.f32 %v5130_v49, %v5129_v1  ;;  %v5194_v16 = vpop.f32.mrb[101].mxu1  ;;  %v5132_v17 = vpop.f32.mrb[102].mxu0 }
 0x286   : > { %v5195_v36 = vadd.f32 %v5194_v16, %v5193_v4  ;;  %v5196_v39 = vpop.f32.mrb[102].mxu1  ;;  %v5133_v19 = vpop.f32.mrb[103].mxu0 }
 0x287   : > { %v3972_v20 = vadd.f32 %v3957_v12, %v3956_v31  ;;  %4680 = vst [vmem:[%s6715_s23] sm:$0xff] %v4679_v14   ;;  %v3781_v11 = vadd.f32 %v5131_v30, %v6670_v58  ;;  %v5134_v42 = vadd.f32 %v5133_v19, %v5132_v17  ;;  %v5197_v22 = vpop.f32.mrb[103].mxu1 }
 0x288   : > { %v5198_v55 = vadd.f32 %v5197_v22, %v5196_v39 }
 0x289   : > { %v3878_v25 = vadd.f32 %v5195_v36, %v3781_v11  ;;  %v3784_v7 = vadd.f32 %v5134_v42, %v6673_v59 }
 0x28b   : > { %v3935_v27 = vadd.f32 %v3934_v10, %v3878_v25  ;;  %v3958_v51 = vmul.f32 %v3878_v25, %v3878_v25  ;;  %v3881_v54 = vadd.f32 %v5198_v55, %v3784_v7  ;;  %v5135_v47 = vpop.f32.mrb[104].mxu0 }
 0x28c   : > { %v5199_v34 = vpop.f32.mrb[104].mxu1  ;;  %v5136_v35 = vpop.f32.mrb[105].mxu0 }
 0x28d   : > { %v3973_v57 = vadd.f32 %v3972_v20, %v3958_v51  ;;  %v3936_v5 = vadd.f32 %v3935_v27, %v3881_v54  ;;  %v3959_v38 = vmul.f32 %v3881_v54, %v3881_v54  ;;  %v4684_v62 = vpack.c.bf16 %v3881_v54, %v3878_v25  ;;  %v5200_v13 = vpop.f32.mrb[105].mxu1  ;;  %v5138_v40 = vpop.f32.mrb[106].mxu0 }
 0x28e   : > { %v5137_v58 = vadd.f32 %v5136_v35, %v5135_v47  ;;  %v5201_v41 = vadd.f32 %v5200_v13, %v5199_v34  ;;  %v5202_v29 = vpop.f32.mrb[106].mxu1  ;;  %v5139_v43 = vpop.f32.mrb[107].mxu0 }
 0x28f   : > { %v3974_v44 = vadd.f32 %v3973_v57, %v3959_v38  ;;  %4716 = vst [vmem:[%s6715_s23 + $0x8] sm:$0xff] %v4684_v62   ;;  %v5140_v59 = vadd.f32 %v5139_v43, %v5138_v40  ;;  %v5203_v45 = vpop.f32.mrb[107].mxu1 }
 0x290   : > { %v3789_v3 = vadd.f32 %v5137_v58, %v6676_v37  ;;  %v5204_v50 = vadd.f32 %v5203_v45, %v5202_v29 }
 0x291   : > { %v3792_v52 = vadd.f32 %v5140_v59, %v6679_v15 }
 0x292   : > { %v3886_v56 = vadd.f32 %v5201_v41, %v3789_v3 }
 0x293   : > { %v3889_v21 = vadd.f32 %v5204_v50, %v3792_v52  ;;  %v5141_v60 = vpop.f32.mrb[108].mxu0 }
 0x294   : > { %v3937_v18 = vadd.f32 %v3936_v5, %v3886_v56  ;;  %v3960_v61 = vmul.f32 %v3886_v56, %v3886_v56  ;;  %v5205_v23 = vpop.f32.mrb[108].mxu1  ;;  %v5142_v63 = vpop.f32.mrb[109].mxu0 }
 0x295   : > { %v3961_v0 = vmul.f32 %v3889_v21, %v3889_v21  ;;  %v4689_v53 = vpack.c.bf16 %v3889_v21, %v3886_v56  ;;  %v5143_v24 = vadd.f32 %v5142_v63, %v5141_v60  ;;  %v5206_v1 = vpop.f32.mrb[109].mxu1  ;;  %v5144_v31 = vpop.f32.mrb[110].mxu0 }
 0x296   : > { %v3975_v4 = vadd.f32 %v3974_v44, %v3960_v61  ;;  %v3938_v49 = vadd.f32 %v3937_v18, %v3889_v21  ;;  %v5207_v10 = vadd.f32 %v5206_v1, %v5205_v23  ;;  %v5208_v37 = vpop.f32.mrb[110].mxu1  ;;  %v5145_v12 = vpop.f32.mrb[111].mxu0 }
 0x297   : > { %4717 = vst [vmem:[%s6715_s23 + $0x10] sm:$0xff] %v4689_v53   ;;  %v3797_v15 = vadd.f32 %v5143_v24, %v6682_v32  ;;  %v5146_v14 = vadd.f32 %v5145_v12, %v5144_v31  ;;  %v5209_v30 = vpop.f32.mrb[111].mxu1 }
 0x298   : > { %v3976_v16 = vadd.f32 %v3975_v4, %v3961_v0  ;;  %v5210_v17 = vadd.f32 %v5209_v30, %v5208_v37 }
 0x299   : > { %v3894_v36 = vadd.f32 %v5207_v10, %v3797_v15  ;;  %v3800_v39 = vadd.f32 %v5146_v14, %v6685_v33 }
 0x29b   : > { %v3939_v19 = vadd.f32 %v3938_v49, %v3894_v36  ;;  %v3962_v20 = vmul.f32 %v3894_v36, %v3894_v36  ;;  %v3897_v11 = vadd.f32 %v5210_v17, %v3800_v39  ;;  %v5147_v42 = vpop.f32.mrb[112].mxu0 }
 0x29c   : > { %v5211_v22 = vpop.f32.mrb[112].mxu1  ;;  %v5148_v55 = vpop.f32.mrb[113].mxu0 }
 0x29d   : > { %v3977_v25 = vadd.f32 %v3976_v16, %v3962_v20  ;;  %v3940_v7 = vadd.f32 %v3939_v19, %v3897_v11  ;;  %v3963_v27 = vmul.f32 %v3897_v11, %v3897_v11  ;;  %v4694_v51 = vpack.c.bf16 %v3897_v11, %v3894_v36  ;;  %v5212_v54 = vpop.f32.mrb[113].mxu1  ;;  %v5150_v32 = vpop.f32.mrb[114].mxu0 }
 0x29e   : > { %v5149_v47 = vadd.f32 %v5148_v55, %v5147_v42  ;;  %v5213_v34 = vadd.f32 %v5212_v54, %v5211_v22  ;;  %v5214_v35 = vpop.f32.mrb[114].mxu1  ;;  %v5151_v57 = vpop.f32.mrb[115].mxu0 }
 0x29f   : > { %v3978_v5 = vadd.f32 %v3977_v25, %v3963_v27  ;;  %4718 = vst [vmem:[%s6715_s23 + $0x18] sm:$0xff] %v4694_v51   ;;  %v5152_v33 = vadd.f32 %v5151_v57, %v5150_v32  ;;  %v5215_v38 = vpop.f32.mrb[115].mxu1 }
 0x2a0   : > { %v3805_v62 = vadd.f32 %v5149_v47, %v6688_v9  ;;  %v5216_v13 = vadd.f32 %v5215_v38, %v5214_v35 }
 0x2a1   : > { %v3808_v40 = vadd.f32 %v5152_v33, %v6691_v48 }
 0x2a2   : > { %v3902_v58 = vadd.f32 %v5213_v34, %v3805_v62 }
 0x2a3   : > { %v3905_v41 = vadd.f32 %v5216_v13, %v3808_v40  ;;  %v5153_v29 = vpop.f32.mrb[116].mxu0 }
 0x2a4   : > { %v3941_v43 = vadd.f32 %v3940_v7, %v3902_v58  ;;  %v3964_v44 = vmul.f32 %v3902_v58, %v3902_v58  ;;  %v5217_v59 = vpop.f32.mrb[116].mxu1  ;;  %v5154_v45 = vpop.f32.mrb[117].mxu0 }
 0x2a5   : > { %v3965_v3 = vmul.f32 %v3905_v41, %v3905_v41  ;;  %v4699_v50 = vpack.c.bf16 %v3905_v41, %v3902_v58  ;;  %v5155_v52 = vadd.f32 %v5154_v45, %v5153_v29  ;;  %v5218_v56 = vpop.f32.mrb[117].mxu1  ;;  %v5156_v21 = vpop.f32.mrb[118].mxu0 }
 0x2a6   : > { %v3979_v60 = vadd.f32 %v3978_v5, %v3964_v44  ;;  %v3942_v18 = vadd.f32 %v3941_v43, %v3905_v41  ;;  %v5219_v61 = vadd.f32 %v5218_v56, %v5217_v59  ;;  %v5220_v9 = vpop.f32.mrb[118].mxu1  ;;  %v5157_v23 = vpop.f32.mrb[119].mxu0 }
 0x2a7   : > { %4719 = vst [vmem:[%s6715_s23 + $0x20] sm:$0xff] %v4699_v50   ;;  %v3813_v48 = vadd.f32 %v5155_v52, %v6694_v6  ;;  %v5158_v63 = vadd.f32 %v5157_v23, %v5156_v21  ;;  %v5221_v0 = vpop.f32.mrb[119].mxu1 }
 0x2a8   : > { %v3980_v53 = vadd.f32 %v3979_v60, %v3965_v3  ;;  %v5222_v24 = vadd.f32 %v5221_v0, %v5220_v9 }
 0x2a9   : > { %v3910_v1 = vadd.f32 %v5219_v61, %v3813_v48  ;;  %v3816_v31 = vadd.f32 %v5158_v63, %v6697_v28 }
 0x2ab   : > { %v3943_v4 = vadd.f32 %v3942_v18, %v3910_v1  ;;  %v3966_v49 = vmul.f32 %v3910_v1, %v3910_v1  ;;  %v3913_v10 = vadd.f32 %v5222_v24, %v3816_v31  ;;  %v5159_v37 = vpop.f32.mrb[120].mxu0 }
 0x2ac   : > { %v5223_v12 = vpop.f32.mrb[120].mxu1  ;;  %v5160_v15 = vpop.f32.mrb[121].mxu0 }
 0x2ad   : > { %v3981_v14 = vadd.f32 %v3980_v53, %v3966_v49  ;;  %v3944_v30 = vadd.f32 %v3943_v4, %v3913_v10  ;;  %v3967_v16 = vmul.f32 %v3913_v10, %v3913_v10  ;;  %v4704_v17 = vpack.c.bf16 %v3913_v10, %v3910_v1  ;;  %v5224_v36 = vpop.f32.mrb[121].mxu1  ;;  %v5162_v6 = vpop.f32.mrb[122].mxu0  ;;  %v4117_v10 = vld [vmem:[%s6715_s23] sm:$0xf] (%p5505_p6) }
 0x2ae   : > { %v5161_v39 = vadd.f32 %v5160_v15, %v5159_v37  ;;  %v5225_v19 = vadd.f32 %v5224_v36, %v5223_v12  ;;  %v5226_v20 = vpop.f32.mrb[122].mxu1  ;;  %v5163_v11 = vpop.f32.mrb[123].mxu0  ;;  %v4119_v37 = vld [vmem:[%s6715_s23 + $0x4] sm:$0xf] (%p5505_p6)  ;;  %v4121_v12 = vld [vmem:[%s6715_s23 + $0x8] sm:$0xf] (%p5505_p6) }
 0x2af   : > { %v3982_v42 = vadd.f32 %v3981_v14, %v3967_v16  ;;  %4720 = vst [vmem:[%s6715_s23 + $0x28] sm:$0xff] %v4704_v17   ;;  %v5164_v28 = vadd.f32 %v5163_v11, %v5162_v6  ;;  %v5227_v22 = vpop.f32.mrb[123].mxu1  ;;  %v4123_v15 = vld [vmem:[%s6715_s23 + $0xc] sm:$0xf] (%p5505_p6)  ;;  %v4125_v14 = vld [vmem:[%s6715_s23 + $0x10] sm:$0xf] (%p5505_p6) }
 0x2b0   : > { %v3821_v55 = vadd.f32 %v5161_v39, %v6700_v26  ;;  %v5228_v25 = vadd.f32 %v5227_v22, %v5226_v20  ;;  %4118 = vst [vmem:[%s4101_s14] sm:$0xf] (%p5505_p6), %v4117_v10  ;;  %4120 = vst [vmem:[%s4101_s14 + $0x8] sm:$0xf] (%p5505_p6), %v4119_v37  ;;  %v4129_v16 = vld [vmem:[%s6715_s23 + $0x18] sm:$0xf] (%p5505_p6) }
 0x2b1   : > { %v3824_v7 = vadd.f32 %v5164_v28, %v6703_v46  ;;  %4122 = vst [vmem:[%s4101_s14 + $0x10] sm:$0xf] (%p5505_p6), %v4121_v12  ;;  %4124 = vst [vmem:[%s4101_s14 + $0x18] sm:$0xf] (%p5505_p6), %v4123_v15  ;;  %v4131_v17 = vld [vmem:[%s6715_s23 + $0x1c] sm:$0xf] (%p5505_p6) }
 0x2b2   : > { %v3918_v27 = vadd.f32 %v5225_v19, %v3821_v55  ;;  %4126 = vst [vmem:[%s4101_s14 + $0x20] sm:$0xf] (%p5505_p6), %v4125_v14  ;;  %4130 = vst [vmem:[%s4101_s14 + $0x30] sm:$0xf] (%p5505_p6), %v4129_v16  ;;  %v4133_v36 = vld [vmem:[%s6715_s23 + $0x20] sm:$0xf] (%p5505_p6) }
 0x2b3   : > { %v3921_v51 = vadd.f32 %v5228_v25, %v3824_v7  ;;  %v5165_v54 = vpop.f32.mrb[124].mxu0  ;;  %4132 = vst [vmem:[%s4101_s14 + $0x38] sm:$0xf] (%p5505_p6), %v4131_v17  ;;  %v4135_v6 = vld [vmem:[%s6715_s23 + $0x24] sm:$0xf] (%p5505_p6) }
 0x2b4   : > { %v3945_v32 = vadd.f32 %v3944_v30, %v3918_v27  ;;  %v3968_v47 = vmul.f32 %v3918_v27, %v3918_v27  ;;  %v5229_v34 = vpop.f32.mrb[124].mxu1  ;;  %v5166_v35 = vpop.f32.mrb[125].mxu0  ;;  %v4127_v30 = vld [vmem:[%s6715_s23 + $0x14] sm:$0xf] (%p5505_p6)  ;;  %4134 = vst [vmem:[%s4101_s14 + $0x40] sm:$0xf] (%p5505_p6), %v4133_v36 }
 0x2b5   : > { %v3969_v57 = vmul.f32 %v3921_v51, %v3921_v51  ;;  %v4709_v5 = vpack.c.bf16 %v3921_v51, %v3918_v27  ;;  %v5167_v33 = vadd.f32 %v5166_v35, %v5165_v54  ;;  %v5230_v38 = vpop.f32.mrb[125].mxu1  ;;  %v5168_v62 = vpop.f32.mrb[126].mxu0  ;;  %4128 = vst [vmem:[%s4101_s14 + $0x28] sm:$0xf] (%p5505_p6), %v4127_v30  ;;  %4136 = vst [vmem:[%s4101_s14 + $0x48] sm:$0xf] (%p5505_p6), %v4135_v6 }
 0x2b6   : > { %v3983_v13 = vadd.f32 %v3982_v42, %v3968_v47  ;;  %v3946_v40 = vadd.f32 %v3945_v32, %v3921_v51  ;;  %v5231_v58 = vadd.f32 %v5230_v38, %v5229_v34  ;;  %v5232_v26 = vpop.f32.mrb[126].mxu1  ;;  %v5169_v41 = vpop.f32.mrb[127].mxu0  ;;  %v4137_v39 = vld [vmem:[%s6715_s23 + $0x28] sm:$0xf] (%p5505_p6)  ;;  %v4139_v19 = vld [vmem:[%s6715_s23 + $0x2c] sm:$0xf] (%p5505_p6) }
 0x2b7   : > { %4721 = vst [vmem:[%s6715_s23 + $0x30] sm:$0xff] %v4709_v5   ;;  %v3829_v46 = vadd.f32 %v5167_v33, %v6706_v8  ;;  %v5170_v29 = vadd.f32 %v5169_v41, %v5168_v62  ;;  %v5233_v43 = vpop.f32.mrb[127].mxu1  ;;  %4138 = vst [vmem:[%s4101_s14 + $0x50] sm:$0xf] (%p5505_p6), %v4137_v39 }
 0x2b8   : > { %v3984_v44 = vadd.f32 %v3983_v13, %v3969_v57  ;;  %v5234_v59 = vadd.f32 %v5233_v43, %v5232_v26  ;;  %4140 = vst [vmem:[%s4101_s14 + $0x58] sm:$0xf] (%p5505_p6), %v4139_v19 }
 0x2b9   : > { %v3926_v45 = vadd.f32 %v5231_v58, %v3829_v46  ;;  %v3832_v3 = vadd.f32 %v5170_v29, %v6709_v2 }
 0x2bb   : > { %v3947_v50 = vadd.f32 %v3946_v40, %v3926_v45  ;;  %v3970_v52 = vmul.f32 %v3926_v45, %v3926_v45  ;;  %v3929_v56 = vadd.f32 %v5234_v59, %v3832_v3 }
 0x2bd   : > { %v3985_v21 = vadd.f32 %v3984_v44, %v3970_v52  ;;  %v3948_v60 = vadd.f32 %v3947_v50, %v3929_v56  ;;  %v3971_v18 = vmul.f32 %v3929_v56, %v3929_v56  ;;  %v4714_v61 = vpack.c.bf16 %v3929_v56, %v3926_v45 }
 0x2be   : > { %v4141_v20 = vld [vmem:[%s6715_s23 + $0x30] sm:$0xf] (%p5505_p6)  ;;  %v4143_v11 = vld [vmem:[%s6715_s23 + $0x34] sm:$0xf] (%p5505_p6) }
 0x2bf   : > { %v3949_v9 = vrot.slane %v3948_v60, 4  ;;  %v3986_v23 = vadd.f32 %v3985_v21, %v3971_v18  ;;  %4722 = vst [vmem:[%s6715_s23 + $0x38] sm:$0xff] %v4714_v61   ;;  %4142 = vst [vmem:[%s4101_s14 + $0x60] sm:$0xf] (%p5505_p6), %v4141_v20 }
 0x2c0   : > { %4144 = vst [vmem:[%s4101_s14 + $0x68] sm:$0xf] (%p5505_p6), %v4143_v11 }
 0x2c1   : > { %v3950_v8 = vadd.f32 %v3949_v9, %v3948_v60  ;;  %v3987_v48 = vrot.slane %v3986_v23, 4 }
 0x2c3   : > { %v3951_v63 = vrot.slane %v3950_v8, 2  ;;  %v3988_v0 = vadd.f32 %v3987_v48, %v3986_v23 }
 0x2c5   : > { %v3952_v53 = vadd.f32 %v3951_v63, %v3950_v8  ;;  %v3989_v24 = vrot.slane %v3988_v0, 2 }
 0x2c6   : > { %v4145_v42 = vld [vmem:[%s6715_s23 + $0x38] sm:$0xf] (%p5505_p6)  ;;  %v4147_v28 = vld [vmem:[%s6715_s23 + $0x3c] sm:$0xf] (%p5505_p6) }
 0x2c7   : > { %v3953_v1 = vrot.slane %v3952_v53, 1  ;;  %v3990_v2 = vadd.f32 %v3989_v24, %v3988_v0  ;;  %4096 = sbr.rel (!%p5505_p6) target bundleno = 718 (0x2ce), region = 73  ;;  %4146 = vst [vmem:[%s4101_s14 + $0x70] sm:$0xf] (%p5505_p6), %v4145_v42  ;;  %4148 = vst [vmem:[%s4101_s14 + $0x78] sm:$0xf] (%p5505_p6), %v4147_v28 }
 0x2c9   : > { %v3954_v31 = vadd.f32 %v3953_v1, %v3952_v53  ;;  %v3991_v4 = vrot.slane %v3990_v2, 1 }
 0x2cb   : > { %3955 = vst [vmem:[%s6658_s8] sm:$0x1] %v3954_v31  ;;  %v3992_v49 = vadd.f32 %v3991_v4, %v3990_v2 }
 0x2cd   : > { %3993 = vst [vmem:[%s6663_s11] sm:$0x1] %v3992_v49 }
 0x2ce PF: > { %s15_s19 = sadd.s32 1, %s5442_s19   ;;  %s6784_s15 = smov %s5430_s16 }
 0x2cf   : > { %p12_p12 = scmp.ge.s32.totalorder %s15_s19, 4   ;;  %s6785_s16 = smov %s5510_s25 }
 0x2d0   : > { %s6786_s17 = smov %s5438_s18  ;;  %s6787_s18 = smov %s6789_s20 }
 0x2d1   :  { %14 = sbr.rel (!%p12_p12) target bundleno = 3 (0x3), region = 172 }

// kernel: disc_model_forward.8
= control target key start
LH: loop header
LB: loop body
LE: loop exit
PB: predicated region body
PF: predicated region fallthrough
CT: control target
= control target key end

     0   :  { %s6095_s0 = inlined_call_operand.vmem [shape: bf16[32,4096], index: 0, kind: input, shape index: {}]   ;;  %s6096_s1 = inlined_call_operand.vmem [shape: bf16[4096,512], index: 1, kind: input, shape index: {}]   ;;  %s6097_s2 = inlined_call_operand.vmem [shape: bf16[32,512], index: 2, kind: output, shape index: {0}]   ;;  %s6098_s3 = inlined_call_operand.vmem [shape: f32[8,512], index: 3, kind: output, shape index: {1}]   ;;  %s6099_s4 = inlined_call_operand.vmem [shape: f32[8,512], index: 4, kind: output, shape index: {2}]  }
   0x1   :  { %6102 = sst [smem:[#allocation8_spill]] %s6095_s0 }
   0x2   :  { %s4981_s15 = smov 0   ;;  %s4983_s16 = smov 0  }
   0x3   :  { %s4985_s17 = smov 0   ;;  %s4987_s18 = smov 0  }
   0x4   :  { %s4989_s19 = smov 0   ;;  %s4991_s20 = smov 0  }
   0x5   :  { %s4993_s21 = smov 0   ;;  %s4995_s22 = smov 0  }
   0x6   :  { %s4997_s23 = smov 0   ;;  %s4999_s24 = smov 0  }
   0x7   :  { %s5001_s25 = smov 0  }
   0x8 LB: > { %s4008_s26 = sadd.s32 4294967295, %s4951_s25   ;;  %s27_s27 = sadd.s32 1, %s4943_s23  ;;  %s4951_s25 = sphi %s5001_s25, %s15_s25   ;;  %s4947_s24 = sphi %s4999_s24, %s6120_s24   ;;  %s4943_s23 = sphi %s4997_s23, %s6119_s23   ;;  %s4939_s22 = sphi %s4995_s22, %s6118_s22   ;;  %s4935_s21 = sphi %s4993_s21, %s6117_s21   ;;  %s4931_s20 = sphi %s4991_s20, %s6116_s20   ;;  %s4927_s19 = sphi %s4989_s19, %s6115_s19   ;;  %s4923_s18 = sphi %s4987_s18, %s6114_s18   ;;  %s4919_s17 = sphi %s4985_s17, %s6113_s17   ;;  %s4915_s16 = sphi %s4983_s16, %s6112_s16   ;;  %s4911_s15 = sphi %s4981_s15, %s6111_s15  }
   0x9   : > { %p28_p0 = scmp.ge.s32.totalorder %s27_s27, 2  ;;  %s30_s28 = sadd.s32 1, %s4947_s24 }
   0xa   : > { %s43_s29 = sadd.s32 1, %s4931_s20  ;;  %p50_p1 = scmp.ne.s32.totalorder %s4931_s20, %s4927_s19 }
   0xb   : > { %s6122_s27 = smov (%p28_p0, %s27_s27), 0  ;;  %s6124_s28 = smov (!%p28_p0, %s30_s28), %s4947_s24 }
   0xc   : > { %6103 = sst [smem:[#allocation6_spill]] %s6122_s27  ;;  %s39_s30 = ssub.s32 %s4943_s23, %s6122_s27 }
   0xd   : > { %p51_p2 = scmp.eq.s32.totalorder %s4951_s25, 0  ;;  %p32_p3 = scmp.ge.s32.totalorder %s6124_s28, 2 }
   0xe   : > { %p41_p4 = scmp.eq.s32.totalorder %s39_s30, 0  ;;  %s71_s6 = sadd.s32 1, %s4923_s18 }
   0xf   : > { %p5048_p5 = por %p51_p2, %p50_p1  ;;  %s6126_s28 = smov (%p32_p3, %s6124_s28), 0 }
  0x10   : > { %6105 = sst [smem:[#allocation7_spill]] %s6126_s28  ;;  %s67_s8 = ssub.s32 %s4947_s24, %s6126_s28 }
  0x11   : > { %s5056_s7 = scalar_select %p41_p4, %s4931_s20, %s43_s29  }
  0x12   : > { %p78_p6 = scmp.ne.s32.totalorder %s4923_s18, %s4919_s17  ;;  %s68_s9 = sor.u32 %s67_s8, %s39_s30 }
  0x13   : > { %p97_p7 = scmp.eq.s32.totalorder %s67_s8, 0  ;;  %p69_p8 = scmp.eq.s32.totalorder %s68_s9, 0 }
  0x14   : > { %p5062_p9 = por %p78_p6, %p51_p2  ;;  %s99_s11 = sadd.s32 1, %s4915_s16 }
  0x15   : > { %p109_p10 = scmp.ne.s32.totalorder %s4915_s16, %s4911_s15  ;;  %p110_p11 = scmp.eq.s32.totalorder %s4008_s26, 3 }
  0x16   : > { %s5070_s12 = scalar_select %p69_p8, %s4923_s18, %s71_s6  }
  0x17   : > { %s5073_s13 = scalar_select %p97_p7, %s4915_s16, %s99_s11  }
  0x18   : > { %p5075_p12 = por %p110_p11, %p109_p10  ;;  %p4011_p13 = scmp.ge.s32.totalorder %s4951_s25, 4 }
  0x1a   : > { %188 = sbr.rel (%p4011_p13) target bundleno = 194 (0xc2), region = 16 }
  0x21   : > { %191 = sbr.rel (!%p5048_p5) target bundleno = 59 (0x3b), region = 20  ;;  %s193_s29 = sand.u32 (%p5048_p5), 1, %s4931_s20  }
  0x22   : > { %s4327_s30 = sshll.u32 (%p5048_p5), %s4943_s23, 6  ;;  %s4012_s8 = sshll.u32 (%p5048_p5), %s193_s29, 8 }
  0x23   : > { %s6108_s0 = sld [smem:[#allocation8_spill]] (%p5048_p5)  ;;  %s5092_s26 = scalar_lea.vmem (%p5048_p5), [#allocation3], %s4012_s8 }
  0x29   : > { %s5087_s11 = scalar_lea.vmem %s6108_s0, %s4327_s30 }
  0x2a   : > { %v214_v0 = vld [vmem:[%s5087_s11] sm:$0xff]  ;;  %v216_v1 = vld [vmem:[%s5087_s11 + $0x8] sm:$0xff]  ;;  %v218_v2 = vld [vmem:[%s5087_s11 + $0x10] sm:$0xff] }
  0x2b   : > { %215 = vst [vmem:[%s5092_s26] sm:$0xff] %v214_v0  ;;  %217 = vst [vmem:[%s5092_s26 + $0x8] sm:$0xff] %v216_v1  ;;  %v220_v3 = vld [vmem:[%s5087_s11 + $0x18] sm:$0xff]  ;;  %v222_v4 = vld [vmem:[%s5087_s11 + $0x20] sm:$0xff] }
  0x2c   : > { %219 = vst [vmem:[%s5092_s26 + $0x10] sm:$0xff] %v218_v2  ;;  %v224_v5 = vld [vmem:[%s5087_s11 + $0x28] sm:$0xff]  ;;  %221 = vst [vmem:[%s5092_s26 + $0x18] sm:$0xff] %v220_v3  ;;  %v226_v6 = vld [vmem:[%s5087_s11 + $0x30] sm:$0xff] }
  0x2d   : > { %223 = vst [vmem:[%s5092_s26 + $0x20] sm:$0xff] %v222_v4  ;;  %225 = vst [vmem:[%s5092_s26 + $0x28] sm:$0xff] %v224_v5  ;;  %v228_v7 = vld [vmem:[%s5087_s11 + $0x38] sm:$0xff]  ;;  %v230_v8 = vld [vmem:[%s5087_s11 + $0x80] sm:$0xff] }
  0x2e   : > { %227 = vst [vmem:[%s5092_s26 + $0x30] sm:$0xff] %v226_v6  ;;  %229 = vst [vmem:[%s5092_s26 + $0x38] sm:$0xff] %v228_v7  ;;  %v232_v9 = vld [vmem:[%s5087_s11 + $0x88] sm:$0xff]  ;;  %v234_v10 = vld [vmem:[%s5087_s11 + $0x90] sm:$0xff] }
  0x2f   : > { %231 = vst [vmem:[%s5092_s26 + $0x40] sm:$0xff] %v230_v8  ;;  %v236_v11 = vld [vmem:[%s5087_s11 + $0x98] sm:$0xff]  ;;  %233 = vst [vmem:[%s5092_s26 + $0x48] sm:$0xff] %v232_v9  ;;  %v238_v12 = vld [vmem:[%s5087_s11 + $0xa0] sm:$0xff] }
  0x30   : > { %235 = vst [vmem:[%s5092_s26 + $0x50] sm:$0xff] %v234_v10  ;;  %237 = vst [vmem:[%s5092_s26 + $0x58] sm:$0xff] %v236_v11  ;;  %v240_v13 = vld [vmem:[%s5087_s11 + $0xa8] sm:$0xff]  ;;  %v242_v14 = vld [vmem:[%s5087_s11 + $0xb0] sm:$0xff] }
  0x31   : > { %239 = vst [vmem:[%s5092_s26 + $0x60] sm:$0xff] %v238_v12  ;;  %241 = vst [vmem:[%s5092_s26 + $0x68] sm:$0xff] %v240_v13  ;;  %v244_v15 = vld [vmem:[%s5087_s11 + $0xb8] sm:$0xff]  ;;  %v246_v16 = vld [vmem:[%s5087_s11 + $0x100] sm:$0xff] }
  0x32   : > { %243 = vst [vmem:[%s5092_s26 + $0x70] sm:$0xff] %v242_v14  ;;  %v248_v17 = vld [vmem:[%s5087_s11 + $0x108] sm:$0xff]  ;;  %245 = vst [vmem:[%s5092_s26 + $0x78] sm:$0xff] %v244_v15  ;;  %v250_v18 = vld [vmem:[%s5087_s11 + $0x110] sm:$0xff] }
  0x33   : > { %247 = vst [vmem:[%s5092_s26 + $0x80] sm:$0xff] %v246_v16  ;;  %249 = vst [vmem:[%s5092_s26 + $0x88] sm:$0xff] %v248_v17  ;;  %v252_v19 = vld [vmem:[%s5087_s11 + $0x118] sm:$0xff]  ;;  %v254_v20 = vld [vmem:[%s5087_s11 + $0x120] sm:$0xff] }
  0x34   : > { %251 = vst [vmem:[%s5092_s26 + $0x90] sm:$0xff] %v250_v18  ;;  %253 = vst [vmem:[%s5092_s26 + $0x98] sm:$0xff] %v252_v19  ;;  %v256_v21 = vld [vmem:[%s5087_s11 + $0x128] sm:$0xff]  ;;  %v258_v22 = vld [vmem:[%s5087_s11 + $0x130] sm:$0xff] }
  0x35   : > { %255 = vst [vmem:[%s5092_s26 + $0xa0] sm:$0xff] %v254_v20  ;;  %v260_v23 = vld [vmem:[%s5087_s11 + $0x138] sm:$0xff]  ;;  %257 = vst [vmem:[%s5092_s26 + $0xa8] sm:$0xff] %v256_v21  ;;  %v262_v24 = vld [vmem:[%s5087_s11 + $0x180] sm:$0xff] }
  0x36   : > { %259 = vst [vmem:[%s5092_s26 + $0xb0] sm:$0xff] %v258_v22  ;;  %261 = vst [vmem:[%s5092_s26 + $0xb8] sm:$0xff] %v260_v23  ;;  %v264_v25 = vld [vmem:[%s5087_s11 + $0x188] sm:$0xff]  ;;  %v266_v26 = vld [vmem:[%s5087_s11 + $0x190] sm:$0xff] }
  0x37   : > { %263 = vst [vmem:[%s5092_s26 + $0xc0] sm:$0xff] %v262_v24  ;;  %265 = vst [vmem:[%s5092_s26 + $0xc8] sm:$0xff] %v264_v25  ;;  %v268_v27 = vld [vmem:[%s5087_s11 + $0x198] sm:$0xff]  ;;  %v270_v28 = vld [vmem:[%s5087_s11 + $0x1a0] sm:$0xff] }
  0x38   : > { %267 = vst [vmem:[%s5092_s26 + $0xd0] sm:$0xff] %v266_v26  ;;  %v272_v29 = vld [vmem:[%s5087_s11 + $0x1a8] sm:$0xff]  ;;  %269 = vst [vmem:[%s5092_s26 + $0xd8] sm:$0xff] %v268_v27  ;;  %v274_v30 = vld [vmem:[%s5087_s11 + $0x1b0] sm:$0xff] }
  0x39   : > { %271 = vst [vmem:[%s5092_s26 + $0xe0] sm:$0xff] %v270_v28  ;;  %273 = vst [vmem:[%s5092_s26 + $0xe8] sm:$0xff] %v272_v29  ;;  %v276_v31 = vld [vmem:[%s5087_s11 + $0x1b8] sm:$0xff] }
  0x3a   : > { %275 = vst [vmem:[%s5092_s26 + $0xf0] sm:$0xff] %v274_v30  ;;  %277 = vst [vmem:[%s5092_s26 + $0xf8] sm:$0xff] %v276_v31 }
  0x3b PF: > { %283 = sbr.rel (!%p5062_p9) target bundleno = 194 (0xc2), region = 43  ;;  %s285_s5 = sand.u32 (%p5062_p9), 1, %s4923_s18  }
  0x3c   : > { %s4017_s29 = sshll.u32 (%p5062_p9), %s4947_s24, 1  ;;  %s4015_s30 = sshll.u32 (%p5062_p9), %s285_s5, 11 }
  0x3d   : > { %s4328_s8 = sshll.u32 (%p5062_p9), %s4943_s23, 10  ;;  %s5168_s10 = scalar_lea.vmem (%p5062_p9), [#allocation4], %s4015_s30 }
  0x3e   : > { %s291_s6 = sadd.s32 (%p5062_p9), %s4328_s8, %s4017_s29 }
  0x3f   : > { %s4019_s9 = sshll.u32 (%p5062_p9), %s291_s6, 2 }
  0x40   : > { %s5163_s27 = scalar_lea.vmem (%p5062_p9), %s6096_s1, %s4019_s9 }
  0x41   : > { %v831_v32 = vld [vmem:[%s5163_s27] sm:$0xff] (%p5062_p9)  ;;  %v833_v33 = vld [vmem:[%s5163_s27 + $0x10] sm:$0xff] (%p5062_p9) }
  0x42   : > { %v835_v34 = vld [vmem:[%s5163_s27 + $0x20] sm:$0xff]  ;;  %832 = vst [vmem:[%s5168_s10] sm:$0xff] %v831_v32  ;;  %834 = vst [vmem:[%s5168_s10 + $0x8] sm:$0xff] %v833_v33  ;;  %v837_v35 = vld [vmem:[%s5163_s27 + $0x30] sm:$0xff] }
  0x43   : > { %836 = vst [vmem:[%s5168_s10 + $0x10] sm:$0xff] %v835_v34  ;;  %v839_v36 = vld [vmem:[%s5163_s27 + $0x40] sm:$0xff]  ;;  %v841_v37 = vld [vmem:[%s5163_s27 + $0x50] sm:$0xff]  ;;  %838 = vst [vmem:[%s5168_s10 + $0x18] sm:$0xff] %v837_v35 }
  0x44   : > { %840 = vst [vmem:[%s5168_s10 + $0x20] sm:$0xff] %v839_v36  ;;  %842 = vst [vmem:[%s5168_s10 + $0x28] sm:$0xff] %v841_v37  ;;  %v843_v38 = vld [vmem:[%s5163_s27 + $0x60] sm:$0xff]  ;;  %v845_v39 = vld [vmem:[%s5163_s27 + $0x70] sm:$0xff] }
  0x45   : > { %v847_v40 = vld [vmem:[%s5163_s27 + $0x80] sm:$0xff]  ;;  %844 = vst [vmem:[%s5168_s10 + $0x30] sm:$0xff] %v843_v38  ;;  %846 = vst [vmem:[%s5168_s10 + $0x38] sm:$0xff] %v845_v39  ;;  %v849_v41 = vld [vmem:[%s5163_s27 + $0x90] sm:$0xff] }
  0x46   : > { %848 = vst [vmem:[%s5168_s10 + $0x40] sm:$0xff] %v847_v40  ;;  %v851_v42 = vld [vmem:[%s5163_s27 + $0xa0] sm:$0xff]  ;;  %v853_v43 = vld [vmem:[%s5163_s27 + $0xb0] sm:$0xff]  ;;  %850 = vst [vmem:[%s5168_s10 + $0x48] sm:$0xff] %v849_v41 }
  0x47   : > { %852 = vst [vmem:[%s5168_s10 + $0x50] sm:$0xff] %v851_v42  ;;  %854 = vst [vmem:[%s5168_s10 + $0x58] sm:$0xff] %v853_v43  ;;  %v855_v44 = vld [vmem:[%s5163_s27 + $0xc0] sm:$0xff]  ;;  %v857_v45 = vld [vmem:[%s5163_s27 + $0xd0] sm:$0xff] }
  0x48   : > { %v859_v46 = vld [vmem:[%s5163_s27 + $0xe0] sm:$0xff]  ;;  %856 = vst [vmem:[%s5168_s10 + $0x60] sm:$0xff] %v855_v44  ;;  %858 = vst [vmem:[%s5168_s10 + $0x68] sm:$0xff] %v857_v45  ;;  %v861_v47 = vld [vmem:[%s5163_s27 + $0xf0] sm:$0xff] }
  0x49   : > { %860 = vst [vmem:[%s5168_s10 + $0x70] sm:$0xff] %v859_v46  ;;  %v863_v48 = vld [vmem:[%s5163_s27 + $0x100] sm:$0xff]  ;;  %v865_v49 = vld [vmem:[%s5163_s27 + $0x110] sm:$0xff]  ;;  %862 = vst [vmem:[%s5168_s10 + $0x78] sm:$0xff] %v861_v47 }
  0x4a   : > { %864 = vst [vmem:[%s5168_s10 + $0x80] sm:$0xff] %v863_v48  ;;  %866 = vst [vmem:[%s5168_s10 + $0x88] sm:$0xff] %v865_v49  ;;  %v867_v50 = vld [vmem:[%s5163_s27 + $0x120] sm:$0xff]  ;;  %v869_v51 = vld [vmem:[%s5163_s27 + $0x130] sm:$0xff] }
  0x4b   : > { %v871_v52 = vld [vmem:[%s5163_s27 + $0x140] sm:$0xff]  ;;  %868 = vst [vmem:[%s5168_s10 + $0x90] sm:$0xff] %v867_v50  ;;  %870 = vst [vmem:[%s5168_s10 + $0x98] sm:$0xff] %v869_v51  ;;  %v873_v53 = vld [vmem:[%s5163_s27 + $0x150] sm:$0xff] }
  0x4c   : > { %872 = vst [vmem:[%s5168_s10 + $0xa0] sm:$0xff] %v871_v52  ;;  %v875_v54 = vld [vmem:[%s5163_s27 + $0x160] sm:$0xff]  ;;  %v877_v55 = vld [vmem:[%s5163_s27 + $0x170] sm:$0xff]  ;;  %874 = vst [vmem:[%s5168_s10 + $0xa8] sm:$0xff] %v873_v53 }
  0x4d   : > { %876 = vst [vmem:[%s5168_s10 + $0xb0] sm:$0xff] %v875_v54  ;;  %878 = vst [vmem:[%s5168_s10 + $0xb8] sm:$0xff] %v877_v55  ;;  %v879_v56 = vld [vmem:[%s5163_s27 + $0x180] sm:$0xff]  ;;  %v881_v57 = vld [vmem:[%s5163_s27 + $0x190] sm:$0xff] }
  0x4e   : > { %v883_v58 = vld [vmem:[%s5163_s27 + $0x1a0] sm:$0xff]  ;;  %880 = vst [vmem:[%s5168_s10 + $0xc0] sm:$0xff] %v879_v56  ;;  %882 = vst [vmem:[%s5168_s10 + $0xc8] sm:$0xff] %v881_v57  ;;  %v885_v59 = vld [vmem:[%s5163_s27 + $0x1b0] sm:$0xff] }
  0x4f   : > { %884 = vst [vmem:[%s5168_s10 + $0xd0] sm:$0xff] %v883_v58  ;;  %v887_v60 = vld [vmem:[%s5163_s27 + $0x1c0] sm:$0xff]  ;;  %v889_v61 = vld [vmem:[%s5163_s27 + $0x1d0] sm:$0xff]  ;;  %886 = vst [vmem:[%s5168_s10 + $0xd8] sm:$0xff] %v885_v59 }
  0x50   : > { %888 = vst [vmem:[%s5168_s10 + $0xe0] sm:$0xff] %v887_v60  ;;  %890 = vst [vmem:[%s5168_s10 + $0xe8] sm:$0xff] %v889_v61  ;;  %v891_v62 = vld [vmem:[%s5163_s27 + $0x1e0] sm:$0xff]  ;;  %v893_v63 = vld [vmem:[%s5163_s27 + $0x1f0] sm:$0xff] }
  0x51   : > { %v895_v0 = vld [vmem:[%s5163_s27 + $0x200] sm:$0xff]  ;;  %892 = vst [vmem:[%s5168_s10 + $0xf0] sm:$0xff] %v891_v62  ;;  %894 = vst [vmem:[%s5168_s10 + $0xf8] sm:$0xff] %v893_v63  ;;  %v897_v1 = vld [vmem:[%s5163_s27 + $0x210] sm:$0xff] }
  0x52   : > { %896 = vst [vmem:[%s5168_s10 + $0x100] sm:$0xff] %v895_v0  ;;  %v899_v2 = vld [vmem:[%s5163_s27 + $0x220] sm:$0xff]  ;;  %v901_v3 = vld [vmem:[%s5163_s27 + $0x230] sm:$0xff]  ;;  %898 = vst [vmem:[%s5168_s10 + $0x108] sm:$0xff] %v897_v1 }
  0x53   : > { %900 = vst [vmem:[%s5168_s10 + $0x110] sm:$0xff] %v899_v2  ;;  %902 = vst [vmem:[%s5168_s10 + $0x118] sm:$0xff] %v901_v3  ;;  %v903_v4 = vld [vmem:[%s5163_s27 + $0x240] sm:$0xff]  ;;  %v905_v5 = vld [vmem:[%s5163_s27 + $0x250] sm:$0xff] }
  0x54   : > { %v907_v6 = vld [vmem:[%s5163_s27 + $0x260] sm:$0xff]  ;;  %904 = vst [vmem:[%s5168_s10 + $0x120] sm:$0xff] %v903_v4  ;;  %906 = vst [vmem:[%s5168_s10 + $0x128] sm:$0xff] %v905_v5  ;;  %v909_v7 = vld [vmem:[%s5163_s27 + $0x270] sm:$0xff] }
  0x55   : > { %908 = vst [vmem:[%s5168_s10 + $0x130] sm:$0xff] %v907_v6  ;;  %v911_v8 = vld [vmem:[%s5163_s27 + $0x280] sm:$0xff]  ;;  %v913_v9 = vld [vmem:[%s5163_s27 + $0x290] sm:$0xff]  ;;  %910 = vst [vmem:[%s5168_s10 + $0x138] sm:$0xff] %v909_v7 }
  0x56   : > { %912 = vst [vmem:[%s5168_s10 + $0x140] sm:$0xff] %v911_v8  ;;  %914 = vst [vmem:[%s5168_s10 + $0x148] sm:$0xff] %v913_v9  ;;  %v915_v10 = vld [vmem:[%s5163_s27 + $0x2a0] sm:$0xff]  ;;  %v917_v11 = vld [vmem:[%s5163_s27 + $0x2b0] sm:$0xff] }
  0x57   : > { %v919_v12 = vld [vmem:[%s5163_s27 + $0x2c0] sm:$0xff]  ;;  %916 = vst [vmem:[%s5168_s10 + $0x150] sm:$0xff] %v915_v10  ;;  %918 = vst [vmem:[%s5168_s10 + $0x158] sm:$0xff] %v917_v11  ;;  %v921_v13 = vld [vmem:[%s5163_s27 + $0x2d0] sm:$0xff] }
  0x58   : > { %920 = vst [vmem:[%s5168_s10 + $0x160] sm:$0xff] %v919_v12  ;;  %v923_v14 = vld [vmem:[%s5163_s27 + $0x2e0] sm:$0xff]  ;;  %v925_v15 = vld [vmem:[%s5163_s27 + $0x2f0] sm:$0xff]  ;;  %922 = vst [vmem:[%s5168_s10 + $0x168] sm:$0xff] %v921_v13 }
  0x59   : > { %924 = vst [vmem:[%s5168_s10 + $0x170] sm:$0xff] %v923_v14  ;;  %926 = vst [vmem:[%s5168_s10 + $0x178] sm:$0xff] %v925_v15  ;;  %v927_v16 = vld [vmem:[%s5163_s27 + $0x300] sm:$0xff]  ;;  %v929_v17 = vld [vmem:[%s5163_s27 + $0x310] sm:$0xff] }
  0x5a   : > { %v931_v18 = vld [vmem:[%s5163_s27 + $0x320] sm:$0xff]  ;;  %928 = vst [vmem:[%s5168_s10 + $0x180] sm:$0xff] %v927_v16  ;;  %930 = vst [vmem:[%s5168_s10 + $0x188] sm:$0xff] %v929_v17  ;;  %v933_v19 = vld [vmem:[%s5163_s27 + $0x330] sm:$0xff] }
  0x5b   : > { %932 = vst [vmem:[%s5168_s10 + $0x190] sm:$0xff] %v931_v18  ;;  %v935_v20 = vld [vmem:[%s5163_s27 + $0x340] sm:$0xff]  ;;  %v937_v21 = vld [vmem:[%s5163_s27 + $0x350] sm:$0xff]  ;;  %934 = vst [vmem:[%s5168_s10 + $0x198] sm:$0xff] %v933_v19 }
  0x5c   : > { %936 = vst [vmem:[%s5168_s10 + $0x1a0] sm:$0xff] %v935_v20  ;;  %938 = vst [vmem:[%s5168_s10 + $0x1a8] sm:$0xff] %v937_v21  ;;  %v939_v22 = vld [vmem:[%s5163_s27 + $0x360] sm:$0xff]  ;;  %v941_v23 = vld [vmem:[%s5163_s27 + $0x370] sm:$0xff] }
  0x5d   : > { %v943_v24 = vld [vmem:[%s5163_s27 + $0x380] sm:$0xff]  ;;  %940 = vst [vmem:[%s5168_s10 + $0x1b0] sm:$0xff] %v939_v22  ;;  %942 = vst [vmem:[%s5168_s10 + $0x1b8] sm:$0xff] %v941_v23  ;;  %v945_v25 = vld [vmem:[%s5163_s27 + $0x390] sm:$0xff] }
  0x5e   : > { %944 = vst [vmem:[%s5168_s10 + $0x1c0] sm:$0xff] %v943_v24  ;;  %v947_v26 = vld [vmem:[%s5163_s27 + $0x3a0] sm:$0xff]  ;;  %v949_v27 = vld [vmem:[%s5163_s27 + $0x3b0] sm:$0xff]  ;;  %946 = vst [vmem:[%s5168_s10 + $0x1c8] sm:$0xff] %v945_v25 }
  0x5f   : > { %948 = vst [vmem:[%s5168_s10 + $0x1d0] sm:$0xff] %v947_v26  ;;  %950 = vst [vmem:[%s5168_s10 + $0x1d8] sm:$0xff] %v949_v27  ;;  %v951_v28 = vld [vmem:[%s5163_s27 + $0x3c0] sm:$0xff]  ;;  %v953_v29 = vld [vmem:[%s5163_s27 + $0x3d0] sm:$0xff] }
  0x60   : > { %v955_v30 = vld [vmem:[%s5163_s27 + $0x3e0] sm:$0xff]  ;;  %952 = vst [vmem:[%s5168_s10 + $0x1e0] sm:$0xff] %v951_v28  ;;  %954 = vst [vmem:[%s5168_s10 + $0x1e8] sm:$0xff] %v953_v29  ;;  %v957_v31 = vld [vmem:[%s5163_s27 + $0x3f0] sm:$0xff] }
  0x61   : > { %956 = vst [vmem:[%s5168_s10 + $0x1f0] sm:$0xff] %v955_v30  ;;  %v959_v32 = vld [vmem:[%s5163_s27 + $0x400] sm:$0xff]  ;;  %v961_v33 = vld [vmem:[%s5163_s27 + $0x410] sm:$0xff]  ;;  %958 = vst [vmem:[%s5168_s10 + $0x1f8] sm:$0xff] %v957_v31 }
  0x62   : > { %960 = vst [vmem:[%s5168_s10 + $0x200] sm:$0xff] %v959_v32  ;;  %962 = vst [vmem:[%s5168_s10 + $0x208] sm:$0xff] %v961_v33  ;;  %v963_v34 = vld [vmem:[%s5163_s27 + $0x420] sm:$0xff]  ;;  %v965_v35 = vld [vmem:[%s5163_s27 + $0x430] sm:$0xff] }
  0x63   : > { %v967_v36 = vld [vmem:[%s5163_s27 + $0x440] sm:$0xff]  ;;  %964 = vst [vmem:[%s5168_s10 + $0x210] sm:$0xff] %v963_v34  ;;  %966 = vst [vmem:[%s5168_s10 + $0x218] sm:$0xff] %v965_v35  ;;  %v969_v37 = vld [vmem:[%s5163_s27 + $0x450] sm:$0xff] }
  0x64   : > { %968 = vst [vmem:[%s5168_s10 + $0x220] sm:$0xff] %v967_v36  ;;  %v971_v38 = vld [vmem:[%s5163_s27 + $0x460] sm:$0xff]  ;;  %v973_v39 = vld [vmem:[%s5163_s27 + $0x470] sm:$0xff]  ;;  %970 = vst [vmem:[%s5168_s10 + $0x228] sm:$0xff] %v969_v37 }
  0x65   : > { %972 = vst [vmem:[%s5168_s10 + $0x230] sm:$0xff] %v971_v38  ;;  %974 = vst [vmem:[%s5168_s10 + $0x238] sm:$0xff] %v973_v39  ;;  %v975_v40 = vld [vmem:[%s5163_s27 + $0x480] sm:$0xff]  ;;  %v977_v41 = vld [vmem:[%s5163_s27 + $0x490] sm:$0xff] }
  0x66   : > { %v979_v42 = vld [vmem:[%s5163_s27 + $0x4a0] sm:$0xff]  ;;  %976 = vst [vmem:[%s5168_s10 + $0x240] sm:$0xff] %v975_v40  ;;  %978 = vst [vmem:[%s5168_s10 + $0x248] sm:$0xff] %v977_v41  ;;  %v981_v43 = vld [vmem:[%s5163_s27 + $0x4b0] sm:$0xff] }
  0x67   : > { %980 = vst [vmem:[%s5168_s10 + $0x250] sm:$0xff] %v979_v42  ;;  %v983_v44 = vld [vmem:[%s5163_s27 + $0x4c0] sm:$0xff]  ;;  %v985_v45 = vld [vmem:[%s5163_s27 + $0x4d0] sm:$0xff]  ;;  %982 = vst [vmem:[%s5168_s10 + $0x258] sm:$0xff] %v981_v43 }
  0x68   : > { %984 = vst [vmem:[%s5168_s10 + $0x260] sm:$0xff] %v983_v44  ;;  %986 = vst [vmem:[%s5168_s10 + $0x268] sm:$0xff] %v985_v45  ;;  %v987_v46 = vld [vmem:[%s5163_s27 + $0x4e0] sm:$0xff]  ;;  %v989_v47 = vld [vmem:[%s5163_s27 + $0x4f0] sm:$0xff] }
  0x69   : > { %v991_v48 = vld [vmem:[%s5163_s27 + $0x500] sm:$0xff]  ;;  %988 = vst [vmem:[%s5168_s10 + $0x270] sm:$0xff] %v987_v46  ;;  %990 = vst [vmem:[%s5168_s10 + $0x278] sm:$0xff] %v989_v47  ;;  %v993_v49 = vld [vmem:[%s5163_s27 + $0x510] sm:$0xff] }
  0x6a   : > { %992 = vst [vmem:[%s5168_s10 + $0x280] sm:$0xff] %v991_v48  ;;  %v995_v50 = vld [vmem:[%s5163_s27 + $0x520] sm:$0xff]  ;;  %v997_v51 = vld [vmem:[%s5163_s27 + $0x530] sm:$0xff]  ;;  %994 = vst [vmem:[%s5168_s10 + $0x288] sm:$0xff] %v993_v49 }
  0x6b   : > { %996 = vst [vmem:[%s5168_s10 + $0x290] sm:$0xff] %v995_v50  ;;  %998 = vst [vmem:[%s5168_s10 + $0x298] sm:$0xff] %v997_v51  ;;  %v999_v52 = vld [vmem:[%s5163_s27 + $0x540] sm:$0xff]  ;;  %v1001_v53 = vld [vmem:[%s5163_s27 + $0x550] sm:$0xff] }
  0x6c   : > { %v1003_v54 = vld [vmem:[%s5163_s27 + $0x560] sm:$0xff]  ;;  %1000 = vst [vmem:[%s5168_s10 + $0x2a0] sm:$0xff] %v999_v52  ;;  %1002 = vst [vmem:[%s5168_s10 + $0x2a8] sm:$0xff] %v1001_v53  ;;  %v1005_v55 = vld [vmem:[%s5163_s27 + $0x570] sm:$0xff] }
  0x6d   : > { %1004 = vst [vmem:[%s5168_s10 + $0x2b0] sm:$0xff] %v1003_v54  ;;  %v1007_v56 = vld [vmem:[%s5163_s27 + $0x580] sm:$0xff]  ;;  %v1009_v57 = vld [vmem:[%s5163_s27 + $0x590] sm:$0xff]  ;;  %1006 = vst [vmem:[%s5168_s10 + $0x2b8] sm:$0xff] %v1005_v55 }
  0x6e   : > { %1008 = vst [vmem:[%s5168_s10 + $0x2c0] sm:$0xff] %v1007_v56  ;;  %1010 = vst [vmem:[%s5168_s10 + $0x2c8] sm:$0xff] %v1009_v57  ;;  %v1011_v58 = vld [vmem:[%s5163_s27 + $0x5a0] sm:$0xff]  ;;  %v1013_v59 = vld [vmem:[%s5163_s27 + $0x5b0] sm:$0xff] }
  0x6f   : > { %v1015_v60 = vld [vmem:[%s5163_s27 + $0x5c0] sm:$0xff]  ;;  %1012 = vst [vmem:[%s5168_s10 + $0x2d0] sm:$0xff] %v1011_v58  ;;  %1014 = vst [vmem:[%s5168_s10 + $0x2d8] sm:$0xff] %v1013_v59  ;;  %v1017_v61 = vld [vmem:[%s5163_s27 + $0x5d0] sm:$0xff] }
  0x70   : > { %1016 = vst [vmem:[%s5168_s10 + $0x2e0] sm:$0xff] %v1015_v60  ;;  %v1019_v62 = vld [vmem:[%s5163_s27 + $0x5e0] sm:$0xff]  ;;  %v1021_v63 = vld [vmem:[%s5163_s27 + $0x5f0] sm:$0xff]  ;;  %1018 = vst [vmem:[%s5168_s10 + $0x2e8] sm:$0xff] %v1017_v61 }
  0x71   : > { %1020 = vst [vmem:[%s5168_s10 + $0x2f0] sm:$0xff] %v1019_v62  ;;  %1022 = vst [vmem:[%s5168_s10 + $0x2f8] sm:$0xff] %v1021_v63  ;;  %v1023_v0 = vld [vmem:[%s5163_s27 + $0x600] sm:$0xff]  ;;  %v1025_v1 = vld [vmem:[%s5163_s27 + $0x610] sm:$0xff] }
  0x72   : > { %v1027_v2 = vld [vmem:[%s5163_s27 + $0x620] sm:$0xff]  ;;  %1024 = vst [vmem:[%s5168_s10 + $0x300] sm:$0xff] %v1023_v0  ;;  %1026 = vst [vmem:[%s5168_s10 + $0x308] sm:$0xff] %v1025_v1  ;;  %v1029_v3 = vld [vmem:[%s5163_s27 + $0x630] sm:$0xff] }
  0x73   : > { %1028 = vst [vmem:[%s5168_s10 + $0x310] sm:$0xff] %v1027_v2  ;;  %v1031_v4 = vld [vmem:[%s5163_s27 + $0x640] sm:$0xff]  ;;  %v1033_v5 = vld [vmem:[%s5163_s27 + $0x650] sm:$0xff]  ;;  %1030 = vst [vmem:[%s5168_s10 + $0x318] sm:$0xff] %v1029_v3 }
  0x74   : > { %1032 = vst [vmem:[%s5168_s10 + $0x320] sm:$0xff] %v1031_v4  ;;  %1034 = vst [vmem:[%s5168_s10 + $0x328] sm:$0xff] %v1033_v5  ;;  %v1035_v6 = vld [vmem:[%s5163_s27 + $0x660] sm:$0xff]  ;;  %v1037_v7 = vld [vmem:[%s5163_s27 + $0x670] sm:$0xff] }
  0x75   : > { %v1039_v8 = vld [vmem:[%s5163_s27 + $0x680] sm:$0xff]  ;;  %1036 = vst [vmem:[%s5168_s10 + $0x330] sm:$0xff] %v1035_v6  ;;  %1038 = vst [vmem:[%s5168_s10 + $0x338] sm:$0xff] %v1037_v7  ;;  %v1041_v9 = vld [vmem:[%s5163_s27 + $0x690] sm:$0xff] }
  0x76   : > { %1040 = vst [vmem:[%s5168_s10 + $0x340] sm:$0xff] %v1039_v8  ;;  %v1043_v10 = vld [vmem:[%s5163_s27 + $0x6a0] sm:$0xff]  ;;  %v1045_v11 = vld [vmem:[%s5163_s27 + $0x6b0] sm:$0xff]  ;;  %1042 = vst [vmem:[%s5168_s10 + $0x348] sm:$0xff] %v1041_v9 }
  0x77   : > { %1044 = vst [vmem:[%s5168_s10 + $0x350] sm:$0xff] %v1043_v10  ;;  %1046 = vst [vmem:[%s5168_s10 + $0x358] sm:$0xff] %v1045_v11  ;;  %v1047_v12 = vld [vmem:[%s5163_s27 + $0x6c0] sm:$0xff]  ;;  %v1049_v13 = vld [vmem:[%s5163_s27 + $0x6d0] sm:$0xff] }
  0x78   : > { %v1051_v14 = vld [vmem:[%s5163_s27 + $0x6e0] sm:$0xff]  ;;  %1048 = vst [vmem:[%s5168_s10 + $0x360] sm:$0xff] %v1047_v12  ;;  %1050 = vst [vmem:[%s5168_s10 + $0x368] sm:$0xff] %v1049_v13  ;;  %v1053_v15 = vld [vmem:[%s5163_s27 + $0x6f0] sm:$0xff] }
  0x79   : > { %1052 = vst [vmem:[%s5168_s10 + $0x370] sm:$0xff] %v1051_v14  ;;  %v1055_v16 = vld [vmem:[%s5163_s27 + $0x700] sm:$0xff]  ;;  %v1057_v17 = vld [vmem:[%s5163_s27 + $0x710] sm:$0xff]  ;;  %1054 = vst [vmem:[%s5168_s10 + $0x378] sm:$0xff] %v1053_v15 }
  0x7a   : > { %1056 = vst [vmem:[%s5168_s10 + $0x380] sm:$0xff] %v1055_v16  ;;  %1058 = vst [vmem:[%s5168_s10 + $0x388] sm:$0xff] %v1057_v17  ;;  %v1059_v18 = vld [vmem:[%s5163_s27 + $0x720] sm:$0xff]  ;;  %v1061_v19 = vld [vmem:[%s5163_s27 + $0x730] sm:$0xff] }
  0x7b   : > { %v1063_v20 = vld [vmem:[%s5163_s27 + $0x740] sm:$0xff]  ;;  %1060 = vst [vmem:[%s5168_s10 + $0x390] sm:$0xff] %v1059_v18  ;;  %1062 = vst [vmem:[%s5168_s10 + $0x398] sm:$0xff] %v1061_v19  ;;  %v1065_v21 = vld [vmem:[%s5163_s27 + $0x750] sm:$0xff] }
  0x7c   : > { %1064 = vst [vmem:[%s5168_s10 + $0x3a0] sm:$0xff] %v1063_v20  ;;  %v1067_v22 = vld [vmem:[%s5163_s27 + $0x760] sm:$0xff]  ;;  %v1069_v23 = vld [vmem:[%s5163_s27 + $0x770] sm:$0xff]  ;;  %1066 = vst [vmem:[%s5168_s10 + $0x3a8] sm:$0xff] %v1065_v21 }
  0x7d   : > { %1068 = vst [vmem:[%s5168_s10 + $0x3b0] sm:$0xff] %v1067_v22  ;;  %1070 = vst [vmem:[%s5168_s10 + $0x3b8] sm:$0xff] %v1069_v23  ;;  %v1071_v24 = vld [vmem:[%s5163_s27 + $0x780] sm:$0xff]  ;;  %v1073_v25 = vld [vmem:[%s5163_s27 + $0x790] sm:$0xff] }
  0x7e   : > { %v1075_v26 = vld [vmem:[%s5163_s27 + $0x7a0] sm:$0xff]  ;;  %1072 = vst [vmem:[%s5168_s10 + $0x3c0] sm:$0xff] %v1071_v24  ;;  %1074 = vst [vmem:[%s5168_s10 + $0x3c8] sm:$0xff] %v1073_v25  ;;  %v1077_v27 = vld [vmem:[%s5163_s27 + $0x7b0] sm:$0xff] }
  0x7f   : > { %1076 = vst [vmem:[%s5168_s10 + $0x3d0] sm:$0xff] %v1075_v26  ;;  %v1079_v28 = vld [vmem:[%s5163_s27 + $0x7c0] sm:$0xff]  ;;  %v1081_v29 = vld [vmem:[%s5163_s27 + $0x7d0] sm:$0xff]  ;;  %1078 = vst [vmem:[%s5168_s10 + $0x3d8] sm:$0xff] %v1077_v27 }
  0x80   : > { %1080 = vst [vmem:[%s5168_s10 + $0x3e0] sm:$0xff] %v1079_v28  ;;  %1082 = vst [vmem:[%s5168_s10 + $0x3e8] sm:$0xff] %v1081_v29  ;;  %v1083_v30 = vld [vmem:[%s5163_s27 + $0x7e0] sm:$0xff]  ;;  %v1085_v31 = vld [vmem:[%s5163_s27 + $0x7f0] sm:$0xff] }
  0x81   : > { %v1087_v32 = vld [vmem:[%s5163_s27 + $0x800] sm:$0xff]  ;;  %1084 = vst [vmem:[%s5168_s10 + $0x3f0] sm:$0xff] %v1083_v30  ;;  %1086 = vst [vmem:[%s5168_s10 + $0x3f8] sm:$0xff] %v1085_v31  ;;  %v1089_v33 = vld [vmem:[%s5163_s27 + $0x810] sm:$0xff] }
  0x82   : > { %1088 = vst [vmem:[%s5168_s10 + $0x400] sm:$0xff] %v1087_v32  ;;  %v1091_v34 = vld [vmem:[%s5163_s27 + $0x820] sm:$0xff]  ;;  %v1093_v35 = vld [vmem:[%s5163_s27 + $0x830] sm:$0xff]  ;;  %1090 = vst [vmem:[%s5168_s10 + $0x408] sm:$0xff] %v1089_v33 }
  0x83   : > { %1092 = vst [vmem:[%s5168_s10 + $0x410] sm:$0xff] %v1091_v34  ;;  %1094 = vst [vmem:[%s5168_s10 + $0x418] sm:$0xff] %v1093_v35  ;;  %v1095_v36 = vld [vmem:[%s5163_s27 + $0x840] sm:$0xff]  ;;  %v1097_v37 = vld [vmem:[%s5163_s27 + $0x850] sm:$0xff] }
  0x84   : > { %v1099_v38 = vld [vmem:[%s5163_s27 + $0x860] sm:$0xff]  ;;  %1096 = vst [vmem:[%s5168_s10 + $0x420] sm:$0xff] %v1095_v36  ;;  %1098 = vst [vmem:[%s5168_s10 + $0x428] sm:$0xff] %v1097_v37  ;;  %v1101_v39 = vld [vmem:[%s5163_s27 + $0x870] sm:$0xff] }
  0x85   : > { %1100 = vst [vmem:[%s5168_s10 + $0x430] sm:$0xff] %v1099_v38  ;;  %v1103_v40 = vld [vmem:[%s5163_s27 + $0x880] sm:$0xff]  ;;  %v1105_v41 = vld [vmem:[%s5163_s27 + $0x890] sm:$0xff]  ;;  %1102 = vst [vmem:[%s5168_s10 + $0x438] sm:$0xff] %v1101_v39 }
  0x86   : > { %1104 = vst [vmem:[%s5168_s10 + $0x440] sm:$0xff] %v1103_v40  ;;  %1106 = vst [vmem:[%s5168_s10 + $0x448] sm:$0xff] %v1105_v41  ;;  %v1107_v42 = vld [vmem:[%s5163_s27 + $0x8a0] sm:$0xff]  ;;  %v1109_v43 = vld [vmem:[%s5163_s27 + $0x8b0] sm:$0xff] }
  0x87   : > { %v1111_v44 = vld [vmem:[%s5163_s27 + $0x8c0] sm:$0xff]  ;;  %1108 = vst [vmem:[%s5168_s10 + $0x450] sm:$0xff] %v1107_v42  ;;  %1110 = vst [vmem:[%s5168_s10 + $0x458] sm:$0xff] %v1109_v43  ;;  %v1113_v45 = vld [vmem:[%s5163_s27 + $0x8d0] sm:$0xff] }
  0x88   : > { %1112 = vst [vmem:[%s5168_s10 + $0x460] sm:$0xff] %v1111_v44  ;;  %v1115_v46 = vld [vmem:[%s5163_s27 + $0x8e0] sm:$0xff]  ;;  %v1117_v47 = vld [vmem:[%s5163_s27 + $0x8f0] sm:$0xff]  ;;  %1114 = vst [vmem:[%s5168_s10 + $0x468] sm:$0xff] %v1113_v45 }
  0x89   : > { %1116 = vst [vmem:[%s5168_s10 + $0x470] sm:$0xff] %v1115_v46  ;;  %1118 = vst [vmem:[%s5168_s10 + $0x478] sm:$0xff] %v1117_v47  ;;  %v1119_v48 = vld [vmem:[%s5163_s27 + $0x900] sm:$0xff]  ;;  %v1121_v49 = vld [vmem:[%s5163_s27 + $0x910] sm:$0xff] }
  0x8a   : > { %v1123_v50 = vld [vmem:[%s5163_s27 + $0x920] sm:$0xff]  ;;  %1120 = vst [vmem:[%s5168_s10 + $0x480] sm:$0xff] %v1119_v48  ;;  %1122 = vst [vmem:[%s5168_s10 + $0x488] sm:$0xff] %v1121_v49  ;;  %v1125_v51 = vld [vmem:[%s5163_s27 + $0x930] sm:$0xff] }
  0x8b   : > { %1124 = vst [vmem:[%s5168_s10 + $0x490] sm:$0xff] %v1123_v50  ;;  %v1127_v52 = vld [vmem:[%s5163_s27 + $0x940] sm:$0xff]  ;;  %v1129_v53 = vld [vmem:[%s5163_s27 + $0x950] sm:$0xff]  ;;  %1126 = vst [vmem:[%s5168_s10 + $0x498] sm:$0xff] %v1125_v51 }
  0x8c   : > { %1128 = vst [vmem:[%s5168_s10 + $0x4a0] sm:$0xff] %v1127_v52  ;;  %1130 = vst [vmem:[%s5168_s10 + $0x4a8] sm:$0xff] %v1129_v53  ;;  %v1131_v54 = vld [vmem:[%s5163_s27 + $0x960] sm:$0xff]  ;;  %v1133_v55 = vld [vmem:[%s5163_s27 + $0x970] sm:$0xff] }
  0x8d   : > { %v1135_v56 = vld [vmem:[%s5163_s27 + $0x980] sm:$0xff]  ;;  %1132 = vst [vmem:[%s5168_s10 + $0x4b0] sm:$0xff] %v1131_v54  ;;  %1134 = vst [vmem:[%s5168_s10 + $0x4b8] sm:$0xff] %v1133_v55  ;;  %v1137_v57 = vld [vmem:[%s5163_s27 + $0x990] sm:$0xff] }
  0x8e   : > { %1136 = vst [vmem:[%s5168_s10 + $0x4c0] sm:$0xff] %v1135_v56  ;;  %v1139_v58 = vld [vmem:[%s5163_s27 + $0x9a0] sm:$0xff]  ;;  %v1141_v59 = vld [vmem:[%s5163_s27 + $0x9b0] sm:$0xff]  ;;  %1138 = vst [vmem:[%s5168_s10 + $0x4c8] sm:$0xff] %v1137_v57 }
  0x8f   : > { %1140 = vst [vmem:[%s5168_s10 + $0x4d0] sm:$0xff] %v1139_v58  ;;  %1142 = vst [vmem:[%s5168_s10 + $0x4d8] sm:$0xff] %v1141_v59  ;;  %v1143_v60 = vld [vmem:[%s5163_s27 + $0x9c0] sm:$0xff]  ;;  %v1145_v61 = vld [vmem:[%s5163_s27 + $0x9d0] sm:$0xff] }
  0x90   : > { %v1147_v62 = vld [vmem:[%s5163_s27 + $0x9e0] sm:$0xff]  ;;  %1144 = vst [vmem:[%s5168_s10 + $0x4e0] sm:$0xff] %v1143_v60  ;;  %1146 = vst [vmem:[%s5168_s10 + $0x4e8] sm:$0xff] %v1145_v61  ;;  %v1149_v63 = vld [vmem:[%s5163_s27 + $0x9f0] sm:$0xff] }
  0x91   : > { %1148 = vst [vmem:[%s5168_s10 + $0x4f0] sm:$0xff] %v1147_v62  ;;  %v1151_v0 = vld [vmem:[%s5163_s27 + $0xa00] sm:$0xff]  ;;  %v1153_v1 = vld [vmem:[%s5163_s27 + $0xa10] sm:$0xff]  ;;  %1150 = vst [vmem:[%s5168_s10 + $0x4f8] sm:$0xff] %v1149_v63 }
  0x92   : > { %1152 = vst [vmem:[%s5168_s10 + $0x500] sm:$0xff] %v1151_v0  ;;  %1154 = vst [vmem:[%s5168_s10 + $0x508] sm:$0xff] %v1153_v1  ;;  %v1155_v2 = vld [vmem:[%s5163_s27 + $0xa20] sm:$0xff]  ;;  %v1157_v3 = vld [vmem:[%s5163_s27 + $0xa30] sm:$0xff] }
  0x93   : > { %v1159_v4 = vld [vmem:[%s5163_s27 + $0xa40] sm:$0xff]  ;;  %1156 = vst [vmem:[%s5168_s10 + $0x510] sm:$0xff] %v1155_v2  ;;  %1158 = vst [vmem:[%s5168_s10 + $0x518] sm:$0xff] %v1157_v3  ;;  %v1161_v5 = vld [vmem:[%s5163_s27 + $0xa50] sm:$0xff] }
  0x94   : > { %1160 = vst [vmem:[%s5168_s10 + $0x520] sm:$0xff] %v1159_v4  ;;  %v1163_v6 = vld [vmem:[%s5163_s27 + $0xa60] sm:$0xff]  ;;  %v1165_v7 = vld [vmem:[%s5163_s27 + $0xa70] sm:$0xff]  ;;  %1162 = vst [vmem:[%s5168_s10 + $0x528] sm:$0xff] %v1161_v5 }
  0x95   : > { %1164 = vst [vmem:[%s5168_s10 + $0x530] sm:$0xff] %v1163_v6  ;;  %1166 = vst [vmem:[%s5168_s10 + $0x538] sm:$0xff] %v1165_v7  ;;  %v1167_v8 = vld [vmem:[%s5163_s27 + $0xa80] sm:$0xff]  ;;  %v1169_v9 = vld [vmem:[%s5163_s27 + $0xa90] sm:$0xff] }
  0x96   : > { %v1171_v10 = vld [vmem:[%s5163_s27 + $0xaa0] sm:$0xff]  ;;  %1168 = vst [vmem:[%s5168_s10 + $0x540] sm:$0xff] %v1167_v8  ;;  %1170 = vst [vmem:[%s5168_s10 + $0x548] sm:$0xff] %v1169_v9  ;;  %v1173_v11 = vld [vmem:[%s5163_s27 + $0xab0] sm:$0xff] }
  0x97   : > { %1172 = vst [vmem:[%s5168_s10 + $0x550] sm:$0xff] %v1171_v10  ;;  %v1175_v12 = vld [vmem:[%s5163_s27 + $0xac0] sm:$0xff]  ;;  %v1177_v13 = vld [vmem:[%s5163_s27 + $0xad0] sm:$0xff]  ;;  %1174 = vst [vmem:[%s5168_s10 + $0x558] sm:$0xff] %v1173_v11 }
  0x98   : > { %1176 = vst [vmem:[%s5168_s10 + $0x560] sm:$0xff] %v1175_v12  ;;  %1178 = vst [vmem:[%s5168_s10 + $0x568] sm:$0xff] %v1177_v13  ;;  %v1179_v14 = vld [vmem:[%s5163_s27 + $0xae0] sm:$0xff]  ;;  %v1181_v15 = vld [vmem:[%s5163_s27 + $0xaf0] sm:$0xff] }
  0x99   : > { %v1183_v16 = vld [vmem:[%s5163_s27 + $0xb00] sm:$0xff]  ;;  %1180 = vst [vmem:[%s5168_s10 + $0x570] sm:$0xff] %v1179_v14  ;;  %1182 = vst [vmem:[%s5168_s10 + $0x578] sm:$0xff] %v1181_v15  ;;  %v1185_v17 = vld [vmem:[%s5163_s27 + $0xb10] sm:$0xff] }
  0x9a   : > { %1184 = vst [vmem:[%s5168_s10 + $0x580] sm:$0xff] %v1183_v16  ;;  %v1187_v18 = vld [vmem:[%s5163_s27 + $0xb20] sm:$0xff]  ;;  %v1189_v19 = vld [vmem:[%s5163_s27 + $0xb30] sm:$0xff]  ;;  %1186 = vst [vmem:[%s5168_s10 + $0x588] sm:$0xff] %v1185_v17 }
  0x9b   : > { %1188 = vst [vmem:[%s5168_s10 + $0x590] sm:$0xff] %v1187_v18  ;;  %1190 = vst [vmem:[%s5168_s10 + $0x598] sm:$0xff] %v1189_v19  ;;  %v1191_v20 = vld [vmem:[%s5163_s27 + $0xb40] sm:$0xff]  ;;  %v1193_v21 = vld [vmem:[%s5163_s27 + $0xb50] sm:$0xff] }
  0x9c   : > { %v1195_v22 = vld [vmem:[%s5163_s27 + $0xb60] sm:$0xff]  ;;  %1192 = vst [vmem:[%s5168_s10 + $0x5a0] sm:$0xff] %v1191_v20  ;;  %1194 = vst [vmem:[%s5168_s10 + $0x5a8] sm:$0xff] %v1193_v21  ;;  %v1197_v23 = vld [vmem:[%s5163_s27 + $0xb70] sm:$0xff] }
  0x9d   : > { %1196 = vst [vmem:[%s5168_s10 + $0x5b0] sm:$0xff] %v1195_v22  ;;  %v1199_v24 = vld [vmem:[%s5163_s27 + $0xb80] sm:$0xff]  ;;  %v1201_v25 = vld [vmem:[%s5163_s27 + $0xb90] sm:$0xff]  ;;  %1198 = vst [vmem:[%s5168_s10 + $0x5b8] sm:$0xff] %v1197_v23 }
  0x9e   : > { %1200 = vst [vmem:[%s5168_s10 + $0x5c0] sm:$0xff] %v1199_v24  ;;  %1202 = vst [vmem:[%s5168_s10 + $0x5c8] sm:$0xff] %v1201_v25  ;;  %v1203_v26 = vld [vmem:[%s5163_s27 + $0xba0] sm:$0xff]  ;;  %v1205_v27 = vld [vmem:[%s5163_s27 + $0xbb0] sm:$0xff] }
  0x9f   : > { %v1207_v28 = vld [vmem:[%s5163_s27 + $0xbc0] sm:$0xff]  ;;  %1204 = vst [vmem:[%s5168_s10 + $0x5d0] sm:$0xff] %v1203_v26  ;;  %1206 = vst [vmem:[%s5168_s10 + $0x5d8] sm:$0xff] %v1205_v27  ;;  %v1209_v29 = vld [vmem:[%s5163_s27 + $0xbd0] sm:$0xff] }
  0xa0   : > { %1208 = vst [vmem:[%s5168_s10 + $0x5e0] sm:$0xff] %v1207_v28  ;;  %v1211_v30 = vld [vmem:[%s5163_s27 + $0xbe0] sm:$0xff]  ;;  %v1213_v31 = vld [vmem:[%s5163_s27 + $0xbf0] sm:$0xff]  ;;  %1210 = vst [vmem:[%s5168_s10 + $0x5e8] sm:$0xff] %v1209_v29 }
  0xa1   : > { %1212 = vst [vmem:[%s5168_s10 + $0x5f0] sm:$0xff] %v1211_v30  ;;  %1214 = vst [vmem:[%s5168_s10 + $0x5f8] sm:$0xff] %v1213_v31  ;;  %v1215_v32 = vld [vmem:[%s5163_s27 + $0xc00] sm:$0xff]  ;;  %v1217_v33 = vld [vmem:[%s5163_s27 + $0xc10] sm:$0xff] }
  0xa2   : > { %v1219_v34 = vld [vmem:[%s5163_s27 + $0xc20] sm:$0xff]  ;;  %1216 = vst [vmem:[%s5168_s10 + $0x600] sm:$0xff] %v1215_v32  ;;  %1218 = vst [vmem:[%s5168_s10 + $0x608] sm:$0xff] %v1217_v33  ;;  %v1221_v35 = vld [vmem:[%s5163_s27 + $0xc30] sm:$0xff] }
  0xa3   : > { %1220 = vst [vmem:[%s5168_s10 + $0x610] sm:$0xff] %v1219_v34  ;;  %v1223_v36 = vld [vmem:[%s5163_s27 + $0xc40] sm:$0xff]  ;;  %v1225_v37 = vld [vmem:[%s5163_s27 + $0xc50] sm:$0xff]  ;;  %1222 = vst [vmem:[%s5168_s10 + $0x618] sm:$0xff] %v1221_v35 }
  0xa4   : > { %1224 = vst [vmem:[%s5168_s10 + $0x620] sm:$0xff] %v1223_v36  ;;  %1226 = vst [vmem:[%s5168_s10 + $0x628] sm:$0xff] %v1225_v37  ;;  %v1227_v38 = vld [vmem:[%s5163_s27 + $0xc60] sm:$0xff]  ;;  %v1229_v39 = vld [vmem:[%s5163_s27 + $0xc70] sm:$0xff] }
  0xa5   : > { %v1231_v40 = vld [vmem:[%s5163_s27 + $0xc80] sm:$0xff]  ;;  %1228 = vst [vmem:[%s5168_s10 + $0x630] sm:$0xff] %v1227_v38  ;;  %1230 = vst [vmem:[%s5168_s10 + $0x638] sm:$0xff] %v1229_v39  ;;  %v1233_v41 = vld [vmem:[%s5163_s27 + $0xc90] sm:$0xff] }
  0xa6   : > { %1232 = vst [vmem:[%s5168_s10 + $0x640] sm:$0xff] %v1231_v40  ;;  %v1235_v42 = vld [vmem:[%s5163_s27 + $0xca0] sm:$0xff]  ;;  %v1237_v43 = vld [vmem:[%s5163_s27 + $0xcb0] sm:$0xff]  ;;  %1234 = vst [vmem:[%s5168_s10 + $0x648] sm:$0xff] %v1233_v41 }
  0xa7   : > { %1236 = vst [vmem:[%s5168_s10 + $0x650] sm:$0xff] %v1235_v42  ;;  %1238 = vst [vmem:[%s5168_s10 + $0x658] sm:$0xff] %v1237_v43  ;;  %v1239_v44 = vld [vmem:[%s5163_s27 + $0xcc0] sm:$0xff]  ;;  %v1241_v45 = vld [vmem:[%s5163_s27 + $0xcd0] sm:$0xff] }
  0xa8   : > { %v1243_v46 = vld [vmem:[%s5163_s27 + $0xce0] sm:$0xff]  ;;  %1240 = vst [vmem:[%s5168_s10 + $0x660] sm:$0xff] %v1239_v44  ;;  %1242 = vst [vmem:[%s5168_s10 + $0x668] sm:$0xff] %v1241_v45  ;;  %v1245_v47 = vld [vmem:[%s5163_s27 + $0xcf0] sm:$0xff] }
  0xa9   : > { %1244 = vst [vmem:[%s5168_s10 + $0x670] sm:$0xff] %v1243_v46  ;;  %v1247_v48 = vld [vmem:[%s5163_s27 + $0xd00] sm:$0xff]  ;;  %v1249_v49 = vld [vmem:[%s5163_s27 + $0xd10] sm:$0xff]  ;;  %1246 = vst [vmem:[%s5168_s10 + $0x678] sm:$0xff] %v1245_v47 }
  0xaa   : > { %1248 = vst [vmem:[%s5168_s10 + $0x680] sm:$0xff] %v1247_v48  ;;  %1250 = vst [vmem:[%s5168_s10 + $0x688] sm:$0xff] %v1249_v49  ;;  %v1251_v50 = vld [vmem:[%s5163_s27 + $0xd20] sm:$0xff]  ;;  %v1253_v51 = vld [vmem:[%s5163_s27 + $0xd30] sm:$0xff] }
  0xab   : > { %v1255_v52 = vld [vmem:[%s5163_s27 + $0xd40] sm:$0xff]  ;;  %1252 = vst [vmem:[%s5168_s10 + $0x690] sm:$0xff] %v1251_v50  ;;  %1254 = vst [vmem:[%s5168_s10 + $0x698] sm:$0xff] %v1253_v51  ;;  %v1257_v53 = vld [vmem:[%s5163_s27 + $0xd50] sm:$0xff] }
  0xac   : > { %1256 = vst [vmem:[%s5168_s10 + $0x6a0] sm:$0xff] %v1255_v52  ;;  %v1259_v54 = vld [vmem:[%s5163_s27 + $0xd60] sm:$0xff]  ;;  %v1261_v55 = vld [vmem:[%s5163_s27 + $0xd70] sm:$0xff]  ;;  %1258 = vst [vmem:[%s5168_s10 + $0x6a8] sm:$0xff] %v1257_v53 }
  0xad   : > { %1260 = vst [vmem:[%s5168_s10 + $0x6b0] sm:$0xff] %v1259_v54  ;;  %1262 = vst [vmem:[%s5168_s10 + $0x6b8] sm:$0xff] %v1261_v55  ;;  %v1263_v56 = vld [vmem:[%s5163_s27 + $0xd80] sm:$0xff]  ;;  %v1265_v57 = vld [vmem:[%s5163_s27 + $0xd90] sm:$0xff] }
  0xae   : > { %v1267_v58 = vld [vmem:[%s5163_s27 + $0xda0] sm:$0xff]  ;;  %1264 = vst [vmem:[%s5168_s10 + $0x6c0] sm:$0xff] %v1263_v56  ;;  %1266 = vst [vmem:[%s5168_s10 + $0x6c8] sm:$0xff] %v1265_v57  ;;  %v1269_v59 = vld [vmem:[%s5163_s27 + $0xdb0] sm:$0xff] }
  0xaf   : > { %1268 = vst [vmem:[%s5168_s10 + $0x6d0] sm:$0xff] %v1267_v58  ;;  %v1271_v60 = vld [vmem:[%s5163_s27 + $0xdc0] sm:$0xff]  ;;  %v1273_v61 = vld [vmem:[%s5163_s27 + $0xdd0] sm:$0xff]  ;;  %1270 = vst [vmem:[%s5168_s10 + $0x6d8] sm:$0xff] %v1269_v59 }
  0xb0   : > { %1272 = vst [vmem:[%s5168_s10 + $0x6e0] sm:$0xff] %v1271_v60  ;;  %1274 = vst [vmem:[%s5168_s10 + $0x6e8] sm:$0xff] %v1273_v61  ;;  %v1275_v62 = vld [vmem:[%s5163_s27 + $0xde0] sm:$0xff]  ;;  %v1277_v63 = vld [vmem:[%s5163_s27 + $0xdf0] sm:$0xff] }
  0xb1   : > { %v1279_v0 = vld [vmem:[%s5163_s27 + $0xe00] sm:$0xff]  ;;  %1276 = vst [vmem:[%s5168_s10 + $0x6f0] sm:$0xff] %v1275_v62  ;;  %1278 = vst [vmem:[%s5168_s10 + $0x6f8] sm:$0xff] %v1277_v63  ;;  %v1281_v1 = vld [vmem:[%s5163_s27 + $0xe10] sm:$0xff] }
  0xb2   : > { %1280 = vst [vmem:[%s5168_s10 + $0x700] sm:$0xff] %v1279_v0  ;;  %v1283_v2 = vld [vmem:[%s5163_s27 + $0xe20] sm:$0xff]  ;;  %v1285_v3 = vld [vmem:[%s5163_s27 + $0xe30] sm:$0xff]  ;;  %1282 = vst [vmem:[%s5168_s10 + $0x708] sm:$0xff] %v1281_v1 }
  0xb3   : > { %1284 = vst [vmem:[%s5168_s10 + $0x710] sm:$0xff] %v1283_v2  ;;  %1286 = vst [vmem:[%s5168_s10 + $0x718] sm:$0xff] %v1285_v3  ;;  %v1287_v4 = vld [vmem:[%s5163_s27 + $0xe40] sm:$0xff]  ;;  %v1289_v5 = vld [vmem:[%s5163_s27 + $0xe50] sm:$0xff] }
  0xb4   : > { %v1291_v6 = vld [vmem:[%s5163_s27 + $0xe60] sm:$0xff]  ;;  %1288 = vst [vmem:[%s5168_s10 + $0x720] sm:$0xff] %v1287_v4  ;;  %1290 = vst [vmem:[%s5168_s10 + $0x728] sm:$0xff] %v1289_v5  ;;  %v1293_v7 = vld [vmem:[%s5163_s27 + $0xe70] sm:$0xff] }
  0xb5   : > { %1292 = vst [vmem:[%s5168_s10 + $0x730] sm:$0xff] %v1291_v6  ;;  %v1295_v8 = vld [vmem:[%s5163_s27 + $0xe80] sm:$0xff]  ;;  %v1297_v9 = vld [vmem:[%s5163_s27 + $0xe90] sm:$0xff]  ;;  %1294 = vst [vmem:[%s5168_s10 + $0x738] sm:$0xff] %v1293_v7 }
  0xb6   : > { %1296 = vst [vmem:[%s5168_s10 + $0x740] sm:$0xff] %v1295_v8  ;;  %1298 = vst [vmem:[%s5168_s10 + $0x748] sm:$0xff] %v1297_v9  ;;  %v1299_v10 = vld [vmem:[%s5163_s27 + $0xea0] sm:$0xff]  ;;  %v1301_v11 = vld [vmem:[%s5163_s27 + $0xeb0] sm:$0xff] }
  0xb7   : > { %v1303_v12 = vld [vmem:[%s5163_s27 + $0xec0] sm:$0xff]  ;;  %1300 = vst [vmem:[%s5168_s10 + $0x750] sm:$0xff] %v1299_v10  ;;  %1302 = vst [vmem:[%s5168_s10 + $0x758] sm:$0xff] %v1301_v11  ;;  %v1305_v13 = vld [vmem:[%s5163_s27 + $0xed0] sm:$0xff] }
  0xb8   : > { %1304 = vst [vmem:[%s5168_s10 + $0x760] sm:$0xff] %v1303_v12  ;;  %v1307_v14 = vld [vmem:[%s5163_s27 + $0xee0] sm:$0xff]  ;;  %v1309_v15 = vld [vmem:[%s5163_s27 + $0xef0] sm:$0xff]  ;;  %1306 = vst [vmem:[%s5168_s10 + $0x768] sm:$0xff] %v1305_v13 }
  0xb9   : > { %1308 = vst [vmem:[%s5168_s10 + $0x770] sm:$0xff] %v1307_v14  ;;  %1310 = vst [vmem:[%s5168_s10 + $0x778] sm:$0xff] %v1309_v15  ;;  %v1311_v16 = vld [vmem:[%s5163_s27 + $0xf00] sm:$0xff]  ;;  %v1313_v17 = vld [vmem:[%s5163_s27 + $0xf10] sm:$0xff] }
  0xba   : > { %v1315_v18 = vld [vmem:[%s5163_s27 + $0xf20] sm:$0xff]  ;;  %1312 = vst [vmem:[%s5168_s10 + $0x780] sm:$0xff] %v1311_v16  ;;  %1314 = vst [vmem:[%s5168_s10 + $0x788] sm:$0xff] %v1313_v17  ;;  %v1317_v19 = vld [vmem:[%s5163_s27 + $0xf30] sm:$0xff] }
  0xbb   : > { %1316 = vst [vmem:[%s5168_s10 + $0x790] sm:$0xff] %v1315_v18  ;;  %v1319_v20 = vld [vmem:[%s5163_s27 + $0xf40] sm:$0xff]  ;;  %v1321_v21 = vld [vmem:[%s5163_s27 + $0xf50] sm:$0xff]  ;;  %1318 = vst [vmem:[%s5168_s10 + $0x798] sm:$0xff] %v1317_v19 }
  0xbc   : > { %1320 = vst [vmem:[%s5168_s10 + $0x7a0] sm:$0xff] %v1319_v20  ;;  %1322 = vst [vmem:[%s5168_s10 + $0x7a8] sm:$0xff] %v1321_v21  ;;  %v1323_v22 = vld [vmem:[%s5163_s27 + $0xf60] sm:$0xff]  ;;  %v1325_v23 = vld [vmem:[%s5163_s27 + $0xf70] sm:$0xff] }
  0xbd   : > { %v1327_v24 = vld [vmem:[%s5163_s27 + $0xf80] sm:$0xff]  ;;  %1324 = vst [vmem:[%s5168_s10 + $0x7b0] sm:$0xff] %v1323_v22  ;;  %1326 = vst [vmem:[%s5168_s10 + $0x7b8] sm:$0xff] %v1325_v23  ;;  %v1329_v25 = vld [vmem:[%s5163_s27 + $0xf90] sm:$0xff] }
  0xbe   : > { %1328 = vst [vmem:[%s5168_s10 + $0x7c0] sm:$0xff] %v1327_v24  ;;  %v1331_v26 = vld [vmem:[%s5163_s27 + $0xfa0] sm:$0xff]  ;;  %v1333_v27 = vld [vmem:[%s5163_s27 + $0xfb0] sm:$0xff]  ;;  %1330 = vst [vmem:[%s5168_s10 + $0x7c8] sm:$0xff] %v1329_v25 }
  0xbf   : > { %1332 = vst [vmem:[%s5168_s10 + $0x7d0] sm:$0xff] %v1331_v26  ;;  %1334 = vst [vmem:[%s5168_s10 + $0x7d8] sm:$0xff] %v1333_v27  ;;  %v1335_v28 = vld [vmem:[%s5163_s27 + $0xfc0] sm:$0xff]  ;;  %v1337_v29 = vld [vmem:[%s5163_s27 + $0xfd0] sm:$0xff] }
  0xc0   : > { %v1339_v30 = vld [vmem:[%s5163_s27 + $0xfe0] sm:$0xff]  ;;  %1336 = vst [vmem:[%s5168_s10 + $0x7e0] sm:$0xff] %v1335_v28  ;;  %1338 = vst [vmem:[%s5168_s10 + $0x7e8] sm:$0xff] %v1337_v29  ;;  %v1341_v31 = vld [vmem:[%s5163_s27 + $0xff0] sm:$0xff] }
  0xc1   : > { %1340 = vst [vmem:[%s5168_s10 + $0x7f0] sm:$0xff] %v1339_v30  ;;  %1342 = vst [vmem:[%s5168_s10 + $0x7f8] sm:$0xff] %v1341_v31 }
  0xc2 PF: > { %p4020_p0 = scmp.ge.s32.totalorder %s4951_s25, 1  ;;  %p1347_p1 = scmp.lt.s32.totalorder %s4951_s25, 5 }
  0xc4   : > { %p1348_p2 = pnand %p4020_p0, %p1347_p1 }
  0xc5   : > { %s1361_s0 = sand.u32 (!%p1348_p2), 1, %s4919_s17   ;;  %s1382_s28 = sand.u32 (!%p1348_p2), 1, %s4911_s15  }
  0xc6   : > { %1351 = sbr.rel (%p1348_p2) target bundleno = 730 (0x2da), region = 81  ;;  %s4022_s11 = sshll.u32 (!%p1348_p2), %s1361_s0, 11 }
  0xc7   : > { %s5683_s26 = sshll.u32 (!%p1348_p2), %s1382_s28, 5  ;;  %s4024_s5 = sshll.u32 (!%p1348_p2), %s4939_s22, 1 }
  0xc8   : > { %s5686_s29 = scalar_lea.vmem (!%p1348_p2), [#allocation4], %s4022_s11  ;;  %p1416_p3 = scmp.lt.s32.totalorder (!%p1348_p2), %s4024_s5, 3 }
  0xc9   : > { %v4481_v32 = vld [vmem:[%s5686_s29 + $0x4] ss:$8 sps:$4 sm:$0xff] (!%p1348_p2)   ;;  %v4485_v34 = vld [vmem:[%s5686_s29] ss:$8 sps:$4 sm:$0xff] (!%p1348_p2)   ;;  %v4487_v36 = vld [vmem:[%s5686_s29 + $0x14] ss:$8 sps:$4 sm:$0xff] (!%p1348_p2)  }
  0xca   : > { %v4483_v33 = vld [vmem:[%s5686_s29 + $0x404] ss:$8 sps:$4 sm:$0xff] (!%p1348_p2)   ;;  %3161 = vmatprep.subr.bf16.mxu1 (!%p1348_p2), %v4481_v32  ;;  %v4486_v35 = vld [vmem:[%s5686_s29 + $0x400] ss:$8 sps:$4 sm:$0xff] (!%p1348_p2)   ;;  %v4489_v37 = vld [vmem:[%s5686_s29 + $0x414] ss:$8 sps:$4 sm:$0xff] (!%p1348_p2)  }
  0xcb   : > { %3373 = vmatprep.subr.bf16.mxu0 (!%p1348_p2), %v4483_v33  ;;  %3162 = vmatpush1.bf16.msra.mxu1 (!%p1348_p2), %v4485_v34  ;;  %v4491_v38 = vld [vmem:[%s5686_s29 + $0x10] ss:$8 sps:$4 sm:$0xff] (!%p1348_p2)   ;;  %v4493_v40 = vld [vmem:[%s5686_s29 + $0x24] ss:$8 sps:$4 sm:$0xff] (!%p1348_p2)   ;;  %v4497_v42 = vld [vmem:[%s5686_s29 + $0x20] ss:$8 sps:$4 sm:$0xff] (!%p1348_p2)  }
  0xcc   : > { %3374 = vmatpush1.bf16.msra.mxu0 (!%p1348_p2), %v4486_v35  ;;  %3163 = vmatprep.subr.bf16.mxu1 (!%p1348_p2), %v4487_v36  ;;  %v4492_v39 = vld [vmem:[%s5686_s29 + $0x410] ss:$8 sps:$4 sm:$0xff] (!%p1348_p2)   ;;  %v4495_v41 = vld [vmem:[%s5686_s29 + $0x424] ss:$8 sps:$4 sm:$0xff] (!%p1348_p2)   ;;  %v4498_v43 = vld [vmem:[%s5686_s29 + $0x420] ss:$8 sps:$4 sm:$0xff] (!%p1348_p2)  }
  0xcd   : > { %s6128_s5 = smov (!%p1416_p3, %s4024_s5), 3  ;;  %3375 = vmatprep.subr.bf16.mxu0 %v4489_v37  ;;  %v4499_v44 = vld [vmem:[%s5686_s29 + $0x34] ss:$8 sps:$4 sm:$0xff]   ;;  %v4503_v46 = vld [vmem:[%s5686_s29 + $0x30] ss:$8 sps:$4 sm:$0xff]   ;;  %s1354_s10 = sand.u32 1, %s4927_s19  }
  0xce   : > { %s4025_s15 = sshll.u32 %s6128_s5, 3  ;;  %v4501_v45 = vld [vmem:[%s5686_s29 + $0x434] ss:$8 sps:$4 sm:$0xff]   ;;  %v4504_v47 = vld [vmem:[%s5686_s29 + $0x430] ss:$8 sps:$4 sm:$0xff]   ;;  %s4021_s0 = sshll.u32 %s1354_s10, 8 }
  0xcf   : > { %s5699_s30 = scalar_lea.vmem %s6098_s3, %s4025_s15  ;;  %s5704_s9 = scalar_lea.vmem %s6099_s4, %s4025_s15  ;;  %3164 = vmatpush1.bf16.msra.mxu1 %v4491_v38  ;;  %v4505_v48 = vld [vmem:[%s5686_s29 + $0x44] ss:$8 sps:$4 sm:$0xff]   ;;  %v4509_v50 = vld [vmem:[%s5686_s29 + $0x40] ss:$8 sps:$4 sm:$0xff]   ;;  %v4511_v52 = vld [vmem:[%s5686_s29 + $0x54] ss:$8 sps:$4 sm:$0xff]  }
  0xd0   : > { %3376 = vmatpush1.bf16.msra.mxu0 %v4492_v39  ;;  %3165 = vmatprep.subr.bf16.mxu1 %v4493_v40  ;;  %v4507_v49 = vld [vmem:[%s5686_s29 + $0x444] ss:$8 sps:$4 sm:$0xff]   ;;  %v4510_v51 = vld [vmem:[%s5686_s29 + $0x440] ss:$8 sps:$4 sm:$0xff]   ;;  %v4513_v53 = vld [vmem:[%s5686_s29 + $0x454] ss:$8 sps:$4 sm:$0xff]  }
  0xd1   : > { %3377 = vmatprep.subr.bf16.mxu0 %v4495_v41  ;;  %v4515_v54 = vld [vmem:[%s5686_s29 + $0x50] ss:$8 sps:$4 sm:$0xff]   ;;  %v4517_v56 = vld [vmem:[%s5686_s29 + $0x64] ss:$8 sps:$4 sm:$0xff]   ;;  %v4521_v58 = vld [vmem:[%s5686_s29 + $0x60] ss:$8 sps:$4 sm:$0xff]  }
  0xd2   : > { %v4516_v55 = vld [vmem:[%s5686_s29 + $0x450] ss:$8 sps:$4 sm:$0xff]   ;;  %v4519_v57 = vld [vmem:[%s5686_s29 + $0x464] ss:$8 sps:$4 sm:$0xff]   ;;  %v4522_v59 = vld [vmem:[%s5686_s29 + $0x460] ss:$8 sps:$4 sm:$0xff]  }
  0xd3   : > { %3166 = vmatpush1.bf16.msra.mxu1 %v4497_v42  ;;  %v4523_v60 = vld [vmem:[%s5686_s29 + $0x74] ss:$8 sps:$4 sm:$0xff]   ;;  %v4527_v62 = vld [vmem:[%s5686_s29 + $0x70] ss:$8 sps:$4 sm:$0xff]   ;;  %v4529_v0 = vld [vmem:[%s5686_s29 + $0x84] ss:$8 sps:$4 sm:$0xff]  }
  0xd4   : > { %3378 = vmatpush1.bf16.msra.mxu0 %v4498_v43  ;;  %3167 = vmatprep.subr.bf16.mxu1 %v4499_v44  ;;  %v4525_v61 = vld [vmem:[%s5686_s29 + $0x474] ss:$8 sps:$4 sm:$0xff]   ;;  %v4528_v63 = vld [vmem:[%s5686_s29 + $0x470] ss:$8 sps:$4 sm:$0xff]   ;;  %v4531_v1 = vld [vmem:[%s5686_s29 + $0x484] ss:$8 sps:$4 sm:$0xff]  }
  0xd5   : > { %3379 = vmatprep.subr.bf16.mxu0 %v4501_v45  ;;  %v4533_v2 = vld [vmem:[%s5686_s29 + $0x80] ss:$8 sps:$4 sm:$0xff]   ;;  %v4535_v4 = vld [vmem:[%s5686_s29 + $0x94] ss:$8 sps:$4 sm:$0xff]   ;;  %v4539_v6 = vld [vmem:[%s5686_s29 + $0x90] ss:$8 sps:$4 sm:$0xff]  }
  0xd6   : > { %v4534_v3 = vld [vmem:[%s5686_s29 + $0x480] ss:$8 sps:$4 sm:$0xff]   ;;  %v4537_v5 = vld [vmem:[%s5686_s29 + $0x494] ss:$8 sps:$4 sm:$0xff]   ;;  %v4540_v7 = vld [vmem:[%s5686_s29 + $0x490] ss:$8 sps:$4 sm:$0xff]  }
  0xd7   : > { %3168 = vmatpush1.bf16.msra.mxu1 %v4503_v46  ;;  %v4541_v8 = vld [vmem:[%s5686_s29 + $0xa4] ss:$8 sps:$4 sm:$0xff]   ;;  %v4545_v10 = vld [vmem:[%s5686_s29 + $0xa0] ss:$8 sps:$4 sm:$0xff]   ;;  %v4547_v12 = vld [vmem:[%s5686_s29 + $0xb4] ss:$8 sps:$4 sm:$0xff]  }
  0xd8   : > { %3380 = vmatpush1.bf16.msra.mxu0 %v4504_v47  ;;  %3169 = vmatprep.subr.bf16.mxu1 %v4505_v48  ;;  %v4543_v9 = vld [vmem:[%s5686_s29 + $0x4a4] ss:$8 sps:$4 sm:$0xff]   ;;  %v4546_v11 = vld [vmem:[%s5686_s29 + $0x4a0] ss:$8 sps:$4 sm:$0xff]   ;;  %v4549_v13 = vld [vmem:[%s5686_s29 + $0x4b4] ss:$8 sps:$4 sm:$0xff]  }
  0xd9   : > { %3381 = vmatprep.subr.bf16.mxu0 %v4507_v49  ;;  %v4551_v14 = vld [vmem:[%s5686_s29 + $0xb0] ss:$8 sps:$4 sm:$0xff]   ;;  %s5747_s19 = scalar_lea.vmem [#allocation3], %s4021_s0  ;;  %v4553_v18 = vld [vmem:[%s5686_s29 + $0xc4] ss:$8 sps:$4 sm:$0xff]   ;;  %s6038_s28 = scalar_lea.vmem [#allocation5], %s5683_s26 }
  0xda   : > { %v4552_v15 = vld [vmem:[%s5686_s29 + $0x4b0] ss:$8 sps:$4 sm:$0xff]   ;;  %v1433_v16 = vld [vmem:[%s5747_s19] sm:$0xff]  ;;  %v4559_v26 = vld [vmem:[%s5686_s29 + $0xd4] ss:$8 sps:$4 sm:$0xff]   ;;  %p4316_p4 = scmp.ne.s32.totalorder %s4935_s21, 0 }
  0xdb   : > { %3170 = vmatpush1.bf16.msra.mxu1 %v4509_v50  ;;  %v1441_v17 = vld [vmem:[%s5747_s19 + $0x40] sm:$0xff]  ;;  %v4561_v27 = vld [vmem:[%s5686_s29 + $0x4d4] ss:$8 sps:$4 sm:$0xff]   ;;  %v4563_v28 = vld [vmem:[%s5686_s29 + $0xd0] ss:$8 sps:$4 sm:$0xff]  }
  0xdc   : > { %3382 = vmatpush1.bf16.msra.mxu0 %v4510_v51  ;;  %3171 = vmatprep.subr.bf16.mxu1 %v4511_v52  ;;  %v4555_v19 = vld [vmem:[%s5686_s29 + $0x4c4] ss:$8 sps:$4 sm:$0xff]   ;;  %v4029_v20 = vcombine.high %v1433_v16, %v1441_v17  ;;  %v4557_v24 = vld [vmem:[%s5686_s29 + $0xc0] ss:$8 sps:$4 sm:$0xff]   ;;  %v4564_v29 = vld [vmem:[%s5686_s29 + $0x4d0] ss:$8 sps:$4 sm:$0xff]   ;;  %v4028_v40 = vcombine.low %v1433_v16, %v1441_v17 }
  0xdd   : > { %3383 = vmatprep.subr.bf16.mxu0 %v4513_v53  ;;  %v1437_v21 = vld [vmem:[%s5747_s19 + $0x20] sm:$0xff]  ;;  %v4571_v34 = vld [vmem:[%s5686_s29 + $0xf4] ss:$8 sps:$4 sm:$0xff]   ;;  %v4575_v36 = vld [vmem:[%s5686_s29 + $0xf0] ss:$8 sps:$4 sm:$0xff]  }
  0xde   : > { %v1445_v22 = vld [vmem:[%s5747_s19 + $0x60] sm:$0xff]  ;;  %3193 = vmatprep.mubr.bf16.mxu1 %v4029_v20  ;;  %v4573_v35 = vld [vmem:[%s5686_s29 + $0x4f4] ss:$8 sps:$4 sm:$0xff]   ;;  %v4576_v37 = vld [vmem:[%s5686_s29 + $0x4f0] ss:$8 sps:$4 sm:$0xff]  }
  0xdf   : > { %3172 = vmatpush1.bf16.msra.mxu1 %v4515_v54  ;;  %v4037_v23 = vcombine.high %v1437_v21, %v1445_v22  ;;  %v4558_v25 = vld [vmem:[%s5686_s29 + $0x4c0] ss:$8 sps:$4 sm:$0xff]   ;;  %v4565_v30 = vld [vmem:[%s5686_s29 + $0xe4] ss:$8 sps:$4 sm:$0xff]   ;;  %v4036_v42 = vcombine.low %v1437_v21, %v1445_v22  ;;  %v4585_v44 = vld [vmem:[%s5686_s29 + $0x114] ss:$8 sps:$4 sm:$0xff]  }
  0xe0   : > { %3384 = vmatpush1.bf16.msra.mxu0 %v4516_v55  ;;  %3173 = vmatprep.subr.bf16.mxu1 %v4517_v56  ;;  %v4567_v31 = vld [vmem:[%s5686_s29 + $0x4e4] ss:$8 sps:$4 sm:$0xff]   ;;  %v4569_v32 = vld [vmem:[%s5686_s29 + $0xe0] ss:$8 sps:$4 sm:$0xff]   ;;  %v4588_v45 = vld [vmem:[%s5686_s29 + $0x514] ss:$8 sps:$4 sm:$0xff]  }
  0xe1   : > { %3385 = vmatprep.subr.bf16.mxu0 %v4519_v57  ;;  %3405 = vmatprep.mubr.bf16.mxu0 %v4037_v23  ;;  %v4570_v33 = vld [vmem:[%s5686_s29 + $0x4e0] ss:$8 sps:$4 sm:$0xff]   ;;  %v4579_v38 = vld [vmem:[%s5686_s29 + $0x104] ss:$8 sps:$4 sm:$0xff]   ;;  %v4583_v46 = vld [vmem:[%s5686_s29 + $0x110] ss:$8 sps:$4 sm:$0xff]  }
  0xe2   : > { %v4582_v39 = vld [vmem:[%s5686_s29 + $0x504] ss:$8 sps:$4 sm:$0xff]   ;;  %v4577_v41 = vld [vmem:[%s5686_s29 + $0x100] ss:$8 sps:$4 sm:$0xff]   ;;  %v4586_v47 = vld [vmem:[%s5686_s29 + $0x510] ss:$8 sps:$4 sm:$0xff]  }
  0xe3   : > { %3174 = vmatpush1.bf16.msra.mxu1 %v4521_v58  ;;  %v4580_v43 = vld [vmem:[%s5686_s29 + $0x500] ss:$8 sps:$4 sm:$0xff]   ;;  %v4591_v48 = vld [vmem:[%s5686_s29 + $0x124] ss:$8 sps:$4 sm:$0xff]   ;;  %v4597_v52 = vld [vmem:[%s5686_s29 + $0x134] ss:$8 sps:$4 sm:$0xff]  }
  0xe4   : > { %3386 = vmatpush1.bf16.msra.mxu0 %v4522_v59  ;;  %3175 = vmatprep.subr.bf16.mxu1 %v4523_v60  ;;  %v4594_v49 = vld [vmem:[%s5686_s29 + $0x524] ss:$8 sps:$4 sm:$0xff]   ;;  %v4589_v50 = vld [vmem:[%s5686_s29 + $0x120] ss:$8 sps:$4 sm:$0xff]   ;;  %v4600_v53 = vld [vmem:[%s5686_s29 + $0x534] ss:$8 sps:$4 sm:$0xff]  }
  0xe5   : > { %3387 = vmatprep.subr.bf16.mxu0 %v4525_v61  ;;  %v4592_v51 = vld [vmem:[%s5686_s29 + $0x520] ss:$8 sps:$4 sm:$0xff]   ;;  %v4595_v54 = vld [vmem:[%s5686_s29 + $0x130] ss:$8 sps:$4 sm:$0xff]   ;;  %v4603_v56 = vld [vmem:[%s5686_s29 + $0x144] ss:$8 sps:$4 sm:$0xff]  }
  0xe6   : > { %v4598_v55 = vld [vmem:[%s5686_s29 + $0x530] ss:$8 sps:$4 sm:$0xff]   ;;  %v4606_v57 = vld [vmem:[%s5686_s29 + $0x544] ss:$8 sps:$4 sm:$0xff]   ;;  %v4601_v58 = vld [vmem:[%s5686_s29 + $0x140] ss:$8 sps:$4 sm:$0xff]  }
  0xe7   : > { %3176 = vmatpush1.bf16.msra.mxu1 %v4527_v62  ;;  %v4604_v59 = vld [vmem:[%s5686_s29 + $0x540] ss:$8 sps:$4 sm:$0xff]   ;;  %v4609_v60 = vld [vmem:[%s5686_s29 + $0x154] ss:$8 sps:$4 sm:$0xff]   ;;  %v4622_v20 = vld [vmem:[%s5686_s29 + $0x570] ss:$8 sps:$4 sm:$0xff]  }
  0xe8   : > { %3388 = vmatpush1.bf16.msra.mxu0 %v4528_v63  ;;  %3177 = vmatprep.subr.bf16.mxu1 %v4529_v0  ;;  %v4612_v61 = vld [vmem:[%s5686_s29 + $0x554] ss:$8 sps:$4 sm:$0xff]   ;;  %v1449_v62 = vld [vmem:[%s5747_s19 + $0x80] sm:$0xff]  ;;  %v4607_v0 = vld [vmem:[%s5686_s29 + $0x150] ss:$8 sps:$4 sm:$0xff]  }
  0xe9   : > { %3389 = vmatprep.subr.bf16.mxu0 %v4531_v1  ;;  %v1457_v63 = vld [vmem:[%s5747_s19 + $0xc0] sm:$0xff]  ;;  %v5812_v17 = vld [vmem:[%s5747_s19 + $0x28] sm:$0xff] }
  0xea   : > { %v4045_v1 = vcombine.high %v1449_v62, %v1457_v63  ;;  %v4627_v22 = vld [vmem:[%s5686_s29 + $0x184] ss:$8 sps:$4 sm:$0xff]  }
  0xeb   : > { %3178 = vmatpush1.bf16.msra.mxu1 %v4533_v2  ;;  %v4610_v2 = vld [vmem:[%s5686_s29 + $0x550] ss:$8 sps:$4 sm:$0xff]   ;;  %v4630_v23 = vld [vmem:[%s5686_s29 + $0x584] ss:$8 sps:$4 sm:$0xff]  }
  0xec   : > { %3390 = vmatpush1.bf16.msra.mxu0 %v4534_v3  ;;  %3179 = vmatprep.subr.bf16.mxu1 %v4535_v4  ;;  %v1453_v3 = vld [vmem:[%s5747_s19 + $0xa0] sm:$0xff] }
  0xed   : > { %3391 = vmatprep.subr.bf16.mxu0 %v4537_v5  ;;  %v1461_v4 = vld [vmem:[%s5747_s19 + $0xe0] sm:$0xff]  ;;  %v4044_v5 = vcombine.low %v1449_v62, %v1457_v63  ;;  %v4681_v62 = vld [vmem:[%s5686_s29 + $0x214] ss:$8 sps:$4 sm:$0xff]  }
  0xee   : > { %v4684_v63 = vld [vmem:[%s5686_s29 + $0x614] ss:$8 sps:$4 sm:$0xff]  }
  0xef   : > { %3180 = vmatpush1.bf16.msra.mxu1 %v4539_v6  ;;  %v4615_v6 = vld [vmem:[%s5686_s29 + $0x164] ss:$8 sps:$4 sm:$0xff]  }
  0xf0   : > { %3392 = vmatpush1.bf16.msra.mxu0 %v4540_v7  ;;  %3181 = vmatprep.subr.bf16.mxu1 %v4541_v8  ;;  %v4053_v7 = vcombine.high %v1453_v3, %v1461_v4  ;;  %v4052_v8 = vcombine.low %v1453_v3, %v1461_v4  ;;  %v4679_v4 = vld [vmem:[%s5686_s29 + $0x210] ss:$8 sps:$4 sm:$0xff]  }
  0xf1   : > { %3393 = vmatprep.subr.bf16.mxu0 %v4543_v9  ;;  %v4618_v9 = vld [vmem:[%s5686_s29 + $0x564] ss:$8 sps:$4 sm:$0xff]  }
  0xf3   : > { %3182 = vmatpush1.bf16.msra.mxu1 %v4545_v10  ;;  %v4613_v10 = vld [vmem:[%s5686_s29 + $0x160] ss:$8 sps:$4 sm:$0xff]  }
  0xf4   : > { %3394 = vmatpush1.bf16.msra.mxu0 %v4546_v11  ;;  %3183 = vmatprep.subr.bf16.mxu1 %v4547_v12  ;;  %v4616_v11 = vld [vmem:[%s5686_s29 + $0x560] ss:$8 sps:$4 sm:$0xff]  }
  0xf5   : > { %3395 = vmatprep.subr.bf16.mxu0 %v4549_v13  ;;  %v5802_v12 = vld [vmem:[%s5747_s19 + $0x8] sm:$0xff] }
  0xf6   : > { %v5805_v13 = vld [vmem:[%s5747_s19 + $0x48] sm:$0xff] }
  0xf7   : > { %3184 = vmatpush1.bf16.msra.mxu1 %v4551_v14  ;;  %v4621_v14 = vld [vmem:[%s5686_s29 + $0x174] ss:$8 sps:$4 sm:$0xff]   ;;  %v4031_v16 = vcombine.high %v5802_v12, %v5805_v13 }
  0xf8   : > { %3396 = vmatpush1.bf16.msra.mxu0 %v4552_v15  ;;  %3185 = vmatprep.subr.bf16.mxu1 %v4553_v18  ;;  %v4624_v15 = vld [vmem:[%s5686_s29 + $0x574] ss:$8 sps:$4 sm:$0xff]   ;;  %v5815_v18 = vld [vmem:[%s5747_s19 + $0x68] sm:$0xff] }
  0xf9   : > { %3397 = vmatprep.subr.bf16.mxu0 %v4555_v19  ;;  %v4619_v19 = vld [vmem:[%s5686_s29 + $0x170] ss:$8 sps:$4 sm:$0xff]   ;;  %v4039_v21 = vcombine.high %v5812_v17, %v5815_v18 }
  0xfb   : > { %3186 = vmatpush1.bf16.msra.mxu1 %v4557_v24  ;;  %v4625_v24 = vld [vmem:[%s5686_s29 + $0x180] ss:$8 sps:$4 sm:$0xff]  }
  0xfc   : > { %3398 = vmatpush1.bf16.msra.mxu0 %v4558_v25  ;;  %3187 = vmatprep.subr.bf16.mxu1 %v4559_v26  ;;  %v4628_v25 = vld [vmem:[%s5686_s29 + $0x580] ss:$8 sps:$4 sm:$0xff]   ;;  %v4633_v26 = vld [vmem:[%s5686_s29 + $0x194] ss:$8 sps:$4 sm:$0xff]  }
  0xfd   : > { %3399 = vmatprep.subr.bf16.mxu0 %v4561_v27  ;;  %v4636_v27 = vld [vmem:[%s5686_s29 + $0x594] ss:$8 sps:$4 sm:$0xff]  }
  0xff   : > { %3188 = vmatpush1.bf16.msra.mxu1 %v4563_v28  ;;  %v4631_v28 = vld [vmem:[%s5686_s29 + $0x190] ss:$8 sps:$4 sm:$0xff]  }
 0x100   : > { %3400 = vmatpush1.bf16.msra.mxu0 %v4564_v29  ;;  %3189 = vmatprep.subr.bf16.mxu1 %v4565_v30  ;;  %v4634_v29 = vld [vmem:[%s5686_s29 + $0x590] ss:$8 sps:$4 sm:$0xff]   ;;  %v4639_v30 = vld [vmem:[%s5686_s29 + $0x1a4] ss:$8 sps:$4 sm:$0xff]  }
 0x101   : > { %3401 = vmatprep.subr.bf16.mxu0 %v4567_v31  ;;  %v4642_v31 = vld [vmem:[%s5686_s29 + $0x5a4] ss:$8 sps:$4 sm:$0xff]  }
 0x103   : > { %3190 = vmatpush1.bf16.msra.mxu1 %v4569_v32  ;;  %v4637_v32 = vld [vmem:[%s5686_s29 + $0x1a0] ss:$8 sps:$4 sm:$0xff]  }
 0x104   : > { %3402 = vmatpush1.bf16.msra.mxu0 %v4570_v33  ;;  %3191 = vmatprep.subr.bf16.mxu1 %v4571_v34  ;;  %v4640_v33 = vld [vmem:[%s5686_s29 + $0x5a0] ss:$8 sps:$4 sm:$0xff]   ;;  %v4645_v34 = vld [vmem:[%s5686_s29 + $0x1b4] ss:$8 sps:$4 sm:$0xff]  }
 0x105   : > { %3403 = vmatprep.subr.bf16.mxu0 %v4573_v35  ;;  %v4648_v35 = vld [vmem:[%s5686_s29 + $0x5b4] ss:$8 sps:$4 sm:$0xff]  }
 0x107   : > { %3192 = vmatpush1.bf16.msra.mxu1 %v4575_v36  ;;  %v4643_v36 = vld [vmem:[%s5686_s29 + $0x1b0] ss:$8 sps:$4 sm:$0xff]  }
 0x108   : > { %3404 = vmatpush1.bf16.msra.mxu0 %v4576_v37  ;;  %3214 = vmatprep.subr.bf16.mxu1 %v4579_v38  ;;  %v4646_v37 = vld [vmem:[%s5686_s29 + $0x5b0] ss:$8 sps:$4 sm:$0xff]   ;;  %v4651_v38 = vld [vmem:[%s5686_s29 + $0x1c4] ss:$8 sps:$4 sm:$0xff]  }
 0x109   : > { %3426 = vmatprep.subr.bf16.mxu0 %v4582_v39  ;;  %v4654_v39 = vld [vmem:[%s5686_s29 + $0x5c4] ss:$8 sps:$4 sm:$0xff]  }
 0x10a   : > { %3194 = vmatmul.mubr.bf16.vlgmr.msra.gmra.mrb[0].mxu1 %v4028_v40  ;;  %v4649_v40 = vld [vmem:[%s5686_s29 + $0x1c0] ss:$8 sps:$4 sm:$0xff]  }
 0x10b   : > { %3406 = vmatmul.mubr.bf16.vlgmr.msra.gmra.mrb[0].mxu0 %v4036_v42  ;;  %3215 = vmatpush1.bf16.msra.mxu1 %v4577_v41  ;;  %v4652_v41 = vld [vmem:[%s5686_s29 + $0x5c0] ss:$8 sps:$4 sm:$0xff]   ;;  %v4657_v42 = vld [vmem:[%s5686_s29 + $0x1d4] ss:$8 sps:$4 sm:$0xff]  }
 0x10c   : > { %3427 = vmatpush1.bf16.msra.mxu0 %v4580_v43  ;;  %3216 = vmatprep.subr.bf16.mxu1 %v4585_v44  ;;  %v4660_v43 = vld [vmem:[%s5686_s29 + $0x5d4] ss:$8 sps:$4 sm:$0xff]   ;;  %v4655_v44 = vld [vmem:[%s5686_s29 + $0x1d0] ss:$8 sps:$4 sm:$0xff]  }
 0x10d   : > { %3428 = vmatprep.subr.bf16.mxu0 %v4588_v45  ;;  %3203 = vmatprep.mubr.bf16.mxu1 %v4045_v1  ;;  %v4658_v45 = vld [vmem:[%s5686_s29 + $0x5d0] ss:$8 sps:$4 sm:$0xff]   ;;  %v1462_v1 = vld [vmem:[%s5747_s19 + $0xe8] sm:$0xff] }
 0x10e   : > { %3415 = vmatprep.mubr.bf16.mxu0 %v4053_v7  ;;  %v4690_v7 = vld [vmem:[%s5686_s29 + $0x624] ss:$8 sps:$4 sm:$0xff]  }
 0x10f   : > { %3217 = vmatpush1.bf16.msra.mxu1 %v4583_v46  ;;  %v4663_v46 = vld [vmem:[%s5686_s29 + $0x1e4] ss:$8 sps:$4 sm:$0xff]  }
 0x110   : > { %3429 = vmatpush1.bf16.msra.mxu0 %v4586_v47  ;;  %3218 = vmatprep.subr.bf16.mxu1 %v4591_v48  ;;  %v4666_v47 = vld [vmem:[%s5686_s29 + $0x5e4] ss:$8 sps:$4 sm:$0xff]   ;;  %v4661_v48 = vld [vmem:[%s5686_s29 + $0x1e0] ss:$8 sps:$4 sm:$0xff]  }
 0x111   : > { %3430 = vmatprep.subr.bf16.mxu0 %v4594_v49  ;;  %v4664_v49 = vld [vmem:[%s5686_s29 + $0x5e0] ss:$8 sps:$4 sm:$0xff]  }
 0x112   : > { %3204 = vmatmul.mubr.bf16.gmra.mrb[4].mxu1 %v4044_v5  ;;  %v4682_v5 = vld [vmem:[%s5686_s29 + $0x610] ss:$8 sps:$4 sm:$0xff]  }
 0x113   : > { %3219 = vmatpush1.bf16.msra.mxu1 %v4589_v50  ;;  %3416 = vmatmul.mubr.bf16.gmra.mrb[4].mxu0 %v4052_v8  ;;  %v4669_v50 = vld [vmem:[%s5686_s29 + $0x1f4] ss:$8 sps:$4 sm:$0xff]   ;;  %v4685_v8 = vld [vmem:[%s5686_s29 + $0x220] ss:$8 sps:$4 sm:$0xff]  }
 0x114   : > { %3431 = vmatpush1.bf16.msra.mxu0 %v4592_v51  ;;  %3220 = vmatprep.subr.bf16.mxu1 %v4597_v52  ;;  %v4672_v51 = vld [vmem:[%s5686_s29 + $0x5f4] ss:$8 sps:$4 sm:$0xff]   ;;  %v4667_v52 = vld [vmem:[%s5686_s29 + $0x1f0] ss:$8 sps:$4 sm:$0xff]  }
 0x115   : > { %3432 = vmatprep.subr.bf16.mxu0 %v4600_v53  ;;  %3246 = vmatprep.mubr.bf16.mxu1 %v4031_v16  ;;  %v4670_v53 = vld [vmem:[%s5686_s29 + $0x5f0] ss:$8 sps:$4 sm:$0xff]   ;;  %v4693_v16 = vld [vmem:[%s5686_s29 + $0x234] ss:$8 sps:$4 sm:$0xff]  }
 0x116   : > { %3458 = vmatprep.mubr.bf16.mxu0 %v4039_v21  ;;  %v4694_v21 = vld [vmem:[%s5686_s29 + $0x630] ss:$8 sps:$4 sm:$0xff]  }
 0x117   : > { %3221 = vmatpush1.bf16.msra.mxu1 %v4595_v54  ;;  %v4675_v54 = vld [vmem:[%s5686_s29 + $0x204] ss:$8 sps:$4 sm:$0xff]  }
 0x118   : > { %3433 = vmatpush1.bf16.msra.mxu0 %v4598_v55  ;;  %3222 = vmatprep.subr.bf16.mxu1 %v4603_v56  ;;  %v4678_v55 = vld [vmem:[%s5686_s29 + $0x604] ss:$8 sps:$4 sm:$0xff]   ;;  %v4673_v56 = vld [vmem:[%s5686_s29 + $0x200] ss:$8 sps:$4 sm:$0xff]  }
 0x119   : > { %3434 = vmatprep.subr.bf16.mxu0 %v4606_v57  ;;  %v4676_v57 = vld [vmem:[%s5686_s29 + $0x600] ss:$8 sps:$4 sm:$0xff]  }
 0x11b   : > { %3223 = vmatpush1.bf16.msra.mxu1 %v4601_v58  ;;  %v1450_v58 = vld [vmem:[%s5747_s19 + $0x88] sm:$0xff] }
 0x11c   : > { %3435 = vmatpush1.bf16.msra.mxu0 %v4604_v59  ;;  %3224 = vmatprep.subr.bf16.mxu1 %v4609_v60  ;;  %v4030_v59 = vcombine.low %v5802_v12, %v5805_v13  ;;  %v4038_v60 = vcombine.low %v5812_v17, %v5815_v18  ;;  %v5877_v13 = vld [vmem:[%s5747_s19 + $0x50] sm:$0xff] }
 0x11d   : > { %3436 = vmatprep.subr.bf16.mxu0 %v4612_v61  ;;  %v1458_v61 = vld [vmem:[%s5747_s19 + $0xc8] sm:$0xff]  ;;  %v4696_v17 = vld [vmem:[%s5686_s29 + $0x634] ss:$8 sps:$4 sm:$0xff]  }
 0x11f   : > { %3225 = vmatpush1.bf16.msra.mxu1 %v4607_v0  ;;  %v1454_v0 = vld [vmem:[%s5747_s19 + $0xa8] sm:$0xff] }
 0x120   : > { %3437 = vmatpush1.bf16.msra.mxu0 %v4610_v2  ;;  %3226 = vmatprep.subr.bf16.mxu1 %v4615_v6  ;;  %v4047_v2 = vcombine.high %v1450_v58, %v1458_v61  ;;  %v4055_v3 = vcombine.high %v1454_v0, %v1462_v1  ;;  %v4687_v6 = vld [vmem:[%s5686_s29 + $0x224] ss:$8 sps:$4 sm:$0xff]   ;;  %v4054_v12 = vcombine.low %v1454_v0, %v1462_v1  ;;  %v4757_v0 = vld [vmem:[%s5686_s29 + $0x2e0] ss:$8 sps:$4 sm:$0xff]  }
 0x121   : > { %3438 = vmatprep.subr.bf16.mxu0 %v4618_v9  ;;  %v4688_v9 = vld [vmem:[%s5686_s29 + $0x620] ss:$8 sps:$4 sm:$0xff]  }
 0x122   : > { %v4760_v1 = vld [vmem:[%s5686_s29 + $0x6e0] ss:$8 sps:$4 sm:$0xff]  }
 0x123   : > { %3227 = vmatpush1.bf16.msra.mxu1 %v4613_v10  ;;  %v5874_v10 = vld [vmem:[%s5747_s19 + $0x10] sm:$0xff] }
 0x124   : > { %3439 = vmatpush1.bf16.msra.mxu0 %v4616_v11  ;;  %3228 = vmatprep.subr.bf16.mxu1 %v4621_v14  ;;  %v4046_v11 = vcombine.low %v1450_v58, %v1458_v61  ;;  %v5880_v14 = vld [vmem:[%s5747_s19 + $0x30] sm:$0xff]  ;;  %v4033_v18 = vcombine.high %v5874_v10, %v5877_v13 }
 0x125   : > { %3440 = vmatprep.subr.bf16.mxu0 %v4624_v15  ;;  %v5883_v15 = vld [vmem:[%s5747_s19 + $0x70] sm:$0xff] }
 0x126   : > { %v4753_v58 = vld [vmem:[%s5686_s29 + $0x2d4] ss:$8 sps:$4 sm:$0xff]   ;;  %v4754_v61 = vld [vmem:[%s5686_s29 + $0x6d0] ss:$8 sps:$4 sm:$0xff]  }
 0x127   : > { %3229 = vmatpush1.bf16.msra.mxu1 %v4619_v19  ;;  %v4041_v19 = vcombine.high %v5880_v14, %v5883_v15 }
 0x128   : > { %3441 = vmatpush1.bf16.msra.mxu0 %v4622_v20  ;;  %3230 = vmatprep.subr.bf16.mxu1 %v4627_v22  ;;  %v4691_v20 = vld [vmem:[%s5686_s29 + $0x230] ss:$8 sps:$4 sm:$0xff]   ;;  %v4699_v22 = vld [vmem:[%s5686_s29 + $0x244] ss:$8 sps:$4 sm:$0xff]  }
 0x129   : > { %3442 = vmatprep.subr.bf16.mxu0 %v4630_v23  ;;  %v4702_v23 = vld [vmem:[%s5686_s29 + $0x644] ss:$8 sps:$4 sm:$0xff]  }
 0x12b   : > { %3231 = vmatpush1.bf16.msra.mxu1 %v4625_v24  ;;  %v4697_v24 = vld [vmem:[%s5686_s29 + $0x240] ss:$8 sps:$4 sm:$0xff]  }
 0x12c   : > { %3443 = vmatpush1.bf16.msra.mxu0 %v4628_v25  ;;  %3232 = vmatprep.subr.bf16.mxu1 %v4633_v26  ;;  %v4700_v25 = vld [vmem:[%s5686_s29 + $0x640] ss:$8 sps:$4 sm:$0xff]   ;;  %v4705_v26 = vld [vmem:[%s5686_s29 + $0x254] ss:$8 sps:$4 sm:$0xff]  }
 0x12d   : > { %3444 = vmatprep.subr.bf16.mxu0 %v4636_v27  ;;  %v4708_v27 = vld [vmem:[%s5686_s29 + $0x654] ss:$8 sps:$4 sm:$0xff]  }
 0x12f   : > { %3233 = vmatpush1.bf16.msra.mxu1 %v4631_v28  ;;  %v4703_v28 = vld [vmem:[%s5686_s29 + $0x250] ss:$8 sps:$4 sm:$0xff]  }
 0x130   : > { %3445 = vmatpush1.bf16.msra.mxu0 %v4634_v29  ;;  %3234 = vmatprep.subr.bf16.mxu1 %v4639_v30  ;;  %v4706_v29 = vld [vmem:[%s5686_s29 + $0x650] ss:$8 sps:$4 sm:$0xff]   ;;  %v4711_v30 = vld [vmem:[%s5686_s29 + $0x264] ss:$8 sps:$4 sm:$0xff]  }
 0x131   : > { %3446 = vmatprep.subr.bf16.mxu0 %v4642_v31  ;;  %v4714_v31 = vld [vmem:[%s5686_s29 + $0x664] ss:$8 sps:$4 sm:$0xff]  }
 0x133   : > { %3235 = vmatpush1.bf16.msra.mxu1 %v4637_v32  ;;  %v4709_v32 = vld [vmem:[%s5686_s29 + $0x260] ss:$8 sps:$4 sm:$0xff]  }
 0x134   : > { %3447 = vmatpush1.bf16.msra.mxu0 %v4640_v33  ;;  %3236 = vmatprep.subr.bf16.mxu1 %v4645_v34  ;;  %v4712_v33 = vld [vmem:[%s5686_s29 + $0x660] ss:$8 sps:$4 sm:$0xff]   ;;  %v4717_v34 = vld [vmem:[%s5686_s29 + $0x274] ss:$8 sps:$4 sm:$0xff]  }
 0x135   : > { %3448 = vmatprep.subr.bf16.mxu0 %v4648_v35  ;;  %v4720_v35 = vld [vmem:[%s5686_s29 + $0x674] ss:$8 sps:$4 sm:$0xff]  }
 0x137   : > { %3237 = vmatpush1.bf16.msra.mxu1 %v4643_v36  ;;  %v4715_v36 = vld [vmem:[%s5686_s29 + $0x270] ss:$8 sps:$4 sm:$0xff]  }
 0x138   : > { %3449 = vmatpush1.bf16.msra.mxu0 %v4646_v37  ;;  %3238 = vmatprep.subr.bf16.mxu1 %v4651_v38  ;;  %v4718_v37 = vld [vmem:[%s5686_s29 + $0x670] ss:$8 sps:$4 sm:$0xff]   ;;  %v4723_v38 = vld [vmem:[%s5686_s29 + $0x284] ss:$8 sps:$4 sm:$0xff]  }
 0x139   : > { %3450 = vmatprep.subr.bf16.mxu0 %v4654_v39  ;;  %v4726_v39 = vld [vmem:[%s5686_s29 + $0x684] ss:$8 sps:$4 sm:$0xff]  }
 0x13b   : > { %3239 = vmatpush1.bf16.msra.mxu1 %v4649_v40  ;;  %v4721_v40 = vld [vmem:[%s5686_s29 + $0x280] ss:$8 sps:$4 sm:$0xff]  }
 0x13c   : > { %3451 = vmatpush1.bf16.msra.mxu0 %v4652_v41  ;;  %3240 = vmatprep.subr.bf16.mxu1 %v4657_v42  ;;  %v4724_v41 = vld [vmem:[%s5686_s29 + $0x680] ss:$8 sps:$4 sm:$0xff]   ;;  %v4729_v42 = vld [vmem:[%s5686_s29 + $0x294] ss:$8 sps:$4 sm:$0xff]  }
 0x13d   : > { %3452 = vmatprep.subr.bf16.mxu0 %v4660_v43  ;;  %v4732_v43 = vld [vmem:[%s5686_s29 + $0x694] ss:$8 sps:$4 sm:$0xff]  }
 0x13f   : > { %3241 = vmatpush1.bf16.msra.mxu1 %v4655_v44  ;;  %v4727_v44 = vld [vmem:[%s5686_s29 + $0x290] ss:$8 sps:$4 sm:$0xff]  }
 0x140   : > { %3453 = vmatpush1.bf16.msra.mxu0 %v4658_v45  ;;  %3242 = vmatprep.subr.bf16.mxu1 %v4663_v46  ;;  %v4730_v45 = vld [vmem:[%s5686_s29 + $0x690] ss:$8 sps:$4 sm:$0xff]   ;;  %v4735_v46 = vld [vmem:[%s5686_s29 + $0x2a4] ss:$8 sps:$4 sm:$0xff]  }
 0x141   : > { %3454 = vmatprep.subr.bf16.mxu0 %v4666_v47  ;;  %v4738_v47 = vld [vmem:[%s5686_s29 + $0x6a4] ss:$8 sps:$4 sm:$0xff]  }
 0x143   : > { %3243 = vmatpush1.bf16.msra.mxu1 %v4661_v48  ;;  %v4733_v48 = vld [vmem:[%s5686_s29 + $0x2a0] ss:$8 sps:$4 sm:$0xff]  }
 0x144   : > { %3455 = vmatpush1.bf16.msra.mxu0 %v4664_v49  ;;  %3244 = vmatprep.subr.bf16.mxu1 %v4669_v50  ;;  %v4736_v49 = vld [vmem:[%s5686_s29 + $0x6a0] ss:$8 sps:$4 sm:$0xff]   ;;  %v4741_v50 = vld [vmem:[%s5686_s29 + $0x2b4] ss:$8 sps:$4 sm:$0xff]  }
 0x145   : > { %3456 = vmatprep.subr.bf16.mxu0 %v4672_v51  ;;  %v4744_v51 = vld [vmem:[%s5686_s29 + $0x6b4] ss:$8 sps:$4 sm:$0xff]  }
 0x147   : > { %3245 = vmatpush1.bf16.msra.mxu1 %v4667_v52  ;;  %v4739_v52 = vld [vmem:[%s5686_s29 + $0x2b0] ss:$8 sps:$4 sm:$0xff]  }
 0x148   : > { %3457 = vmatpush1.bf16.msra.mxu0 %v4670_v53  ;;  %3267 = vmatprep.subr.bf16.mxu1 %v4675_v54  ;;  %v4742_v53 = vld [vmem:[%s5686_s29 + $0x6b0] ss:$8 sps:$4 sm:$0xff]   ;;  %v4747_v54 = vld [vmem:[%s5686_s29 + $0x2c4] ss:$8 sps:$4 sm:$0xff]  }
 0x149   : > { %3479 = vmatprep.subr.bf16.mxu0 %v4678_v55  ;;  %v4750_v55 = vld [vmem:[%s5686_s29 + $0x6c4] ss:$8 sps:$4 sm:$0xff]  }
 0x14a   : > { %3247 = vmatmul.mubr.bf16.vlgmr.msra.gmra.mrb[0].mxu1 %v4030_v59  ;;  %v4756_v59 = vld [vmem:[%s5686_s29 + $0x6d4] ss:$8 sps:$4 sm:$0xff]  }
 0x14b   : > { %3459 = vmatmul.mubr.bf16.vlgmr.msra.gmra.mrb[0].mxu0 %v4038_v60  ;;  %3268 = vmatpush1.bf16.msra.mxu1 %v4673_v56  ;;  %v4745_v56 = vld [vmem:[%s5686_s29 + $0x2c0] ss:$8 sps:$4 sm:$0xff]   ;;  %v4751_v60 = vld [vmem:[%s5686_s29 + $0x2d0] ss:$8 sps:$4 sm:$0xff]  }
 0x14c   : > { %3480 = vmatpush1.bf16.msra.mxu0 %v4676_v57  ;;  %3269 = vmatprep.subr.bf16.mxu1 %v4681_v62  ;;  %v4748_v57 = vld [vmem:[%s5686_s29 + $0x6c0] ss:$8 sps:$4 sm:$0xff]   ;;  %v4759_v62 = vld [vmem:[%s5686_s29 + $0x2e4] ss:$8 sps:$4 sm:$0xff]  }
 0x14d   : > { %3481 = vmatprep.subr.bf16.mxu0 %v4684_v63  ;;  %3256 = vmatprep.mubr.bf16.mxu1 %v4047_v2  ;;  %v4762_v63 = vld [vmem:[%s5686_s29 + $0x6e4] ss:$8 sps:$4 sm:$0xff]   ;;  %v4765_v2 = vld [vmem:[%s5686_s29 + $0x2f4] ss:$8 sps:$4 sm:$0xff]  }
 0x14e   : > { %3468 = vmatprep.mubr.bf16.mxu0 %v4055_v3  ;;  %v4768_v3 = vld [vmem:[%s5686_s29 + $0x6f4] ss:$8 sps:$4 sm:$0xff]  }
 0x14f   : > { %3270 = vmatpush1.bf16.msra.mxu1 %v4679_v4  ;;  %v4763_v4 = vld [vmem:[%s5686_s29 + $0x2f0] ss:$8 sps:$4 sm:$0xff]  }
 0x150   : > { %3482 = vmatpush1.bf16.msra.mxu0 %v4682_v5  ;;  %3271 = vmatprep.subr.bf16.mxu1 %v4687_v6  ;;  %v4766_v5 = vld [vmem:[%s5686_s29 + $0x6f0] ss:$8 sps:$4 sm:$0xff]   ;;  %v4771_v6 = vld [vmem:[%s5686_s29 + $0x304] ss:$8 sps:$4 sm:$0xff]  }
 0x151   : > { %3483 = vmatprep.subr.bf16.mxu0 %v4690_v7  ;;  %v4774_v7 = vld [vmem:[%s5686_s29 + $0x704] ss:$8 sps:$4 sm:$0xff]  }
 0x152   : > { %3257 = vmatmul.mubr.bf16.gmra.mrb[4].mxu1 %v4046_v11  ;;  %v4040_v11 = vcombine.low %v5880_v14, %v5883_v15  ;;  %v4775_v14 = vld [vmem:[%s5686_s29 + $0x310] ss:$8 sps:$4 sm:$0xff]  }
 0x153   : > { %3469 = vmatmul.mubr.bf16.gmra.mrb[4].mxu0 %v4054_v12  ;;  %3272 = vmatpush1.bf16.msra.mxu1 %v4685_v8  ;;  %v1451_v8 = vld [vmem:[%s5747_s19 + $0x90] sm:$0xff] }
 0x154   : > { %3484 = vmatpush1.bf16.msra.mxu0 %v4688_v9  ;;  %3273 = vmatprep.subr.bf16.mxu1 %v4693_v16  ;;  %v4032_v9 = vcombine.low %v5874_v10, %v5877_v13  ;;  %v1459_v12 = vld [vmem:[%s5747_s19 + $0xd0] sm:$0xff] }
 0x155   : > { %3485 = vmatprep.subr.bf16.mxu0 %v4696_v17  ;;  %3299 = vmatprep.mubr.bf16.mxu1 %v4033_v18  ;;  %v1455_v16 = vld [vmem:[%s5747_s19 + $0xb0] sm:$0xff]  ;;  %v4769_v18 = vld [vmem:[%s5686_s29 + $0x300] ss:$8 sps:$4 sm:$0xff]   ;;  %v4049_v10 = vcombine.high %v1451_v8, %v1459_v12 }
 0x156   : > { %3511 = vmatprep.mubr.bf16.mxu0 %v4041_v19  ;;  %v1463_v17 = vld [vmem:[%s5747_s19 + $0xf0] sm:$0xff]  ;;  %v4772_v19 = vld [vmem:[%s5686_s29 + $0x700] ss:$8 sps:$4 sm:$0xff]  }
 0x157   : > { %3274 = vmatpush1.bf16.msra.mxu1 %v4691_v20  ;;  %v4777_v20 = vld [vmem:[%s5686_s29 + $0x314] ss:$8 sps:$4 sm:$0xff]   ;;  %v4057_v13 = vcombine.high %v1455_v16, %v1463_v17  ;;  %v4778_v15 = vld [vmem:[%s5686_s29 + $0x710] ss:$8 sps:$4 sm:$0xff]  }
 0x158   : > { %3486 = vmatpush1.bf16.msra.mxu0 %v4694_v21  ;;  %3275 = vmatprep.subr.bf16.mxu1 %v4699_v22  ;;  %v4780_v21 = vld [vmem:[%s5686_s29 + $0x714] ss:$8 sps:$4 sm:$0xff]   ;;  %v4783_v22 = vld [vmem:[%s5686_s29 + $0x324] ss:$8 sps:$4 sm:$0xff]  }
 0x159   : > { %3487 = vmatprep.subr.bf16.mxu0 %v4702_v23  ;;  %v4786_v23 = vld [vmem:[%s5686_s29 + $0x724] ss:$8 sps:$4 sm:$0xff]  }
 0x15b   : > { %3276 = vmatpush1.bf16.msra.mxu1 %v4697_v24  ;;  %v5960_v24 = vld [vmem:[%s5747_s19 + $0x18] sm:$0xff] }
 0x15c   : > { %3488 = vmatpush1.bf16.msra.mxu0 %v4700_v25  ;;  %3277 = vmatprep.subr.bf16.mxu1 %v4705_v26  ;;  %v4048_v25 = vcombine.low %v1451_v8, %v1459_v12  ;;  %v4056_v26 = vcombine.low %v1455_v16, %v1463_v17  ;;  %v4841_v8 = vld [vmem:[%s5686_s29 + $0x3c0] ss:$8 sps:$4 sm:$0xff]   ;;  %v4852_v12 = vld [vmem:[%s5686_s29 + $0x7d4] ss:$8 sps:$4 sm:$0xff]   ;;  %v4847_v16 = vld [vmem:[%s5686_s29 + $0x3d0] ss:$8 sps:$4 sm:$0xff]  }
 0x15d   : > { %3489 = vmatprep.subr.bf16.mxu0 %v4708_v27  ;;  %v5963_v27 = vld [vmem:[%s5747_s19 + $0x58] sm:$0xff] }
 0x15e   : > { %v4850_v17 = vld [vmem:[%s5686_s29 + $0x7d0] ss:$8 sps:$4 sm:$0xff]  }
 0x15f   : > { %3278 = vmatpush1.bf16.msra.mxu1 %v4703_v28  ;;  %v5966_v28 = vld [vmem:[%s5747_s19 + $0x38] sm:$0xff] }
 0x160   : > { %3490 = vmatpush1.bf16.msra.mxu0 %v4706_v29  ;;  %3279 = vmatprep.subr.bf16.mxu1 %v4711_v30  ;;  %v5969_v29 = vld [vmem:[%s5747_s19 + $0x78] sm:$0xff]  ;;  %v4781_v30 = vld [vmem:[%s5686_s29 + $0x320] ss:$8 sps:$4 sm:$0xff]  }
 0x161   : > { %3491 = vmatprep.subr.bf16.mxu0 %v4714_v31  ;;  %v4784_v31 = vld [vmem:[%s5686_s29 + $0x720] ss:$8 sps:$4 sm:$0xff]  }
 0x163   : > { %3280 = vmatpush1.bf16.msra.mxu1 %v4709_v32  ;;  %v4789_v32 = vld [vmem:[%s5686_s29 + $0x334] ss:$8 sps:$4 sm:$0xff]  }
 0x164   : > { %3492 = vmatpush1.bf16.msra.mxu0 %v4712_v33  ;;  %3281 = vmatprep.subr.bf16.mxu1 %v4717_v34  ;;  %v4792_v33 = vld [vmem:[%s5686_s29 + $0x734] ss:$8 sps:$4 sm:$0xff]   ;;  %v4035_v34 = vcombine.high %v5960_v24, %v5963_v27 }
 0x165   : > { %3493 = vmatprep.subr.bf16.mxu0 %v4720_v35  ;;  %v4043_v35 = vcombine.high %v5966_v28, %v5969_v29 }
 0x167   : > { %3282 = vmatpush1.bf16.msra.mxu1 %v4715_v36  ;;  %v4787_v36 = vld [vmem:[%s5686_s29 + $0x330] ss:$8 sps:$4 sm:$0xff]  }
 0x168   : > { %3494 = vmatpush1.bf16.msra.mxu0 %v4718_v37  ;;  %3283 = vmatprep.subr.bf16.mxu1 %v4723_v38  ;;  %v4790_v37 = vld [vmem:[%s5686_s29 + $0x730] ss:$8 sps:$4 sm:$0xff]   ;;  %v4795_v38 = vld [vmem:[%s5686_s29 + $0x344] ss:$8 sps:$4 sm:$0xff]  }
 0x169   : > { %3495 = vmatprep.subr.bf16.mxu0 %v4726_v39  ;;  %v4798_v39 = vld [vmem:[%s5686_s29 + $0x744] ss:$8 sps:$4 sm:$0xff]  }
 0x16b   : > { %3284 = vmatpush1.bf16.msra.mxu1 %v4721_v40  ;;  %v4793_v40 = vld [vmem:[%s5686_s29 + $0x340] ss:$8 sps:$4 sm:$0xff]  }
 0x16c   : > { %3496 = vmatpush1.bf16.msra.mxu0 %v4724_v41  ;;  %3285 = vmatprep.subr.bf16.mxu1 %v4729_v42  ;;  %v4796_v41 = vld [vmem:[%s5686_s29 + $0x740] ss:$8 sps:$4 sm:$0xff]   ;;  %v4801_v42 = vld [vmem:[%s5686_s29 + $0x354] ss:$8 sps:$4 sm:$0xff]  }
 0x16d   : > { %3497 = vmatprep.subr.bf16.mxu0 %v4732_v43  ;;  %v4804_v43 = vld [vmem:[%s5686_s29 + $0x754] ss:$8 sps:$4 sm:$0xff]  }
 0x16f   : > { %3286 = vmatpush1.bf16.msra.mxu1 %v4727_v44  ;;  %v4799_v44 = vld [vmem:[%s5686_s29 + $0x350] ss:$8 sps:$4 sm:$0xff]  }
 0x170   : > { %3498 = vmatpush1.bf16.msra.mxu0 %v4730_v45  ;;  %3287 = vmatprep.subr.bf16.mxu1 %v4735_v46  ;;  %v4802_v45 = vld [vmem:[%s5686_s29 + $0x750] ss:$8 sps:$4 sm:$0xff]   ;;  %v4807_v46 = vld [vmem:[%s5686_s29 + $0x364] ss:$8 sps:$4 sm:$0xff]  }
 0x171   : > { %3499 = vmatprep.subr.bf16.mxu0 %v4738_v47  ;;  %v4810_v47 = vld [vmem:[%s5686_s29 + $0x764] ss:$8 sps:$4 sm:$0xff]  }
 0x173   : > { %3288 = vmatpush1.bf16.msra.mxu1 %v4733_v48  ;;  %v4805_v48 = vld [vmem:[%s5686_s29 + $0x360] ss:$8 sps:$4 sm:$0xff]  }
 0x174   : > { %3500 = vmatpush1.bf16.msra.mxu0 %v4736_v49  ;;  %3289 = vmatprep.subr.bf16.mxu1 %v4741_v50  ;;  %v4808_v49 = vld [vmem:[%s5686_s29 + $0x760] ss:$8 sps:$4 sm:$0xff]   ;;  %v4813_v50 = vld [vmem:[%s5686_s29 + $0x374] ss:$8 sps:$4 sm:$0xff]  }
 0x175   : > { %3501 = vmatprep.subr.bf16.mxu0 %v4744_v51  ;;  %v4816_v51 = vld [vmem:[%s5686_s29 + $0x774] ss:$8 sps:$4 sm:$0xff]  }
 0x177   : > { %3290 = vmatpush1.bf16.msra.mxu1 %v4739_v52  ;;  %v4811_v52 = vld [vmem:[%s5686_s29 + $0x370] ss:$8 sps:$4 sm:$0xff]  }
 0x178   : > { %3502 = vmatpush1.bf16.msra.mxu0 %v4742_v53  ;;  %3291 = vmatprep.subr.bf16.mxu1 %v4747_v54  ;;  %v4814_v53 = vld [vmem:[%s5686_s29 + $0x770] ss:$8 sps:$4 sm:$0xff]   ;;  %v4819_v54 = vld [vmem:[%s5686_s29 + $0x384] ss:$8 sps:$4 sm:$0xff]  }
 0x179   : > { %3503 = vmatprep.subr.bf16.mxu0 %v4750_v55  ;;  %v4822_v55 = vld [vmem:[%s5686_s29 + $0x784] ss:$8 sps:$4 sm:$0xff]  }
 0x17b   : > { %3292 = vmatpush1.bf16.msra.mxu1 %v4745_v56  ;;  %v4817_v56 = vld [vmem:[%s5686_s29 + $0x380] ss:$8 sps:$4 sm:$0xff]  }
 0x17c   : > { %3504 = vmatpush1.bf16.msra.mxu0 %v4748_v57  ;;  %3293 = vmatprep.subr.bf16.mxu1 %v4753_v58  ;;  %v4820_v57 = vld [vmem:[%s5686_s29 + $0x780] ss:$8 sps:$4 sm:$0xff]   ;;  %v4825_v58 = vld [vmem:[%s5686_s29 + $0x394] ss:$8 sps:$4 sm:$0xff]  }
 0x17d   : > { %3505 = vmatprep.subr.bf16.mxu0 %v4756_v59  ;;  %v4828_v59 = vld [vmem:[%s5686_s29 + $0x794] ss:$8 sps:$4 sm:$0xff]  }
 0x17f   : > { %3294 = vmatpush1.bf16.msra.mxu1 %v4751_v60  ;;  %v4823_v60 = vld [vmem:[%s5686_s29 + $0x390] ss:$8 sps:$4 sm:$0xff]  }
 0x180   : > { %3506 = vmatpush1.bf16.msra.mxu0 %v4754_v61  ;;  %3295 = vmatprep.subr.bf16.mxu1 %v4759_v62  ;;  %v4826_v61 = vld [vmem:[%s5686_s29 + $0x790] ss:$8 sps:$4 sm:$0xff]   ;;  %v4831_v62 = vld [vmem:[%s5686_s29 + $0x3a4] ss:$8 sps:$4 sm:$0xff]  }
 0x181   : > { %3507 = vmatprep.subr.bf16.mxu0 %v4762_v63  ;;  %v4834_v63 = vld [vmem:[%s5686_s29 + $0x7a4] ss:$8 sps:$4 sm:$0xff]  }
 0x183   : > { %3296 = vmatpush1.bf16.msra.mxu1 %v4757_v0  ;;  %v4829_v0 = vld [vmem:[%s5686_s29 + $0x3a0] ss:$8 sps:$4 sm:$0xff]  }
 0x184   : > { %3508 = vmatpush1.bf16.msra.mxu0 %v4760_v1  ;;  %3297 = vmatprep.subr.bf16.mxu1 %v4765_v2  ;;  %v4832_v1 = vld [vmem:[%s5686_s29 + $0x7a0] ss:$8 sps:$4 sm:$0xff]   ;;  %v4837_v2 = vld [vmem:[%s5686_s29 + $0x3b4] ss:$8 sps:$4 sm:$0xff]  }
 0x185   : > { %3509 = vmatprep.subr.bf16.mxu0 %v4768_v3  ;;  %v4840_v3 = vld [vmem:[%s5686_s29 + $0x7b4] ss:$8 sps:$4 sm:$0xff]  }
 0x187   : > { %3298 = vmatpush1.bf16.msra.mxu1 %v4763_v4  ;;  %v4835_v4 = vld [vmem:[%s5686_s29 + $0x3b0] ss:$8 sps:$4 sm:$0xff]  }
 0x188   : > { %3510 = vmatpush1.bf16.msra.mxu0 %v4766_v5  ;;  %3320 = vmatprep.subr.bf16.mxu1 %v4771_v6  ;;  %v4838_v5 = vld [vmem:[%s5686_s29 + $0x7b0] ss:$8 sps:$4 sm:$0xff]   ;;  %v4843_v6 = vld [vmem:[%s5686_s29 + $0x3c4] ss:$8 sps:$4 sm:$0xff]  }
 0x189   : > { %3532 = vmatprep.subr.bf16.mxu0 %v4774_v7  ;;  %v4846_v7 = vld [vmem:[%s5686_s29 + $0x7c4] ss:$8 sps:$4 sm:$0xff]  }
 0x18a   : > { %3300 = vmatmul.mubr.bf16.vlgmr.msra.gmra.mrb[0].mxu1 %v4032_v9  ;;  %v4844_v9 = vld [vmem:[%s5686_s29 + $0x7c0] ss:$8 sps:$4 sm:$0xff]  }
 0x18b   : > { %3512 = vmatmul.mubr.bf16.vlgmr.msra.gmra.mrb[0].mxu0 %v4040_v11  ;;  %3321 = vmatpush1.bf16.msra.mxu1 %v4769_v18  ;;  %v4849_v11 = vld [vmem:[%s5686_s29 + $0x3d4] ss:$8 sps:$4 sm:$0xff]   ;;  %v4855_v18 = vld [vmem:[%s5686_s29 + $0x3e4] ss:$8 sps:$4 sm:$0xff]  }
 0x18c   : > { %3533 = vmatpush1.bf16.msra.mxu0 %v4772_v19  ;;  %3322 = vmatprep.subr.bf16.mxu1 %v4777_v20  ;;  %v4858_v19 = vld [vmem:[%s5686_s29 + $0x7e4] ss:$8 sps:$4 sm:$0xff]   ;;  %v4853_v20 = vld [vmem:[%s5686_s29 + $0x3e0] ss:$8 sps:$4 sm:$0xff]  }
 0x18d   : > { %3534 = vmatprep.subr.bf16.mxu0 %v4780_v21  ;;  %3309 = vmatprep.mubr.bf16.mxu1 %v4049_v10  ;;  %v4856_v21 = vld [vmem:[%s5686_s29 + $0x7e0] ss:$8 sps:$4 sm:$0xff]   ;;  %v4861_v10 = vld [vmem:[%s5686_s29 + $0x3f4] ss:$8 sps:$4 sm:$0xff]  }
 0x18e   : > { %3521 = vmatprep.mubr.bf16.mxu0 %v4057_v13  ;;  %v4864_v13 = vld [vmem:[%s5686_s29 + $0x7f4] ss:$8 sps:$4 sm:$0xff]  }
 0x18f   : > { %3323 = vmatpush1.bf16.msra.mxu1 %v4775_v14  ;;  %v4859_v14 = vld [vmem:[%s5686_s29 + $0x3f0] ss:$8 sps:$4 sm:$0xff]  }
 0x190   : > { %3535 = vmatpush1.bf16.msra.mxu0 %v4778_v15  ;;  %3324 = vmatprep.subr.bf16.mxu1 %v4783_v22  ;;  %v4862_v15 = vld [vmem:[%s5686_s29 + $0x7f0] ss:$8 sps:$4 sm:$0xff]  }
 0x191   : > { %3536 = vmatprep.subr.bf16.mxu0 %v4786_v23  ;;  %v1452_v22 = vld [vmem:[%s5747_s19 + $0x98] sm:$0xff] }
 0x192   : > { %3310 = vmatmul.mubr.bf16.gmra.mrb[4].mxu1 %v4048_v25  ;;  %v1460_v23 = vld [vmem:[%s5747_s19 + $0xd8] sm:$0xff] }
 0x193   : > { %3522 = vmatmul.mubr.bf16.gmra.mrb[4].mxu0 %v4056_v26  ;;  %3325 = vmatpush1.bf16.msra.mxu1 %v4781_v30  ;;  %v1456_v25 = vld [vmem:[%s5747_s19 + $0xb8] sm:$0xff]  ;;  %v4034_v30 = vcombine.low %v5960_v24, %v5963_v27 }
 0x194   : > { %3537 = vmatpush1.bf16.msra.mxu0 %v4784_v31  ;;  %3326 = vmatprep.subr.bf16.mxu1 %v4789_v32  ;;  %v1464_v26 = vld [vmem:[%s5747_s19 + $0xf8] sm:$0xff]  ;;  %v4042_v31 = vcombine.low %v5966_v28, %v5969_v29  ;;  %v4051_v32 = vcombine.high %v1452_v22, %v1460_v23 }
 0x195   : > { %3538 = vmatprep.subr.bf16.mxu0 %v4792_v33  ;;  %3352 = vmatprep.mubr.bf16.mxu1 %v4035_v34  ;;  %v4059_v33 = vcombine.high %v1456_v25, %v1464_v26  ;;  %v4050_v34 = vcombine.low %v1452_v22, %v1460_v23 }
 0x196   : > { %3564 = vmatprep.mubr.bf16.mxu0 %v4043_v35  ;;  %v4058_v35 = vcombine.low %v1456_v25, %v1464_v26 }
 0x197   : > { %3327 = vmatpush1.bf16.msra.mxu1 %v4787_v36 }
 0x198   : > { %3539 = vmatpush1.bf16.msra.mxu0 %v4790_v37  ;;  %3328 = vmatprep.subr.bf16.mxu1 %v4795_v38 }
 0x199   : > { %3540 = vmatprep.subr.bf16.mxu0 %v4798_v39 }
 0x19b   : > { %3329 = vmatpush1.bf16.msra.mxu1 %v4793_v40 }
 0x19c   : > { %3541 = vmatpush1.bf16.msra.mxu0 %v4796_v41  ;;  %3330 = vmatprep.subr.bf16.mxu1 %v4801_v42 }
 0x19d   : > { %3542 = vmatprep.subr.bf16.mxu0 %v4804_v43 }
 0x19f   : > { %3331 = vmatpush1.bf16.msra.mxu1 %v4799_v44 }
 0x1a0   : > { %3543 = vmatpush1.bf16.msra.mxu0 %v4802_v45  ;;  %3332 = vmatprep.subr.bf16.mxu1 %v4807_v46 }
 0x1a1   : > { %3544 = vmatprep.subr.bf16.mxu0 %v4810_v47 }
 0x1a3   : > { %3333 = vmatpush1.bf16.msra.mxu1 %v4805_v48 }
 0x1a4   : > { %3545 = vmatpush1.bf16.msra.mxu0 %v4808_v49  ;;  %3334 = vmatprep.subr.bf16.mxu1 %v4813_v50 }
 0x1a5   : > { %3546 = vmatprep.subr.bf16.mxu0 %v4816_v51 }
 0x1a7   : > { %3335 = vmatpush1.bf16.msra.mxu1 %v4811_v52 }
 0x1a8   : > { %3547 = vmatpush1.bf16.msra.mxu0 %v4814_v53  ;;  %3336 = vmatprep.subr.bf16.mxu1 %v4819_v54 }
 0x1a9   : > { %3548 = vmatprep.subr.bf16.mxu0 %v4822_v55 }
 0x1ab   : > { %3337 = vmatpush1.bf16.msra.mxu1 %v4817_v56  ;;  %v4953_v56 = vmov (!%p4316_p4), 0.0  }
 0x1ac   : > { %3549 = vmatpush1.bf16.msra.mxu0 %v4820_v57  ;;  %3338 = vmatprep.subr.bf16.mxu1 %v4825_v58  ;;  %3589 = vst [vmem:[#allocation2] sm:$0xff] (!%p4316_p4), %v4953_v56  ;;  %3590 = vst [vmem:[#allocation2 + $0x8] sm:$0xff] (!%p4316_p4), %v4953_v56 }
 0x1ad   : > { %3550 = vmatprep.subr.bf16.mxu0 %v4828_v59  ;;  %3591 = vst [vmem:[#allocation2 + $0x10] sm:$0xff] (!%p4316_p4), %v4953_v56  ;;  %3592 = vst [vmem:[#allocation2 + $0x18] sm:$0xff] (!%p4316_p4), %v4953_v56 }
 0x1ae   : > { %3593 = vst [vmem:[#allocation2 + $0x20] sm:$0xff] (!%p4316_p4), %v4953_v56  ;;  %3594 = vst [vmem:[#allocation2 + $0x28] sm:$0xff] (!%p4316_p4), %v4953_v56 }
 0x1af   : > { %3339 = vmatpush1.bf16.msra.mxu1 %v4823_v60  ;;  %3595 = vst [vmem:[#allocation2 + $0x30] sm:$0xff] (!%p4316_p4), %v4953_v56  ;;  %3596 = vst [vmem:[#allocation2 + $0x38] sm:$0xff] (!%p4316_p4), %v4953_v56 }
 0x1b0   : > { %3551 = vmatpush1.bf16.msra.mxu0 %v4826_v61  ;;  %3340 = vmatprep.subr.bf16.mxu1 %v4831_v62 }
 0x1b1   : > { %3552 = vmatprep.subr.bf16.mxu0 %v4834_v63 }
 0x1b3   : > { %3341 = vmatpush1.bf16.msra.mxu1 %v4829_v0 }
 0x1b4   : > { %3553 = vmatpush1.bf16.msra.mxu0 %v4832_v1  ;;  %3342 = vmatprep.subr.bf16.mxu1 %v4837_v2 }
 0x1b5   : > { %3554 = vmatprep.subr.bf16.mxu0 %v4840_v3 }
 0x1b7   : > { %3343 = vmatpush1.bf16.msra.mxu1 %v4835_v4 }
 0x1b8   : > { %3555 = vmatpush1.bf16.msra.mxu0 %v4838_v5  ;;  %3344 = vmatprep.subr.bf16.mxu1 %v4843_v6 }
 0x1b9   : > { %3556 = vmatprep.subr.bf16.mxu0 %v4846_v7 }
 0x1bb   : > { %3345 = vmatpush1.bf16.msra.mxu1 %v4841_v8 }
 0x1bc   : > { %3557 = vmatpush1.bf16.msra.mxu0 %v4844_v9  ;;  %3346 = vmatprep.subr.bf16.mxu1 %v4849_v11 }
 0x1bd   : > { %3558 = vmatprep.subr.bf16.mxu0 %v4852_v12 }
 0x1bf   : > { %3347 = vmatpush1.bf16.msra.mxu1 %v4847_v16 }
 0x1c0   : > { %3559 = vmatpush1.bf16.msra.mxu0 %v4850_v17  ;;  %3348 = vmatprep.subr.bf16.mxu1 %v4855_v18 }
 0x1c1   : > { %3560 = vmatprep.subr.bf16.mxu0 %v4858_v19 }
 0x1c3   : > { %3349 = vmatpush1.bf16.msra.mxu1 %v4853_v20 }
 0x1c4   : > { %3561 = vmatpush1.bf16.msra.mxu0 %v4856_v21  ;;  %3350 = vmatprep.subr.bf16.mxu1 %v4861_v10 }
 0x1c5   : > { %3562 = vmatprep.subr.bf16.mxu0 %v4864_v13 }
 0x1c7   : > { %3351 = vmatpush1.bf16.msra.mxu1 %v4859_v14 }
 0x1c8   : > { %3563 = vmatpush1.bf16.msra.mxu0 %v4862_v15 }
 0x1ca   : > { %3353 = vmatmul.mubr.bf16.vlgmr.msra.gmra.mrb[0].mxu1 %v4034_v30 }
 0x1cb   : > { %3565 = vmatmul.mubr.bf16.vlgmr.msra.gmra.mrb[0].mxu0 %v4042_v31  ;;  %3362 = vmatprep.mubr.bf16.mxu1 %v4051_v32 }
 0x1cc   : > { %3574 = vmatprep.mubr.bf16.mxu0 %v4059_v33 }
 0x1d2   : > { %3363 = vmatmul.mubr.bf16.gmra.mrb[4].mxu1 %v4050_v34 }
 0x1d3   : > { %3575 = vmatmul.mubr.bf16.gmra.mrb[4].mxu0 %v4058_v35 }
 0x29d   : > { %v3354_v36 = vpop.f32.mrb[0].mxu1 }
 0x29e   : > { %v3566_v37 = vpop.f32.mrb[0].mxu0  ;;  %v3356_v39 = vpop.f32.mrb[1].mxu1 }
 0x29f   : > { %v4334_v38 = vadd.f32 %v3566_v37, %v3354_v36  ;;  %v3568_v24 = vpop.f32.mrb[1].mxu0  ;;  %v3358_v40 = vpop.f32.mrb[2].mxu1 }
 0x2a0   : > { %v4335_v27 = vadd.f32 %v3568_v24, %v3356_v39  ;;  %v3570_v28 = vpop.f32.mrb[2].mxu0  ;;  %v3360_v41 = vpop.f32.mrb[3].mxu1 }
 0x2a1   : > { %v4336_v29 = vadd.f32 %v3570_v28, %v3358_v40  ;;  %v3572_v42 = vpop.f32.mrb[3].mxu0 }
 0x2a2   : > { %v4337_v43 = vadd.f32 %v3572_v42, %v3360_v41 }
 0x2a4   : > { %3588 = sbr.rel (%p4316_p4) target bundleno = 683 (0x2ab), region = 93 }
 0x2a5   : > { %v3364_v44 = vpop.f32.mrb[4].mxu1 }
 0x2a6   : > { %v3576_v45 = vpop.f32.mrb[4].mxu0  ;;  %v3366_v47 = vpop.f32.mrb[5].mxu1 }
 0x2a7   : > { %v4338_v46 = vadd.f32 %v3576_v45, %v3364_v44  ;;  %v3578_v48 = vpop.f32.mrb[5].mxu0  ;;  %v3368_v50 = vpop.f32.mrb[6].mxu1 }
 0x2a8   : > { %v4339_v49 = vadd.f32 %v3578_v48, %v3366_v47  ;;  %v3580_v51 = vpop.f32.mrb[6].mxu0  ;;  %v3370_v53 = vpop.f32.mrb[7].mxu1 }
 0x2a9   : > { %v4340_v52 = vadd.f32 %v3580_v51, %v3368_v50  ;;  %v3582_v54 = vpop.f32.mrb[7].mxu0 }
 0x2aa   : > { %v4341_v55 = vadd.f32 %v3582_v54, %v3370_v53 }
 0x2ab PF: > { %v3597_v57 = vld [vmem:[#allocation2] sm:$0xff]  ;;  %v3598_v58 = vld [vmem:[#allocation2 + $0x8] sm:$0xff]  ;;  %v3599_v59 = vld [vmem:[#allocation2 + $0x10] sm:$0xff]  ;;  %p4317_p5 = scmp.ne.s32.totalorder %s4935_s21, 1 }
 0x2ac   : > { %v3605_v60 = vadd.f32 %v4334_v38, %v3597_v57  ;;  %v3606_v61 = vadd.f32 %v4335_v27, %v3598_v58  ;;  %v3607_v62 = vadd.f32 %v4336_v29, %v3599_v59  ;;  %v3600_v63 = vld [vmem:[#allocation2 + $0x18] sm:$0xff]  ;;  %v3601_v0 = vld [vmem:[#allocation2 + $0x20] sm:$0xff]  ;;  %v3602_v1 = vld [vmem:[#allocation2 + $0x28] sm:$0xff]  ;;  %v4954_v16 = vmov (!%p4317_p5), 0.0  }
 0x2ad   : > { %v3608_v2 = vadd.f32 %v4337_v43, %v3600_v63  ;;  %v3609_v3 = vadd.f32 %v4338_v46, %v3601_v0  ;;  %v3610_v4 = vadd.f32 %v4339_v49, %v3602_v1  ;;  %v3603_v5 = vld [vmem:[#allocation2 + $0x30] sm:$0xff]  ;;  %v3604_v6 = vld [vmem:[#allocation2 + $0x38] sm:$0xff]  ;;  %3624 = sbr.rel (%p4317_p5) target bundleno = 723 (0x2d3), region = 97  ;;  %3633 = vst [vmem:[%s5699_s30] sm:$0xff] (!%p4317_p5), %v4954_v16  ;;  %3635 = vst [vmem:[%s5704_s9] sm:$0xff] (!%p4317_p5), %v4954_v16  ;;  %v4955_v46 = vmov (!%p4317_p5), 1966171168  }
 0x2ae   : > { %3613 = vst [vmem:[#allocation2] sm:$0xff] %v3605_v60  ;;  %3614 = vst [vmem:[#allocation2 + $0x8] sm:$0xff] %v3606_v61  ;;  %v3611_v7 = vadd.f32 %v4340_v52, %v3603_v5  ;;  %v3612_v8 = vadd.f32 %v4341_v55, %v3604_v6  ;;  %v3659_v47 = vunpack.c.l.s4 (!%p4317_p5), %v4955_v46  ;;  %v3661_v48 = vlaneseq (!%p4317_p5) }
 0x2af   : > { %3615 = vst [vmem:[#allocation2 + $0x10] sm:$0xff] %v3607_v62  ;;  %3616 = vst [vmem:[#allocation2 + $0x18] sm:$0xff] %v3608_v2 }
 0x2b0   : > { %3617 = vst [vmem:[#allocation2 + $0x20] sm:$0xff] %v3609_v3  ;;  %3618 = vst [vmem:[#allocation2 + $0x28] sm:$0xff] %v3610_v4  ;;  %v3660_v57 = vunpack.c.0.s8 (!%p4317_p5), %v3659_v47  ;;  %v3662_v58 = vshrl.u32 (!%p4317_p5), %v3661_v48, 7  ;;  %vm3675_vm0 = vcmp.lt.s32.totalorder (!%p4317_p5), %v3661_v48, 256 }
 0x2b1   : > { %3619 = vst [vmem:[#allocation2 + $0x30] sm:$0xff] %v3611_v7  ;;  %3620 = vst [vmem:[#allocation2 + $0x38] sm:$0xff] %v3612_v8 }
 0x2b2   : > { %3634 = vst [vmem:[%s5699_s30 + $0x8] sm:$0xff] (!%p4317_p5), %v4954_v16  ;;  %3636 = vst [vmem:[%s5704_s9 + $0x8] sm:$0xff] (!%p4317_p5), %v4954_v16  ;;  %v3663_v3 = vsub.s32 (!%p4317_p5), %v3660_v57, %v3662_v58 }
 0x2b5   : > { %v3625_v9 = vld [vmem:[#allocation2] sm:$0xff]  ;;  %v3626_v11 = vld [vmem:[#allocation2 + $0x8] sm:$0xff] }
 0x2b6   : > { %v3627_v12 = vld [vmem:[#allocation2 + $0x10] sm:$0xff]  ;;  %v3628_v17 = vld [vmem:[#allocation2 + $0x18] sm:$0xff]  ;;  %v3679_v21 = vmul.f32 %v3625_v9, %v3625_v9  ;;  %v3680_v10 = vmul.f32 %v3626_v11, %v3626_v11  ;;  %v4329_v38 = vpack.c.bf16 %v3626_v11, %v3625_v9 }
 0x2b7   : > { %v3629_v18 = vld [vmem:[#allocation2 + $0x20] sm:$0xff]  ;;  %v3630_v19 = vld [vmem:[#allocation2 + $0x28] sm:$0xff]  ;;  %v3637_v20 = vadd.f32 %v3627_v12, %v3625_v9  ;;  %v3646_v15 = vadd.f32 %v3628_v17, %v3626_v11  ;;  %v3681_v22 = vmul.f32 %v3627_v12, %v3627_v12  ;;  %v3682_v25 = vmul.f32 %v3628_v17, %v3628_v17 }
 0x2b8   : > { %v3631_v13 = vld [vmem:[#allocation2 + $0x30] sm:$0xff]  ;;  %v3632_v14 = vld [vmem:[#allocation2 + $0x38] sm:$0xff]  ;;  %v3683_v26 = vmul.f32 %v3629_v18, %v3629_v18  ;;  %v3684_v31 = vmul.f32 %v3630_v19, %v3630_v19  ;;  %v4330_v39 = vpack.c.bf16 %v3628_v17, %v3627_v12  ;;  %v4331_v24 = vpack.c.bf16 %v3630_v19, %v3629_v18  ;;  %3749 = vst [vmem:[%s6038_s28] sm:$0xff] %v4329_v38 }
 0x2b9   : > { %v3638_v23 = vadd.f32 %v3637_v20, %v3629_v18  ;;  %v3647_v30 = vadd.f32 %v3646_v15, %v3630_v19  ;;  %v3685_v32 = vmul.f32 %v3631_v13, %v3631_v13  ;;  %v3686_v34 = vmul.f32 %v3632_v14, %v3632_v14 }
 0x2ba   : > { %v3687_v35 = vadd.f32 %v3681_v22, %v3679_v21  ;;  %v3696_v36 = vadd.f32 %v3682_v25, %v3680_v10  ;;  %v4332_v29 = vpack.c.bf16 %v3632_v14, %v3631_v13  ;;  %3750 = vst [vmem:[%s6038_s28 + $0x8] sm:$0xff] %v4330_v39  ;;  %3751 = vst [vmem:[%s6038_s28 + $0x10] sm:$0xff] %v4331_v24 }
 0x2bb   : > { %v3639_v33 = vadd.f32 %v3638_v23, %v3631_v13  ;;  %v3648_v37 = vadd.f32 %v3647_v30, %v3632_v14 }
 0x2bc   : > { %v3688_v40 = vadd.f32 %v3687_v35, %v3683_v26  ;;  %v3697_v28 = vadd.f32 %v3696_v36, %v3684_v31  ;;  %3752 = vst [vmem:[%s6038_s28 + $0x18] sm:$0xff] %v4332_v29 }
 0x2bd   : > { %v3640_v27 = vrot.slane %v3639_v33, 4  ;;  %v3649_v41 = vrot.slane %v3648_v37, 4 }
 0x2be   : > { %v3689_v43 = vadd.f32 %v3688_v40, %v3685_v32  ;;  %v3698_v44 = vadd.f32 %v3697_v28, %v3686_v34 }
 0x2bf   : > { %v3641_v42 = vadd.f32 %v3640_v27, %v3639_v33  ;;  %v3650_v45 = vadd.f32 %v3649_v41, %v3648_v37 }
 0x2c0   : > { %v3690_v50 = vrot.slane %v3689_v43, 4  ;;  %v3699_v51 = vrot.slane %v3698_v44, 4 }
 0x2c1   : > { %v3642_v49 = vrot.slane %v3641_v42, 2  ;;  %v3651_v52 = vrot.slane %v3650_v45, 2 }
 0x2c2   : > { %v3691_v54 = vadd.f32 %v3690_v50, %v3689_v43  ;;  %v3700_v55 = vadd.f32 %v3699_v51, %v3698_v44 }
 0x2c3   : > { %v3643_v53 = vadd.f32 %v3642_v49, %v3641_v42  ;;  %v3652_v56 = vadd.f32 %v3651_v52, %v3650_v45 }
 0x2c4   : > { %v3692_v60 = vrot.slane %v3691_v54, 2  ;;  %v3701_v61 = vrot.slane %v3700_v55, 2 }
 0x2c5   : > { %v3644_v59 = vrot.slane %v3643_v53, 1  ;;  %v3653_v62 = vrot.slane %v3652_v56, 1 }
 0x2c6   : > { %v3693_v0 = vadd.f32 %v3692_v60, %v3691_v54  ;;  %v3702_v1 = vadd.f32 %v3701_v61, %v3700_v55 }
 0x2c7   : > { %v3645_v63 = vadd.f32 %v3644_v59, %v3643_v53  ;;  %v3654_v2 = vadd.f32 %v3653_v62, %v3652_v56 }
 0x2c8   : > { %v3694_v4 = vrot.slane %v3693_v0, 1  ;;  %v3703_v5 = vrot.slane %v3702_v1, 1 }
 0x2c9   : > { %v3657_v6 = vcombine.low %v3645_v63, %v3654_v2 }
 0x2ca   : > { %v3695_v7 = vadd.f32 %v3694_v4, %v3693_v0  ;;  %v3704_v8 = vadd.f32 %v3703_v5, %v3702_v1 }
 0x2cb   : > { %v3664_v9 = vrot.slane %v3657_v6, %v3663_v3 }
 0x2cc   : > { %v3707_v11 = vcombine.low %v3695_v7, %v3704_v8 }
 0x2cd   : > { %v3671_v12 = vrot.slane %v3664_v9, %v3663_v3 }
 0x2ce   : > { %v3714_v16 = vrot.slane %v3707_v11, %v3663_v3 }
 0x2cf   : > { %3677 = vst.msk [vmem:[%s5699_s30] ss:$8 sm:$0x3] %vm3675_vm0, %v3671_v12 }
 0x2d0   : > { %v3721_v17 = vrot.slane %v3714_v16, %v3663_v3 }
 0x2d2   : > { %3723 = vst.msk [vmem:[%s5704_s9] ss:$8 sm:$0x3] %vm3675_vm0, %v3721_v17 }
 0x2d3 PF: > { %3777 = sbr.rel (!%p5075_p12) target bundleno = 730 (0x2da), region = 101  ;;  %s4333_s21 = sshll.u32 (%p5075_p12), %s4939_s22, 3  ;;  %v3817_v18 = vld [vmem:[%s6038_s28] sm:$0xff] (%p5075_p12)  ;;  %v3819_v19 = vld [vmem:[%s6038_s28 + $0x8] sm:$0xff] (%p5075_p12)  ;;  %v3821_v20 = vld [vmem:[%s6038_s28 + $0x10] sm:$0xff] (%p5075_p12) }
 0x2d4   : > { %s3783_s5 = scalar_lea.vmem (%p5075_p12), %s6097_s2, %s4333_s21  ;;  %v3823_v21 = vld [vmem:[%s6038_s28 + $0x18] sm:$0xff] (%p5075_p12) }
 0x2d5   : > { %3818 = vst [vmem:[%s3783_s5] sm:$0xff] (%p5075_p12), %v3817_v18  ;;  %3820 = vst [vmem:[%s3783_s5 + $0x10] sm:$0xff] (%p5075_p12), %v3819_v19 }
 0x2d6   : > { %3822 = vst [vmem:[%s3783_s5 + $0x20] sm:$0xff] (%p5075_p12), %v3821_v20  ;;  %3824 = vst [vmem:[%s3783_s5 + $0x30] sm:$0xff] (%p5075_p12), %v3823_v21 }
 0x2da PF: > { %s15_s25 = sadd.s32 1, %s4951_s25   ;;  %s6109_s14 = sld [smem:[#allocation6_spill]] }
 0x2db   : > { %p12_p6 = scmp.ge.s32.totalorder %s15_s25, 6   ;;  %s6110_s29 = sld [smem:[#allocation7_spill]] }
 0x2dc   : > { %s6111_s15 = smov %s4915_s16  ;;  %s6112_s16 = smov %s5073_s13 }
 0x2dd   : > { %s6113_s17 = smov %s4923_s18  ;;  %s6114_s18 = smov %s5070_s12 }
 0x2de   : > { %s6115_s19 = smov %s4931_s20  ;;  %s6116_s20 = smov %s5056_s7 }
 0x2df   : > { %s6117_s21 = smov %s4943_s23  ;;  %s6118_s22 = smov %s4947_s24 }
 0x2e0   : > { %s6119_s23 = smov %s6109_s14  ;;  %14 = sbr.rel (!%p12_p6) target bundleno = 8 (0x8), region = 202 }
 0x2e1   : > { %s6120_s24 = smov %s6110_s29 }

// kernel: disc_model_forward.9
= control target key start
LH: loop header
LB: loop body
LE: loop exit
PB: predicated region body
PF: predicated region fallthrough
CT: control target
= control target key end

     0   :  { %s4159_s9 = smov 0   ;;  %s4161_s10 = smov 0   ;;  %s4477_s0 = inlined_call_operand.vmem [shape: bf16[8,8192], index: 0, kind: input, shape index: {}]   ;;  %s4478_s1 = inlined_call_operand.vmem [shape: bf16[8192,128], index: 1, kind: input, shape index: {}]   ;;  %s4479_s2 = inlined_call_operand.vmem [shape: f32[8,128], index: 2, kind: output, shape index: {}]  }
   0x1   :  { %s4163_s11 = smov 0  }
   0x2 LB: > { %s24_s12 = sadd.s32 1, %s4137_s10  ;;  %p3151_p0 = scmp.ge.s32.totalorder %s4141_s11, 1  ;;  %s4141_s11 = sphi %s4163_s11, %s12_s11   ;;  %s4137_s10 = sphi %s4161_s10, %s4481_s10   ;;  %s4133_s9 = sphi %s4159_s9, %s4480_s9  }
   0x3   : > { %p25_p1 = scmp.ge.s32.totalorder %s24_s12, 2  ;;  %p156_p2 = scmp.lt.s32.totalorder %s4141_s11, 3 }
   0x5   : > { %s4483_s12 = smov (%p25_p1, %s24_s12), 0  ;;  %p157_p3 = pnand %p3151_p0, %p156_p2 }
   0x6   : > { %s3154_s13 = sshll.u32 (!%p157_p3), %s4133_s9, 9  ;;  %s3152_s18 = sshll.u32 (!%p157_p3), %s4133_s9, 5 }
   0x7   : > { %160 = sbr.rel (%p157_p3) target bundleno = 531 (0x213), region = 28  ;;  %p203_p4 = scmp.lt.s32.totalorder (!%p157_p3), %s3154_s13, 1023 }
   0x8   : > { %p195_p5 = scmp.lt.s32.totalorder (!%p157_p3), %s3152_s18, 63  ;;  %p3444_p6 = scmp.ne.s32.totalorder (!%p157_p3), %s4133_s9, 0 }
   0xe   : > { %s4485_s13 = smov (!%p203_p4, %s3154_s13), 1023  ;;  %s4487_s18 = smov (!%p195_p5, %s3152_s18), 63 }
   0xf   : > { %s3155_s14 = sshll.u32 %s4485_s13, 2  ;;  %s3153_s19 = sshll.u32 %s4487_s18, 2 }
  0x10   : > { %s4183_s17 = scalar_lea.vmem %s4478_s1, %s3155_s14  ;;  %s4219_s22 = scalar_lea.vmem %s4477_s0, %s3153_s19 }
  0x11   : > { %v3827_v0 = vld [vmem:[%s4183_s17 + $0x40] sm:$0xff]   ;;  %v3831_v4 = vld [vmem:[%s4183_s17 + $0x48] sm:$0xff]   ;;  %v3835_v8 = vld [vmem:[%s4183_s17 + $0x50] sm:$0xff]  }
  0x12   : > { %v3828_v1 = vld [vmem:[%s4183_s17 + $0xc0] sm:$0xff]   ;;  %3450 = vmatprep.subr.bf16.mxu0 %v3827_v0  ;;  %v3832_v5 = vld [vmem:[%s4183_s17 + $0xc8] sm:$0xff]   ;;  %v3836_v9 = vld [vmem:[%s4183_s17 + $0xd0] sm:$0xff]  }
  0x13   : > { %v3829_v2 = vld [vmem:[%s4183_s17] sm:$0xff]   ;;  %3472 = vmatprep.subr.bf16.mxu1 %v3828_v1  ;;  %v3833_v6 = vld [vmem:[%s4183_s17 + $0x8] sm:$0xff]   ;;  %v3837_v10 = vld [vmem:[%s4183_s17 + $0x10] sm:$0xff]  }
  0x14   : > { %v3830_v3 = vld [vmem:[%s4183_s17 + $0x80] sm:$0xff]   ;;  %3451 = vmatpush3.bf16.msra.mxu0 %v3829_v2  ;;  %v3834_v7 = vld [vmem:[%s4183_s17 + $0x88] sm:$0xff]   ;;  %v3838_v11 = vld [vmem:[%s4183_s17 + $0x90] sm:$0xff]  }
  0x15   : > { %3473 = vmatpush3.bf16.msra.mxu1 %v3830_v3  ;;  %3452 = vmatprep.subr.bf16.mxu0 %v3831_v4  ;;  %v3839_v12 = vld [vmem:[%s4183_s17 + $0x58] sm:$0xff]   ;;  %v3843_v16 = vld [vmem:[%s4183_s17 + $0x60] sm:$0xff]   ;;  %v3847_v20 = vld [vmem:[%s4183_s17 + $0x68] sm:$0xff]  }
  0x16   : > { %3474 = vmatprep.subr.bf16.mxu1 %v3832_v5  ;;  %v3840_v13 = vld [vmem:[%s4183_s17 + $0xd8] sm:$0xff]   ;;  %v3844_v17 = vld [vmem:[%s4183_s17 + $0xe0] sm:$0xff]   ;;  %v3848_v21 = vld [vmem:[%s4183_s17 + $0xe8] sm:$0xff]  }
  0x17   : > { %v3841_v14 = vld [vmem:[%s4183_s17 + $0x18] sm:$0xff]   ;;  %v3845_v18 = vld [vmem:[%s4183_s17 + $0x20] sm:$0xff]   ;;  %v3849_v22 = vld [vmem:[%s4183_s17 + $0x28] sm:$0xff]  }
  0x18   : > { %3453 = vmatpush3.bf16.msra.mxu0 %v3833_v6  ;;  %v3842_v15 = vld [vmem:[%s4183_s17 + $0x98] sm:$0xff]   ;;  %v3846_v19 = vld [vmem:[%s4183_s17 + $0xa0] sm:$0xff]   ;;  %v3850_v23 = vld [vmem:[%s4183_s17 + $0xa8] sm:$0xff]  }
  0x19   : > { %3475 = vmatpush3.bf16.msra.mxu1 %v3834_v7  ;;  %3454 = vmatprep.subr.bf16.mxu0 %v3835_v8  ;;  %v3851_v24 = vld [vmem:[%s4183_s17 + $0x70] sm:$0xff]   ;;  %v3855_v28 = vld [vmem:[%s4183_s17 + $0x78] sm:$0xff]   ;;  %v219_v32 = vld [vmem:[%s4219_s22] sm:$0xff] }
  0x1a   : > { %3476 = vmatprep.subr.bf16.mxu1 %v3836_v9  ;;  %v3852_v25 = vld [vmem:[%s4183_s17 + $0xf0] sm:$0xff]   ;;  %v3856_v29 = vld [vmem:[%s4183_s17 + $0xf8] sm:$0xff]   ;;  %v220_v33 = vld [vmem:[%s4219_s22 + $0x8] sm:$0xff]  ;;  %v3156_v34 = vcombine.low %v219_v32, %v219_v32  ;;  %v3157_v35 = vcombine.high %v219_v32, %v219_v32 }
  0x1b   : > { %v3853_v26 = vld [vmem:[%s4183_s17 + $0x30] sm:$0xff]   ;;  %v3857_v30 = vld [vmem:[%s4183_s17 + $0x38] sm:$0xff]   ;;  %v3158_v36 = vcombine.low %v220_v33, %v220_v33  ;;  %v3159_v37 = vcombine.high %v220_v33, %v220_v33  ;;  %v3863_v38 = vld [vmem:[%s4183_s17 + $0x140] sm:$0xff]  }
  0x1c   : > { %3455 = vmatpush3.bf16.msra.mxu0 %v3837_v10  ;;  %v3854_v27 = vld [vmem:[%s4183_s17 + $0xb0] sm:$0xff]   ;;  %v3858_v31 = vld [vmem:[%s4183_s17 + $0xb8] sm:$0xff]   ;;  %v3864_v39 = vld [vmem:[%s4183_s17 + $0x1c0] sm:$0xff]   ;;  %2427 = vmatprep.mubr.bf16.mxu0 %v3157_v35 }
  0x1d   : > { %3477 = vmatpush3.bf16.msra.mxu1 %v3838_v11  ;;  %3456 = vmatprep.subr.bf16.mxu0 %v3839_v12  ;;  %v3865_v40 = vld [vmem:[%s4183_s17 + $0x100] sm:$0xff]   ;;  %v3867_v42 = vld [vmem:[%s4183_s17 + $0x148] sm:$0xff]   ;;  %v3871_v46 = vld [vmem:[%s4183_s17 + $0x150] sm:$0xff]  }
  0x1e   : > { %3478 = vmatprep.subr.bf16.mxu1 %v3840_v13  ;;  %2467 = vmatprep.mubr.bf16.mxu1 %v3159_v37  ;;  %v3866_v41 = vld [vmem:[%s4183_s17 + $0x180] sm:$0xff]   ;;  %v3868_v43 = vld [vmem:[%s4183_s17 + $0x1c8] sm:$0xff]   ;;  %v3872_v47 = vld [vmem:[%s4183_s17 + $0x1d0] sm:$0xff]  }
  0x1f   : > { %v3869_v44 = vld [vmem:[%s4183_s17 + $0x108] sm:$0xff]   ;;  %v3873_v48 = vld [vmem:[%s4183_s17 + $0x110] sm:$0xff]   ;;  %v3875_v50 = vld [vmem:[%s4183_s17 + $0x158] sm:$0xff]  }
  0x20   : > { %3457 = vmatpush3.bf16.msra.mxu0 %v3841_v14  ;;  %v3870_v45 = vld [vmem:[%s4183_s17 + $0x188] sm:$0xff]   ;;  %v3874_v49 = vld [vmem:[%s4183_s17 + $0x190] sm:$0xff]   ;;  %v3876_v51 = vld [vmem:[%s4183_s17 + $0x1d8] sm:$0xff]  }
  0x21   : > { %3479 = vmatpush3.bf16.msra.mxu1 %v3842_v15  ;;  %3458 = vmatprep.subr.bf16.mxu0 %v3843_v16  ;;  %v3877_v52 = vld [vmem:[%s4183_s17 + $0x118] sm:$0xff]   ;;  %v3879_v54 = vld [vmem:[%s4183_s17 + $0x160] sm:$0xff]   ;;  %v3883_v58 = vld [vmem:[%s4183_s17 + $0x168] sm:$0xff]  }
  0x22   : > { %3480 = vmatprep.subr.bf16.mxu1 %v3844_v17  ;;  %v3878_v53 = vld [vmem:[%s4183_s17 + $0x198] sm:$0xff]   ;;  %v3880_v55 = vld [vmem:[%s4183_s17 + $0x1e0] sm:$0xff]   ;;  %v3884_v59 = vld [vmem:[%s4183_s17 + $0x1e8] sm:$0xff]  }
  0x23   : > { %v3881_v56 = vld [vmem:[%s4183_s17 + $0x120] sm:$0xff]   ;;  %v3885_v60 = vld [vmem:[%s4183_s17 + $0x128] sm:$0xff]   ;;  %v3887_v62 = vld [vmem:[%s4183_s17 + $0x170] sm:$0xff]  }
  0x24   : > { %3459 = vmatpush3.bf16.msra.mxu0 %v3845_v18  ;;  %v3882_v57 = vld [vmem:[%s4183_s17 + $0x1a0] sm:$0xff]   ;;  %v3886_v61 = vld [vmem:[%s4183_s17 + $0x1a8] sm:$0xff]   ;;  %v3888_v63 = vld [vmem:[%s4183_s17 + $0x1f0] sm:$0xff]  }
  0x25   : > { %3481 = vmatpush3.bf16.msra.mxu1 %v3846_v19  ;;  %3460 = vmatprep.subr.bf16.mxu0 %v3847_v20  ;;  %v3889_v0 = vld [vmem:[%s4183_s17 + $0x130] sm:$0xff]   ;;  %v3891_v2 = vld [vmem:[%s4183_s17 + $0x178] sm:$0xff]   ;;  %v3899_v12 = vld [vmem:[%s4183_s17 + $0x240] sm:$0xff]  }
  0x26   : > { %3482 = vmatprep.subr.bf16.mxu1 %v3848_v21  ;;  %v3890_v1 = vld [vmem:[%s4183_s17 + $0x1b0] sm:$0xff]   ;;  %v3892_v3 = vld [vmem:[%s4183_s17 + $0x1f8] sm:$0xff]   ;;  %v3900_v13 = vld [vmem:[%s4183_s17 + $0x2c0] sm:$0xff]  }
  0x27   : > { %v3893_v4 = vld [vmem:[%s4183_s17 + $0x138] sm:$0xff]   ;;  %v221_v6 = vld [vmem:[%s4219_s22 + $0x10] sm:$0xff]  ;;  %v3901_v14 = vld [vmem:[%s4183_s17 + $0x200] sm:$0xff]  }
  0x28   : > { %3461 = vmatpush3.bf16.msra.mxu0 %v3849_v22  ;;  %v3894_v5 = vld [vmem:[%s4183_s17 + $0x1b8] sm:$0xff]   ;;  %v3160_v7 = vcombine.low %v221_v6, %v221_v6  ;;  %v3161_v8 = vcombine.high %v221_v6, %v221_v6  ;;  %v3902_v15 = vld [vmem:[%s4183_s17 + $0x280] sm:$0xff]   ;;  %v3903_v16 = vld [vmem:[%s4183_s17 + $0x248] sm:$0xff]  }
  0x29   : > { %3483 = vmatpush3.bf16.msra.mxu1 %v3850_v23  ;;  %3462 = vmatprep.subr.bf16.mxu0 %v3851_v24  ;;  %v222_v9 = vld [vmem:[%s4219_s22 + $0x18] sm:$0xff]  ;;  %v3904_v17 = vld [vmem:[%s4183_s17 + $0x2c8] sm:$0xff]   ;;  %v3907_v20 = vld [vmem:[%s4183_s17 + $0x250] sm:$0xff]  }
  0x2a   : > { %3484 = vmatprep.subr.bf16.mxu1 %v3852_v25  ;;  %v3162_v10 = vcombine.low %v222_v9, %v222_v9  ;;  %v3163_v11 = vcombine.high %v222_v9, %v222_v9  ;;  %v3905_v18 = vld [vmem:[%s4183_s17 + $0x208] sm:$0xff]   ;;  %v3908_v21 = vld [vmem:[%s4183_s17 + $0x2d0] sm:$0xff]   ;;  %v3911_v24 = vld [vmem:[%s4183_s17 + $0x258] sm:$0xff]  }
  0x2b   : > { %v3906_v19 = vld [vmem:[%s4183_s17 + $0x288] sm:$0xff]   ;;  %v3909_v22 = vld [vmem:[%s4183_s17 + $0x210] sm:$0xff]   ;;  %v3912_v25 = vld [vmem:[%s4183_s17 + $0x2d8] sm:$0xff]  }
  0x2c   : > { %3463 = vmatpush3.bf16.msra.mxu0 %v3853_v26  ;;  %v3910_v23 = vld [vmem:[%s4183_s17 + $0x290] sm:$0xff]   ;;  %v3913_v26 = vld [vmem:[%s4183_s17 + $0x218] sm:$0xff]   ;;  %v3919_v32 = vld [vmem:[%s4183_s17 + $0x268] sm:$0xff]  }
  0x2d   : > { %3485 = vmatpush3.bf16.msra.mxu1 %v3854_v27  ;;  %3464 = vmatprep.subr.bf16.mxu0 %v3855_v28  ;;  %v3914_v27 = vld [vmem:[%s4183_s17 + $0x298] sm:$0xff]   ;;  %v3915_v28 = vld [vmem:[%s4183_s17 + $0x260] sm:$0xff]   ;;  %v3920_v33 = vld [vmem:[%s4183_s17 + $0x2e8] sm:$0xff]  }
  0x2e   : > { %3486 = vmatprep.subr.bf16.mxu1 %v3856_v29  ;;  %v3916_v29 = vld [vmem:[%s4183_s17 + $0x2e0] sm:$0xff]   ;;  %v3922_v35 = vld [vmem:[%s4183_s17 + $0x2a8] sm:$0xff]   ;;  %v3924_v37 = vld [vmem:[%s4183_s17 + $0x2f0] sm:$0xff]  }
  0x2f   : > { %v3955_v6 = vld [vmem:[%s4183_s17 + $0x368] sm:$0xff]  }
  0x30   : > { %3465 = vmatpush3.bf16.msra.mxu0 %v3857_v30  ;;  %v3917_v30 = vld [vmem:[%s4183_s17 + $0x220] sm:$0xff]   ;;  %v3958_v9 = vld [vmem:[%s4183_s17 + $0x3a8] sm:$0xff]  }
  0x31   : > { %3487 = vmatpush3.bf16.msra.mxu1 %v3858_v31  ;;  %3494 = vmatprep.subr.bf16.mxu0 %v3863_v38  ;;  %v3918_v31 = vld [vmem:[%s4183_s17 + $0x2a0] sm:$0xff]   ;;  %v3925_v38 = vld [vmem:[%s4183_s17 + $0x230] sm:$0xff]  }
  0x32   : > { %3516 = vmatprep.subr.bf16.mxu1 %v3864_v39  ;;  %v3926_v39 = vld [vmem:[%s4183_s17 + $0x2b0] sm:$0xff]  }
  0x33   : > { %2428 = vmatmul.mubr.bf16.vlgmr.msra.gmra.mrb[0].mxu0 %v3156_v34  ;;  %v3921_v34 = vld [vmem:[%s4183_s17 + $0x228] sm:$0xff]  }
  0x34   : > { %2468 = vmatmul.mubr.bf16.vlgmr.msra.gmra.mrb[0].mxu1 %v3158_v36  ;;  %3495 = vmatpush3.bf16.msra.mxu0 %v3865_v40  ;;  %v3923_v36 = vld [vmem:[%s4183_s17 + $0x270] sm:$0xff]   ;;  %v3927_v40 = vld [vmem:[%s4183_s17 + $0x278] sm:$0xff]  }
  0x35   : > { %3517 = vmatpush3.bf16.msra.mxu1 %v3866_v41  ;;  %3496 = vmatprep.subr.bf16.mxu0 %v3867_v42  ;;  %v3928_v41 = vld [vmem:[%s4183_s17 + $0x2f8] sm:$0xff]  }
  0x36   : > { %3518 = vmatprep.subr.bf16.mxu1 %v3868_v43  ;;  %2507 = vmatprep.mubr.bf16.mxu0 %v3161_v8  ;;  %v3929_v42 = vld [vmem:[%s4183_s17 + $0x238] sm:$0xff]   ;;  %v3957_v8 = vld [vmem:[%s4183_s17 + $0x328] sm:$0xff]  }
  0x37   : > { %2547 = vmatprep.mubr.bf16.mxu1 %v3163_v11  ;;  %v3930_v43 = vld [vmem:[%s4183_s17 + $0x2b8] sm:$0xff]   ;;  %v3960_v11 = vld [vmem:[%s4183_s17 + $0x3f0] sm:$0xff]  }
  0x38   : > { %3497 = vmatpush3.bf16.msra.mxu0 %v3869_v44  ;;  %v223_v44 = vld [vmem:[%s4219_s22 + $0x20] sm:$0xff] }
  0x39   : > { %3519 = vmatpush3.bf16.msra.mxu1 %v3870_v45  ;;  %3498 = vmatprep.subr.bf16.mxu0 %v3871_v46  ;;  %v224_v45 = vld [vmem:[%s4219_s22 + $0x28] sm:$0xff]  ;;  %v3164_v46 = vcombine.low %v223_v44, %v223_v44 }
  0x3a   : > { %3520 = vmatprep.subr.bf16.mxu1 %v3872_v47  ;;  %v3165_v47 = vcombine.high %v223_v44, %v223_v44  ;;  %v3991_v44 = vld [vmem:[%s4183_s17 + $0x468] sm:$0xff]  }
  0x3c   : > { %3499 = vmatpush3.bf16.msra.mxu0 %v3873_v48  ;;  %v3166_v48 = vcombine.low %v224_v45, %v224_v45 }
  0x3d   : > { %3521 = vmatpush3.bf16.msra.mxu1 %v3874_v49  ;;  %3500 = vmatprep.subr.bf16.mxu0 %v3875_v50  ;;  %v3167_v49 = vcombine.high %v224_v45, %v224_v45  ;;  %v3935_v50 = vld [vmem:[%s4183_s17 + $0x340] sm:$0xff]   ;;  %v3992_v45 = vld [vmem:[%s4183_s17 + $0x4e8] sm:$0xff]  }
  0x3e   : > { %3522 = vmatprep.subr.bf16.mxu1 %v3876_v51  ;;  %v3936_v51 = vld [vmem:[%s4183_s17 + $0x3c0] sm:$0xff]  }
  0x40   : > { %3501 = vmatpush3.bf16.msra.mxu0 %v3877_v52  ;;  %v3937_v52 = vld [vmem:[%s4183_s17 + $0x300] sm:$0xff]  }
  0x41   : > { %3523 = vmatpush3.bf16.msra.mxu1 %v3878_v53  ;;  %3502 = vmatprep.subr.bf16.mxu0 %v3879_v54  ;;  %v3938_v53 = vld [vmem:[%s4183_s17 + $0x380] sm:$0xff]   ;;  %v3939_v54 = vld [vmem:[%s4183_s17 + $0x348] sm:$0xff]  }
  0x42   : > { %3524 = vmatprep.subr.bf16.mxu1 %v3880_v55  ;;  %v3940_v55 = vld [vmem:[%s4183_s17 + $0x3c8] sm:$0xff]  }
  0x44   : > { %3503 = vmatpush3.bf16.msra.mxu0 %v3881_v56  ;;  %v3941_v56 = vld [vmem:[%s4183_s17 + $0x308] sm:$0xff]  }
  0x45   : > { %3525 = vmatpush3.bf16.msra.mxu1 %v3882_v57  ;;  %3504 = vmatprep.subr.bf16.mxu0 %v3883_v58  ;;  %v3942_v57 = vld [vmem:[%s4183_s17 + $0x388] sm:$0xff]   ;;  %v3943_v58 = vld [vmem:[%s4183_s17 + $0x350] sm:$0xff]  }
  0x46   : > { %3526 = vmatprep.subr.bf16.mxu1 %v3884_v59  ;;  %v3944_v59 = vld [vmem:[%s4183_s17 + $0x3d0] sm:$0xff]  }
  0x48   : > { %3505 = vmatpush3.bf16.msra.mxu0 %v3885_v60  ;;  %v3945_v60 = vld [vmem:[%s4183_s17 + $0x310] sm:$0xff]  }
  0x49   : > { %3527 = vmatpush3.bf16.msra.mxu1 %v3886_v61  ;;  %3506 = vmatprep.subr.bf16.mxu0 %v3887_v62  ;;  %v3946_v61 = vld [vmem:[%s4183_s17 + $0x390] sm:$0xff]   ;;  %v3947_v62 = vld [vmem:[%s4183_s17 + $0x358] sm:$0xff]  }
  0x4a   : > { %3528 = vmatprep.subr.bf16.mxu1 %v3888_v63  ;;  %v3948_v63 = vld [vmem:[%s4183_s17 + $0x3d8] sm:$0xff]  }
  0x4c   : > { %3507 = vmatpush3.bf16.msra.mxu0 %v3889_v0  ;;  %v3949_v0 = vld [vmem:[%s4183_s17 + $0x318] sm:$0xff]  }
  0x4d   : > { %3529 = vmatpush3.bf16.msra.mxu1 %v3890_v1  ;;  %3508 = vmatprep.subr.bf16.mxu0 %v3891_v2  ;;  %v3950_v1 = vld [vmem:[%s4183_s17 + $0x398] sm:$0xff]   ;;  %v3951_v2 = vld [vmem:[%s4183_s17 + $0x360] sm:$0xff]  }
  0x4e   : > { %3530 = vmatprep.subr.bf16.mxu1 %v3892_v3  ;;  %v3952_v3 = vld [vmem:[%s4183_s17 + $0x3e0] sm:$0xff]  }
  0x50   : > { %3509 = vmatpush3.bf16.msra.mxu0 %v3893_v4  ;;  %v3953_v4 = vld [vmem:[%s4183_s17 + $0x320] sm:$0xff]  }
  0x51   : > { %3531 = vmatpush3.bf16.msra.mxu1 %v3894_v5  ;;  %3538 = vmatprep.subr.bf16.mxu0 %v3899_v12  ;;  %v3954_v5 = vld [vmem:[%s4183_s17 + $0x3a0] sm:$0xff]   ;;  %v3961_v12 = vld [vmem:[%s4183_s17 + $0x330] sm:$0xff]  }
  0x52   : > { %3560 = vmatprep.subr.bf16.mxu1 %v3900_v13  ;;  %v3962_v13 = vld [vmem:[%s4183_s17 + $0x3b0] sm:$0xff]  }
  0x53   : > { %2508 = vmatmul.mubr.bf16.vlgmr.msra.gmra.mrb[4].mxu0 %v3160_v7  ;;  %v3956_v7 = vld [vmem:[%s4183_s17 + $0x3e8] sm:$0xff]  }
  0x54   : > { %2548 = vmatmul.mubr.bf16.vlgmr.msra.gmra.mrb[4].mxu1 %v3162_v10  ;;  %3539 = vmatpush3.bf16.msra.mxu0 %v3901_v14  ;;  %v3959_v10 = vld [vmem:[%s4183_s17 + $0x370] sm:$0xff]   ;;  %v3963_v14 = vld [vmem:[%s4183_s17 + $0x378] sm:$0xff]  }
  0x55   : > { %3561 = vmatpush3.bf16.msra.mxu1 %v3902_v15  ;;  %3540 = vmatprep.subr.bf16.mxu0 %v3903_v16  ;;  %v3964_v15 = vld [vmem:[%s4183_s17 + $0x3f8] sm:$0xff]  }
  0x56   : > { %3562 = vmatprep.subr.bf16.mxu1 %v3904_v17  ;;  %2587 = vmatprep.mubr.bf16.mxu0 %v3165_v47  ;;  %v3965_v16 = vld [vmem:[%s4183_s17 + $0x338] sm:$0xff]   ;;  %v3994_v47 = vld [vmem:[%s4183_s17 + $0x4a8] sm:$0xff]  }
  0x57   : > { %2627 = vmatprep.mubr.bf16.mxu1 %v3167_v49  ;;  %v3966_v17 = vld [vmem:[%s4183_s17 + $0x3b8] sm:$0xff]   ;;  %v3996_v49 = vld [vmem:[%s4183_s17 + $0x4f0] sm:$0xff]  }
  0x58   : > { %3541 = vmatpush3.bf16.msra.mxu0 %v3905_v18  ;;  %v225_v18 = vld [vmem:[%s4219_s22 + $0x30] sm:$0xff] }
  0x59   : > { %3563 = vmatpush3.bf16.msra.mxu1 %v3906_v19  ;;  %3542 = vmatprep.subr.bf16.mxu0 %v3907_v20  ;;  %v226_v19 = vld [vmem:[%s4219_s22 + $0x38] sm:$0xff]  ;;  %v3168_v20 = vcombine.low %v225_v18, %v225_v18 }
  0x5a   : > { %3564 = vmatprep.subr.bf16.mxu1 %v3908_v21  ;;  %v3169_v21 = vcombine.high %v225_v18, %v225_v18  ;;  %v4027_v18 = vld [vmem:[%s4183_s17 + $0x568] sm:$0xff]  }
  0x5c   : > { %3543 = vmatpush3.bf16.msra.mxu0 %v3909_v22  ;;  %v3170_v22 = vcombine.low %v226_v19, %v226_v19 }
  0x5d   : > { %3565 = vmatpush3.bf16.msra.mxu1 %v3910_v23  ;;  %3544 = vmatprep.subr.bf16.mxu0 %v3911_v24  ;;  %v3971_v23 = vld [vmem:[%s4183_s17 + $0x440] sm:$0xff]   ;;  %v3171_v24 = vcombine.high %v226_v19, %v226_v19  ;;  %v4028_v19 = vld [vmem:[%s4183_s17 + $0x5e8] sm:$0xff]  }
  0x5e   : > { %3566 = vmatprep.subr.bf16.mxu1 %v3912_v25  ;;  %v3972_v25 = vld [vmem:[%s4183_s17 + $0x4c0] sm:$0xff]  }
  0x60   : > { %3545 = vmatpush3.bf16.msra.mxu0 %v3913_v26  ;;  %v3973_v26 = vld [vmem:[%s4183_s17 + $0x400] sm:$0xff]  }
  0x61   : > { %3567 = vmatpush3.bf16.msra.mxu1 %v3914_v27  ;;  %3546 = vmatprep.subr.bf16.mxu0 %v3915_v28  ;;  %v3974_v27 = vld [vmem:[%s4183_s17 + $0x480] sm:$0xff]   ;;  %v3975_v28 = vld [vmem:[%s4183_s17 + $0x448] sm:$0xff]  }
  0x62   : > { %3568 = vmatprep.subr.bf16.mxu1 %v3916_v29  ;;  %v3976_v29 = vld [vmem:[%s4183_s17 + $0x4c8] sm:$0xff]  }
  0x64   : > { %3547 = vmatpush3.bf16.msra.mxu0 %v3917_v30  ;;  %v3977_v30 = vld [vmem:[%s4183_s17 + $0x408] sm:$0xff]  }
  0x65   : > { %3569 = vmatpush3.bf16.msra.mxu1 %v3918_v31  ;;  %3548 = vmatprep.subr.bf16.mxu0 %v3919_v32  ;;  %v3978_v31 = vld [vmem:[%s4183_s17 + $0x488] sm:$0xff]   ;;  %v3979_v32 = vld [vmem:[%s4183_s17 + $0x450] sm:$0xff]  }
  0x66   : > { %3570 = vmatprep.subr.bf16.mxu1 %v3920_v33  ;;  %v3980_v33 = vld [vmem:[%s4183_s17 + $0x4d0] sm:$0xff]  }
  0x68   : > { %3549 = vmatpush3.bf16.msra.mxu0 %v3921_v34  ;;  %v3981_v34 = vld [vmem:[%s4183_s17 + $0x410] sm:$0xff]  }
  0x69   : > { %3571 = vmatpush3.bf16.msra.mxu1 %v3922_v35  ;;  %3550 = vmatprep.subr.bf16.mxu0 %v3923_v36  ;;  %v3982_v35 = vld [vmem:[%s4183_s17 + $0x490] sm:$0xff]   ;;  %v3983_v36 = vld [vmem:[%s4183_s17 + $0x458] sm:$0xff]  }
  0x6a   : > { %3572 = vmatprep.subr.bf16.mxu1 %v3924_v37  ;;  %v3984_v37 = vld [vmem:[%s4183_s17 + $0x4d8] sm:$0xff]  }
  0x6c   : > { %3551 = vmatpush3.bf16.msra.mxu0 %v3925_v38  ;;  %v3985_v38 = vld [vmem:[%s4183_s17 + $0x418] sm:$0xff]  }
  0x6d   : > { %3573 = vmatpush3.bf16.msra.mxu1 %v3926_v39  ;;  %3552 = vmatprep.subr.bf16.mxu0 %v3927_v40  ;;  %v3986_v39 = vld [vmem:[%s4183_s17 + $0x498] sm:$0xff]   ;;  %v3987_v40 = vld [vmem:[%s4183_s17 + $0x460] sm:$0xff]  }
  0x6e   : > { %3574 = vmatprep.subr.bf16.mxu1 %v3928_v41  ;;  %v3988_v41 = vld [vmem:[%s4183_s17 + $0x4e0] sm:$0xff]  }
  0x70   : > { %3553 = vmatpush3.bf16.msra.mxu0 %v3929_v42  ;;  %v3989_v42 = vld [vmem:[%s4183_s17 + $0x420] sm:$0xff]  }
  0x71   : > { %3575 = vmatpush3.bf16.msra.mxu1 %v3930_v43  ;;  %3582 = vmatprep.subr.bf16.mxu0 %v3935_v50  ;;  %v3990_v43 = vld [vmem:[%s4183_s17 + $0x4a0] sm:$0xff]   ;;  %v3997_v50 = vld [vmem:[%s4183_s17 + $0x430] sm:$0xff]  }
  0x72   : > { %3604 = vmatprep.subr.bf16.mxu1 %v3936_v51  ;;  %v3998_v51 = vld [vmem:[%s4183_s17 + $0x4b0] sm:$0xff]  }
  0x73   : > { %2588 = vmatmul.mubr.bf16.vlgmr.msra.gmra.mrb[8].mxu0 %v3164_v46  ;;  %v3993_v46 = vld [vmem:[%s4183_s17 + $0x428] sm:$0xff]  }
  0x74   : > { %2628 = vmatmul.mubr.bf16.vlgmr.msra.gmra.mrb[8].mxu1 %v3166_v48  ;;  %3583 = vmatpush3.bf16.msra.mxu0 %v3937_v52  ;;  %v3995_v48 = vld [vmem:[%s4183_s17 + $0x470] sm:$0xff]   ;;  %v3999_v52 = vld [vmem:[%s4183_s17 + $0x478] sm:$0xff]  }
  0x75   : > { %3605 = vmatpush3.bf16.msra.mxu1 %v3938_v53  ;;  %3584 = vmatprep.subr.bf16.mxu0 %v3939_v54  ;;  %v4000_v53 = vld [vmem:[%s4183_s17 + $0x4f8] sm:$0xff]  }
  0x76   : > { %3606 = vmatprep.subr.bf16.mxu1 %v3940_v55  ;;  %2667 = vmatprep.mubr.bf16.mxu0 %v3169_v21  ;;  %v4001_v54 = vld [vmem:[%s4183_s17 + $0x438] sm:$0xff]   ;;  %v4030_v21 = vld [vmem:[%s4183_s17 + $0x5a8] sm:$0xff]  }
  0x77   : > { %2707 = vmatprep.mubr.bf16.mxu1 %v3171_v24  ;;  %v4002_v55 = vld [vmem:[%s4183_s17 + $0x4b8] sm:$0xff]   ;;  %v4033_v24 = vld [vmem:[%s4183_s17 + $0x530] sm:$0xff]  }
  0x78   : > { %3585 = vmatpush3.bf16.msra.mxu0 %v3941_v56  ;;  %v227_v56 = vld [vmem:[%s4219_s22 + $0x40] sm:$0xff] }
  0x79   : > { %3607 = vmatpush3.bf16.msra.mxu1 %v3942_v57  ;;  %3586 = vmatprep.subr.bf16.mxu0 %v3943_v58  ;;  %v3172_v57 = vcombine.low %v227_v56, %v227_v56  ;;  %v3173_v58 = vcombine.high %v227_v56, %v227_v56  ;;  %v4063_v56 = vld [vmem:[%s4183_s17 + $0x668] sm:$0xff]  }
  0x7a   : > { %3608 = vmatprep.subr.bf16.mxu1 %v3944_v59  ;;  %v228_v59 = vld [vmem:[%s4219_s22 + $0x48] sm:$0xff] }
  0x7c   : > { %3587 = vmatpush3.bf16.msra.mxu0 %v3945_v60  ;;  %v3174_v60 = vcombine.low %v228_v59, %v228_v59 }
  0x7d   : > { %3609 = vmatpush3.bf16.msra.mxu1 %v3946_v61  ;;  %3588 = vmatprep.subr.bf16.mxu0 %v3947_v62  ;;  %v3175_v61 = vcombine.high %v228_v59, %v228_v59  ;;  %v4007_v62 = vld [vmem:[%s4183_s17 + $0x540] sm:$0xff]   ;;  %v4066_v59 = vld [vmem:[%s4183_s17 + $0x6a8] sm:$0xff]  }
  0x7e   : > { %3610 = vmatprep.subr.bf16.mxu1 %v3948_v63  ;;  %v4008_v63 = vld [vmem:[%s4183_s17 + $0x5c0] sm:$0xff]  }
  0x80   : > { %3589 = vmatpush3.bf16.msra.mxu0 %v3949_v0  ;;  %v4009_v0 = vld [vmem:[%s4183_s17 + $0x500] sm:$0xff]  }
  0x81   : > { %3611 = vmatpush3.bf16.msra.mxu1 %v3950_v1  ;;  %3590 = vmatprep.subr.bf16.mxu0 %v3951_v2  ;;  %v4010_v1 = vld [vmem:[%s4183_s17 + $0x580] sm:$0xff]   ;;  %v4011_v2 = vld [vmem:[%s4183_s17 + $0x548] sm:$0xff]  }
  0x82   : > { %3612 = vmatprep.subr.bf16.mxu1 %v3952_v3  ;;  %v4012_v3 = vld [vmem:[%s4183_s17 + $0x5c8] sm:$0xff]  }
  0x84   : > { %3591 = vmatpush3.bf16.msra.mxu0 %v3953_v4  ;;  %v4013_v4 = vld [vmem:[%s4183_s17 + $0x508] sm:$0xff]  }
  0x85   : > { %3613 = vmatpush3.bf16.msra.mxu1 %v3954_v5  ;;  %3592 = vmatprep.subr.bf16.mxu0 %v3955_v6  ;;  %v4014_v5 = vld [vmem:[%s4183_s17 + $0x588] sm:$0xff]   ;;  %v4015_v6 = vld [vmem:[%s4183_s17 + $0x550] sm:$0xff]  }
  0x86   : > { %3614 = vmatprep.subr.bf16.mxu1 %v3956_v7  ;;  %v4016_v7 = vld [vmem:[%s4183_s17 + $0x5d0] sm:$0xff]  }
  0x88   : > { %3593 = vmatpush3.bf16.msra.mxu0 %v3957_v8  ;;  %v4017_v8 = vld [vmem:[%s4183_s17 + $0x510] sm:$0xff]  }
  0x89   : > { %3615 = vmatpush3.bf16.msra.mxu1 %v3958_v9  ;;  %3594 = vmatprep.subr.bf16.mxu0 %v3959_v10  ;;  %v4018_v9 = vld [vmem:[%s4183_s17 + $0x590] sm:$0xff]   ;;  %v4019_v10 = vld [vmem:[%s4183_s17 + $0x558] sm:$0xff]  }
  0x8a   : > { %3616 = vmatprep.subr.bf16.mxu1 %v3960_v11  ;;  %v4020_v11 = vld [vmem:[%s4183_s17 + $0x5d8] sm:$0xff]  }
  0x8c   : > { %3595 = vmatpush3.bf16.msra.mxu0 %v3961_v12  ;;  %v4021_v12 = vld [vmem:[%s4183_s17 + $0x518] sm:$0xff]  }
  0x8d   : > { %3617 = vmatpush3.bf16.msra.mxu1 %v3962_v13  ;;  %3596 = vmatprep.subr.bf16.mxu0 %v3963_v14  ;;  %v4022_v13 = vld [vmem:[%s4183_s17 + $0x598] sm:$0xff]   ;;  %v4023_v14 = vld [vmem:[%s4183_s17 + $0x560] sm:$0xff]  }
  0x8e   : > { %3618 = vmatprep.subr.bf16.mxu1 %v3964_v15  ;;  %v4024_v15 = vld [vmem:[%s4183_s17 + $0x5e0] sm:$0xff]  }
  0x90   : > { %3597 = vmatpush3.bf16.msra.mxu0 %v3965_v16  ;;  %v4025_v16 = vld [vmem:[%s4183_s17 + $0x520] sm:$0xff]  }
  0x91   : > { %3619 = vmatpush3.bf16.msra.mxu1 %v3966_v17  ;;  %3626 = vmatprep.subr.bf16.mxu0 %v3971_v23  ;;  %v4026_v17 = vld [vmem:[%s4183_s17 + $0x5a0] sm:$0xff]   ;;  %v4032_v23 = vld [vmem:[%s4183_s17 + $0x5f0] sm:$0xff]  }
  0x92   : > { %3648 = vmatprep.subr.bf16.mxu1 %v3972_v25  ;;  %v4034_v25 = vld [vmem:[%s4183_s17 + $0x5b0] sm:$0xff]  }
  0x93   : > { %2668 = vmatmul.mubr.bf16.vlgmr.msra.gmra.mrb[12].mxu0 %v3168_v20  ;;  %v4029_v20 = vld [vmem:[%s4183_s17 + $0x528] sm:$0xff]  }
  0x94   : > { %2708 = vmatmul.mubr.bf16.vlgmr.msra.gmra.mrb[12].mxu1 %v3170_v22  ;;  %3627 = vmatpush3.bf16.msra.mxu0 %v3973_v26  ;;  %v4031_v22 = vld [vmem:[%s4183_s17 + $0x570] sm:$0xff]   ;;  %v4035_v26 = vld [vmem:[%s4183_s17 + $0x578] sm:$0xff]  }
  0x95   : > { %3649 = vmatpush3.bf16.msra.mxu1 %v3974_v27  ;;  %3628 = vmatprep.subr.bf16.mxu0 %v3975_v28  ;;  %v4036_v27 = vld [vmem:[%s4183_s17 + $0x5f8] sm:$0xff]  }
  0x96   : > { %3650 = vmatprep.subr.bf16.mxu1 %v3976_v29  ;;  %2747 = vmatprep.mubr.bf16.mxu0 %v3173_v58  ;;  %v4037_v28 = vld [vmem:[%s4183_s17 + $0x538] sm:$0xff]   ;;  %v4065_v58 = vld [vmem:[%s4183_s17 + $0x628] sm:$0xff]  }
  0x97   : > { %2787 = vmatprep.mubr.bf16.mxu1 %v3175_v61  ;;  %v4038_v29 = vld [vmem:[%s4183_s17 + $0x5b8] sm:$0xff]   ;;  %v4068_v61 = vld [vmem:[%s4183_s17 + $0x6f0] sm:$0xff]  }
  0x98   : > { %3629 = vmatpush3.bf16.msra.mxu0 %v3977_v30  ;;  %v229_v30 = vld [vmem:[%s4219_s22 + $0x50] sm:$0xff] }
  0x99   : > { %3651 = vmatpush3.bf16.msra.mxu1 %v3978_v31  ;;  %3630 = vmatprep.subr.bf16.mxu0 %v3979_v32  ;;  %v230_v31 = vld [vmem:[%s4219_s22 + $0x58] sm:$0xff]  ;;  %v3176_v32 = vcombine.low %v229_v30, %v229_v30 }
  0x9a   : > { %3652 = vmatprep.subr.bf16.mxu1 %v3980_v33  ;;  %v3177_v33 = vcombine.high %v229_v30, %v229_v30  ;;  %v4098_v30 = vld [vmem:[%s4183_s17 + $0x7a0] sm:$0xff]  }
  0x9c   : > { %3631 = vmatpush3.bf16.msra.mxu0 %v3981_v34  ;;  %v3178_v34 = vcombine.low %v230_v31, %v230_v31 }
  0x9d   : > { %3653 = vmatpush3.bf16.msra.mxu1 %v3982_v35  ;;  %3632 = vmatprep.subr.bf16.mxu0 %v3983_v36  ;;  %v3179_v35 = vcombine.high %v230_v31, %v230_v31  ;;  %v4043_v36 = vld [vmem:[%s4183_s17 + $0x640] sm:$0xff]  }
  0x9e   : > { %3654 = vmatprep.subr.bf16.mxu1 %v3984_v37  ;;  %v4044_v37 = vld [vmem:[%s4183_s17 + $0x6c0] sm:$0xff]  }
  0xa0   : > { %3633 = vmatpush3.bf16.msra.mxu0 %v3985_v38  ;;  %v4045_v38 = vld [vmem:[%s4183_s17 + $0x600] sm:$0xff]  }
  0xa1   : > { %3655 = vmatpush3.bf16.msra.mxu1 %v3986_v39  ;;  %3634 = vmatprep.subr.bf16.mxu0 %v3987_v40  ;;  %v4046_v39 = vld [vmem:[%s4183_s17 + $0x680] sm:$0xff]   ;;  %v4047_v40 = vld [vmem:[%s4183_s17 + $0x648] sm:$0xff]  }
  0xa2   : > { %3656 = vmatprep.subr.bf16.mxu1 %v3988_v41  ;;  %v4048_v41 = vld [vmem:[%s4183_s17 + $0x6c8] sm:$0xff]  }
  0xa4   : > { %3635 = vmatpush3.bf16.msra.mxu0 %v3989_v42  ;;  %v4049_v42 = vld [vmem:[%s4183_s17 + $0x608] sm:$0xff]  }
  0xa5   : > { %3657 = vmatpush3.bf16.msra.mxu1 %v3990_v43  ;;  %3636 = vmatprep.subr.bf16.mxu0 %v3991_v44  ;;  %v4050_v43 = vld [vmem:[%s4183_s17 + $0x688] sm:$0xff]   ;;  %v4051_v44 = vld [vmem:[%s4183_s17 + $0x650] sm:$0xff]  }
  0xa6   : > { %3658 = vmatprep.subr.bf16.mxu1 %v3992_v45  ;;  %v4052_v45 = vld [vmem:[%s4183_s17 + $0x6d0] sm:$0xff]  }
  0xa8   : > { %3637 = vmatpush3.bf16.msra.mxu0 %v3993_v46  ;;  %v4053_v46 = vld [vmem:[%s4183_s17 + $0x610] sm:$0xff]  }
  0xa9   : > { %3659 = vmatpush3.bf16.msra.mxu1 %v3994_v47  ;;  %3638 = vmatprep.subr.bf16.mxu0 %v3995_v48  ;;  %v4054_v47 = vld [vmem:[%s4183_s17 + $0x690] sm:$0xff]   ;;  %v4055_v48 = vld [vmem:[%s4183_s17 + $0x658] sm:$0xff]  }
  0xaa   : > { %3660 = vmatprep.subr.bf16.mxu1 %v3996_v49  ;;  %v4056_v49 = vld [vmem:[%s4183_s17 + $0x6d8] sm:$0xff]  }
  0xac   : > { %3639 = vmatpush3.bf16.msra.mxu0 %v3997_v50  ;;  %v4057_v50 = vld [vmem:[%s4183_s17 + $0x618] sm:$0xff]  }
  0xad   : > { %3661 = vmatpush3.bf16.msra.mxu1 %v3998_v51  ;;  %3640 = vmatprep.subr.bf16.mxu0 %v3999_v52  ;;  %v4058_v51 = vld [vmem:[%s4183_s17 + $0x698] sm:$0xff]   ;;  %v4059_v52 = vld [vmem:[%s4183_s17 + $0x660] sm:$0xff]  }
  0xae   : > { %3662 = vmatprep.subr.bf16.mxu1 %v4000_v53  ;;  %v4060_v53 = vld [vmem:[%s4183_s17 + $0x6e0] sm:$0xff]  }
  0xb0   : > { %3641 = vmatpush3.bf16.msra.mxu0 %v4001_v54  ;;  %v4061_v54 = vld [vmem:[%s4183_s17 + $0x620] sm:$0xff]  }
  0xb1   : > { %3663 = vmatpush3.bf16.msra.mxu1 %v4002_v55  ;;  %3670 = vmatprep.subr.bf16.mxu0 %v4007_v62  ;;  %v4062_v55 = vld [vmem:[%s4183_s17 + $0x6a0] sm:$0xff]   ;;  %v4069_v62 = vld [vmem:[%s4183_s17 + $0x630] sm:$0xff]  }
  0xb2   : > { %3692 = vmatprep.subr.bf16.mxu1 %v4008_v63  ;;  %v4070_v63 = vld [vmem:[%s4183_s17 + $0x6b0] sm:$0xff]  }
  0xb3   : > { %2748 = vmatmul.mubr.bf16.vlgmr.msra.gmra.mrb[16].mxu0 %v3172_v57  ;;  %v4064_v57 = vld [vmem:[%s4183_s17 + $0x6e8] sm:$0xff]  }
  0xb4   : > { %2788 = vmatmul.mubr.bf16.vlgmr.msra.gmra.mrb[16].mxu1 %v3174_v60  ;;  %3671 = vmatpush3.bf16.msra.mxu0 %v4009_v0  ;;  %v4067_v60 = vld [vmem:[%s4183_s17 + $0x670] sm:$0xff]   ;;  %v4071_v0 = vld [vmem:[%s4183_s17 + $0x678] sm:$0xff]  }
  0xb5   : > { %3693 = vmatpush3.bf16.msra.mxu1 %v4010_v1  ;;  %3672 = vmatprep.subr.bf16.mxu0 %v4011_v2  ;;  %v4072_v1 = vld [vmem:[%s4183_s17 + $0x6f8] sm:$0xff]  }
  0xb6   : > { %3694 = vmatprep.subr.bf16.mxu1 %v4012_v3  ;;  %2827 = vmatprep.mubr.bf16.mxu0 %v3177_v33  ;;  %v4073_v2 = vld [vmem:[%s4183_s17 + $0x638] sm:$0xff]   ;;  %v4099_v33 = vld [vmem:[%s4183_s17 + $0x768] sm:$0xff]  }
  0xb7   : > { %2867 = vmatprep.mubr.bf16.mxu1 %v3179_v35  ;;  %v4074_v3 = vld [vmem:[%s4183_s17 + $0x6b8] sm:$0xff]  }
  0xb8   : > { %3673 = vmatpush3.bf16.msra.mxu0 %v4013_v4  ;;  %v231_v4 = vld [vmem:[%s4219_s22 + $0x60] sm:$0xff] }
  0xb9   : > { %3695 = vmatpush3.bf16.msra.mxu1 %v4014_v5  ;;  %3674 = vmatprep.subr.bf16.mxu0 %v4015_v6  ;;  %v232_v5 = vld [vmem:[%s4219_s22 + $0x68] sm:$0xff]  ;;  %v3180_v6 = vcombine.low %v231_v4, %v231_v4 }
  0xba   : > { %3696 = vmatprep.subr.bf16.mxu1 %v4016_v7  ;;  %v3181_v7 = vcombine.high %v231_v4, %v231_v4 }
  0xbc   : > { %3675 = vmatpush3.bf16.msra.mxu0 %v4017_v8  ;;  %v3182_v8 = vcombine.low %v232_v5, %v232_v5 }
  0xbd   : > { %3697 = vmatpush3.bf16.msra.mxu1 %v4018_v9  ;;  %3676 = vmatprep.subr.bf16.mxu0 %v4019_v10  ;;  %v4079_v9 = vld [vmem:[%s4183_s17 + $0x740] sm:$0xff]   ;;  %v3183_v10 = vcombine.high %v232_v5, %v232_v5 }
  0xbe   : > { %3698 = vmatprep.subr.bf16.mxu1 %v4020_v11  ;;  %v4080_v11 = vld [vmem:[%s4183_s17 + $0x7c0] sm:$0xff]  }
  0xc0   : > { %3677 = vmatpush3.bf16.msra.mxu0 %v4021_v12  ;;  %v4081_v12 = vld [vmem:[%s4183_s17 + $0x700] sm:$0xff]  }
  0xc1   : > { %3699 = vmatpush3.bf16.msra.mxu1 %v4022_v13  ;;  %3678 = vmatprep.subr.bf16.mxu0 %v4023_v14  ;;  %v4082_v13 = vld [vmem:[%s4183_s17 + $0x780] sm:$0xff]   ;;  %v4083_v14 = vld [vmem:[%s4183_s17 + $0x748] sm:$0xff]  }
  0xc2   : > { %3700 = vmatprep.subr.bf16.mxu1 %v4024_v15  ;;  %v4084_v15 = vld [vmem:[%s4183_s17 + $0x7c8] sm:$0xff]  }
  0xc4   : > { %3679 = vmatpush3.bf16.msra.mxu0 %v4025_v16  ;;  %v4085_v16 = vld [vmem:[%s4183_s17 + $0x708] sm:$0xff]  }
  0xc5   : > { %3701 = vmatpush3.bf16.msra.mxu1 %v4026_v17  ;;  %3680 = vmatprep.subr.bf16.mxu0 %v4027_v18  ;;  %v4086_v17 = vld [vmem:[%s4183_s17 + $0x788] sm:$0xff]   ;;  %v4087_v18 = vld [vmem:[%s4183_s17 + $0x750] sm:$0xff]  }
  0xc6   : > { %3702 = vmatprep.subr.bf16.mxu1 %v4028_v19  ;;  %v4088_v19 = vld [vmem:[%s4183_s17 + $0x7d0] sm:$0xff]  }
  0xc8   : > { %3681 = vmatpush3.bf16.msra.mxu0 %v4029_v20  ;;  %v4089_v20 = vld [vmem:[%s4183_s17 + $0x710] sm:$0xff]  }
  0xc9   : > { %3703 = vmatpush3.bf16.msra.mxu1 %v4030_v21  ;;  %3682 = vmatprep.subr.bf16.mxu0 %v4031_v22  ;;  %v4090_v21 = vld [vmem:[%s4183_s17 + $0x790] sm:$0xff]   ;;  %v4091_v22 = vld [vmem:[%s4183_s17 + $0x758] sm:$0xff]  }
  0xca   : > { %3704 = vmatprep.subr.bf16.mxu1 %v4032_v23  ;;  %v4092_v23 = vld [vmem:[%s4183_s17 + $0x7d8] sm:$0xff]  }
  0xcc   : > { %3683 = vmatpush3.bf16.msra.mxu0 %v4033_v24  ;;  %v4093_v24 = vld [vmem:[%s4183_s17 + $0x718] sm:$0xff]  }
  0xcd   : > { %3705 = vmatpush3.bf16.msra.mxu1 %v4034_v25  ;;  %3684 = vmatprep.subr.bf16.mxu0 %v4035_v26  ;;  %v4094_v25 = vld [vmem:[%s4183_s17 + $0x798] sm:$0xff]   ;;  %v4095_v26 = vld [vmem:[%s4183_s17 + $0x760] sm:$0xff]  }
  0xce   : > { %3706 = vmatprep.subr.bf16.mxu1 %v4036_v27  ;;  %v4096_v27 = vld [vmem:[%s4183_s17 + $0x7e0] sm:$0xff]  }
  0xd0   : > { %3685 = vmatpush3.bf16.msra.mxu0 %v4037_v28  ;;  %v4097_v28 = vld [vmem:[%s4183_s17 + $0x720] sm:$0xff]  }
  0xd1   : > { %3707 = vmatpush3.bf16.msra.mxu1 %v4038_v29  ;;  %3714 = vmatprep.subr.bf16.mxu0 %v4043_v36  ;;  %v4100_v36 = vld [vmem:[%s4183_s17 + $0x7e8] sm:$0xff]  }
  0xd2   : > { %3736 = vmatprep.subr.bf16.mxu1 %v4044_v37 }
  0xd3   : > { %2828 = vmatmul.mubr.bf16.vlgmr.msra.gmra.mrb[20].mxu0 %v3176_v32 }
  0xd4   : > { %2868 = vmatmul.mubr.bf16.vlgmr.msra.gmra.mrb[20].mxu1 %v3178_v34  ;;  %3715 = vmatpush3.bf16.msra.mxu0 %v4045_v38 }
  0xd5   : > { %3737 = vmatpush3.bf16.msra.mxu1 %v4046_v39  ;;  %3716 = vmatprep.subr.bf16.mxu0 %v4047_v40  ;;  %v4101_v40 = vld [vmem:[%s4183_s17 + $0x728] sm:$0xff]  }
  0xd6   : > { %3738 = vmatprep.subr.bf16.mxu1 %v4048_v41  ;;  %2907 = vmatprep.mubr.bf16.mxu0 %v3181_v7 }
  0xd7   : > { %2947 = vmatprep.mubr.bf16.mxu1 %v3183_v10 }
  0xd8   : > { %3717 = vmatpush3.bf16.msra.mxu0 %v4049_v42 }
  0xd9   : > { %3739 = vmatpush3.bf16.msra.mxu1 %v4050_v43  ;;  %3718 = vmatprep.subr.bf16.mxu0 %v4051_v44  ;;  %v4102_v43 = vld [vmem:[%s4183_s17 + $0x7a8] sm:$0xff]  }
  0xda   : > { %3740 = vmatprep.subr.bf16.mxu1 %v4052_v45  ;;  %v4103_v45 = vld [vmem:[%s4183_s17 + $0x770] sm:$0xff]  }
  0xdc   : > { %3719 = vmatpush3.bf16.msra.mxu0 %v4053_v46  ;;  %v4104_v46 = vld [vmem:[%s4183_s17 + $0x7f0] sm:$0xff]  }
  0xdd   : > { %3741 = vmatpush3.bf16.msra.mxu1 %v4054_v47  ;;  %3720 = vmatprep.subr.bf16.mxu0 %v4055_v48  ;;  %v4105_v47 = vld [vmem:[%s4183_s17 + $0x730] sm:$0xff]  }
  0xde   : > { %3742 = vmatprep.subr.bf16.mxu1 %v4056_v49  ;;  %v4106_v48 = vld [vmem:[%s4183_s17 + $0x7b0] sm:$0xff]   ;;  %v4107_v49 = vld [vmem:[%s4183_s17 + $0x778] sm:$0xff]  }
  0xe0   : > { %3721 = vmatpush3.bf16.msra.mxu0 %v4057_v50  ;;  %v4108_v50 = vld [vmem:[%s4183_s17 + $0x7f8] sm:$0xff]  }
  0xe1   : > { %3743 = vmatpush3.bf16.msra.mxu1 %v4058_v51  ;;  %3722 = vmatprep.subr.bf16.mxu0 %v4059_v52  ;;  %v4109_v51 = vld [vmem:[%s4183_s17 + $0x738] sm:$0xff]  }
  0xe2   : > { %3744 = vmatprep.subr.bf16.mxu1 %v4060_v53  ;;  %v4110_v52 = vld [vmem:[%s4183_s17 + $0x7b8] sm:$0xff]   ;;  %v233_v53 = vld [vmem:[%s4219_s22 + $0x70] sm:$0xff] }
  0xe4   : > { %3723 = vmatpush3.bf16.msra.mxu0 %v4061_v54  ;;  %v234_v54 = vld [vmem:[%s4219_s22 + $0x78] sm:$0xff] }
  0xe5   : > { %3745 = vmatpush3.bf16.msra.mxu1 %v4062_v55  ;;  %3724 = vmatprep.subr.bf16.mxu0 %v4063_v56  ;;  %v3184_v55 = vcombine.low %v233_v53, %v233_v53  ;;  %v3185_v56 = vcombine.high %v233_v53, %v233_v53 }
  0xe6   : > { %3746 = vmatprep.subr.bf16.mxu1 %v4064_v57  ;;  %v3186_v57 = vcombine.low %v234_v54, %v234_v54 }
  0xe8   : > { %3725 = vmatpush3.bf16.msra.mxu0 %v4065_v58  ;;  %v3187_v58 = vcombine.high %v234_v54, %v234_v54 }
  0xe9   : > { %3747 = vmatpush3.bf16.msra.mxu1 %v4066_v59  ;;  %3726 = vmatprep.subr.bf16.mxu0 %v4067_v60 }
  0xea   : > { %3748 = vmatprep.subr.bf16.mxu1 %v4068_v61 }
  0xec   : > { %3727 = vmatpush3.bf16.msra.mxu0 %v4069_v62 }
  0xed   : > { %3749 = vmatpush3.bf16.msra.mxu1 %v4070_v63  ;;  %3728 = vmatprep.subr.bf16.mxu0 %v4071_v0 }
  0xee   : > { %3750 = vmatprep.subr.bf16.mxu1 %v4072_v1 }
  0xf0   : > { %3729 = vmatpush3.bf16.msra.mxu0 %v4073_v2 }
  0xf1   : > { %3751 = vmatpush3.bf16.msra.mxu1 %v4074_v3  ;;  %3758 = vmatprep.subr.bf16.mxu0 %v4079_v9 }
  0xf2   : > { %3780 = vmatprep.subr.bf16.mxu1 %v4080_v11 }
  0xf3   : > { %2908 = vmatmul.mubr.bf16.vlgmr.msra.gmra.mrb[24].mxu0 %v3180_v6 }
  0xf4   : > { %2948 = vmatmul.mubr.bf16.vlgmr.msra.gmra.mrb[24].mxu1 %v3182_v8  ;;  %3759 = vmatpush3.bf16.msra.mxu0 %v4081_v12 }
  0xf5   : > { %3781 = vmatpush3.bf16.msra.mxu1 %v4082_v13  ;;  %3760 = vmatprep.subr.bf16.mxu0 %v4083_v14 }
  0xf6   : > { %3782 = vmatprep.subr.bf16.mxu1 %v4084_v15  ;;  %2987 = vmatprep.mubr.bf16.mxu0 %v3185_v56 }
  0xf7   : > { %3027 = vmatprep.mubr.bf16.mxu1 %v3187_v58 }
  0xf8   : > { %3761 = vmatpush3.bf16.msra.mxu0 %v4085_v16 }
  0xf9   : > { %3783 = vmatpush3.bf16.msra.mxu1 %v4086_v17  ;;  %3762 = vmatprep.subr.bf16.mxu0 %v4087_v18 }
  0xfa   : > { %3784 = vmatprep.subr.bf16.mxu1 %v4088_v19 }
  0xfc   : > { %3763 = vmatpush3.bf16.msra.mxu0 %v4089_v20 }
  0xfd   : > { %3785 = vmatpush3.bf16.msra.mxu1 %v4090_v21  ;;  %3764 = vmatprep.subr.bf16.mxu0 %v4091_v22 }
  0xfe   : > { %3786 = vmatprep.subr.bf16.mxu1 %v4092_v23 }
 0x100   : > { %3765 = vmatpush3.bf16.msra.mxu0 %v4093_v24 }
 0x101   : > { %3787 = vmatpush3.bf16.msra.mxu1 %v4094_v25  ;;  %3766 = vmatprep.subr.bf16.mxu0 %v4095_v26 }
 0x102   : > { %3788 = vmatprep.subr.bf16.mxu1 %v4096_v27 }
 0x104   : > { %3767 = vmatpush3.bf16.msra.mxu0 %v4097_v28 }
 0x105   : > { %3789 = vmatpush3.bf16.msra.mxu1 %v4098_v30  ;;  %3768 = vmatprep.subr.bf16.mxu0 %v4099_v33 }
 0x106   : > { %v3466_v29 = vpop.f32.mrb[0].mxu0  ;;  %3790 = vmatprep.subr.bf16.mxu1 %v4100_v36 }
 0x107   : > { %v3488_v31 = vpop.f32.mrb[0].mxu1  ;;  %v3467_v32 = vpop.f32.mrb[1].mxu0 }
 0x108   : > { %v3468_v34 = vadd.f32 %v3467_v32, %v3466_v29  ;;  %v3489_v35 = vpop.f32.mrb[1].mxu1  ;;  %v3469_v38 = vpop.f32.mrb[2].mxu0  ;;  %3769 = vmatpush3.bf16.msra.mxu0 %v4101_v40 }
 0x109   : > { %v3490_v37 = vadd.f32 %v3489_v35, %v3488_v31  ;;  %v3491_v39 = vpop.f32.mrb[2].mxu1  ;;  %v3470_v41 = vpop.f32.mrb[3].mxu0  ;;  %3791 = vmatpush3.bf16.msra.mxu1 %v4102_v43  ;;  %3770 = vmatprep.subr.bf16.mxu0 %v4103_v45 }
 0x10a   : > { %v3492_v44 = vpop.f32.mrb[3].mxu1  ;;  %3792 = vmatprep.subr.bf16.mxu1 %v4104_v46 }
 0x10b   : > { %v2470_v42 = vadd.f32 %v3490_v37, %v3468_v34 }
 0x10c   : > { %3771 = vmatpush3.bf16.msra.mxu0 %v4105_v47 }
 0x10d   : > { %3793 = vmatpush3.bf16.msra.mxu1 %v4106_v48  ;;  %3772 = vmatprep.subr.bf16.mxu0 %v4107_v49 }
 0x10e   : > { %3794 = vmatprep.subr.bf16.mxu1 %v4108_v50 }
 0x110   : > { %3773 = vmatpush3.bf16.msra.mxu0 %v4109_v51 }
 0x111   : > { %3795 = vmatpush3.bf16.msra.mxu1 %v4110_v52 }
 0x113   : > { %2988 = vmatmul.mubr.bf16.vlgmr.msra.gmra.mrb[28].mxu0 %v3184_v55 }
 0x114   : > { %3028 = vmatmul.mubr.bf16.vlgmr.msra.gmra.mrb[28].mxu1 %v3186_v57 }
 0x126   : > { %v3510_v59 = vpop.f32.mrb[4].mxu0 }
 0x127   : > { %v3532_v60 = vpop.f32.mrb[4].mxu1  ;;  %v3511_v61 = vpop.f32.mrb[5].mxu0 }
 0x128   : > { %v3533_v62 = vpop.f32.mrb[5].mxu1  ;;  %v3512_v63 = vadd.f32 %v3511_v61, %v3510_v59  ;;  %v3513_v1 = vpop.f32.mrb[6].mxu0 }
 0x129   : > { %v3534_v0 = vadd.f32 %v3533_v62, %v3532_v60  ;;  %v3535_v2 = vpop.f32.mrb[6].mxu1  ;;  %v3514_v3 = vpop.f32.mrb[7].mxu0 }
 0x12a   : > { %v3536_v4 = vpop.f32.mrb[7].mxu1  ;;  %v2510_v5 = vadd.f32 %v3512_v63, %v2470_v42 }
 0x12c   : > { %v2550_v6 = vadd.f32 %v3534_v0, %v2510_v5 }
 0x146   : > { %v3554_v7 = vpop.f32.mrb[8].mxu0 }
 0x147   : > { %v3576_v8 = vpop.f32.mrb[8].mxu1  ;;  %v3555_v9 = vpop.f32.mrb[9].mxu0 }
 0x148   : > { %v3556_v10 = vadd.f32 %v3555_v9, %v3554_v7  ;;  %v3577_v11 = vpop.f32.mrb[9].mxu1  ;;  %v3557_v12 = vpop.f32.mrb[10].mxu0 }
 0x149   : > { %v3578_v13 = vadd.f32 %v3577_v11, %v3576_v8  ;;  %v3579_v14 = vpop.f32.mrb[10].mxu1  ;;  %v3558_v15 = vpop.f32.mrb[11].mxu0 }
 0x14a   : > { %v2590_v16 = vadd.f32 %v3556_v10, %v2550_v6  ;;  %v3580_v17 = vpop.f32.mrb[11].mxu1  ;;  %v4143_v15 = vmov (!%p3444_p6), 0.0  }
 0x14b   : > { %3039 = vst [vmem:[#allocation2] sm:$0xff] (!%p3444_p6), %v4143_v15 }
 0x14c   : > { %v2630_v18 = vadd.f32 %v3578_v13, %v2590_v16 }
 0x166   : > { %v3598_v19 = vpop.f32.mrb[12].mxu0 }
 0x167   : > { %v3620_v20 = vpop.f32.mrb[12].mxu1  ;;  %v3599_v21 = vpop.f32.mrb[13].mxu0 }
 0x168   : > { %v3600_v22 = vadd.f32 %v3599_v21, %v3598_v19  ;;  %v3621_v23 = vpop.f32.mrb[13].mxu1  ;;  %v3601_v24 = vpop.f32.mrb[14].mxu0 }
 0x169   : > { %v3622_v25 = vadd.f32 %v3621_v23, %v3620_v20  ;;  %v3623_v26 = vpop.f32.mrb[14].mxu1  ;;  %v3602_v27 = vpop.f32.mrb[15].mxu0 }
 0x16a   : > { %v2670_v28 = vadd.f32 %v3600_v22, %v2630_v18  ;;  %v3624_v29 = vpop.f32.mrb[15].mxu1 }
 0x16c   : > { %v2710_v30 = vadd.f32 %v3622_v25, %v2670_v28 }
 0x186   : > { %v3642_v31 = vpop.f32.mrb[16].mxu0 }
 0x187   : > { %v3664_v32 = vpop.f32.mrb[16].mxu1  ;;  %v3643_v33 = vpop.f32.mrb[17].mxu0 }
 0x188   : > { %v3665_v34 = vpop.f32.mrb[17].mxu1  ;;  %v3644_v35 = vadd.f32 %v3643_v33, %v3642_v31  ;;  %v3645_v37 = vpop.f32.mrb[18].mxu0 }
 0x189   : > { %v3666_v36 = vadd.f32 %v3665_v34, %v3664_v32  ;;  %v3667_v38 = vpop.f32.mrb[18].mxu1  ;;  %v3646_v39 = vpop.f32.mrb[19].mxu0 }
 0x18a   : > { %v3668_v40 = vpop.f32.mrb[19].mxu1  ;;  %v2750_v41 = vadd.f32 %v3644_v35, %v2710_v30 }
 0x18c   : > { %v2790_v42 = vadd.f32 %v3666_v36, %v2750_v41 }
 0x1a6   : > { %v3686_v43 = vpop.f32.mrb[20].mxu0 }
 0x1a7   : > { %v3708_v44 = vpop.f32.mrb[20].mxu1  ;;  %v3687_v45 = vpop.f32.mrb[21].mxu0 }
 0x1a8   : > { %v3688_v46 = vadd.f32 %v3687_v45, %v3686_v43  ;;  %v3709_v47 = vpop.f32.mrb[21].mxu1  ;;  %v3689_v48 = vpop.f32.mrb[22].mxu0 }
 0x1a9   : > { %v3710_v49 = vadd.f32 %v3709_v47, %v3708_v44  ;;  %v3711_v50 = vpop.f32.mrb[22].mxu1  ;;  %v3690_v51 = vpop.f32.mrb[23].mxu0 }
 0x1aa   : > { %v2830_v52 = vadd.f32 %v3688_v46, %v2790_v42  ;;  %v3712_v53 = vpop.f32.mrb[23].mxu1 }
 0x1ac   : > { %v2870_v54 = vadd.f32 %v3710_v49, %v2830_v52 }
 0x1c6   : > { %v3730_v55 = vpop.f32.mrb[24].mxu0 }
 0x1c7   : > { %v3752_v56 = vpop.f32.mrb[24].mxu1  ;;  %v3731_v57 = vpop.f32.mrb[25].mxu0 }
 0x1c8   : > { %v3732_v58 = vadd.f32 %v3731_v57, %v3730_v55  ;;  %v3753_v59 = vpop.f32.mrb[25].mxu1  ;;  %v3733_v60 = vpop.f32.mrb[26].mxu0 }
 0x1c9   : > { %v3754_v61 = vadd.f32 %v3753_v59, %v3752_v56  ;;  %v3755_v62 = vpop.f32.mrb[26].mxu1  ;;  %v3734_v63 = vpop.f32.mrb[27].mxu0 }
 0x1ca   : > { %v2910_v0 = vadd.f32 %v3732_v58, %v2870_v54  ;;  %v3756_v1 = vpop.f32.mrb[27].mxu1 }
 0x1cc   : > { %v2950_v2 = vadd.f32 %v3754_v61, %v2910_v0 }
 0x1e6   : > { %v3774_v3 = vpop.f32.mrb[28].mxu0  ;;  %3038 = sbr.rel (%p3444_p6) target bundleno = 493 (0x1ed), region = 32 }
 0x1e7   : > { %v3796_v4 = vpop.f32.mrb[28].mxu1  ;;  %v3775_v5 = vpop.f32.mrb[29].mxu0 }
 0x1e8   : > { %v3776_v6 = vadd.f32 %v3775_v5, %v3774_v3  ;;  %v3797_v7 = vpop.f32.mrb[29].mxu1  ;;  %v3777_v8 = vpop.f32.mrb[30].mxu0 }
 0x1e9   : > { %v3798_v9 = vadd.f32 %v3797_v7, %v3796_v4  ;;  %v3799_v10 = vpop.f32.mrb[30].mxu1  ;;  %v3778_v11 = vpop.f32.mrb[31].mxu0 }
 0x1ea   : > { %v2990_v12 = vadd.f32 %v3776_v6, %v2950_v2  ;;  %v3800_v13 = vpop.f32.mrb[31].mxu1 }
 0x1ec   : > { %v3030_v14 = vadd.f32 %v3798_v9, %v2990_v12 }
 0x1ed PF: > { %v3040_v16 = vld [vmem:[#allocation2] sm:$0xff]  ;;  %p3445_p7 = scmp.ne.s32.totalorder %s4133_s9, 1 }
 0x1ee   : > { %v3041_v17 = vadd.f32 %v3040_v16, %v3030_v14 }
 0x1ef   : > { %3046 = sbr.rel (%p3445_p7) target bundleno = 531 (0x213), region = 36 }
 0x1f0   : > { %3042 = vst [vmem:[#allocation2] sm:$0xff] %v3041_v17 }
 0x1f7   : > { %v3047_v18 = vld [vmem:[#allocation2] sm:$0xff] }
 0x1f8   : > { %v3446_v19 = vmul.f32 -1.442695, %v3047_v18 }
 0x1fa   : > { %4115 = vpow2.f32 %v3446_v19 }
 0x204   : > { %v4116_v20 = vpop.eup %4115 }
 0x205   : > { %v3051_v21 = vadd.f32 1.0, %v4116_v20 }
 0x207   : > { %4117 = vrcp.f32 %v3051_v21 }
 0x211   : > { %v4118_v22 = vpop.eup %4117 }
 0x212   : > { %3054 = vst [vmem:[%s4479_s2] sm:$0xff] %v4118_v22 }
 0x213 PF: > { %s12_s11 = sadd.s32 1, %s4141_s11   ;;  %s4480_s9 = smov %s4137_s10 }
 0x214   : > { %p9_p8 = scmp.ge.s32.totalorder %s12_s11, 4   ;;  %s4481_s10 = smov %s4483_s12 }
 0x216   :  { %11 = sbr.rel (!%p9_p8) target bundleno = 2 (0x2), region = 69 }

</bundles_post_ra>
